<compile_context>
chip_gen: v5e
topology: v5e:2x2
jax: 0.10.0
libtpu: 0.0.40
codegen_flags: <defaults>
</compile_context>

<pallas_src>
import functools

import jax
import jax.numpy as jnp
from jax.experimental import pallas as pl
from jax.experimental.pallas import tpu as pltpu


LANE = 128     # MXU / lane width
TB = 8         # images per grid step (batch tile)
C1P = 8        # stored conv1 output channels (6 real + 2 zero pad)
K1P = 128      # conv1 patch K: 5*5*3 = 75  -> 128
K2P = 256      # conv2 patch K: 5*5*8 = 200 -> 256


def _pad_to(n, m):
    return ((n + m - 1) // m) * m


def _pick_chunk(m, cap=512):
    """Largest multiple-of-8 divisor of m that is <= cap (else m)."""
    best = m
    for c in range(8, min(m, cap) + 1, 8):
        if m % c == 0:
            best = c
    return best


# ----------------------------- Pallas kernels ------------------------------


def _conv_pool_kernel(p_ref, w_ref, b_ref, o_ref, *, row_chunk):
    """Fused conv-as-matmul + bias + ReLU + 2x2 max-pool.

    p_ref: (1, 4, M, K) bf16 patches, one slab per pool-window position.
    w_ref: (K, 128) bf16.  b_ref: (1, 128) f32.  o_ref: (1, M, Cout) bf16.
    Pool is the elementwise max over the 4 slabs' f32 accumulators.
    """
    m_total = p_ref.shape[2]
    cout = o_ref.shape[-1]
    for r0 in range(0, m_total, row_chunk):
        acc = jnp.dot(p_ref[0, 0, r0:r0 + row_chunk, :], w_ref[...],
                      preferred_element_type=jnp.float32)
        for q in range(1, 4):
            acc = jnp.maximum(
                acc,
                jnp.dot(p_ref[0, q, r0:r0 + row_chunk, :], w_ref[...],
                        preferred_element_type=jnp.float32))
        out = jnp.maximum(acc + b_ref[...], 0.0)
        o_ref[0, r0:r0 + row_chunk, :] = out[:, :cout].astype(o_ref.dtype)


def _conv_pool_fc_kernel(p_ref, w_ref, b_ref,
                         w1_ref, b1_ref, w2_ref, b2_ref, w3_ref, b3_ref,
                         o_ref, *, tb):
    """Fused conv2 + bias + ReLU + 2x2 pool + fc1 + fc2 + fc3.

    p_ref: (1, 4, 25*tb, 256) bf16 patches, rows ordered (pool position p, image t).
    w1_ref: (25*128, 128) bf16 with fc1 weight block for pool position p at rows
    [p*128, (p+1)*128).  o_ref: (tb, 128) f32 logits (lanes 0..9 valid).
    """
    # conv2 as 4 matmuls + max (pool) + bias + relu, all on the f32 accumulator.
    acc = jnp.dot(p_ref[0, 0], w_ref[...], preferred_element_type=jnp.float32)
    for q in range(1, 4):
        acc = jnp.maximum(
            acc, jnp.dot(p_ref[0, q], w_ref[...],
                         preferred_element_type=jnp.float32))
    act = jnp.maximum(acc + b_ref[...], 0.0)                  # (25*tb, 128) f32

    # fc1: h[t, n] = sum_p act[p*tb + t, :] @ W1_p   (25 sublane-aligned matmuls)
    n_pos = act.shape[0] // tb
    h = jnp.zeros((tb, LANE), jnp.float32)
    for p in range(n_pos):
        lhs = act[p * tb:(p + 1) * tb, :].astype(jnp.bfloat16)
        h = h + jnp.dot(lhs, w1_ref[p * LANE:(p + 1) * LANE, :],
                        preferred_element_type=jnp.float32)
    h = jnp.maximum(h + b1_ref[...], 0.0).astype(jnp.bfloat16)

    h = jnp.dot(h, w2_ref[...], preferred_element_type=jnp.float32)
    h = jnp.maximum(h + b2_ref[...], 0.0).astype(jnp.bfloat16)

    h = jnp.dot(h, w3_ref[...], preferred_element_type=jnp.float32)
    o_ref[...] = h + b3_ref[...]


# ------------------------------ kernel wrappers -----------------------------


def conv1_pool_call(p, prep):
    """p: (nblk, 4, TB*196, 128) bf16 -> (nblk, TB*196, 8) bf16 pooled conv1."""
    nblk, nq, rows, kp = p.shape
    kern = functools.partial(_conv_pool_kernel, row_chunk=_pick_chunk(rows))
    return pl.pallas_call(
        kern,
        out_shape=jax.ShapeDtypeStruct((nblk, rows, C1P), jnp.bfloat16),
        grid=(nblk,),
        in_specs=[
            pl.BlockSpec((1, nq, rows, kp), lambda i: (i, 0, 0, 0)),
            pl.BlockSpec((kp, LANE), lambda i: (0, 0)),
            pl.BlockSpec((1, LANE), lambda i: (0, 0)),
        ],
        out_specs=pl.BlockSpec((1, rows, C1P), lambda i: (i, 0, 0)),
        compiler_params=pltpu.CompilerParams(dimension_semantics=("parallel",)),
    )(p, prep["conv1_w"], prep["conv1_b"])


def conv2_fc_call(p, prep, bp):
    """p: (nblk, 4, 25*TB, 256) bf16 -> (bp, 128) f32 logits (lanes 0..9 valid)."""
    nblk, nq, rows, kp = p.shape
    kern = functools.partial(_conv_pool_fc_kernel, tb=TB)
    return pl.pallas_call(
        kern,
        out_shape=jax.ShapeDtypeStruct((bp, LANE), jnp.float32),
        grid=(nblk,),
        in_specs=[
            pl.BlockSpec((1, nq, rows, kp), lambda i: (i, 0, 0, 0)),
            pl.BlockSpec((kp, LANE), lambda i: (0, 0)),
            pl.BlockSpec((1, LANE), lambda i: (0, 0)),
            pl.BlockSpec((25 * LANE, LANE), lambda i: (0, 0)),
            pl.BlockSpec((1, LANE), lambda i: (0, 0)),
            pl.BlockSpec((LANE, LANE), lambda i: (0, 0)),
            pl.BlockSpec((1, LANE), lambda i: (0, 0)),
            pl.BlockSpec((LANE, LANE), lambda i: (0, 0)),
            pl.BlockSpec((1, LANE), lambda i: (0, 0)),
        ],
        out_specs=pl.BlockSpec((TB, LANE), lambda i: (i, 0)),
        compiler_params=pltpu.CompilerParams(dimension_semantics=("parallel",)),
    )(p, prep["conv2_w"], prep["conv2_b"], prep["fc1_w"], prep["fc1_b"],
      prep["fc2_w"], prep["fc2_b"], prep["fc3_w"], prep["fc3_b"])


# ----------------------- pool-ordered im2col (XLA glue) ----------------------
# TODO(synk): move this patch construction inside the conv kernels (in-kernel
# im2col from a VMEM-resident image tile) to kill the patch HBM round-trip.


def _pooled_patches(x, k, kpad, tb, pt_order):
    """x: (B, H, W, C) bf16 -> (B//tb, 4, rows, kpad) bf16 patches.

    Slab q = 2*i + j holds the im2col rows of the conv outputs at positions
    (2*ph + i, 2*pw + j), i.e. the 4 members of each 2x2 pool window, so the
    pool becomes an elementwise max of 4 matmul accumulators in the kernel.
    Row order inside a batch tile: (t, p) if pt_order=False else (p, t).
    """
    b, h, w, c = x.shape
    ph, pw = (h - k + 1) // 2, (w - k + 1) // 2
    m = ph * pw
    nblk = b // tb
    slabs = []
    for i in range(2):
        for j in range(2):
            cols = []
            for kh in range(k):
                for kw in range(k):
                    cols.append(x[:, i + kh: i + kh + 2 * ph: 2,
                                  j + kw: j + kw + 2 * pw: 2, :])
            s = jnp.stack(cols, axis=3).reshape(b, m, k * k * c)
            s = jnp.pad(s, ((0, 0), (0, 0), (0, kpad - k * k * c)))
            if pt_order:
                s = s.reshape(nblk, tb, m, kpad).transpose(0, 2, 1, 3)
                s = s.reshape(nblk, m * tb, kpad)
            else:
                s = s.reshape(nblk, tb * m, kpad)
            slabs.append(s.astype(jnp.bfloat16))
    return jnp.stack(slabs, axis=1)


# ------------------------------ model wrapper -------------------------------


def init_params(key):
    """Deterministic init matching the PyTorch module's parameter shapes."""
    ks = jax.random.split(key, 10)

    def u(k, shape, fan_in):
        bound = 1.0 / float(fan_in) ** 0.5
        return jax.random.uniform(k, shape, jnp.float32, -bound, bound)

    return {
        "conv1_w": u(ks[0], (6, 3, 5, 5), 3 * 5 * 5),
        "conv1_b": u(ks[1], (6,), 3 * 5 * 5),
        "conv2_w": u(ks[2], (16, 6, 5, 5), 6 * 5 * 5),
        "conv2_b": u(ks[3], (16,), 6 * 5 * 5),
        "fc1_w": u(ks[4], (120, 16 * 5 * 5), 16 * 5 * 5),
        "fc1_b": u(ks[5], (120,), 16 * 5 * 5),
        "fc2_w": u(ks[6], (84, 120), 120),
        "fc2_b": u(ks[7], (84,), 120),
        "fc3_w": u(ks[8], (10, 84), 84),
        "fc3_b": u(ks[9], (10,), 84),
    }


def prepare_params(params):
    """One-time transpose/pad/cast of PyTorch-layout params for the kernels."""
    def bias(b, n=LANE):
        return jnp.pad(b, (0, n - b.shape[0])).reshape(1, n).astype(jnp.float32)

    # conv1: OIHW -> (KH,KW,Cin,Cout) -> (75,6) -> pad to (128,128).
    c1 = jnp.transpose(params["conv1_w"], (2, 3, 1, 0)).reshape(75, 6)
    c1 = jnp.pad(c1, ((0, K1P - 75), (0, LANE - 6))).astype(jnp.bfloat16)

    # conv2: OIHW -> (KH,KW,Cin,Cout), pad Cin 6->8 (matches the 8-channel
    # conv1 output layout), flatten to (200,16), pad to (256,128).
    c2 = jnp.transpose(params["conv2_w"], (2, 3, 1, 0))
    c2 = jnp.pad(c2, ((0, 0), (0, 0), (0, C1P - 6), (0, 0))).reshape(200, 16)
    c2 = jnp.pad(c2, ((0, K2P - 200), (0, LANE - 16))).astype(jnp.bfloat16)

    # fc1: PyTorch input index = c*25 + (ph*5+pw).  Re-lay as (p, c, n) blocks of
    # 128x128 per pool position p so the kernel can slice rows [p*128,(p+1)*128).
    f1 = params["fc1_w"].reshape(120, 16, 25)          # [n, c, p]
    f1 = jnp.transpose(f1, (2, 1, 0))                  # [p, c, n]
    f1 = jnp.pad(f1, ((0, 0), (0, LANE - 16), (0, LANE - 120)))
    f1 = f1.reshape(25 * LANE, LANE).astype(jnp.bfloat16)

    f2 = jnp.pad(params["fc2_w"].T, ((0, LANE - 120), (0, LANE - 84)))
    f3 = jnp.pad(params["fc3_w"].T, ((0, LANE - 84), (0, LANE - 10)))

    return {
        "conv1_w": c1, "conv1_b": bias(params["conv1_b"]),
        "conv2_w": c2, "conv2_b": bias(params["conv2_b"]),
        "fc1_w": f1, "fc1_b": bias(params["fc1_b"]),
        "fc2_w": f2.astype(jnp.bfloat16), "fc2_b": bias(params["fc2_b"]),
        "fc3_w": f3.astype(jnp.bfloat16), "fc3_b": bias(params["fc3_b"]),
    }


def net_forward(prep, x_nchw):
    b = x_nchw.shape[0]
    bp = _pad_to(max(b, TB), TB)
    x = jnp.transpose(x_nchw, (0, 2, 3, 1)).astype(jnp.bfloat16)   # (B,32,32,3)
    if bp != b:
        x = jnp.pad(x, ((0, bp - b), (0, 0), (0, 0), (0, 0)))

    # conv1 + relu + 2x2 pool (fused): patches (nblk,4,TB*196,128) -> (nblk,TB*196,8)
    p1 = _pooled_patches(x, k=5, kpad=K1P, tb=TB, pt_order=False)
    y1 = conv1_pool_call(p1, prep)
    y1 = y1.reshape(bp, 14, 14, C1P)

    # conv2 + relu + pool + fc1 + fc2 + fc3 (fused): rows ordered (p, t) per tile.
    p2 = _pooled_patches(y1, k=5, kpad=K2P, tb=TB, pt_order=True)
    logits = conv2_fc_call(p2, prep, bp)                           # (bp,128) f32
    return logits[:b, :10]


# ------------------------------ pure-JAX reference ---------------------------


def reference_forward(params, x_nchw):
    dn = ("NCHW", "OIHW", "NCHW")
    y = jax.lax.conv_general_dilated(x_nchw.astype(jnp.float32),
                                     params["conv1_w"], (1, 1), "VALID",
                                     dimension_numbers=dn)
    y = jax.nn.relu(y + params["conv1_b"][None, :, None, None])
    y = jax.lax.reduce_window(y, -jnp.inf, jax.lax.max,
                              (1, 1, 2, 2), (1, 1, 2, 2), "VALID")
    y = jax.lax.conv_general_dilated(y, params["conv2_w"], (1, 1), "VALID",
                                     dimension_numbers=dn)
    y = jax.nn.relu(y + params["conv2_b"][None, :, None, None])
    y = jax.lax.reduce_window(y, -jnp.inf, jax.lax.max,
                              (1, 1, 2, 2), (1, 1, 2, 2), "VALID")
    y = y.reshape(y.shape[0], -1)
    y = jax.nn.relu(y @ params["fc1_w"].T + params["fc1_b"])
    y = jax.nn.relu(y @ params["fc2_w"].T + params["fc2_b"])
    return y @ params["fc3_w"].T + params["fc3_b"]


if __name__ == "__main__":
    key = jax.random.PRNGKey(0)
    pkey, xkey = jax.random.split(key)
    params = init_params(pkey)
    prep = prepare_params(params)
    # CIFAR-10 sized input implied by fc1 = Linear(16*5*5, 120): 32x32x3.
    x = jax.random.normal(xkey, (2, 3, 32, 32), dtype=jnp.float32)

    fwd = jax.jit(net_forward)
    out = jax.block_until_ready(fwd(prep, x))
    assert out.shape == (2, 10)
    assert bool(jnp.all(jnp.isfinite(out)))

    ref = reference_forward(params, x)
    assert float(jnp.max(jnp.abs(out - ref))) < 1e-1   # bf16 matmuls vs f32 ref
    print("KERNEL_OK")
</pallas_src>

<mosaic_0001>
module attributes {stable_mosaic.version = 11 : i64} {
  func.func @_conv_pool_kernel(%arg0: i32, %arg1: memref<1x4x1568x128xbf16, #tpu.memory_space<vmem>>, %arg2: memref<128x128xbf16, #tpu.memory_space<vmem>>, %arg3: memref<1x128xf32, #tpu.memory_space<vmem>>, %arg4: memref<1x1568x8xbf16, #tpu.memory_space<vmem>>) attributes {dimension_semantics = [#tpu.dimension_semantics<parallel>], iteration_bounds = array<i64: 1>, scalar_prefetch = 0 : i64, scratch_operands = 0 : i64, tpu.core_type = #tpu.core_type<tc>, window_params = [{transform_indices = @transform_0, window_bounds = array<i64: 1, 4, 1568, 128>}, {pipeline_mode = #tpu.pipeline_mode<synchronous>, transform_indices = @transform_1, window_bounds = array<i64: 128, 128>}, {pipeline_mode = #tpu.pipeline_mode<synchronous>, transform_indices = @transform_2, window_bounds = array<i64: 1, 128>}, {transform_indices = @transform_3, window_bounds = array<i64: 1, 1568, 8>}]} {
    %c0 = arith.constant 0 : index
    %c0_0 = arith.constant 0 : index
    %c0_1 = arith.constant 0 : index
    %c0_2 = arith.constant 0 : index
    %0 = vector.load %arg1[%c0, %c0_0, %c0_1, %c0_2] : memref<1x4x1568x128xbf16, #tpu.memory_space<vmem>>, vector<1x1x392x128xbf16>
    %1 = vector.shape_cast %0 : vector<1x1x392x128xbf16> to vector<392x128xbf16>
    %c0_3 = arith.constant 0 : index
    %c0_4 = arith.constant 0 : index
    %2 = vector.load %arg2[%c0_3, %c0_4] : memref<128x128xbf16, #tpu.memory_space<vmem>>, vector<128x128xbf16>
    %cst = arith.constant dense<0.000000e+00> : vector<392x128xf32>
    %3 = tpu.matmul %1, %2, %cst {dimension_numbers = #tpu.dot_dimension_numbers<[1], [0], [0], [1], [0, 0, 1, 1], [], []>} : vector<392x128xbf16>, vector<128x128xbf16>, vector<392x128xf32> -> vector<392x128xf32>
    %c0_5 = arith.constant 0 : index
    %c1 = arith.constant 1 : index
    %c0_6 = arith.constant 0 : index
    %c0_7 = arith.constant 0 : index
    %4 = vector.load %arg1[%c0_5, %c1, %c0_6, %c0_7] : memref<1x4x1568x128xbf16, #tpu.memory_space<vmem>>, vector<1x1x392x128xbf16>
    %5 = vector.shape_cast %4 : vector<1x1x392x128xbf16> to vector<392x128xbf16>
    %c0_8 = arith.constant 0 : index
    %c0_9 = arith.constant 0 : index
    %6 = vector.load %arg2[%c0_8, %c0_9] : memref<128x128xbf16, #tpu.memory_space<vmem>>, vector<128x128xbf16>
    %cst_10 = arith.constant dense<0.000000e+00> : vector<392x128xf32>
    %7 = tpu.matmul %5, %6, %cst_10 {dimension_numbers = #tpu.dot_dimension_numbers<[1], [0], [0], [1], [0, 0, 1, 1], [], []>} : vector<392x128xbf16>, vector<128x128xbf16>, vector<392x128xf32> -> vector<392x128xf32>
    %8 = arith.maximumf %3, %7 : vector<392x128xf32>
    %c0_11 = arith.constant 0 : index
    %c2 = arith.constant 2 : index
    %c0_12 = arith.constant 0 : index
    %c0_13 = arith.constant 0 : index
    %9 = vector.load %arg1[%c0_11, %c2, %c0_12, %c0_13] : memref<1x4x1568x128xbf16, #tpu.memory_space<vmem>>, vector<1x1x392x128xbf16>
    %10 = vector.shape_cast %9 : vector<1x1x392x128xbf16> to vector<392x128xbf16>
    %c0_14 = arith.constant 0 : index
    %c0_15 = arith.constant 0 : index
    %11 = vector.load %arg2[%c0_14, %c0_15] : memref<128x128xbf16, #tpu.memory_space<vmem>>, vector<128x128xbf16>
    %cst_16 = arith.constant dense<0.000000e+00> : vector<392x128xf32>
    %12 = tpu.matmul %10, %11, %cst_16 {dimension_numbers = #tpu.dot_dimension_numbers<[1], [0], [0], [1], [0, 0, 1, 1], [], []>} : vector<392x128xbf16>, vector<128x128xbf16>, vector<392x128xf32> -> vector<392x128xf32>
    %13 = arith.maximumf %8, %12 : vector<392x128xf32>
    %c0_17 = arith.constant 0 : index
    %c3 = arith.constant 3 : index
    %c0_18 = arith.constant 0 : index
    %c0_19 = arith.constant 0 : index
    %14 = vector.load %arg1[%c0_17, %c3, %c0_18, %c0_19] : memref<1x4x1568x128xbf16, #tpu.memory_space<vmem>>, vector<1x1x392x128xbf16>
    %15 = vector.shape_cast %14 : vector<1x1x392x128xbf16> to vector<392x128xbf16>
    %c0_20 = arith.constant 0 : index
    %c0_21 = arith.constant 0 : index
    %16 = vector.load %arg2[%c0_20, %c0_21] : memref<128x128xbf16, #tpu.memory_space<vmem>>, vector<128x128xbf16>
    %cst_22 = arith.constant dense<0.000000e+00> : vector<392x128xf32>
    %17 = tpu.matmul %15, %16, %cst_22 {dimension_numbers = #tpu.dot_dimension_numbers<[1], [0], [0], [1], [0, 0, 1, 1], [], []>} : vector<392x128xbf16>, vector<128x128xbf16>, vector<392x128xf32> -> vector<392x128xf32>
    %18 = arith.maximumf %13, %17 : vector<392x128xf32>
    %c0_23 = arith.constant 0 : index
    %c0_24 = arith.constant 0 : index
    %19 = vector.load %arg3[%c0_23, %c0_24] : memref<1x128xf32, #tpu.memory_space<vmem>>, vector<1x128xf32>
    %20 = vector.broadcast %19 : vector<1x128xf32> to vector<392x128xf32>
    %21 = arith.addf %18, %20 : vector<392x128xf32>
    %cst_25 = arith.constant 0.000000e+00 : f32
    %22 = vector.broadcast %cst_25 : f32 to vector<392x128xf32>
    %23 = arith.maximumf %21, %22 : vector<392x128xf32>
    %24 = vector.extract_strided_slice %23 {offsets = [0, 0], sizes = [392, 8], strides = [1, 1]} : vector<392x128xf32> to vector<392x8xf32>
    %25 = arith.truncf %24 : vector<392x8xf32> to vector<392x8xbf16>
    %c0_26 = arith.constant 0 : index
    %c0_27 = arith.constant 0 : index
    %c0_28 = arith.constant 0 : index
    %26 = vector.load %arg4[%c0_26, %c0_27, %c0_28] : memref<1x1568x8xbf16, #tpu.memory_space<vmem>>, vector<1x392x8xbf16>
    %27 = vector.shape_cast %26 : vector<1x392x8xbf16> to vector<392x8xbf16>
    %28 = vector.shape_cast %25 : vector<392x8xbf16> to vector<1x392x8xbf16>
    tpu.vector_store %arg4[%c0_26, %c0_27, %c0_28], %28 {strides = array<i32>} : memref<1x1568x8xbf16, #tpu.memory_space<vmem>>, vector<1x392x8xbf16>,
    %c0_29 = arith.constant 0 : index
    %c0_30 = arith.constant 0 : index
    %c392 = arith.constant 392 : index
    %c0_31 = arith.constant 0 : index
    %29 = vector.load %arg1[%c0_29, %c0_30, %c392, %c0_31] : memref<1x4x1568x128xbf16, #tpu.memory_space<vmem>>, vector<1x1x392x128xbf16>
    %30 = vector.shape_cast %29 : vector<1x1x392x128xbf16> to vector<392x128xbf16>
    %c0_32 = arith.constant 0 : index
    %c0_33 = arith.constant 0 : index
    %31 = vector.load %arg2[%c0_32, %c0_33] : memref<128x128xbf16, #tpu.memory_space<vmem>>, vector<128x128xbf16>
    %cst_34 = arith.constant dense<0.000000e+00> : vector<392x128xf32>
    %32 = tpu.matmul %30, %31, %cst_34 {dimension_numbers = #tpu.dot_dimension_numbers<[1], [0], [0], [1], [0, 0, 1, 1], [], []>} : vector<392x128xbf16>, vector<128x128xbf16>, vector<392x128xf32> -> vector<392x128xf32>
    %c0_35 = arith.constant 0 : index
    %c1_36 = arith.constant 1 : index
    %c392_37 = arith.constant 392 : index
    %c0_38 = arith.constant 0 : index
    %33 = vector.load %arg1[%c0_35, %c1_36, %c392_37, %c0_38] : memref<1x4x1568x128xbf16, #tpu.memory_space<vmem>>, vector<1x1x392x128xbf16>
    %34 = vector.shape_cast %33 : vector<1x1x392x128xbf16> to vector<392x128xbf16>
    %c0_39 = arith.constant 0 : index
    %c0_40 = arith.constant 0 : index
    %35 = vector.load %arg2[%c0_39, %c0_40] : memref<128x128xbf16, #tpu.memory_space<vmem>>, vector<128x128xbf16>
    %cst_41 = arith.constant dense<0.000000e+00> : vector<392x128xf32>
    %36 = tpu.matmul %34, %35, %cst_41 {dimension_numbers = #tpu.dot_dimension_numbers<[1], [0], [0], [1], [0, 0, 1, 1], [], []>} : vector<392x128xbf16>, vector<128x128xbf16>, vector<392x128xf32> -> vector<392x128xf32>
    %37 = arith.maximumf %32, %36 : vector<392x128xf32>
    %c0_42 = arith.constant 0 : index
    %c2_43 = arith.constant 2 : index
    %c392_44 = arith.constant 392 : index
    %c0_45 = arith.constant 0 : index
    %38 = vector.load %arg1[%c0_42, %c2_43, %c392_44, %c0_45] : memref<1x4x1568x128xbf16, #tpu.memory_space<vmem>>, vector<1x1x392x128xbf16>
    %39 = vector.shape_cast %38 : vector<1x1x392x128xbf16> to vector<392x128xbf16>
    %c0_46 = arith.constant 0 : index
    %c0_47 = arith.constant 0 : index
    %40 = vector.load %arg2[%c0_46, %c0_47] : memref<128x128xbf16, #tpu.memory_space<vmem>>, vector<128x128xbf16>
    %cst_48 = arith.constant dense<0.000000e+00> : vector<392x128xf32>
    %41 = tpu.matmul %39, %40, %cst_48 {dimension_numbers = #tpu.dot_dimension_numbers<[1], [0], [0], [1], [0, 0, 1, 1], [], []>} : vector<392x128xbf16>, vector<128x128xbf16>, vector<392x128xf32> -> vector<392x128xf32>
    %42 = arith.maximumf %37, %41 : vector<392x128xf32>
    %c0_49 = arith.constant 0 : index
    %c3_50 = arith.constant 3 : index
    %c392_51 = arith.constant 392 : index
    %c0_52 = arith.constant 0 : index
    %43 = vector.load %arg1[%c0_49, %c3_50, %c392_51, %c0_52] : memref<1x4x1568x128xbf16, #tpu.memory_space<vmem>>, vector<1x1x392x128xbf16>
    %44 = vector.shape_cast %43 : vector<1x1x392x128xbf16> to vector<392x128xbf16>
    %c0_53 = arith.constant 0 : index
    %c0_54 = arith.constant 0 : index
    %45 = vector.load %arg2[%c0_53, %c0_54] : memref<128x128xbf16, #tpu.memory_space<vmem>>, vector<128x128xbf16>
    %cst_55 = arith.constant dense<0.000000e+00> : vector<392x128xf32>
    %46 = tpu.matmul %44, %45, %cst_55 {dimension_numbers = #tpu.dot_dimension_numbers<[1], [0], [0], [1], [0, 0, 1, 1], [], []>} : vector<392x128xbf16>, vector<128x128xbf16>, vector<392x128xf32> -> vector<392x128xf32>
    %47 = arith.maximumf %42, %46 : vector<392x128xf32>
    %c0_56 = arith.constant 0 : index
    %c0_57 = arith.constant 0 : index
    %48 = vector.load %arg3[%c0_56, %c0_57] : memref<1x128xf32, #tpu.memory_space<vmem>>, vector<1x128xf32>
    %49 = vector.broadcast %48 : vector<1x128xf32> to vector<392x128xf32>
    %50 = arith.addf %47, %49 : vector<392x128xf32>
    %cst_58 = arith.constant 0.000000e+00 : f32
    %51 = vector.broadcast %cst_58 : f32 to vector<392x128xf32>
    %52 = arith.maximumf %50, %51 : vector<392x128xf32>
    %53 = vector.extract_strided_slice %52 {offsets = [0, 0], sizes = [392, 8], strides = [1, 1]} : vector<392x128xf32> to vector<392x8xf32>
    %54 = arith.truncf %53 : vector<392x8xf32> to vector<392x8xbf16>
    %c0_59 = arith.constant 0 : index
    %c392_60 = arith.constant 392 : index
    %c0_61 = arith.constant 0 : index
    %55 = vector.load %arg4[%c0_59, %c392_60, %c0_61] : memref<1x1568x8xbf16, #tpu.memory_space<vmem>>, vector<1x392x8xbf16>
    %56 = vector.shape_cast %55 : vector<1x392x8xbf16> to vector<392x8xbf16>
    %57 = vector.shape_cast %54 : vector<392x8xbf16> to vector<1x392x8xbf16>
    tpu.vector_store %arg4[%c0_59, %c392_60, %c0_61], %57 {strides = array<i32>} : memref<1x1568x8xbf16, #tpu.memory_space<vmem>>, vector<1x392x8xbf16>,
    %c0_62 = arith.constant 0 : index
    %c0_63 = arith.constant 0 : index
    %c784 = arith.constant 784 : index
    %c0_64 = arith.constant 0 : index
    %58 = vector.load %arg1[%c0_62, %c0_63, %c784, %c0_64] : memref<1x4x1568x128xbf16, #tpu.memory_space<vmem>>, vector<1x1x392x128xbf16>
    %59 = vector.shape_cast %58 : vector<1x1x392x128xbf16> to vector<392x128xbf16>
    %c0_65 = arith.constant 0 : index
    %c0_66 = arith.constant 0 : index
    %60 = vector.load %arg2[%c0_65, %c0_66] : memref<128x128xbf16, #tpu.memory_space<vmem>>, vector<128x128xbf16>
    %cst_67 = arith.constant dense<0.000000e+00> : vector<392x128xf32>
    %61 = tpu.matmul %59, %60, %cst_67 {dimension_numbers = #tpu.dot_dimension_numbers<[1], [0], [0], [1], [0, 0, 1, 1], [], []>} : vector<392x128xbf16>, vector<128x128xbf16>, vector<392x128xf32> -> vector<392x128xf32>
    %c0_68 = arith.constant 0 : index
    %c1_69 = arith.constant 1 : index
    %c784_70 = arith.constant 784 : index
    %c0_71 = arith.constant 0 : index
    %62 = vector.load %arg1[%c0_68, %c1_69, %c784_70, %c0_71] : memref<1x4x1568x128xbf16, #tpu.memory_space<vmem>>, vector<1x1x392x128xbf16>
    %63 = vector.shape_cast %62 : vector<1x1x392x128xbf16> to vector<392x128xbf16>
    %c0_72 = arith.constant 0 : index
    %c0_73 = arith.constant 0 : index
    %64 = vector.load %arg2[%c0_72, %c0_73] : memref<128x128xbf16, #tpu.memory_space<vmem>>, vector<128x128xbf16>
    %cst_74 = arith.constant dense<0.000000e+00> : vector<392x128xf32>
    %65 = tpu.matmul %63, %64, %cst_74 {dimension_numbers = #tpu.dot_dimension_numbers<[1], [0], [0], [1], [0, 0, 1, 1], [], []>} : vector<392x128xbf16>, vector<128x128xbf16>, vector<392x128xf32> -> vector<392x128xf32>
    %66 = arith.maximumf %61, %65 : vector<392x128xf32>
    %c0_75 = arith.constant 0 : index
    %c2_76 = arith.constant 2 : index
    %c784_77 = arith.constant 784 : index
    %c0_78 = arith.constant 0 : index
    %67 = vector.load %arg1[%c0_75, %c2_76, %c784_77, %c0_78] : memref<1x4x1568x128xbf16, #tpu.memory_space<vmem>>, vector<1x1x392x128xbf16>
    %68 = vector.shape_cast %67 : vector<1x1x392x128xbf16> to vector<392x128xbf16>
    %c0_79 = arith.constant 0 : index
    %c0_80 = arith.constant 0 : index
    %69 = vector.load %arg2[%c0_79, %c0_80] : memref<128x128xbf16, #tpu.memory_space<vmem>>, vector<128x128xbf16>
    %cst_81 = arith.constant dense<0.000000e+00> : vector<392x128xf32>
    %70 = tpu.matmul %68, %69, %cst_81 {dimension_numbers = #tpu.dot_dimension_numbers<[1], [0], [0], [1], [0, 0, 1, 1], [], []>} : vector<392x128xbf16>, vector<128x128xbf16>, vector<392x128xf32> -> vector<392x128xf32>
    %71 = arith.maximumf %66, %70 : vector<392x128xf32>
    %c0_82 = arith.constant 0 : index
    %c3_83 = arith.constant 3 : index
    %c784_84 = arith.constant 784 : index
    %c0_85 = arith.constant 0 : index
    %72 = vector.load %arg1[%c0_82, %c3_83, %c784_84, %c0_85] : memref<1x4x1568x128xbf16, #tpu.memory_space<vmem>>, vector<1x1x392x128xbf16>
    %73 = vector.shape_cast %72 : vector<1x1x392x128xbf16> to vector<392x128xbf16>
    %c0_86 = arith.constant 0 : index
    %c0_87 = arith.constant 0 : index
    %74 = vector.load %arg2[%c0_86, %c0_87] : memref<128x128xbf16, #tpu.memory_space<vmem>>, vector<128x128xbf16>
    %cst_88 = arith.constant dense<0.000000e+00> : vector<392x128xf32>
    %75 = tpu.matmul %73, %74, %cst_88 {dimension_numbers = #tpu.dot_dimension_numbers<[1], [0], [0], [1], [0, 0, 1, 1], [], []>} : vector<392x128xbf16>, vector<128x128xbf16>, vector<392x128xf32> -> vector<392x128xf32>
    %76 = arith.maximumf %71, %75 : vector<392x128xf32>
    %c0_89 = arith.constant 0 : index
    %c0_90 = arith.constant 0 : index
    %77 = vector.load %arg3[%c0_89, %c0_90] : memref<1x128xf32, #tpu.memory_space<vmem>>, vector<1x128xf32>
    %78 = vector.broadcast %77 : vector<1x128xf32> to vector<392x128xf32>
    %79 = arith.addf %76, %78 : vector<392x128xf32>
    %cst_91 = arith.constant 0.000000e+00 : f32
    %80 = vector.broadcast %cst_91 : f32 to vector<392x128xf32>
    %81 = arith.maximumf %79, %80 : vector<392x128xf32>
    %82 = vector.extract_strided_slice %81 {offsets = [0, 0], sizes = [392, 8], strides = [1, 1]} : vector<392x128xf32> to vector<392x8xf32>
    %83 = arith.truncf %82 : vector<392x8xf32> to vector<392x8xbf16>
    %c0_92 = arith.constant 0 : index
    %c784_93 = arith.constant 784 : index
    %c0_94 = arith.constant 0 : index
    %84 = vector.load %arg4[%c0_92, %c784_93, %c0_94] : memref<1x1568x8xbf16, #tpu.memory_space<vmem>>, vector<1x392x8xbf16>
    %85 = vector.shape_cast %84 : vector<1x392x8xbf16> to vector<392x8xbf16>
    %86 = vector.shape_cast %83 : vector<392x8xbf16> to vector<1x392x8xbf16>
    tpu.vector_store %arg4[%c0_92, %c784_93, %c0_94], %86 {strides = array<i32>} : memref<1x1568x8xbf16, #tpu.memory_space<vmem>>, vector<1x392x8xbf16>,
    %c0_95 = arith.constant 0 : index
    %c0_96 = arith.constant 0 : index
    %c1176 = arith.constant 1176 : index
    %c0_97 = arith.constant 0 : index
    %87 = vector.load %arg1[%c0_95, %c0_96, %c1176, %c0_97] : memref<1x4x1568x128xbf16, #tpu.memory_space<vmem>>, vector<1x1x392x128xbf16>
    %88 = vector.shape_cast %87 : vector<1x1x392x128xbf16> to vector<392x128xbf16>
    %c0_98 = arith.constant 0 : index
    %c0_99 = arith.constant 0 : index
    %89 = vector.load %arg2[%c0_98, %c0_99] : memref<128x128xbf16, #tpu.memory_space<vmem>>, vector<128x128xbf16>
    %cst_100 = arith.constant dense<0.000000e+00> : vector<392x128xf32>
    %90 = tpu.matmul %88, %89, %cst_100 {dimension_numbers = #tpu.dot_dimension_numbers<[1], [0], [0], [1], [0, 0, 1, 1], [], []>} : vector<392x128xbf16>, vector<128x128xbf16>, vector<392x128xf32> -> vector<392x128xf32>
    %c0_101 = arith.constant 0 : index
    %c1_102 = arith.constant 1 : index
    %c1176_103 = arith.constant 1176 : index
    %c0_104 = arith.constant 0 : index
    %91 = vector.load %arg1[%c0_101, %c1_102, %c1176_103, %c0_104] : memref<1x4x1568x128xbf16, #tpu.memory_space<vmem>>, vector<1x1x392x128xbf16>
    %92 = vector.shape_cast %91 : vector<1x1x392x128xbf16> to vector<392x128xbf16>
    %c0_105 = arith.constant 0 : index
    %c0_106 = arith.constant 0 : index
    %93 = vector.load %arg2[%c0_105, %c0_106] : memref<128x128xbf16, #tpu.memory_space<vmem>>, vector<128x128xbf16>
    %cst_107 = arith.constant dense<0.000000e+00> : vector<392x128xf32>
    %94 = tpu.matmul %92, %93, %cst_107 {dimension_numbers = #tpu.dot_dimension_numbers<[1], [0], [0], [1], [0, 0, 1, 1], [], []>} : vector<392x128xbf16>, vector<128x128xbf16>, vector<392x128xf32> -> vector<392x128xf32>
    %95 = arith.maximumf %90, %94 : vector<392x128xf32>
    %c0_108 = arith.constant 0 : index
    %c2_109 = arith.constant 2 : index
    %c1176_110 = arith.constant 1176 : index
    %c0_111 = arith.constant 0 : index
    %96 = vector.load %arg1[%c0_108, %c2_109, %c1176_110, %c0_111] : memref<1x4x1568x128xbf16, #tpu.memory_space<vmem>>, vector<1x1x392x128xbf16>
    %97 = vector.shape_cast %96 : vector<1x1x392x128xbf16> to vector<392x128xbf16>
    %c0_112 = arith.constant 0 : index
    %c0_113 = arith.constant 0 : index
    %98 = vector.load %arg2[%c0_112, %c0_113] : memref<128x128xbf16, #tpu.memory_space<vmem>>, vector<128x128xbf16>
    %cst_114 = arith.constant dense<0.000000e+00> : vector<392x128xf32>
    %99 = tpu.matmul %97, %98, %cst_114 {dimension_numbers = #tpu.dot_dimension_numbers<[1], [0], [0], [1], [0, 0, 1, 1], [], []>} : vector<392x128xbf16>, vector<128x128xbf16>, vector<392x128xf32> -> vector<392x128xf32>
    %100 = arith.maximumf %95, %99 : vector<392x128xf32>
    %c0_115 = arith.constant 0 : index
    %c3_116 = arith.constant 3 : index
    %c1176_117 = arith.constant 1176 : index
    %c0_118 = arith.constant 0 : index
    %101 = vector.load %arg1[%c0_115, %c3_116, %c1176_117, %c0_118] : memref<1x4x1568x128xbf16, #tpu.memory_space<vmem>>, vector<1x1x392x128xbf16>
    %102 = vector.shape_cast %101 : vector<1x1x392x128xbf16> to vector<392x128xbf16>
    %c0_119 = arith.constant 0 : index
    %c0_120 = arith.constant 0 : index
    %103 = vector.load %arg2[%c0_119, %c0_120] : memref<128x128xbf16, #tpu.memory_space<vmem>>, vector<128x128xbf16>
    %cst_121 = arith.constant dense<0.000000e+00> : vector<392x128xf32>
    %104 = tpu.matmul %102, %103, %cst_121 {dimension_numbers = #tpu.dot_dimension_numbers<[1], [0], [0], [1], [0, 0, 1, 1], [], []>} : vector<392x128xbf16>, vector<128x128xbf16>, vector<392x128xf32> -> vector<392x128xf32>
    %105 = arith.maximumf %100, %104 : vector<392x128xf32>
    %c0_122 = arith.constant 0 : index
    %c0_123 = arith.constant 0 : index
    %106 = vector.load %arg3[%c0_122, %c0_123] : memref<1x128xf32, #tpu.memory_space<vmem>>, vector<1x128xf32>
    %107 = vector.broadcast %106 : vector<1x128xf32> to vector<392x128xf32>
    %108 = arith.addf %105, %107 : vector<392x128xf32>
    %cst_124 = arith.constant 0.000000e+00 : f32
    %109 = vector.broadcast %cst_124 : f32 to vector<392x128xf32>
    %110 = arith.maximumf %108, %109 : vector<392x128xf32>
    %111 = vector.extract_strided_slice %110 {offsets = [0, 0], sizes = [392, 8], strides = [1, 1]} : vector<392x128xf32> to vector<392x8xf32>
    %112 = arith.truncf %111 : vector<392x8xf32> to vector<392x8xbf16>
    %c0_125 = arith.constant 0 : index
    %c1176_126 = arith.constant 1176 : index
    %c0_127 = arith.constant 0 : index
    %113 = vector.load %arg4[%c0_125, %c1176_126, %c0_127] : memref<1x1568x8xbf16, #tpu.memory_space<vmem>>, vector<1x392x8xbf16>
    %114 = vector.shape_cast %113 : vector<1x392x8xbf16> to vector<392x8xbf16>
    %115 = vector.shape_cast %112 : vector<392x8xbf16> to vector<1x392x8xbf16>
    tpu.vector_store %arg4[%c0_125, %c1176_126, %c0_127], %115 {strides = array<i32>} : memref<1x1568x8xbf16, #tpu.memory_space<vmem>>, vector<1x392x8xbf16>,
    return
  }
  func.func @transform_0(%arg0: i32) -> (i32, i32, i32, i32) {
    %c0_i32 = arith.constant 0 : i32
    %c0_i32_0 = arith.constant 0 : i32
    %c0_i32_1 = arith.constant 0 : i32
    %c0_i32_2 = arith.constant 0 : i32
    return %arg0, %c0_i32, %c0_i32_0, %c0_i32_1 : i32, i32, i32, i32
  }
  func.func @transform_1(%arg0: i32) -> (i32, i32) {
    %c0_i32 = arith.constant 0 : i32
    %c0_i32_0 = arith.constant 0 : i32
    %c0_i32_1 = arith.constant 0 : i32
    return %c0_i32, %c0_i32_0 : i32, i32
  }
  func.func @transform_2(%arg0: i32) -> (i32, i32) {
    %c0_i32 = arith.constant 0 : i32
    %c0_i32_0 = arith.constant 0 : i32
    %c0_i32_1 = arith.constant 0 : i32
    return %c0_i32, %c0_i32_0 : i32, i32
  }
  func.func @transform_3(%arg0: i32) -> (i32, i32, i32) {
    %c0_i32 = arith.constant 0 : i32
    %c0_i32_0 = arith.constant 0 : i32
    %c0_i32_1 = arith.constant 0 : i32
    return %arg0, %c0_i32, %c0_i32_0 : i32, i32, i32
  }
}

module attributes {stable_mosaic.version = 11 : i64} {
  func.func @_conv_pool_fc_kernel(%arg0: i32, %arg1: memref<1x4x200x256xbf16, #tpu.memory_space<vmem>>, %arg2: memref<256x128xbf16, #tpu.memory_space<vmem>>, %arg3: memref<1x128xf32, #tpu.memory_space<vmem>>, %arg4: memref<3200x128xbf16, #tpu.memory_space<vmem>>, %arg5: memref<1x128xf32, #tpu.memory_space<vmem>>, %arg6: memref<128x128xbf16, #tpu.memory_space<vmem>>, %arg7: memref<1x128xf32, #tpu.memory_space<vmem>>, %arg8: memref<128x128xbf16, #tpu.memory_space<vmem>>, %arg9: memref<1x128xf32, #tpu.memory_space<vmem>>, %arg10: memref<8x128xf32, #tpu.memory_space<vmem>>) attributes {dimension_semantics = [#tpu.dimension_semantics<parallel>], iteration_bounds = array<i64: 1>, scalar_prefetch = 0 : i64, scratch_operands = 0 : i64, tpu.core_type = #tpu.core_type<tc>, window_params = [{transform_indices = @transform_0, window_bounds = array<i64: 1, 4, 200, 256>}, {pipeline_mode = #tpu.pipeline_mode<synchronous>, transform_indices = @transform_1, window_bounds = array<i64: 256, 128>}, {pipeline_mode = #tpu.pipeline_mode<synchronous>, transform_indices = @transform_2, window_bounds = array<i64: 1, 128>}, {pipeline_mode = #tpu.pipeline_mode<synchronous>, transform_indices = @transform_3, window_bounds = array<i64: 3200, 128>}, {pipeline_mode = #tpu.pipeline_mode<synchronous>, transform_indices = @transform_4, window_bounds = array<i64: 1, 128>}, {pipeline_mode = #tpu.pipeline_mode<synchronous>, transform_indices = @transform_5, window_bounds = array<i64: 128, 128>}, {pipeline_mode = #tpu.pipeline_mode<synchronous>, transform_indices = @transform_6, window_bounds = array<i64: 1, 128>}, {pipeline_mode = #tpu.pipeline_mode<synchronous>, transform_indices = @transform_7, window_bounds = array<i64: 128, 128>}, {pipeline_mode = #tpu.pipeline_mode<synchronous>, transform_indices = @transform_8, window_bounds = array<i64: 1, 128>}, {transform_indices = @transform_9, window_bounds = array<i64: 8, 128>}]} {
    %c0 = arith.constant 0 : index
    %c0_0 = arith.constant 0 : index
    %c0_1 = arith.constant 0 : index
    %c0_2 = arith.constant 0 : index
    %0 = vector.load %arg1[%c0, %c0_0, %c0_1, %c0_2] : memref<1x4x200x256xbf16, #tpu.memory_space<vmem>>, vector<1x1x200x256xbf16>
    %1 = vector.shape_cast %0 : vector<1x1x200x256xbf16> to vector<200x256xbf16>
    %c0_3 = arith.constant 0 : index
    %c0_4 = arith.constant 0 : index
    %2 = vector.load %arg2[%c0_3, %c0_4] : memref<256x128xbf16, #tpu.memory_space<vmem>>, vector<256x128xbf16>
    %cst = arith.constant dense<0.000000e+00> : vector<200x128xf32>
    %3 = tpu.matmul %1, %2, %cst {dimension_numbers = #tpu.dot_dimension_numbers<[1], [0], [0], [1], [0, 0, 1, 1], [], []>} : vector<200x256xbf16>, vector<256x128xbf16>, vector<200x128xf32> -> vector<200x128xf32>
    %c0_5 = arith.constant 0 : index
    %c1 = arith.constant 1 : index
    %c0_6 = arith.constant 0 : index
    %c0_7 = arith.constant 0 : index
    %4 = vector.load %arg1[%c0_5, %c1, %c0_6, %c0_7] : memref<1x4x200x256xbf16, #tpu.memory_space<vmem>>, vector<1x1x200x256xbf16>
    %5 = vector.shape_cast %4 : vector<1x1x200x256xbf16> to vector<200x256xbf16>
    %c0_8 = arith.constant 0 : index
    %c0_9 = arith.constant 0 : index
    %6 = vector.load %arg2[%c0_8, %c0_9] : memref<256x128xbf16, #tpu.memory_space<vmem>>, vector<256x128xbf16>
    %cst_10 = arith.constant dense<0.000000e+00> : vector<200x128xf32>
    %7 = tpu.matmul %5, %6, %cst_10 {dimension_numbers = #tpu.dot_dimension_numbers<[1], [0], [0], [1], [0, 0, 1, 1], [], []>} : vector<200x256xbf16>, vector<256x128xbf16>, vector<200x128xf32> -> vector<200x128xf32>
    %8 = arith.maximumf %3, %7 : vector<200x128xf32>
    %c0_11 = arith.constant 0 : index
    %c2 = arith.constant 2 : index
    %c0_12 = arith.constant 0 : index
    %c0_13 = arith.constant 0 : index
    %9 = vector.load %arg1[%c0_11, %c2, %c0_12, %c0_13] : memref<1x4x200x256xbf16, #tpu.memory_space<vmem>>, vector<1x1x200x256xbf16>
    %10 = vector.shape_cast %9 : vector<1x1x200x256xbf16> to vector<200x256xbf16>
    %c0_14 = arith.constant 0 : index
    %c0_15 = arith.constant 0 : index
    %11 = vector.load %arg2[%c0_14, %c0_15] : memref<256x128xbf16, #tpu.memory_space<vmem>>, vector<256x128xbf16>
    %cst_16 = arith.constant dense<0.000000e+00> : vector<200x128xf32>
    %12 = tpu.matmul %10, %11, %cst_16 {dimension_numbers = #tpu.dot_dimension_numbers<[1], [0], [0], [1], [0, 0, 1, 1], [], []>} : vector<200x256xbf16>, vector<256x128xbf16>, vector<200x128xf32> -> vector<200x128xf32>
    %13 = arith.maximumf %8, %12 : vector<200x128xf32>
    %c0_17 = arith.constant 0 : index
    %c3 = arith.constant 3 : index
    %c0_18 = arith.constant 0 : index
    %c0_19 = arith.constant 0 : index
    %14 = vector.load %arg1[%c0_17, %c3, %c0_18, %c0_19] : memref<1x4x200x256xbf16, #tpu.memory_space<vmem>>, vector<1x1x200x256xbf16>
    %15 = vector.shape_cast %14 : vector<1x1x200x256xbf16> to vector<200x256xbf16>
    %c0_20 = arith.constant 0 : index
    %c0_21 = arith.constant 0 : index
    %16 = vector.load %arg2[%c0_20, %c0_21] : memref<256x128xbf16, #tpu.memory_space<vmem>>, vector<256x128xbf16>
    %cst_22 = arith.constant dense<0.000000e+00> : vector<200x128xf32>
    %17 = tpu.matmul %15, %16, %cst_22 {dimension_numbers = #tpu.dot_dimension_numbers<[1], [0], [0], [1], [0, 0, 1, 1], [], []>} : vector<200x256xbf16>, vector<256x128xbf16>, vector<200x128xf32> -> vector<200x128xf32>
    %18 = arith.maximumf %13, %17 : vector<200x128xf32>
    %c0_23 = arith.constant 0 : index
    %c0_24 = arith.constant 0 : index
    %19 = vector.load %arg3[%c0_23, %c0_24] : memref<1x128xf32, #tpu.memory_space<vmem>>, vector<1x128xf32>
    %20 = vector.broadcast %19 : vector<1x128xf32> to vector<200x128xf32>
    %21 = arith.addf %18, %20 : vector<200x128xf32>
    %cst_25 = arith.constant 0.000000e+00 : f32
    %22 = vector.broadcast %cst_25 : f32 to vector<200x128xf32>
    %23 = arith.maximumf %21, %22 : vector<200x128xf32>
    %cst_26 = arith.constant 0.000000e+00 : f32
    %24 = vector.broadcast %cst_26 : f32 to vector<8x128xf32>
    %25 = vector.extract_strided_slice %23 {offsets = [0, 0], sizes = [8, 128], strides = [1, 1]} : vector<200x128xf32> to vector<8x128xf32>
    %26 = arith.truncf %25 : vector<8x128xf32> to vector<8x128xbf16>
    %c0_27 = arith.constant 0 : index
    %c0_28 = arith.constant 0 : index
    %27 = vector.load %arg4[%c0_27, %c0_28] : memref<3200x128xbf16, #tpu.memory_space<vmem>>, vector<128x128xbf16>
    %cst_29 = arith.constant dense<0.000000e+00> : vector<8x128xf32>
    %28 = tpu.matmul %26, %27, %cst_29 {dimension_numbers = #tpu.dot_dimension_numbers<[1], [0], [0], [1], [0, 0, 1, 1], [], []>} : vector<8x128xbf16>, vector<128x128xbf16>, vector<8x128xf32> -> vector<8x128xf32>
    %29 = arith.addf %24, %28 : vector<8x128xf32>
    %30 = vector.extract_strided_slice %23 {offsets = [8, 0], sizes = [8, 128], strides = [1, 1]} : vector<200x128xf32> to vector<8x128xf32>
    %31 = arith.truncf %30 : vector<8x128xf32> to vector<8x128xbf16>
    %c128 = arith.constant 128 : index
    %c0_30 = arith.constant 0 : index
    %32 = vector.load %arg4[%c128, %c0_30] : memref<3200x128xbf16, #tpu.memory_space<vmem>>, vector<128x128xbf16>
    %cst_31 = arith.constant dense<0.000000e+00> : vector<8x128xf32>
    %33 = tpu.matmul %31, %32, %cst_31 {dimension_numbers = #tpu.dot_dimension_numbers<[1], [0], [0], [1], [0, 0, 1, 1], [], []>} : vector<8x128xbf16>, vector<128x128xbf16>, vector<8x128xf32> -> vector<8x128xf32>
    %34 = arith.addf %29, %33 : vector<8x128xf32>
    %35 = vector.extract_strided_slice %23 {offsets = [16, 0], sizes = [8, 128], strides = [1, 1]} : vector<200x128xf32> to vector<8x128xf32>
    %36 = arith.truncf %35 : vector<8x128xf32> to vector<8x128xbf16>
    %c256 = arith.constant 256 : index
    %c0_32 = arith.constant 0 : index
    %37 = vector.load %arg4[%c256, %c0_32] : memref<3200x128xbf16, #tpu.memory_space<vmem>>, vector<128x128xbf16>
    %cst_33 = arith.constant dense<0.000000e+00> : vector<8x128xf32>
    %38 = tpu.matmul %36, %37, %cst_33 {dimension_numbers = #tpu.dot_dimension_numbers<[1], [0], [0], [1], [0, 0, 1, 1], [], []>} : vector<8x128xbf16>, vector<128x128xbf16>, vector<8x128xf32> -> vector<8x128xf32>
    %39 = arith.addf %34, %38 : vector<8x128xf32>
    %40 = vector.extract_strided_slice %23 {offsets = [24, 0], sizes = [8, 128], strides = [1, 1]} : vector<200x128xf32> to vector<8x128xf32>
    %41 = arith.truncf %40 : vector<8x128xf32> to vector<8x128xbf16>
    %c384 = arith.constant 384 : index
    %c0_34 = arith.constant 0 : index
    %42 = vector.load %arg4[%c384, %c0_34] : memref<3200x128xbf16, #tpu.memory_space<vmem>>, vector<128x128xbf16>
    %cst_35 = arith.constant dense<0.000000e+00> : vector<8x128xf32>
    %43 = tpu.matmul %41, %42, %cst_35 {dimension_numbers = #tpu.dot_dimension_numbers<[1], [0], [0], [1], [0, 0, 1, 1], [], []>} : vector<8x128xbf16>, vector<128x128xbf16>, vector<8x128xf32> -> vector<8x128xf32>
    %44 = arith.addf %39, %43 : vector<8x128xf32>
    %45 = vector.extract_strided_slice %23 {offsets = [32, 0], sizes = [8, 128], strides = [1, 1]} : vector<200x128xf32> to vector<8x128xf32>
    %46 = arith.truncf %45 : vector<8x128xf32> to vector<8x128xbf16>
    %c512 = arith.constant 512 : index
    %c0_36 = arith.constant 0 : index
    %47 = vector.load %arg4[%c512, %c0_36] : memref<3200x128xbf16, #tpu.memory_space<vmem>>, vector<128x128xbf16>
    %cst_37 = arith.constant dense<0.000000e+00> : vector<8x128xf32>
    %48 = tpu.matmul %46, %47, %cst_37 {dimension_numbers = #tpu.dot_dimension_numbers<[1], [0], [0], [1], [0, 0, 1, 1], [], []>} : vector<8x128xbf16>, vector<128x128xbf16>, vector<8x128xf32> -> vector<8x128xf32>
    %49 = arith.addf %44, %48 : vector<8x128xf32>
    %50 = vector.extract_strided_slice %23 {offsets = [40, 0], sizes = [8, 128], strides = [1, 1]} : vector<200x128xf32> to vector<8x128xf32>
    %51 = arith.truncf %50 : vector<8x128xf32> to vector<8x128xbf16>
    %c640 = arith.constant 640 : index
    %c0_38 = arith.constant 0 : index
    %52 = vector.load %arg4[%c640, %c0_38] : memref<3200x128xbf16, #tpu.memory_space<vmem>>, vector<128x128xbf16>
    %cst_39 = arith.constant dense<0.000000e+00> : vector<8x128xf32>
    %53 = tpu.matmul %51, %52, %cst_39 {dimension_numbers = #tpu.dot_dimension_numbers<[1], [0], [0], [1], [0, 0, 1, 1], [], []>} : vector<8x128xbf16>, vector<128x128xbf16>, vector<8x128xf32> -> vector<8x128xf32>
    %54 = arith.addf %49, %53 : vector<8x128xf32>
    %55 = vector.extract_strided_slice %23 {offsets = [48, 0], sizes = [8, 128], strides = [1, 1]} : vector<200x128xf32> to vector<8x128xf32>
    %56 = arith.truncf %55 : vector<8x128xf32> to vector<8x128xbf16>
    %c768 = arith.constant 768 : index
    %c0_40 = arith.constant 0 : index
    %57 = vector.load %arg4[%c768, %c0_40] : memref<3200x128xbf16, #tpu.memory_space<vmem>>, vector<128x128xbf16>
    %cst_41 = arith.constant dense<0.000000e+00> : vector<8x128xf32>
    %58 = tpu.matmul %56, %57, %cst_41 {dimension_numbers = #tpu.dot_dimension_numbers<[1], [0], [0], [1], [0, 0, 1, 1], [], []>} : vector<8x128xbf16>, vector<128x128xbf16>, vector<8x128xf32> -> vector<8x128xf32>
    %59 = arith.addf %54, %58 : vector<8x128xf32>
    %60 = vector.extract_strided_slice %23 {offsets = [56, 0], sizes = [8, 128], strides = [1, 1]} : vector<200x128xf32> to vector<8x128xf32>
    %61 = arith.truncf %60 : vector<8x128xf32> to vector<8x128xbf16>
    %c896 = arith.constant 896 : index
    %c0_42 = arith.constant 0 : index
    %62 = vector.load %arg4[%c896, %c0_42] : memref<3200x128xbf16, #tpu.memory_space<vmem>>, vector<128x128xbf16>
    %cst_43 = arith.constant dense<0.000000e+00> : vector<8x128xf32>
    %63 = tpu.matmul %61, %62, %cst_43 {dimension_numbers = #tpu.dot_dimension_numbers<[1], [0], [0], [1], [0, 0, 1, 1], [], []>} : vector<8x128xbf16>, vector<128x128xbf16>, vector<8x128xf32> -> vector<8x128xf32>
    %64 = arith.addf %59, %63 : vector<8x128xf32>
    %65 = vector.extract_strided_slice %23 {offsets = [64, 0], sizes = [8, 128], strides = [1, 1]} : vector<200x128xf32> to vector<8x128xf32>
    %66 = arith.truncf %65 : vector<8x128xf32> to vector<8x128xbf16>
    %c1024 = arith.constant 1024 : index
    %c0_44 = arith.constant 0 : index
    %67 = vector.load %arg4[%c1024, %c0_44] : memref<3200x128xbf16, #tpu.memory_space<vmem>>, vector<128x128xbf16>
    %cst_45 = arith.constant dense<0.000000e+00> : vector<8x128xf32>
    %68 = tpu.matmul %66, %67, %cst_45 {dimension_numbers = #tpu.dot_dimension_numbers<[1], [0], [0], [1], [0, 0, 1, 1], [], []>} : vector<8x128xbf16>, vector<128x128xbf16>, vector<8x128xf32> -> vector<8x128xf32>
    %69 = arith.addf %64, %68 : vector<8x128xf32>
    %70 = vector.extract_strided_slice %23 {offsets = [72, 0], sizes = [8, 128], strides = [1, 1]} : vector<200x128xf32> to vector<8x128xf32>
    %71 = arith.truncf %70 : vector<8x128xf32> to vector<8x128xbf16>
    %c1152 = arith.constant 1152 : index
    %c0_46 = arith.constant 0 : index
    %72 = vector.load %arg4[%c1152, %c0_46] : memref<3200x128xbf16, #tpu.memory_space<vmem>>, vector<128x128xbf16>
    %cst_47 = arith.constant dense<0.000000e+00> : vector<8x128xf32>
    %73 = tpu.matmul %71, %72, %cst_47 {dimension_numbers = #tpu.dot_dimension_numbers<[1], [0], [0], [1], [0, 0, 1, 1], [], []>} : vector<8x128xbf16>, vector<128x128xbf16>, vector<8x128xf32> -> vector<8x128xf32>
    %74 = arith.addf %69, %73 : vector<8x128xf32>
    %75 = vector.extract_strided_slice %23 {offsets = [80, 0], sizes = [8, 128], strides = [1, 1]} : vector<200x128xf32> to vector<8x128xf32>
    %76 = arith.truncf %75 : vector<8x128xf32> to vector<8x128xbf16>
    %c1280 = arith.constant 1280 : index
    %c0_48 = arith.constant 0 : index
    %77 = vector.load %arg4[%c1280, %c0_48] : memref<3200x128xbf16, #tpu.memory_space<vmem>>, vector<128x128xbf16>
    %cst_49 = arith.constant dense<0.000000e+00> : vector<8x128xf32>
    %78 = tpu.matmul %76, %77, %cst_49 {dimension_numbers = #tpu.dot_dimension_numbers<[1], [0], [0], [1], [0, 0, 1, 1], [], []>} : vector<8x128xbf16>, vector<128x128xbf16>, vector<8x128xf32> -> vector<8x128xf32>
    %79 = arith.addf %74, %78 : vector<8x128xf32>
    %80 = vector.extract_strided_slice %23 {offsets = [88, 0], sizes = [8, 128], strides = [1, 1]} : vector<200x128xf32> to vector<8x128xf32>
    %81 = arith.truncf %80 : vector<8x128xf32> to vector<8x128xbf16>
    %c1408 = arith.constant 1408 : index
    %c0_50 = arith.constant 0 : index
    %82 = vector.load %arg4[%c1408, %c0_50] : memref<3200x128xbf16, #tpu.memory_space<vmem>>, vector<128x128xbf16>
    %cst_51 = arith.constant dense<0.000000e+00> : vector<8x128xf32>
    %83 = tpu.matmul %81, %82, %cst_51 {dimension_numbers = #tpu.dot_dimension_numbers<[1], [0], [0], [1], [0, 0, 1, 1], [], []>} : vector<8x128xbf16>, vector<128x128xbf16>, vector<8x128xf32> -> vector<8x128xf32>
    %84 = arith.addf %79, %83 : vector<8x128xf32>
    %85 = vector.extract_strided_slice %23 {offsets = [96, 0], sizes = [8, 128], strides = [1, 1]} : vector<200x128xf32> to vector<8x128xf32>
    %86 = arith.truncf %85 : vector<8x128xf32> to vector<8x128xbf16>
    %c1536 = arith.constant 1536 : index
    %c0_52 = arith.constant 0 : index
    %87 = vector.load %arg4[%c1536, %c0_52] : memref<3200x128xbf16, #tpu.memory_space<vmem>>, vector<128x128xbf16>
    %cst_53 = arith.constant dense<0.000000e+00> : vector<8x128xf32>
    %88 = tpu.matmul %86, %87, %cst_53 {dimension_numbers = #tpu.dot_dimension_numbers<[1], [0], [0], [1], [0, 0, 1, 1], [], []>} : vector<8x128xbf16>, vector<128x128xbf16>, vector<8x128xf32> -> vector<8x128xf32>
    %89 = arith.addf %84, %88 : vector<8x128xf32>
    %90 = vector.extract_strided_slice %23 {offsets = [104, 0], sizes = [8, 128], strides = [1, 1]} : vector<200x128xf32> to vector<8x128xf32>
    %91 = arith.truncf %90 : vector<8x128xf32> to vector<8x128xbf16>
    %c1664 = arith.constant 1664 : index
    %c0_54 = arith.constant 0 : index
    %92 = vector.load %arg4[%c1664, %c0_54] : memref<3200x128xbf16, #tpu.memory_space<vmem>>, vector<128x128xbf16>
    %cst_55 = arith.constant dense<0.000000e+00> : vector<8x128xf32>
    %93 = tpu.matmul %91, %92, %cst_55 {dimension_numbers = #tpu.dot_dimension_numbers<[1], [0], [0], [1], [0, 0, 1, 1], [], []>} : vector<8x128xbf16>, vector<128x128xbf16>, vector<8x128xf32> -> vector<8x128xf32>
    %94 = arith.addf %89, %93 : vector<8x128xf32>
    %95 = vector.extract_strided_slice %23 {offsets = [112, 0], sizes = [8, 128], strides = [1, 1]} : vector<200x128xf32> to vector<8x128xf32>
    %96 = arith.truncf %95 : vector<8x128xf32> to vector<8x128xbf16>
    %c1792 = arith.constant 1792 : index
    %c0_56 = arith.constant 0 : index
    %97 = vector.load %arg4[%c1792, %c0_56] : memref<3200x128xbf16, #tpu.memory_space<vmem>>, vector<128x128xbf16>
    %cst_57 = arith.constant dense<0.000000e+00> : vector<8x128xf32>
    %98 = tpu.matmul %96, %97, %cst_57 {dimension_numbers = #tpu.dot_dimension_numbers<[1], [0], [0], [1], [0, 0, 1, 1], [], []>} : vector<8x128xbf16>, vector<128x128xbf16>, vector<8x128xf32> -> vector<8x128xf32>
    %99 = arith.addf %94, %98 : vector<8x128xf32>
    %100 = vector.extract_strided_slice %23 {offsets = [120, 0], sizes = [8, 128], strides = [1, 1]} : vector<200x128xf32> to vector<8x128xf32>
    %101 = arith.truncf %100 : vector<8x128xf32> to vector<8x128xbf16>
    %c1920 = arith.constant 1920 : index
    %c0_58 = arith.constant 0 : index
    %102 = vector.load %arg4[%c1920, %c0_58] : memref<3200x128xbf16, #tpu.memory_space<vmem>>, vector<128x128xbf16>
    %cst_59 = arith.constant dense<0.000000e+00> : vector<8x128xf32>
    %103 = tpu.matmul %101, %102, %cst_59 {dimension_numbers = #tpu.dot_dimension_numbers<[1], [0], [0], [1], [0, 0, 1, 1], [], []>} : vector<8x128xbf16>, vector<128x128xbf16>, vector<8x128xf32> -> vector<8x128xf32>
    %104 = arith.addf %99, %103 : vector<8x128xf32>
    %105 = vector.extract_strided_slice %23 {offsets = [128, 0], sizes = [8, 128], strides = [1, 1]} : vector<200x128xf32> to vector<8x128xf32>
    %106 = arith.truncf %105 : vector<8x128xf32> to vector<8x128xbf16>
    %c2048 = arith.constant 2048 : index
    %c0_60 = arith.constant 0 : index
    %107 = vector.load %arg4[%c2048, %c0_60] : memref<3200x128xbf16, #tpu.memory_space<vmem>>, vector<128x128xbf16>
    %cst_61 = arith.constant dense<0.000000e+00> : vector<8x128xf32>
    %108 = tpu.matmul %106, %107, %cst_61 {dimension_numbers = #tpu.dot_dimension_numbers<[1], [0], [0], [1], [0, 0, 1, 1], [], []>} : vector<8x128xbf16>, vector<128x128xbf16>, vector<8x128xf32> -> vector<8x128xf32>
    %109 = arith.addf %104, %108 : vector<8x128xf32>
    %110 = vector.extract_strided_slice %23 {offsets = [136, 0], sizes = [8, 128], strides = [1, 1]} : vector<200x128xf32> to vector<8x128xf32>
    %111 = arith.truncf %110 : vector<8x128xf32> to vector<8x128xbf16>
    %c2176 = arith.constant 2176 : index
    %c0_62 = arith.constant 0 : index
    %112 = vector.load %arg4[%c2176, %c0_62] : memref<3200x128xbf16, #tpu.memory_space<vmem>>, vector<128x128xbf16>
    %cst_63 = arith.constant dense<0.000000e+00> : vector<8x128xf32>
    %113 = tpu.matmul %111, %112, %cst_63 {dimension_numbers = #tpu.dot_dimension_numbers<[1], [0], [0], [1], [0, 0, 1, 1], [], []>} : vector<8x128xbf16>, vector<128x128xbf16>, vector<8x128xf32> -> vector<8x128xf32>
    %114 = arith.addf %109, %113 : vector<8x128xf32>
    %115 = vector.extract_strided_slice %23 {offsets = [144, 0], sizes = [8, 128], strides = [1, 1]} : vector<200x128xf32> to vector<8x128xf32>
    %116 = arith.truncf %115 : vector<8x128xf32> to vector<8x128xbf16>
    %c2304 = arith.constant 2304 : index
    %c0_64 = arith.constant 0 : index
    %117 = vector.load %arg4[%c2304, %c0_64] : memref<3200x128xbf16, #tpu.memory_space<vmem>>, vector<128x128xbf16>
    %cst_65 = arith.constant dense<0.000000e+00> : vector<8x128xf32>
    %118 = tpu.matmul %116, %117, %cst_65 {dimension_numbers = #tpu.dot_dimension_numbers<[1], [0], [0], [1], [0, 0, 1, 1], [], []>} : vector<8x128xbf16>, vector<128x128xbf16>, vector<8x128xf32> -> vector<8x128xf32>
    %119 = arith.addf %114, %118 : vector<8x128xf32>
    %120 = vector.extract_strided_slice %23 {offsets = [152, 0], sizes = [8, 128], strides = [1, 1]} : vector<200x128xf32> to vector<8x128xf32>
    %121 = arith.truncf %120 : vector<8x128xf32> to vector<8x128xbf16>
    %c2432 = arith.constant 2432 : index
    %c0_66 = arith.constant 0 : index
    %122 = vector.load %arg4[%c2432, %c0_66] : memref<3200x128xbf16, #tpu.memory_space<vmem>>, vector<128x128xbf16>
    %cst_67 = arith.constant dense<0.000000e+00> : vector<8x128xf32>
    %123 = tpu.matmul %121, %122, %cst_67 {dimension_numbers = #tpu.dot_dimension_numbers<[1], [0], [0], [1], [0, 0, 1, 1], [], []>} : vector<8x128xbf16>, vector<128x128xbf16>, vector<8x128xf32> -> vector<8x128xf32>
    %124 = arith.addf %119, %123 : vector<8x128xf32>
    %125 = vector.extract_strided_slice %23 {offsets = [160, 0], sizes = [8, 128], strides = [1, 1]} : vector<200x128xf32> to vector<8x128xf32>
    %126 = arith.truncf %125 : vector<8x128xf32> to vector<8x128xbf16>
    %c2560 = arith.constant 2560 : index
    %c0_68 = arith.constant 0 : index
    %127 = vector.load %arg4[%c2560, %c0_68] : memref<3200x128xbf16, #tpu.memory_space<vmem>>, vector<128x128xbf16>
    %cst_69 = arith.constant dense<0.000000e+00> : vector<8x128xf32>
    %128 = tpu.matmul %126, %127, %cst_69 {dimension_numbers = #tpu.dot_dimension_numbers<[1], [0], [0], [1], [0, 0, 1, 1], [], []>} : vector<8x128xbf16>, vector<128x128xbf16>, vector<8x128xf32> -> vector<8x128xf32>
    %129 = arith.addf %124, %128 : vector<8x128xf32>
    %130 = vector.extract_strided_slice %23 {offsets = [168, 0], sizes = [8, 128], strides = [1, 1]} : vector<200x128xf32> to vector<8x128xf32>
    %131 = arith.truncf %130 : vector<8x128xf32> to vector<8x128xbf16>
    %c2688 = arith.constant 2688 : index
    %c0_70 = arith.constant 0 : index
    %132 = vector.load %arg4[%c2688, %c0_70] : memref<3200x128xbf16, #tpu.memory_space<vmem>>, vector<128x128xbf16>
    %cst_71 = arith.constant dense<0.000000e+00> : vector<8x128xf32>
    %133 = tpu.matmul %131, %132, %cst_71 {dimension_numbers = #tpu.dot_dimension_numbers<[1], [0], [0], [1], [0, 0, 1, 1], [], []>} : vector<8x128xbf16>, vector<128x128xbf16>, vector<8x128xf32> -> vector<8x128xf32>
    %134 = arith.addf %129, %133 : vector<8x128xf32>
    %135 = vector.extract_strided_slice %23 {offsets = [176, 0], sizes = [8, 128], strides = [1, 1]} : vector<200x128xf32> to vector<8x128xf32>
    %136 = arith.truncf %135 : vector<8x128xf32> to vector<8x128xbf16>
    %c2816 = arith.constant 2816 : index
    %c0_72 = arith.constant 0 : index
    %137 = vector.load %arg4[%c2816, %c0_72] : memref<3200x128xbf16, #tpu.memory_space<vmem>>, vector<128x128xbf16>
    %cst_73 = arith.constant dense<0.000000e+00> : vector<8x128xf32>
    %138 = tpu.matmul %136, %137, %cst_73 {dimension_numbers = #tpu.dot_dimension_numbers<[1], [0], [0], [1], [0, 0, 1, 1], [], []>} : vector<8x128xbf16>, vector<128x128xbf16>, vector<8x128xf32> -> vector<8x128xf32>
    %139 = arith.addf %134, %138 : vector<8x128xf32>
    %140 = vector.extract_strided_slice %23 {offsets = [184, 0], sizes = [8, 128], strides = [1, 1]} : vector<200x128xf32> to vector<8x128xf32>
    %141 = arith.truncf %140 : vector<8x128xf32> to vector<8x128xbf16>
    %c2944 = arith.constant 2944 : index
    %c0_74 = arith.constant 0 : index
    %142 = vector.load %arg4[%c2944, %c0_74] : memref<3200x128xbf16, #tpu.memory_space<vmem>>, vector<128x128xbf16>
    %cst_75 = arith.constant dense<0.000000e+00> : vector<8x128xf32>
    %143 = tpu.matmul %141, %142, %cst_75 {dimension_numbers = #tpu.dot_dimension_numbers<[1], [0], [0], [1], [0, 0, 1, 1], [], []>} : vector<8x128xbf16>, vector<128x128xbf16>, vector<8x128xf32> -> vector<8x128xf32>
    %144 = arith.addf %139, %143 : vector<8x128xf32>
    %145 = vector.extract_strided_slice %23 {offsets = [192, 0], sizes = [8, 128], strides = [1, 1]} : vector<200x128xf32> to vector<8x128xf32>
    %146 = arith.truncf %145 : vector<8x128xf32> to vector<8x128xbf16>
    %c3072 = arith.constant 3072 : index
    %c0_76 = arith.constant 0 : index
    %147 = vector.load %arg4[%c3072, %c0_76] : memref<3200x128xbf16, #tpu.memory_space<vmem>>, vector<128x128xbf16>
    %cst_77 = arith.constant dense<0.000000e+00> : vector<8x128xf32>
    %148 = tpu.matmul %146, %147, %cst_77 {dimension_numbers = #tpu.dot_dimension_numbers<[1], [0], [0], [1], [0, 0, 1, 1], [], []>} : vector<8x128xbf16>, vector<128x128xbf16>, vector<8x128xf32> -> vector<8x128xf32>
    %149 = arith.addf %144, %148 : vector<8x128xf32>
    %c0_78 = arith.constant 0 : index
    %c0_79 = arith.constant 0 : index
    %150 = vector.load %arg5[%c0_78, %c0_79] : memref<1x128xf32, #tpu.memory_space<vmem>>, vector<1x128xf32>
    %151 = vector.broadcast %150 : vector<1x128xf32> to vector<8x128xf32>
    %152 = arith.addf %149, %151 : vector<8x128xf32>
    %cst_80 = arith.constant 0.000000e+00 : f32
    %153 = vector.broadcast %cst_80 : f32 to vector<8x128xf32>
    %154 = arith.maximumf %152, %153 : vector<8x128xf32>
    %155 = arith.truncf %154 : vector<8x128xf32> to vector<8x128xbf16>
    %c0_81 = arith.constant 0 : index
    %c0_82 = arith.constant 0 : index
    %156 = vector.load %arg6[%c0_81, %c0_82] : memref<128x128xbf16, #tpu.memory_space<vmem>>, vector<128x128xbf16>
    %cst_83 = arith.constant dense<0.000000e+00> : vector<8x128xf32>
    %157 = tpu.matmul %155, %156, %cst_83 {dimension_numbers = #tpu.dot_dimension_numbers<[1], [0], [0], [1], [0, 0, 1, 1], [], []>} : vector<8x128xbf16>, vector<128x128xbf16>, vector<8x128xf32> -> vector<8x128xf32>
    %c0_84 = arith.constant 0 : index
    %c0_85 = arith.constant 0 : index
    %158 = vector.load %arg7[%c0_84, %c0_85] : memref<1x128xf32, #tpu.memory_space<vmem>>, vector<1x128xf32>
    %159 = vector.broadcast %158 : vector<1x128xf32> to vector<8x128xf32>
    %160 = arith.addf %157, %159 : vector<8x128xf32>
    %cst_86 = arith.constant 0.000000e+00 : f32
    %161 = vector.broadcast %cst_86 : f32 to vector<8x128xf32>
    %162 = arith.maximumf %160, %161 : vector<8x128xf32>
    %163 = arith.truncf %162 : vector<8x128xf32> to vector<8x128xbf16>
    %c0_87 = arith.constant 0 : index
    %c0_88 = arith.constant 0 : index
    %164 = vector.load %arg8[%c0_87, %c0_88] : memref<128x128xbf16, #tpu.memory_space<vmem>>, vector<128x128xbf16>
    %cst_89 = arith.constant dense<0.000000e+00> : vector<8x128xf32>
    %165 = tpu.matmul %163, %164, %cst_89 {dimension_numbers = #tpu.dot_dimension_numbers<[1], [0], [0], [1], [0, 0, 1, 1], [], []>} : vector<8x128xbf16>, vector<128x128xbf16>, vector<8x128xf32> -> vector<8x128xf32>
    %c0_90 = arith.constant 0 : index
    %c0_91 = arith.constant 0 : index
    %166 = vector.load %arg9[%c0_90, %c0_91] : memref<1x128xf32, #tpu.memory_space<vmem>>, vector<1x128xf32>
    %167 = vector.broadcast %166 : vector<1x128xf32> to vector<8x128xf32>
    %168 = arith.addf %165, %167 : vector<8x128xf32>
    %c0_92 = arith.constant 0 : index
    %c0_93 = arith.constant 0 : index
    %169 = vector.load %arg10[%c0_92, %c0_93] : memref<8x128xf32, #tpu.memory_space<vmem>>, vector<8x128xf32>
    tpu.vector_store %arg10[%c0_92, %c0_93], %168 {strides = array<i32>} : memref<8x128xf32, #tpu.memory_space<vmem>>, vector<8x128xf32>,
    return
  }
  func.func @transform_0(%arg0: i32) -> (i32, i32, i32, i32) {
    %c0_i32 = arith.constant 0 : i32
    %c0_i32_0 = arith.constant 0 : i32
    %c0_i32_1 = arith.constant 0 : i32
    %c0_i32_2 = arith.constant 0 : i32
    return %arg0, %c0_i32, %c0_i32_0, %c0_i32_1 : i32, i32, i32, i32
  }
  func.func @transform_1(%arg0: i32) -> (i32, i32) {
    %c0_i32 = arith.constant 0 : i32
    %c0_i32_0 = arith.constant 0 : i32
    %c0_i32_1 = arith.constant 0 : i32
    return %c0_i32, %c0_i32_0 : i32, i32
  }
  func.func @transform_2(%arg0: i32) -> (i32, i32) {
    %c0_i32 = arith.constant 0 : i32
    %c0_i32_0 = arith.constant 0 : i32
    %c0_i32_1 = arith.constant 0 : i32
    return %c0_i32, %c0_i32_0 : i32, i32
  }
  func.func @transform_3(%arg0: i32) -> (i32, i32) {
    %c0_i32 = arith.constant 0 : i32
    %c0_i32_0 = arith.constant 0 : i32
    %c0_i32_1 = arith.constant 0 : i32
    return %c0_i32, %c0_i32_0 : i32, i32
  }
  func.func @transform_4(%arg0: i32) -> (i32, i32) {
    %c0_i32 = arith.constant 0 : i32
    %c0_i32_0 = arith.constant 0 : i32
    %c0_i32_1 = arith.constant 0 : i32
    return %c0_i32, %c0_i32_0 : i32, i32
  }
  func.func @transform_5(%arg0: i32) -> (i32, i32) {
    %c0_i32 = arith.constant 0 : i32
    %c0_i32_0 = arith.constant 0 : i32
    %c0_i32_1 = arith.constant 0 : i32
    return %c0_i32, %c0_i32_0 : i32, i32
  }
  func.func @transform_6(%arg0: i32) -> (i32, i32) {
    %c0_i32 = arith.constant 0 : i32
    %c0_i32_0 = arith.constant 0 : i32
    %c0_i32_1 = arith.constant 0 : i32
    return %c0_i32, %c0_i32_0 : i32, i32
  }
  func.func @transform_7(%arg0: i32) -> (i32, i32) {
    %c0_i32 = arith.constant 0 : i32
    %c0_i32_0 = arith.constant 0 : i32
    %c0_i32_1 = arith.constant 0 : i32
    return %c0_i32, %c0_i32_0 : i32, i32
  }
  func.func @transform_8(%arg0: i32) -> (i32, i32) {
    %c0_i32 = arith.constant 0 : i32
    %c0_i32_0 = arith.constant 0 : i32
    %c0_i32_1 = arith.constant 0 : i32
    return %c0_i32, %c0_i32_0 : i32, i32
  }
  func.func @transform_9(%arg0: i32) -> (i32, i32) {
    %c0_i32 = arith.constant 0 : i32
    %c0_i32_0 = arith.constant 0 : i32
    return %arg0, %c0_i32 : i32, i32
  }
}

</mosaic_0001>

<bundles_post_ra>
// kernel: net_forward.2
= control target key start
LH: loop header
LB: loop body
LE: loop exit
PB: predicated region body
PF: predicated region fallthrough
CT: control target
= control target key end

     0   :  { %vm1699_vm0 = vcmask 60416   ;;  %s11958_s1 = inlined_call_operand.vmem [shape: bf16[128,128], index: 1, kind: input, shape index: {}]   ;;  %s11959_s0 = inlined_call_operand.vmem [shape: bf16[1,4,1568,128], index: 0, kind: input, shape index: {}]   ;;  %s11960_s2 = inlined_call_operand.vmem [shape: f32[1,128], index: 2, kind: input, shape index: {}]   ;;  %s11961_s3 = inlined_call_operand.vmem [shape: bf16[1,1568,8], index: 3, kind: output, shape index: {}]  }
   0x1   :  { %v9229_v0 = vld [vmem:[%s11958_s1 + $0x38] sm:$0xff]  ;;  %v9228_v1 = vld [vmem:[%s11958_s1 + $0x30] sm:$0xff]  ;;  %v9227_v2 = vld [vmem:[%s11958_s1 + $0x28] sm:$0xff] }
   0x2   :  { %275 = vmatpush.bf16.msra.mxu0 %v9229_v0  ;;  %606 = vmatpush.bf16.msra.mxu1 %v9229_v0  ;;  %v9226_v3 = vld [vmem:[%s11958_s1 + $0x20] sm:$0xff]  ;;  %v9225_v4 = vld [vmem:[%s11958_s1 + $0x18] sm:$0xff]  ;;  %v9224_v5 = vld [vmem:[%s11958_s1 + $0x10] sm:$0xff] }
   0x3   :  { %986 = vmatpush.bf16.msra.mxu2 %v9229_v0  ;;  %1366 = vmatpush.bf16.msra.mxu3 %v9229_v0  ;;  %v9223_v6 = vld [vmem:[%s11958_s1 + $0x8] sm:$0xff]  ;;  %v9222_v7 = vld [vmem:[%s11958_s1] sm:$0xff]  ;;  %v9333_v8 = vld [vmem:[%s11958_s1 + $0x38] sm:$0xff] }
   0x4   :  { %v9198_v9 = vld [vmem:[%s11959_s0] sm:$0xff]  ;;  %v9230_v10 = vld [vmem:[%s11959_s0 + $0x310] sm:$0xff]  ;;  %v9199_v13 = vld [vmem:[%s11959_s0 + $0x8] sm:$0xff] }
   0x5   :  { %v9254_v11 = vld [vmem:[%s11959_s0 + $0x620] sm:$0xff]  ;;  %v9278_v12 = vld [vmem:[%s11959_s0 + $0x930] sm:$0xff]  ;;  %v9231_v14 = vld [vmem:[%s11959_s0 + $0x318] sm:$0xff] }
   0x6   :  { %276 = vmatpush.bf16.msra.mxu0 %v9228_v1  ;;  %607 = vmatpush.bf16.msra.mxu1 %v9228_v1  ;;  %v9255_v15 = vld [vmem:[%s11959_s0 + $0x628] sm:$0xff]  ;;  %v9279_v16 = vld [vmem:[%s11959_s0 + $0x938] sm:$0xff]  ;;  %v9332_v17 = vld [vmem:[%s11958_s1 + $0x30] sm:$0xff] }
   0x7   :  { %987 = vmatpush.bf16.msra.mxu2 %v9228_v1  ;;  %1367 = vmatpush.bf16.msra.mxu3 %v9228_v1  ;;  %v9200_v18 = vld [vmem:[%s11959_s0 + $0x10] sm:$0xff]  ;;  %v9232_v19 = vld [vmem:[%s11959_s0 + $0x320] sm:$0xff]  ;;  %v9201_v22 = vld [vmem:[%s11959_s0 + $0x18] sm:$0xff] }
   0x8   :  { %v9256_v20 = vld [vmem:[%s11959_s0 + $0x630] sm:$0xff]  ;;  %v9280_v21 = vld [vmem:[%s11959_s0 + $0x940] sm:$0xff]  ;;  %v9233_v23 = vld [vmem:[%s11959_s0 + $0x328] sm:$0xff] }
   0x9   :  { %v9257_v24 = vld [vmem:[%s11959_s0 + $0x638] sm:$0xff]  ;;  %v9281_v25 = vld [vmem:[%s11959_s0 + $0x948] sm:$0xff]  ;;  %v9202_v26 = vld [vmem:[%s11959_s0 + $0x20] sm:$0xff] }
   0xa   :  { %277 = vmatpush.bf16.msra.mxu0 %v9227_v2  ;;  %608 = vmatpush.bf16.msra.mxu1 %v9227_v2  ;;  %v9234_v27 = vld [vmem:[%s11959_s0 + $0x330] sm:$0xff]  ;;  %v9258_v28 = vld [vmem:[%s11959_s0 + $0x640] sm:$0xff]  ;;  %v9331_v30 = vld [vmem:[%s11958_s1 + $0x28] sm:$0xff] }
   0xb   :  { %988 = vmatpush.bf16.msra.mxu2 %v9227_v2  ;;  %1368 = vmatpush.bf16.msra.mxu3 %v9227_v2  ;;  %v9282_v29 = vld [vmem:[%s11959_s0 + $0x950] sm:$0xff]  ;;  %v9203_v31 = vld [vmem:[%s11959_s0 + $0x28] sm:$0xff]  ;;  %v9235_v32 = vld [vmem:[%s11959_s0 + $0x338] sm:$0xff] }
   0xc   :  { %v9259_v33 = vld [vmem:[%s11959_s0 + $0x648] sm:$0xff]  ;;  %v9283_v34 = vld [vmem:[%s11959_s0 + $0x958] sm:$0xff]  ;;  %v9204_v35 = vld [vmem:[%s11959_s0 + $0x30] sm:$0xff] }
   0xd   :  { %v9236_v36 = vld [vmem:[%s11959_s0 + $0x340] sm:$0xff]  ;;  %v9260_v37 = vld [vmem:[%s11959_s0 + $0x650] sm:$0xff]  ;;  %v9205_v39 = vld [vmem:[%s11959_s0 + $0x38] sm:$0xff] }
   0xe   :  { %278 = vmatpush.bf16.msra.mxu0 %v9226_v3  ;;  %609 = vmatpush.bf16.msra.mxu1 %v9226_v3  ;;  %v9284_v38 = vld [vmem:[%s11959_s0 + $0x960] sm:$0xff]  ;;  %v9237_v40 = vld [vmem:[%s11959_s0 + $0x348] sm:$0xff]  ;;  %v9261_v41 = vld [vmem:[%s11959_s0 + $0x658] sm:$0xff] }
   0xf   :  { %989 = vmatpush.bf16.msra.mxu2 %v9226_v3  ;;  %1369 = vmatpush.bf16.msra.mxu3 %v9226_v3  ;;  %v9285_v42 = vld [vmem:[%s11959_s0 + $0x968] sm:$0xff]  ;;  %v9206_v43 = vld [vmem:[%s11959_s0 + $0x40] sm:$0xff]  ;;  %v9238_v44 = vld [vmem:[%s11959_s0 + $0x350] sm:$0xff] }
  0x10   :  { %v9262_v47 = vld [vmem:[%s11959_s0 + $0x660] sm:$0xff]  ;;  %v9286_v48 = vld [vmem:[%s11959_s0 + $0x970] sm:$0xff]  ;;  %v9207_v63 = vld [vmem:[%s11959_s0 + $0x48] sm:$0xff] }
  0x11   :  { %v9330_v49 = vld [vmem:[%s11958_s1 + $0x20] sm:$0xff]  ;;  %v9239_v0 = vld [vmem:[%s11959_s0 + $0x358] sm:$0xff] }
  0x12   :  { %279 = vmatpush.bf16.msra.mxu0 %v9225_v4  ;;  %610 = vmatpush.bf16.msra.mxu1 %v9225_v4  ;;  %v9789_v54 = vld [vmem:[%s11960_s2] ss:$0 sm:$0xff] }
  0x13   :  { %990 = vmatpush.bf16.msra.mxu2 %v9225_v4  ;;  %1370 = vmatpush.bf16.msra.mxu3 %v9225_v4 }
  0x16   :  { %280 = vmatpush.bf16.msra.mxu0 %v9224_v5  ;;  %611 = vmatpush.bf16.msra.mxu1 %v9224_v5 }
  0x17   :  { %991 = vmatpush.bf16.msra.mxu2 %v9224_v5  ;;  %1371 = vmatpush.bf16.msra.mxu3 %v9224_v5  ;;  %v9263_v5 = vld [vmem:[%s11959_s0 + $0x668] sm:$0xff] }
  0x1a   :  { %281 = vmatpush.bf16.msra.mxu0 %v9223_v6  ;;  %612 = vmatpush.bf16.msra.mxu1 %v9223_v6 }
  0x1b   :  { %992 = vmatpush.bf16.msra.mxu2 %v9223_v6  ;;  %1372 = vmatpush.bf16.msra.mxu3 %v9223_v6  ;;  %v9287_v6 = vld [vmem:[%s11959_s0 + $0x978] sm:$0xff] }
  0x1e   :  { %282 = vmatpush.bf16.msra.mxu0 %v9222_v7  ;;  %613 = vmatpush.bf16.msra.mxu1 %v9222_v7 }
  0x1f   :  { %993 = vmatpush.bf16.msra.mxu2 %v9222_v7  ;;  %1373 = vmatpush.bf16.msra.mxu3 %v9222_v7 }
  0x21   :  { %283 = vmatmul.bf16.vlgmr.msra.gmra.mxu0 %v9198_v9  ;;  %614 = vmatmul.bf16.vlgmr.msra.gmra.mxu1 %v9230_v10 }
  0x22   :  { %994 = vmatmul.bf16.vlgmr.msra.gmra.mxu2 %v9254_v11  ;;  %1374 = vmatmul.bf16.vlgmr.msra.gmra.mxu3 %v9278_v12 }
  0x23   :  { %2719 = vmatpush.bf16.msrb.mxu2 %v9333_v8  ;;  %3098 = vmatpush.bf16.msrb.mxu3 %v9333_v8 }
  0x24   :  { %2010 = vmatpush.bf16.msrb.mxu0 %v9333_v8  ;;  %2340 = vmatpush.bf16.msrb.mxu1 %v9333_v8 }
  0x27   :  { %2720 = vmatpush.bf16.msrb.mxu2 %v9332_v17  ;;  %3099 = vmatpush.bf16.msrb.mxu3 %v9332_v17 }
  0x28   :  { %2011 = vmatpush.bf16.msrb.mxu0 %v9332_v17  ;;  %2341 = vmatpush.bf16.msrb.mxu1 %v9332_v17 }
  0x2b   :  { %2721 = vmatpush.bf16.msrb.mxu2 %v9331_v30  ;;  %3100 = vmatpush.bf16.msrb.mxu3 %v9331_v30 }
  0x2c   :  { %2012 = vmatpush.bf16.msrb.mxu0 %v9331_v30  ;;  %2342 = vmatpush.bf16.msrb.mxu1 %v9331_v30  ;;  %v9288_v30 = vld [vmem:[%s11959_s0 + $0x980] sm:$0xff] }
  0x2f   :  { %2722 = vmatpush.bf16.msrb.mxu2 %v9330_v49  ;;  %3101 = vmatpush.bf16.msrb.mxu3 %v9330_v49 }
  0x30   :  { %2013 = vmatpush.bf16.msrb.mxu0 %v9330_v49  ;;  %2343 = vmatpush.bf16.msrb.mxu1 %v9330_v49 }
  0x31   :  { %288 = vmatmul.bf16.gmra.mxu0 %v9199_v13  ;;  %619 = vmatmul.bf16.gmra.mxu1 %v9231_v14 }
  0x32   :  { %999 = vmatmul.bf16.gmra.mxu2 %v9255_v15  ;;  %1379 = vmatmul.bf16.gmra.mxu3 %v9279_v16 }
  0x41   :  { %293 = vmatmul.bf16.gmra.mxu0 %v9200_v18  ;;  %624 = vmatmul.bf16.gmra.mxu1 %v9232_v19 }
  0x42   :  { %1004 = vmatmul.bf16.gmra.mxu2 %v9256_v20  ;;  %1384 = vmatmul.bf16.gmra.mxu3 %v9280_v21 }
  0x51   :  { %298 = vmatmul.bf16.gmra.mxu0 %v9201_v22  ;;  %629 = vmatmul.bf16.gmra.mxu1 %v9233_v23  ;;  %v9208_v23 = vld [vmem:[%s11959_s0 + $0x50] sm:$0xff] }
  0x52   :  { %1009 = vmatmul.bf16.gmra.mxu2 %v9257_v24  ;;  %1389 = vmatmul.bf16.gmra.mxu3 %v9281_v25  ;;  %v9240_v24 = vld [vmem:[%s11959_s0 + $0x360] sm:$0xff] }
  0x61   :  { %303 = vmatmul.bf16.gmra.mxu0 %v9202_v26  ;;  %634 = vmatmul.bf16.gmra.mxu1 %v9234_v27 }
  0x62   :  { %1014 = vmatmul.bf16.gmra.mxu2 %v9258_v28  ;;  %1394 = vmatmul.bf16.gmra.mxu3 %v9282_v29  ;;  %v9264_v29 = vld [vmem:[%s11959_s0 + $0x670] sm:$0xff] }
  0x71   :  { %308 = vmatmul.bf16.gmra.mxu0 %v9203_v31  ;;  %639 = vmatmul.bf16.gmra.mxu1 %v9235_v32 }
  0x72   :  { %1019 = vmatmul.bf16.gmra.mxu2 %v9259_v33  ;;  %1399 = vmatmul.bf16.gmra.mxu3 %v9283_v34 }
  0x81   :  { %313 = vmatmul.bf16.gmra.mxu0 %v9204_v35  ;;  %644 = vmatmul.bf16.gmra.mxu1 %v9236_v36 }
  0x82   :  { %1024 = vmatmul.bf16.gmra.mxu2 %v9260_v37  ;;  %1404 = vmatmul.bf16.gmra.mxu3 %v9284_v38 }
  0x91   :  { %318 = vmatmul.bf16.gmra.mxu0 %v9205_v39  ;;  %649 = vmatmul.bf16.gmra.mxu1 %v9237_v40 }
  0x92   :  { %1029 = vmatmul.bf16.gmra.mxu2 %v9261_v41  ;;  %1409 = vmatmul.bf16.gmra.mxu3 %v9285_v42 }
  0x9e   :  { %v284_v45 = vpop.f32.mrf.mxu0  ;;  %v615_v46 = vpop.f32.mrf.mxu1 }
  0x9f   :  { %v739_v50 = vmax.f32 %v284_v45, %v615_v46 }
  0xa1   :  { %323 = vmatmul.bf16.gmra.mxu0 %v9206_v43  ;;  %654 = vmatmul.bf16.gmra.mxu1 %v9238_v44 }
  0xa2   :  { %1034 = vmatmul.bf16.gmra.mxu2 %v9262_v47  ;;  %1414 = vmatmul.bf16.gmra.mxu3 %v9286_v48  ;;  %v9209_v47 = vld [vmem:[%s11959_s0 + $0x58] sm:$0xff]  ;;  %v9241_v48 = vld [vmem:[%s11959_s0 + $0x368] sm:$0xff] }
  0xa5   :  { %v995_v51 = vpop.f32.mrf.mxu2  ;;  %v1375_v52 = vpop.f32.mrf.mxu3 }
  0xa6   :  { %v1119_v53 = vmax.f32 %v739_v50, %v995_v51  ;;  %v286_v55 = vpop.f32.mrf.mxu0  ;;  %v617_v56 = vpop.f32.mrf.mxu1 }
  0xa7   :  { %v740_v60 = vmax.f32 %v286_v55, %v617_v56  ;;  %v9289_v55 = vld [vmem:[%s11959_s0 + $0x988] sm:$0xff] }
  0xa8   :  { %v1499_v57 = vmax.f32 %v1119_v53, %v1375_v52  ;;  %v9265_v53 = vld [vmem:[%s11959_s0 + $0x678] sm:$0xff] }
  0xaa   :  { %v1552_v58 = vadd.f32 %v9789_v54, %v1499_v57  ;;  %v9329_v57 = vld [vmem:[%s11958_s1 + $0x18] sm:$0xff] }
  0xab   :  { %2723 = vmatpush.bf16.msrb.mxu2 %v9329_v57  ;;  %3102 = vmatpush.bf16.msrb.mxu3 %v9329_v57 }
  0xac   :  { %v1601_v59 = vmax.f32 %v1552_v58, 0.0  ;;  %2014 = vmatpush.bf16.msrb.mxu0 %v9329_v57  ;;  %2344 = vmatpush.bf16.msrb.mxu1 %v9329_v57 }
  0xad   :  { %v997_v61 = vpop.f32.mrf.mxu2  ;;  %v1377_v62 = vpop.f32.mrf.mxu3 }
  0xae   :  { %v1650_v1 = vpack.c.bf16 %v1601_v59, %v1601_v59  ;;  %v1120_v2 = vmax.f32 %v740_v60, %v997_v61  ;;  %v289_v3 = vpop.f32.mrf.mxu0  ;;  %v620_v4 = vpop.f32.mrf.mxu1 }
  0xaf   :  { %v741_v9 = vmax.f32 %v289_v3, %v620_v4 }
  0xb0   :  { %1700 = vst.msk [vmem:[%s11961_s3] sm:$0xf] %vm1699_vm0, %v1650_v1  ;;  %v1500_v7 = vmax.f32 %v1120_v2, %v1377_v62 }
  0xb1   :  { %328 = vmatmul.bf16.gmra.mxu0 %v9207_v63  ;;  %659 = vmatmul.bf16.gmra.mxu1 %v9239_v0 }
  0xb2   :  { %v1553_v8 = vadd.f32 %v9789_v54, %v1500_v7  ;;  %1039 = vmatmul.bf16.gmra.mxu2 %v9263_v5  ;;  %1419 = vmatmul.bf16.gmra.mxu3 %v9287_v6 }
  0xb4   :  { %v1602_v10 = vmax.f32 %v1553_v8, 0.0 }
  0xb5   :  { %v1000_v11 = vpop.f32.mrf.mxu2  ;;  %v1380_v12 = vpop.f32.mrf.mxu3 }
  0xb6   :  { %v1651_v13 = vpack.c.bf16 %v1602_v10, %v1602_v10  ;;  %v1121_v14 = vmax.f32 %v741_v9, %v1000_v11  ;;  %v291_v15 = vpop.f32.mrf.mxu0  ;;  %v622_v16 = vpop.f32.mrf.mxu1  ;;  %v9210_v9 = vld [vmem:[%s11959_s0 + $0x60] sm:$0xff]  ;;  %v9242_v10 = vld [vmem:[%s11959_s0 + $0x370] sm:$0xff] }
  0xb7   :  { %v742_v20 = vmax.f32 %v291_v15, %v622_v16  ;;  %v9266_v15 = vld [vmem:[%s11959_s0 + $0x680] sm:$0xff]  ;;  %v9290_v16 = vld [vmem:[%s11959_s0 + $0x990] sm:$0xff] }
  0xb8   :  { %1701 = vst.msk [vmem:[%s11961_s3 + $0x4] sm:$0xf] %vm1699_vm0, %v1651_v13  ;;  %v1501_v17 = vmax.f32 %v1121_v14, %v1380_v12 }
  0xba   :  { %v1554_v18 = vadd.f32 %v9789_v54, %v1501_v17 }
  0xbc   :  { %v1603_v19 = vmax.f32 %v1554_v18, 0.0 }
  0xbd   :  { %v1002_v21 = vpop.f32.mrf.mxu2  ;;  %v1382_v22 = vpop.f32.mrf.mxu3 }
  0xbe   :  { %v1652_v25 = vpack.c.bf16 %v1603_v19, %v1603_v19  ;;  %v1122_v26 = vmax.f32 %v742_v20, %v1002_v21  ;;  %v294_v27 = vpop.f32.mrf.mxu0  ;;  %v625_v28 = vpop.f32.mrf.mxu1 }
  0xbf   :  { %v743_v33 = vmax.f32 %v294_v27, %v625_v28 }
  0xc0   :  { %1702 = vst.msk [vmem:[%s11961_s3 + $0x8] sm:$0xf] %vm1699_vm0, %v1652_v25  ;;  %v1502_v31 = vmax.f32 %v1122_v26, %v1382_v22 }
  0xc1   :  { %333 = vmatmul.bf16.gmra.mxu0 %v9208_v23  ;;  %664 = vmatmul.bf16.gmra.mxu1 %v9240_v24 }
  0xc2   :  { %v1555_v32 = vadd.f32 %v9789_v54, %v1502_v31  ;;  %1044 = vmatmul.bf16.gmra.mxu2 %v9264_v29  ;;  %1424 = vmatmul.bf16.gmra.mxu3 %v9288_v30 }
  0xc4   :  { %v1604_v34 = vmax.f32 %v1555_v32, 0.0 }
  0xc5   :  { %v1005_v35 = vpop.f32.mrf.mxu2  ;;  %v1385_v36 = vpop.f32.mrf.mxu3 }
  0xc6   :  { %v1653_v37 = vpack.c.bf16 %v1604_v34, %v1604_v34  ;;  %v1123_v38 = vmax.f32 %v743_v33, %v1005_v35  ;;  %v296_v39 = vpop.f32.mrf.mxu0  ;;  %v627_v40 = vpop.f32.mrf.mxu1  ;;  %v9211_v33 = vld [vmem:[%s11959_s0 + $0x68] sm:$0xff]  ;;  %v9243_v34 = vld [vmem:[%s11959_s0 + $0x378] sm:$0xff] }
  0xc7   :  { %v744_v44 = vmax.f32 %v296_v39, %v627_v40  ;;  %v9267_v39 = vld [vmem:[%s11959_s0 + $0x688] sm:$0xff]  ;;  %v9291_v40 = vld [vmem:[%s11959_s0 + $0x998] sm:$0xff] }
  0xc8   :  { %1703 = vst.msk [vmem:[%s11961_s3 + $0xc] sm:$0xf] %vm1699_vm0, %v1653_v37  ;;  %v1503_v41 = vmax.f32 %v1123_v38, %v1385_v36 }
  0xca   :  { %v1556_v42 = vadd.f32 %v9789_v54, %v1503_v41 }
  0xcc   :  { %v1605_v43 = vmax.f32 %v1556_v42, 0.0 }
  0xcd   :  { %v1007_v45 = vpop.f32.mrf.mxu2  ;;  %v1387_v46 = vpop.f32.mrf.mxu3 }
  0xce   :  { %v1654_v49 = vpack.c.bf16 %v1605_v43, %v1605_v43  ;;  %v1124_v50 = vmax.f32 %v744_v44, %v1007_v45  ;;  %v299_v51 = vpop.f32.mrf.mxu0  ;;  %v630_v52 = vpop.f32.mrf.mxu1 }
  0xcf   :  { %v745_v59 = vmax.f32 %v299_v51, %v630_v52 }
  0xd0   :  { %1704 = vst.msk [vmem:[%s11961_s3 + $0x10] sm:$0xf] %vm1699_vm0, %v1654_v49  ;;  %v1504_v56 = vmax.f32 %v1124_v50, %v1387_v46 }
  0xd1   :  { %338 = vmatmul.bf16.gmra.mxu0 %v9209_v47  ;;  %669 = vmatmul.bf16.gmra.mxu1 %v9241_v48 }
  0xd2   :  { %v1557_v58 = vadd.f32 %v9789_v54, %v1504_v56  ;;  %1049 = vmatmul.bf16.gmra.mxu2 %v9265_v53  ;;  %1429 = vmatmul.bf16.gmra.mxu3 %v9289_v55 }
  0xd4   :  { %v1606_v60 = vmax.f32 %v1557_v58, 0.0  ;;  %v9212_v58 = vld [vmem:[%s11959_s0 + $0x70] sm:$0xff] }
  0xd5   :  { %v1010_v61 = vpop.f32.mrf.mxu2  ;;  %v1390_v62 = vpop.f32.mrf.mxu3 }
  0xd6   :  { %v1655_v63 = vpack.c.bf16 %v1606_v60, %v1606_v60  ;;  %v1125_v0 = vmax.f32 %v745_v59, %v1010_v61  ;;  %v301_v1 = vpop.f32.mrf.mxu0  ;;  %v632_v2 = vpop.f32.mrf.mxu1  ;;  %v9244_v59 = vld [vmem:[%s11959_s0 + $0x380] sm:$0xff] }
  0xd7   :  { %v746_v6 = vmax.f32 %v301_v1, %v632_v2  ;;  %v9292_v1 = vld [vmem:[%s11959_s0 + $0x9a0] sm:$0xff] }
  0xd8   :  { %1705 = vst.msk [vmem:[%s11961_s3 + $0x14] sm:$0xf] %vm1699_vm0, %v1655_v63  ;;  %v1505_v3 = vmax.f32 %v1125_v0, %v1390_v62  ;;  %v9268_v0 = vld [vmem:[%s11959_s0 + $0x690] sm:$0xff] }
  0xda   :  { %v1558_v4 = vadd.f32 %v9789_v54, %v1505_v3  ;;  %v9328_v3 = vld [vmem:[%s11958_s1 + $0x10] sm:$0xff] }
  0xdb   :  { %2724 = vmatpush.bf16.msrb.mxu2 %v9328_v3  ;;  %3103 = vmatpush.bf16.msrb.mxu3 %v9328_v3 }
  0xdc   :  { %v1607_v5 = vmax.f32 %v1558_v4, 0.0  ;;  %2015 = vmatpush.bf16.msrb.mxu0 %v9328_v3  ;;  %2345 = vmatpush.bf16.msrb.mxu1 %v9328_v3 }
  0xdd   :  { %v1012_v7 = vpop.f32.mrf.mxu2  ;;  %v1392_v8 = vpop.f32.mrf.mxu3 }
  0xde   :  { %v1656_v11 = vpack.c.bf16 %v1607_v5, %v1607_v5  ;;  %v1126_v12 = vmax.f32 %v746_v6, %v1012_v7  ;;  %v304_v13 = vpop.f32.mrf.mxu0  ;;  %v635_v14 = vpop.f32.mrf.mxu1 }
  0xdf   :  { %v747_v19 = vmax.f32 %v304_v13, %v635_v14 }
  0xe0   :  { %1706 = vst.msk [vmem:[%s11961_s3 + $0x18] sm:$0xf] %vm1699_vm0, %v1656_v11  ;;  %v1506_v17 = vmax.f32 %v1126_v12, %v1392_v8 }
  0xe1   :  { %343 = vmatmul.bf16.gmra.mxu0 %v9210_v9  ;;  %674 = vmatmul.bf16.gmra.mxu1 %v9242_v10 }
  0xe2   :  { %v1559_v18 = vadd.f32 %v9789_v54, %v1506_v17  ;;  %1054 = vmatmul.bf16.gmra.mxu2 %v9266_v15  ;;  %1434 = vmatmul.bf16.gmra.mxu3 %v9290_v16 }
  0xe4   :  { %v1608_v20 = vmax.f32 %v1559_v18, 0.0 }
  0xe5   :  { %v1015_v21 = vpop.f32.mrf.mxu2  ;;  %v1395_v22 = vpop.f32.mrf.mxu3 }
  0xe6   :  { %v1657_v23 = vpack.c.bf16 %v1608_v20, %v1608_v20  ;;  %v1127_v24 = vmax.f32 %v747_v19, %v1015_v21  ;;  %v306_v25 = vpop.f32.mrf.mxu0  ;;  %v637_v26 = vpop.f32.mrf.mxu1  ;;  %v9213_v19 = vld [vmem:[%s11959_s0 + $0x78] sm:$0xff]  ;;  %v9245_v20 = vld [vmem:[%s11959_s0 + $0x388] sm:$0xff] }
  0xe7   :  { %v748_v30 = vmax.f32 %v306_v25, %v637_v26  ;;  %v9269_v25 = vld [vmem:[%s11959_s0 + $0x698] sm:$0xff]  ;;  %v9293_v26 = vld [vmem:[%s11959_s0 + $0x9a8] sm:$0xff] }
  0xe8   :  { %1707 = vst.msk [vmem:[%s11961_s3 + $0x1c] sm:$0xf] %vm1699_vm0, %v1657_v23  ;;  %v1507_v27 = vmax.f32 %v1127_v24, %v1395_v22 }
  0xea   :  { %v1560_v28 = vadd.f32 %v9789_v54, %v1507_v27 }
  0xec   :  { %v1609_v29 = vmax.f32 %v1560_v28, 0.0 }
  0xed   :  { %v1017_v31 = vpop.f32.mrf.mxu2  ;;  %v1397_v32 = vpop.f32.mrf.mxu3 }
  0xee   :  { %v1658_v35 = vpack.c.bf16 %v1609_v29, %v1609_v29  ;;  %v1128_v36 = vmax.f32 %v748_v30, %v1017_v31  ;;  %v309_v37 = vpop.f32.mrf.mxu0  ;;  %v640_v38 = vpop.f32.mrf.mxu1 }
  0xef   :  { %v749_v43 = vmax.f32 %v309_v37, %v640_v38 }
  0xf0   :  { %1708 = vst.msk [vmem:[%s11961_s3 + $0x20] sm:$0xf] %vm1699_vm0, %v1658_v35  ;;  %v1508_v41 = vmax.f32 %v1128_v36, %v1397_v32 }
  0xf1   :  { %348 = vmatmul.bf16.gmra.mxu0 %v9211_v33  ;;  %679 = vmatmul.bf16.gmra.mxu1 %v9243_v34 }
  0xf2   :  { %v1561_v42 = vadd.f32 %v9789_v54, %v1508_v41  ;;  %1059 = vmatmul.bf16.gmra.mxu2 %v9267_v39  ;;  %1439 = vmatmul.bf16.gmra.mxu3 %v9291_v40 }
  0xf4   :  { %v1610_v44 = vmax.f32 %v1561_v42, 0.0 }
  0xf5   :  { %v1020_v45 = vpop.f32.mrf.mxu2  ;;  %v1400_v46 = vpop.f32.mrf.mxu3 }
  0xf6   :  { %v1659_v47 = vpack.c.bf16 %v1610_v44, %v1610_v44  ;;  %v1129_v48 = vmax.f32 %v749_v43, %v1020_v45  ;;  %v311_v49 = vpop.f32.mrf.mxu0  ;;  %v642_v50 = vpop.f32.mrf.mxu1  ;;  %v9214_v43 = vld [vmem:[%s11959_s0 + $0x80] sm:$0xff]  ;;  %v9246_v44 = vld [vmem:[%s11959_s0 + $0x390] sm:$0xff] }
  0xf7   :  { %v750_v55 = vmax.f32 %v311_v49, %v642_v50  ;;  %v9270_v49 = vld [vmem:[%s11959_s0 + $0x6a0] sm:$0xff]  ;;  %v9294_v50 = vld [vmem:[%s11959_s0 + $0x9b0] sm:$0xff] }
  0xf8   :  { %1709 = vst.msk [vmem:[%s11961_s3 + $0x24] sm:$0xf] %vm1699_vm0, %v1659_v47  ;;  %v1509_v51 = vmax.f32 %v1129_v48, %v1400_v46 }
  0xfa   :  { %v1562_v52 = vadd.f32 %v9789_v54, %v1509_v51 }
  0xfc   :  { %v1611_v53 = vmax.f32 %v1562_v52, 0.0 }
  0xfd   :  { %v1022_v56 = vpop.f32.mrf.mxu2  ;;  %v1402_v57 = vpop.f32.mrf.mxu3 }
  0xfe   :  { %v1660_v60 = vpack.c.bf16 %v1611_v53, %v1611_v53  ;;  %v1130_v61 = vmax.f32 %v750_v55, %v1022_v56  ;;  %v314_v62 = vpop.f32.mrf.mxu0  ;;  %v645_v63 = vpop.f32.mrf.mxu1 }
  0xff   :  { %v751_v5 = vmax.f32 %v314_v62, %v645_v63 }
 0x100   :  { %1710 = vst.msk [vmem:[%s11961_s3 + $0x28] sm:$0xf] %vm1699_vm0, %v1660_v60  ;;  %v1510_v2 = vmax.f32 %v1130_v61, %v1402_v57 }
 0x101   :  { %353 = vmatmul.bf16.gmra.mxu0 %v9212_v58  ;;  %684 = vmatmul.bf16.gmra.mxu1 %v9244_v59 }
 0x102   :  { %v1563_v4 = vadd.f32 %v9789_v54, %v1510_v2  ;;  %1064 = vmatmul.bf16.gmra.mxu2 %v9268_v0  ;;  %1444 = vmatmul.bf16.gmra.mxu3 %v9292_v1 }
 0x104   :  { %v1612_v6 = vmax.f32 %v1563_v4, 0.0  ;;  %v9215_v4 = vld [vmem:[%s11959_s0 + $0x88] sm:$0xff] }
 0x105   :  { %v1025_v7 = vpop.f32.mrf.mxu2  ;;  %v1405_v8 = vpop.f32.mrf.mxu3 }
 0x106   :  { %v1661_v9 = vpack.c.bf16 %v1612_v6, %v1612_v6  ;;  %v1131_v10 = vmax.f32 %v751_v5, %v1025_v7  ;;  %v316_v11 = vpop.f32.mrf.mxu0  ;;  %v647_v12 = vpop.f32.mrf.mxu1  ;;  %v9247_v5 = vld [vmem:[%s11959_s0 + $0x398] sm:$0xff] }
 0x107   :  { %v752_v16 = vmax.f32 %v316_v11, %v647_v12  ;;  %v9295_v11 = vld [vmem:[%s11959_s0 + $0x9b8] sm:$0xff] }
 0x108   :  { %1711 = vst.msk [vmem:[%s11961_s3 + $0x2c] sm:$0xf] %vm1699_vm0, %v1661_v9  ;;  %v1511_v13 = vmax.f32 %v1131_v10, %v1405_v8  ;;  %v9271_v10 = vld [vmem:[%s11959_s0 + $0x6a8] sm:$0xff] }
 0x10a   :  { %v1564_v14 = vadd.f32 %v9789_v54, %v1511_v13 }
 0x10c   :  { %v1613_v15 = vmax.f32 %v1564_v14, 0.0 }
 0x10d   :  { %v1027_v17 = vpop.f32.mrf.mxu2  ;;  %v1407_v18 = vpop.f32.mrf.mxu3 }
 0x10e   :  { %v1662_v21 = vpack.c.bf16 %v1613_v15, %v1613_v15  ;;  %v1132_v22 = vmax.f32 %v752_v16, %v1027_v17  ;;  %v319_v23 = vpop.f32.mrf.mxu0  ;;  %v650_v24 = vpop.f32.mrf.mxu1 }
 0x10f   :  { %v753_v29 = vmax.f32 %v319_v23, %v650_v24  ;;  %v9327_v23 = vld [vmem:[%s11958_s1 + $0x8] sm:$0xff] }
 0x110   :  { %1712 = vst.msk [vmem:[%s11961_s3 + $0x30] sm:$0xf] %vm1699_vm0, %v1662_v21  ;;  %v1512_v27 = vmax.f32 %v1132_v22, %v1407_v18  ;;  %2725 = vmatpush.bf16.msrb.mxu2 %v9327_v23  ;;  %3104 = vmatpush.bf16.msrb.mxu3 %v9327_v23 }
 0x111   :  { %358 = vmatmul.bf16.gmra.mxu0 %v9213_v19  ;;  %689 = vmatmul.bf16.gmra.mxu1 %v9245_v20 }
 0x112   :  { %v1565_v28 = vadd.f32 %v9789_v54, %v1512_v27  ;;  %1069 = vmatmul.bf16.gmra.mxu2 %v9269_v25  ;;  %1449 = vmatmul.bf16.gmra.mxu3 %v9293_v26 }
 0x113   :  { %2016 = vmatpush.bf16.msrb.mxu0 %v9327_v23  ;;  %2346 = vmatpush.bf16.msrb.mxu1 %v9327_v23 }
 0x114   :  { %v1614_v30 = vmax.f32 %v1565_v28, 0.0 }
 0x115   :  { %v1030_v31 = vpop.f32.mrf.mxu2  ;;  %v1410_v32 = vpop.f32.mrf.mxu3 }
 0x116   :  { %v1663_v33 = vpack.c.bf16 %v1614_v30, %v1614_v30  ;;  %v1133_v34 = vmax.f32 %v753_v29, %v1030_v31  ;;  %v321_v35 = vpop.f32.mrf.mxu0  ;;  %v652_v36 = vpop.f32.mrf.mxu1  ;;  %v9216_v29 = vld [vmem:[%s11959_s0 + $0x90] sm:$0xff]  ;;  %v9248_v30 = vld [vmem:[%s11959_s0 + $0x3a0] sm:$0xff] }
 0x117   :  { %v754_v40 = vmax.f32 %v321_v35, %v652_v36  ;;  %v9272_v35 = vld [vmem:[%s11959_s0 + $0x6b0] sm:$0xff]  ;;  %v9296_v36 = vld [vmem:[%s11959_s0 + $0x9c0] sm:$0xff] }
 0x118   :  { %1713 = vst.msk [vmem:[%s11961_s3 + $0x34] sm:$0xf] %vm1699_vm0, %v1663_v33  ;;  %v1513_v37 = vmax.f32 %v1133_v34, %v1410_v32 }
 0x11a   :  { %v1566_v38 = vadd.f32 %v9789_v54, %v1513_v37 }
 0x11c   :  { %v1615_v39 = vmax.f32 %v1566_v38, 0.0 }
 0x11d   :  { %v1032_v41 = vpop.f32.mrf.mxu2  ;;  %v1412_v42 = vpop.f32.mrf.mxu3 }
 0x11e   :  { %v1664_v45 = vpack.c.bf16 %v1615_v39, %v1615_v39  ;;  %v1134_v46 = vmax.f32 %v754_v40, %v1032_v41  ;;  %v324_v47 = vpop.f32.mrf.mxu0  ;;  %v655_v48 = vpop.f32.mrf.mxu1 }
 0x11f   :  { %v755_v53 = vmax.f32 %v324_v47, %v655_v48 }
 0x120   :  { %1714 = vst.msk [vmem:[%s11961_s3 + $0x38] sm:$0xf] %vm1699_vm0, %v1664_v45  ;;  %v1514_v51 = vmax.f32 %v1134_v46, %v1412_v42 }
 0x121   :  { %363 = vmatmul.bf16.gmra.mxu0 %v9214_v43  ;;  %694 = vmatmul.bf16.gmra.mxu1 %v9246_v44 }
 0x122   :  { %v1567_v52 = vadd.f32 %v9789_v54, %v1514_v51  ;;  %1074 = vmatmul.bf16.gmra.mxu2 %v9270_v49  ;;  %1454 = vmatmul.bf16.gmra.mxu3 %v9294_v50 }
 0x124   :  { %v1616_v55 = vmax.f32 %v1567_v52, 0.0 }
 0x125   :  { %v1035_v56 = vpop.f32.mrf.mxu2  ;;  %v1415_v57 = vpop.f32.mrf.mxu3 }
 0x126   :  { %v1665_v58 = vpack.c.bf16 %v1616_v55, %v1616_v55  ;;  %v1135_v59 = vmax.f32 %v755_v53, %v1035_v56  ;;  %v326_v60 = vpop.f32.mrf.mxu0  ;;  %v657_v61 = vpop.f32.mrf.mxu1  ;;  %v9217_v53 = vld [vmem:[%s11959_s0 + $0x98] sm:$0xff]  ;;  %v9249_v55 = vld [vmem:[%s11959_s0 + $0x3a8] sm:$0xff] }
 0x127   :  { %v756_v1 = vmax.f32 %v326_v60, %v657_v61  ;;  %v9273_v60 = vld [vmem:[%s11959_s0 + $0x6b8] sm:$0xff]  ;;  %v9297_v61 = vld [vmem:[%s11959_s0 + $0x9c8] sm:$0xff] }
 0x128   :  { %1715 = vst.msk [vmem:[%s11961_s3 + $0x3c] sm:$0xf] %vm1699_vm0, %v1665_v58  ;;  %v1515_v62 = vmax.f32 %v1135_v59, %v1415_v57 }
 0x12a   :  { %v1568_v63 = vadd.f32 %v9789_v54, %v1515_v62 }
 0x12c   :  { %v1617_v0 = vmax.f32 %v1568_v63, 0.0 }
 0x12d   :  { %v1037_v2 = vpop.f32.mrf.mxu2  ;;  %v1417_v3 = vpop.f32.mrf.mxu3 }
 0x12e   :  { %v1666_v6 = vpack.c.bf16 %v1617_v0, %v1617_v0  ;;  %v1136_v7 = vmax.f32 %v756_v1, %v1037_v2  ;;  %v329_v8 = vpop.f32.mrf.mxu0  ;;  %v660_v9 = vpop.f32.mrf.mxu1 }
 0x12f   :  { %v757_v14 = vmax.f32 %v329_v8, %v660_v9 }
 0x130   :  { %1716 = vst.msk [vmem:[%s11961_s3 + $0x40] sm:$0xf] %vm1699_vm0, %v1666_v6  ;;  %v1516_v12 = vmax.f32 %v1136_v7, %v1417_v3 }
 0x131   :  { %368 = vmatmul.bf16.gmra.mxu0 %v9215_v4  ;;  %699 = vmatmul.bf16.gmra.mxu1 %v9247_v5 }
 0x132   :  { %v1569_v13 = vadd.f32 %v9789_v54, %v1516_v12  ;;  %1079 = vmatmul.bf16.gmra.mxu2 %v9271_v10  ;;  %1459 = vmatmul.bf16.gmra.mxu3 %v9295_v11 }
 0x134   :  { %v1618_v15 = vmax.f32 %v1569_v13, 0.0 }
 0x135   :  { %v1040_v16 = vpop.f32.mrf.mxu2  ;;  %v1420_v17 = vpop.f32.mrf.mxu3 }
 0x136   :  { %v1667_v18 = vpack.c.bf16 %v1618_v15, %v1618_v15  ;;  %v1137_v19 = vmax.f32 %v757_v14, %v1040_v16  ;;  %v331_v20 = vpop.f32.mrf.mxu0  ;;  %v662_v21 = vpop.f32.mrf.mxu1  ;;  %v9218_v14 = vld [vmem:[%s11959_s0 + $0xa0] sm:$0xff]  ;;  %v9250_v15 = vld [vmem:[%s11959_s0 + $0x3b0] sm:$0xff] }
 0x137   :  { %v758_v26 = vmax.f32 %v331_v20, %v662_v21  ;;  %v9274_v20 = vld [vmem:[%s11959_s0 + $0x6c0] sm:$0xff]  ;;  %v9298_v21 = vld [vmem:[%s11959_s0 + $0x9d0] sm:$0xff] }
 0x138   :  { %1717 = vst.msk [vmem:[%s11961_s3 + $0x44] sm:$0xf] %vm1699_vm0, %v1667_v18  ;;  %v1517_v22 = vmax.f32 %v1137_v19, %v1420_v17 }
 0x13a   :  { %v1570_v24 = vadd.f32 %v9789_v54, %v1517_v22 }
 0x13c   :  { %v1619_v25 = vmax.f32 %v1570_v24, 0.0 }
 0x13d   :  { %v1042_v27 = vpop.f32.mrf.mxu2  ;;  %v1422_v28 = vpop.f32.mrf.mxu3 }
 0x13e   :  { %v1668_v31 = vpack.c.bf16 %v1619_v25, %v1619_v25  ;;  %v1138_v32 = vmax.f32 %v758_v26, %v1042_v27  ;;  %v334_v33 = vpop.f32.mrf.mxu0  ;;  %v665_v34 = vpop.f32.mrf.mxu1 }
 0x13f   :  { %v759_v39 = vmax.f32 %v334_v33, %v665_v34  ;;  %v9326_v33 = vld [vmem:[%s11958_s1] sm:$0xff] }
 0x140   :  { %1718 = vst.msk [vmem:[%s11961_s3 + $0x48] sm:$0xf] %vm1699_vm0, %v1668_v31  ;;  %v1518_v37 = vmax.f32 %v1138_v32, %v1422_v28  ;;  %2726 = vmatpush.bf16.msrb.mxu2 %v9326_v33  ;;  %3105 = vmatpush.bf16.msrb.mxu3 %v9326_v33 }
 0x141   :  { %373 = vmatmul.bf16.gmra.mxu0 %v9216_v29  ;;  %704 = vmatmul.bf16.gmra.mxu1 %v9248_v30 }
 0x142   :  { %v1571_v38 = vadd.f32 %v9789_v54, %v1518_v37  ;;  %1084 = vmatmul.bf16.gmra.mxu2 %v9272_v35  ;;  %1464 = vmatmul.bf16.gmra.mxu3 %v9296_v36 }
 0x143   :  { %2017 = vmatpush.bf16.msrb.mxu0 %v9326_v33  ;;  %2347 = vmatpush.bf16.msrb.mxu1 %v9326_v33 }
 0x144   :  { %v1620_v40 = vmax.f32 %v1571_v38, 0.0 }
 0x145   :  { %v1045_v41 = vpop.f32.mrf.mxu2  ;;  %v1425_v42 = vpop.f32.mrf.mxu3 }
 0x146   :  { %v1669_v43 = vpack.c.bf16 %v1620_v40, %v1620_v40  ;;  %v1139_v44 = vmax.f32 %v759_v39, %v1045_v41  ;;  %v336_v45 = vpop.f32.mrf.mxu0  ;;  %v667_v46 = vpop.f32.mrf.mxu1  ;;  %v9219_v39 = vld [vmem:[%s11959_s0 + $0xa8] sm:$0xff]  ;;  %v9251_v40 = vld [vmem:[%s11959_s0 + $0x3b8] sm:$0xff] }
 0x147   :  { %v760_v50 = vmax.f32 %v336_v45, %v667_v46  ;;  %v9275_v45 = vld [vmem:[%s11959_s0 + $0x6c8] sm:$0xff]  ;;  %v9299_v46 = vld [vmem:[%s11959_s0 + $0x9d8] sm:$0xff] }
 0x148   :  { %1719 = vst.msk [vmem:[%s11961_s3 + $0x4c] sm:$0xf] %vm1699_vm0, %v1669_v43  ;;  %v1519_v47 = vmax.f32 %v1139_v44, %v1425_v42 }
 0x14a   :  { %v1572_v48 = vadd.f32 %v9789_v54, %v1519_v47 }
 0x14c   :  { %v1621_v49 = vmax.f32 %v1572_v48, 0.0 }
 0x14d   :  { %v1047_v51 = vpop.f32.mrf.mxu2  ;;  %v1427_v52 = vpop.f32.mrf.mxu3 }
 0x14e   :  { %v1670_v56 = vpack.c.bf16 %v1621_v49, %v1621_v49  ;;  %v1140_v57 = vmax.f32 %v760_v50, %v1047_v51  ;;  %v339_v58 = vpop.f32.mrf.mxu0  ;;  %v670_v59 = vpop.f32.mrf.mxu1 }
 0x14f   :  { %v761_v0 = vmax.f32 %v339_v58, %v670_v59 }
 0x150   :  { %1720 = vst.msk [vmem:[%s11961_s3 + $0x50] sm:$0xf] %vm1699_vm0, %v1670_v56  ;;  %v1520_v62 = vmax.f32 %v1140_v57, %v1427_v52 }
 0x151   :  { %378 = vmatmul.bf16.gmra.mxu0 %v9217_v53  ;;  %709 = vmatmul.bf16.gmra.mxu1 %v9249_v55 }
 0x152   :  { %v1573_v63 = vadd.f32 %v9789_v54, %v1520_v62  ;;  %1089 = vmatmul.bf16.gmra.mxu2 %v9273_v60  ;;  %1469 = vmatmul.bf16.gmra.mxu3 %v9297_v61 }
 0x154   :  { %v1622_v1 = vmax.f32 %v1573_v63, 0.0 }
 0x155   :  { %v1050_v2 = vpop.f32.mrf.mxu2  ;;  %v1430_v3 = vpop.f32.mrf.mxu3 }
 0x156   :  { %v1671_v4 = vpack.c.bf16 %v1622_v1, %v1622_v1  ;;  %v1141_v5 = vmax.f32 %v761_v0, %v1050_v2  ;;  %v341_v6 = vpop.f32.mrf.mxu0  ;;  %v672_v7 = vpop.f32.mrf.mxu1  ;;  %v9220_v0 = vld [vmem:[%s11959_s0 + $0xb0] sm:$0xff]  ;;  %v9252_v1 = vld [vmem:[%s11959_s0 + $0x3c0] sm:$0xff] }
 0x157   :  { %v762_v11 = vmax.f32 %v341_v6, %v672_v7  ;;  %v9276_v6 = vld [vmem:[%s11959_s0 + $0x6d0] sm:$0xff]  ;;  %v9300_v7 = vld [vmem:[%s11959_s0 + $0x9e0] sm:$0xff] }
 0x158   :  { %1721 = vst.msk [vmem:[%s11961_s3 + $0x54] sm:$0xf] %vm1699_vm0, %v1671_v4  ;;  %v1521_v8 = vmax.f32 %v1141_v5, %v1430_v3 }
 0x15a   :  { %v1574_v9 = vadd.f32 %v9789_v54, %v1521_v8 }
 0x15c   :  { %v1623_v10 = vmax.f32 %v1574_v9, 0.0 }
 0x15d   :  { %v1052_v12 = vpop.f32.mrf.mxu2  ;;  %v1432_v13 = vpop.f32.mrf.mxu3 }
 0x15e   :  { %v1672_v16 = vpack.c.bf16 %v1623_v10, %v1623_v10  ;;  %v1142_v17 = vmax.f32 %v762_v11, %v1052_v12  ;;  %v344_v18 = vpop.f32.mrf.mxu0  ;;  %v675_v19 = vpop.f32.mrf.mxu1 }
 0x15f   :  { %v763_v24 = vmax.f32 %v344_v18, %v675_v19 }
 0x160   :  { %1722 = vst.msk [vmem:[%s11961_s3 + $0x58] sm:$0xf] %vm1699_vm0, %v1672_v16  ;;  %v1522_v22 = vmax.f32 %v1142_v17, %v1432_v13 }
 0x161   :  { %383 = vmatmul.bf16.gmra.mxu0 %v9218_v14  ;;  %714 = vmatmul.bf16.gmra.mxu1 %v9250_v15 }
 0x162   :  { %v1575_v23 = vadd.f32 %v9789_v54, %v1522_v22  ;;  %1094 = vmatmul.bf16.gmra.mxu2 %v9274_v20  ;;  %1474 = vmatmul.bf16.gmra.mxu3 %v9298_v21 }
 0x164   :  { %v1624_v25 = vmax.f32 %v1575_v23, 0.0 }
 0x165   :  { %v1055_v26 = vpop.f32.mrf.mxu2  ;;  %v1435_v27 = vpop.f32.mrf.mxu3 }
 0x166   :  { %v1673_v28 = vpack.c.bf16 %v1624_v25, %v1624_v25  ;;  %v1143_v29 = vmax.f32 %v763_v24, %v1055_v26  ;;  %v346_v30 = vpop.f32.mrf.mxu0  ;;  %v677_v31 = vpop.f32.mrf.mxu1  ;;  %v9221_v24 = vld [vmem:[%s11959_s0 + $0xb8] sm:$0xff]  ;;  %v9253_v25 = vld [vmem:[%s11959_s0 + $0x3c8] sm:$0xff] }
 0x167   :  { %v764_v36 = vmax.f32 %v346_v30, %v677_v31  ;;  %v9277_v30 = vld [vmem:[%s11959_s0 + $0x6d8] sm:$0xff]  ;;  %v9301_v31 = vld [vmem:[%s11959_s0 + $0x9e8] sm:$0xff] }
 0x168   :  { %1723 = vst.msk [vmem:[%s11961_s3 + $0x5c] sm:$0xf] %vm1699_vm0, %v1673_v28  ;;  %v1523_v32 = vmax.f32 %v1143_v29, %v1435_v27 }
 0x16a   :  { %v1576_v34 = vadd.f32 %v9789_v54, %v1523_v32 }
 0x16c   :  { %v1625_v35 = vmax.f32 %v1576_v34, 0.0 }
 0x16d   :  { %v1057_v37 = vpop.f32.mrf.mxu2  ;;  %v1437_v38 = vpop.f32.mrf.mxu3 }
 0x16e   :  { %v1674_v41 = vpack.c.bf16 %v1625_v35, %v1625_v35  ;;  %v1144_v42 = vmax.f32 %v764_v36, %v1057_v37  ;;  %v349_v43 = vpop.f32.mrf.mxu0  ;;  %v680_v44 = vpop.f32.mrf.mxu1 }
 0x16f   :  { %v765_v49 = vmax.f32 %v349_v43, %v680_v44  ;;  %v7122_v43 = vld [vmem:[%s11959_s0 + $0x3d0] sm:$0xf]  ;;  %v7267_v44 = vld [vmem:[%s11959_s0 + $0x6e0] sm:$0xf] }
 0x170   :  { %1724 = vst.msk [vmem:[%s11961_s3 + $0x60] sm:$0xf] %vm1699_vm0, %v1674_v41  ;;  %v1524_v47 = vmax.f32 %v1144_v42, %v1437_v38  ;;  %v62_v42 = vld [vmem:[%s11959_s0 + $0xc0] sm:$0xf] }
 0x171   :  { %388 = vmatmul.bf16.gmra.mxu0 %v9219_v39  ;;  %719 = vmatmul.bf16.gmra.mxu1 %v9251_v40 }
 0x172   :  { %v1577_v48 = vadd.f32 %v9789_v54, %v1524_v47  ;;  %1099 = vmatmul.bf16.gmra.mxu2 %v9275_v45  ;;  %1479 = vmatmul.bf16.gmra.mxu3 %v9299_v46  ;;  %v7412_v45 = vld [vmem:[%s11959_s0 + $0x9f0] sm:$0xf]  ;;  %v9437_v47 = vld [vmem:[%s11958_s1 + $0x38] sm:$0xff] }
 0x173   :  { %4450 = vmatpush.bf16.msra.mxu2 %v9437_v47  ;;  %4829 = vmatpush.bf16.msra.mxu3 %v9437_v47 }
 0x174   :  { %v1626_v50 = vmax.f32 %v1577_v48, 0.0  ;;  %v176_v48 = vunpack.c.l.b16 %v62_v42  ;;  %3741 = vmatpush.bf16.msra.mxu0 %v9437_v47  ;;  %4071 = vmatpush.bf16.msra.mxu1 %v9437_v47  ;;  %v9303_v42 = vld [vmem:[%s11959_s0 + $0xcc] sm:$0xff] }
 0x175   :  { %v1060_v51 = vpop.f32.mrf.mxu2  ;;  %v1440_v52 = vpop.f32.mrf.mxu3 }
 0x176   :  { %v1675_v53 = vpack.c.bf16 %v1626_v50, %v1626_v50  ;;  %v1145_v55 = vmax.f32 %v765_v49, %v1060_v51  ;;  %v351_v56 = vpop.f32.mrf.mxu0  ;;  %v682_v57 = vpop.f32.mrf.mxu1  ;;  %v555_v49 = vunpack.c.l.b16 %v7122_v43  ;;  %v935_v51 = vunpack.c.l.b16 %v7267_v44  ;;  %v9335_v43 = vld [vmem:[%s11959_s0 + $0x3dc] sm:$0xff] }
 0x177   :  { %v766_v61 = vmax.f32 %v351_v56, %v682_v57 }
 0x178   :  { %1725 = vst.msk [vmem:[%s11961_s3 + $0x64] sm:$0xf] %vm1699_vm0, %v1675_v53  ;;  %v1525_v58 = vmax.f32 %v1145_v55, %v1440_v52  ;;  %v1315_v52 = vunpack.c.l.b16 %v7412_v45 }
 0x17a   :  { %v1578_v59 = vadd.f32 %v9789_v54, %v1525_v58  ;;  %v201_v58 = vpack.c.b16 %v176_v48, %v176_v48  ;;  %v9359_v48 = vld [vmem:[%s11959_s0 + $0x6ec] sm:$0xff] }
 0x17c   :  { %v1627_v60 = vmax.f32 %v1578_v59, 0.0  ;;  %v580_v59 = vpack.c.b16 %v555_v49, %v555_v49  ;;  %v9383_v49 = vld [vmem:[%s11959_s0 + $0x9fc] sm:$0xff] }
 0x17d   :  { %v1062_v62 = vpop.f32.mrf.mxu2  ;;  %v1442_v63 = vpop.f32.mrf.mxu3 }
 0x17e   :  { %v1676_v2 = vpack.c.bf16 %v1627_v60, %v1627_v60  ;;  %v1146_v3 = vmax.f32 %v766_v61, %v1062_v62  ;;  %v354_v4 = vpop.f32.mrf.mxu0  ;;  %v685_v5 = vpop.f32.mrf.mxu1 }
 0x17f   :  { %v767_v10 = vmax.f32 %v354_v4, %v685_v5 }
 0x180   :  { %1726 = vst.msk [vmem:[%s11961_s3 + $0x68] sm:$0xf] %vm1699_vm0, %v1676_v2  ;;  %v1526_v8 = vmax.f32 %v1146_v3, %v1442_v63 }
 0x181   :  { %393 = vmatmul.bf16.gmra.mxu0 %v9220_v0  ;;  %724 = vmatmul.bf16.gmra.mxu1 %v9252_v1  ;;  %v960_v0 = vpack.c.b16 %v935_v51, %v935_v51  ;;  %v1340_v1 = vpack.c.b16 %v1315_v52, %v1315_v52 }
 0x182   :  { %v1579_v9 = vadd.f32 %v9789_v54, %v1526_v8  ;;  %1104 = vmatmul.bf16.gmra.mxu2 %v9276_v6  ;;  %1484 = vmatmul.bf16.gmra.mxu3 %v9300_v7 }
 0x184   :  { %v1628_v11 = vmax.f32 %v1579_v9, 0.0 }
 0x185   :  { %v1065_v12 = vpop.f32.mrf.mxu2  ;;  %v1445_v13 = vpop.f32.mrf.mxu3 }
 0x186   :  { %v1677_v14 = vpack.c.bf16 %v1628_v11, %v1628_v11  ;;  %v1147_v15 = vmax.f32 %v767_v10, %v1065_v12  ;;  %v356_v16 = vpop.f32.mrf.mxu0  ;;  %v687_v17 = vpop.f32.mrf.mxu1 }
 0x187   :  { %v768_v21 = vmax.f32 %v356_v16, %v687_v17 }
 0x188   :  { %1727 = vst.msk [vmem:[%s11961_s3 + $0x6c] sm:$0xf] %vm1699_vm0, %v1677_v14  ;;  %v1527_v18 = vmax.f32 %v1147_v15, %v1445_v13 }
 0x18a   :  { %v1580_v19 = vadd.f32 %v9789_v54, %v1527_v18  ;;  %v9302_v18 = vld [vmem:[%s11959_s0 + $0xc4] sm:$0xff] }
 0x18c   :  { %v1629_v20 = vmax.f32 %v1580_v19, 0.0  ;;  %v9334_v19 = vld [vmem:[%s11959_s0 + $0x3d4] sm:$0xff] }
 0x18d   :  { %v1067_v22 = vpop.f32.mrf.mxu2  ;;  %v1447_v23 = vpop.f32.mrf.mxu3 }
 0x18e   :  { %v1678_v26 = vpack.c.bf16 %v1629_v20, %v1629_v20  ;;  %v1148_v27 = vmax.f32 %v768_v21, %v1067_v22  ;;  %v359_v28 = vpop.f32.mrf.mxu0  ;;  %v690_v29 = vpop.f32.mrf.mxu1 }
 0x18f   :  { %v769_v34 = vmax.f32 %v359_v28, %v690_v29 }
 0x190   :  { %1728 = vst.msk [vmem:[%s11961_s3 + $0x70] sm:$0xf] %vm1699_vm0, %v1678_v26  ;;  %v1528_v32 = vmax.f32 %v1148_v27, %v1447_v23 }
 0x191   :  { %398 = vmatmul.bf16.gmra.mxu0 %v9221_v24  ;;  %729 = vmatmul.bf16.gmra.mxu1 %v9253_v25  ;;  %v9358_v24 = vld [vmem:[%s11959_s0 + $0x6e4] sm:$0xff]  ;;  %v9382_v25 = vld [vmem:[%s11959_s0 + $0x9f4] sm:$0xff] }
 0x192   :  { %v1581_v33 = vadd.f32 %v9789_v54, %v1528_v32  ;;  %1109 = vmatmul.bf16.gmra.mxu2 %v9277_v30  ;;  %1489 = vmatmul.bf16.gmra.mxu3 %v9301_v31 }
 0x194   :  { %v1630_v35 = vmax.f32 %v1581_v33, 0.0 }
 0x195   :  { %v1070_v36 = vpop.f32.mrf.mxu2  ;;  %v1450_v37 = vpop.f32.mrf.mxu3 }
 0x196   :  { %v1679_v38 = vpack.c.bf16 %v1630_v35, %v1630_v35  ;;  %v1149_v39 = vmax.f32 %v769_v34, %v1070_v36  ;;  %v361_v40 = vpop.f32.mrf.mxu0  ;;  %v692_v41 = vpop.f32.mrf.mxu1 }
 0x197   :  { %v770_v55 = vmax.f32 %v361_v40, %v692_v41 }
 0x198   :  { %1729 = vst.msk [vmem:[%s11961_s3 + $0x74] sm:$0xf] %vm1699_vm0, %v1679_v38  ;;  %v1529_v46 = vmax.f32 %v1149_v39, %v1450_v37 }
 0x19a   :  { %v1582_v50 = vadd.f32 %v9789_v54, %v1529_v46 }
 0x19c   :  { %v1631_v53 = vmax.f32 %v1582_v50, 0.0 }
 0x19d   :  { %v1072_v56 = vpop.f32.mrf.mxu2  ;;  %v1452_v57 = vpop.f32.mrf.mxu3 }
 0x19e   :  { %v1680_v60 = vpack.c.bf16 %v1631_v53, %v1631_v53  ;;  %v1150_v61 = vmax.f32 %v770_v55, %v1072_v56  ;;  %v364_v62 = vpop.f32.mrf.mxu0  ;;  %v695_v63 = vpop.f32.mrf.mxu1 }
 0x19f   :  { %v771_v4 = vmax.f32 %v364_v62, %v695_v63  ;;  %v9436_v62 = vld [vmem:[%s11958_s1 + $0x30] sm:$0xff] }
 0x1a0   :  { %1730 = vst.msk [vmem:[%s11961_s3 + $0x78] sm:$0xf] %vm1699_vm0, %v1680_v60  ;;  %v1530_v2 = vmax.f32 %v1150_v61, %v1452_v57  ;;  %4451 = vmatpush.bf16.msra.mxu2 %v9436_v62  ;;  %4830 = vmatpush.bf16.msra.mxu3 %v9436_v62 }
 0x1a1   :  { %403 = vmatmul.bf16.gmra.mxu0 %v201_v58  ;;  %734 = vmatmul.bf16.gmra.mxu1 %v580_v59 }
 0x1a2   :  { %v1583_v3 = vadd.f32 %v9789_v54, %v1530_v2  ;;  %1114 = vmatmul.bf16.gmra.mxu2 %v960_v0  ;;  %1494 = vmatmul.bf16.gmra.mxu3 %v1340_v1  ;;  %v10161_v54 = vld [vmem:[%s11960_s2] ss:$0 sm:$0xff] }
 0x1a3   :  { %3742 = vmatpush.bf16.msra.mxu0 %v9436_v62  ;;  %4072 = vmatpush.bf16.msra.mxu1 %v9436_v62 }
 0x1a4   :  { %v1632_v5 = vmax.f32 %v1583_v3, 0.0 }
 0x1a5   :  { %v1075_v6 = vpop.f32.mrf.mxu2  ;;  %v1455_v7 = vpop.f32.mrf.mxu3 }
 0x1a6   :  { %v1681_v8 = vpack.c.bf16 %v1632_v5, %v1632_v5  ;;  %v1151_v9 = vmax.f32 %v771_v4, %v1075_v6  ;;  %v366_v10 = vpop.f32.mrf.mxu0  ;;  %v697_v11 = vpop.f32.mrf.mxu1  ;;  %v9304_v4 = vld [vmem:[%s11959_s0 + $0xd4] sm:$0xff]  ;;  %v9336_v5 = vld [vmem:[%s11959_s0 + $0x3e4] sm:$0xff] }
 0x1a7   :  { %v772_v15 = vmax.f32 %v366_v10, %v697_v11  ;;  %v9360_v10 = vld [vmem:[%s11959_s0 + $0x6f4] sm:$0xff]  ;;  %v9384_v11 = vld [vmem:[%s11959_s0 + $0xa04] sm:$0xff] }
 0x1a8   :  { %1731 = vst.msk [vmem:[%s11961_s3 + $0x7c] sm:$0xf] %vm1699_vm0, %v1681_v8  ;;  %v1531_v12 = vmax.f32 %v1151_v9, %v1455_v7 }
 0x1aa   :  { %v1584_v13 = vadd.f32 %v10161_v54, %v1531_v12 }
 0x1ac   :  { %v1633_v14 = vmax.f32 %v1584_v13, 0.0 }
 0x1ad   :  { %v1077_v16 = vpop.f32.mrf.mxu2  ;;  %v1457_v17 = vpop.f32.mrf.mxu3 }
 0x1ae   :  { %v1682_v20 = vpack.c.bf16 %v1633_v14, %v1633_v14  ;;  %v1152_v21 = vmax.f32 %v772_v15, %v1077_v16  ;;  %v369_v22 = vpop.f32.mrf.mxu0  ;;  %v700_v23 = vpop.f32.mrf.mxu1 }
 0x1af   :  { %v773_v28 = vmax.f32 %v369_v22, %v700_v23 }
 0x1b0   :  { %1732 = vst.msk [vmem:[%s11961_s3 + $0x80] sm:$0xf] %vm1699_vm0, %v1682_v20  ;;  %v1532_v26 = vmax.f32 %v1152_v21, %v1457_v17 }
 0x1b1   :  { %2018 = vmatmul.bf16.vlgmr.msrb.gmra.mxu0 %v9302_v18  ;;  %2348 = vmatmul.bf16.vlgmr.msrb.gmra.mxu1 %v9334_v19 }
 0x1b2   :  { %v1585_v27 = vadd.f32 %v10161_v54, %v1532_v26  ;;  %2727 = vmatmul.bf16.vlgmr.msrb.gmra.mxu2 %v9358_v24  ;;  %3106 = vmatmul.bf16.vlgmr.msrb.gmra.mxu3 %v9382_v25 }
 0x1b4   :  { %v1634_v29 = vmax.f32 %v1585_v27, 0.0 }
 0x1b5   :  { %v1080_v30 = vpop.f32.mrf.mxu2  ;;  %v1460_v31 = vpop.f32.mrf.mxu3 }
 0x1b6   :  { %v1683_v32 = vpack.c.bf16 %v1634_v29, %v1634_v29  ;;  %v1153_v33 = vmax.f32 %v773_v28, %v1080_v30  ;;  %v371_v34 = vpop.f32.mrf.mxu0  ;;  %v702_v35 = vpop.f32.mrf.mxu1  ;;  %v9305_v28 = vld [vmem:[%s11959_s0 + $0xdc] sm:$0xff]  ;;  %v9337_v29 = vld [vmem:[%s11959_s0 + $0x3ec] sm:$0xff] }
 0x1b7   :  { %v774_v39 = vmax.f32 %v371_v34, %v702_v35  ;;  %v9361_v34 = vld [vmem:[%s11959_s0 + $0x6fc] sm:$0xff]  ;;  %v9385_v35 = vld [vmem:[%s11959_s0 + $0xa0c] sm:$0xff] }
 0x1b8   :  { %1733 = vst.msk [vmem:[%s11961_s3 + $0x84] sm:$0xf] %vm1699_vm0, %v1683_v32  ;;  %v1533_v36 = vmax.f32 %v1153_v33, %v1460_v31 }
 0x1ba   :  { %v1586_v37 = vadd.f32 %v10161_v54, %v1533_v36 }
 0x1bc   :  { %v1635_v38 = vmax.f32 %v1586_v37, 0.0 }
 0x1bd   :  { %v1082_v40 = vpop.f32.mrf.mxu2  ;;  %v1462_v41 = vpop.f32.mrf.mxu3 }
 0x1be   :  { %v1684_v44 = vpack.c.bf16 %v1635_v38, %v1635_v38  ;;  %v1154_v45 = vmax.f32 %v774_v39, %v1082_v40  ;;  %v374_v46 = vpop.f32.mrf.mxu0  ;;  %v705_v47 = vpop.f32.mrf.mxu1 }
 0x1bf   :  { %v775_v52 = vmax.f32 %v374_v46, %v705_v47 }
 0x1c0   :  { %1734 = vst.msk [vmem:[%s11961_s3 + $0x88] sm:$0xf] %vm1699_vm0, %v1684_v44  ;;  %v1534_v50 = vmax.f32 %v1154_v45, %v1462_v41 }
 0x1c1   :  { %2023 = vmatmul.bf16.gmra.mxu0 %v9303_v42  ;;  %2353 = vmatmul.bf16.gmra.mxu1 %v9335_v43 }
 0x1c2   :  { %v1587_v51 = vadd.f32 %v10161_v54, %v1534_v50  ;;  %2732 = vmatmul.bf16.gmra.mxu2 %v9359_v48  ;;  %3111 = vmatmul.bf16.gmra.mxu3 %v9383_v49 }
 0x1c4   :  { %v1636_v53 = vmax.f32 %v1587_v51, 0.0 }
 0x1c5   :  { %v1085_v55 = vpop.f32.mrf.mxu2  ;;  %v1465_v56 = vpop.f32.mrf.mxu3 }
 0x1c6   :  { %v1685_v57 = vpack.c.bf16 %v1636_v53, %v1636_v53  ;;  %v1155_v58 = vmax.f32 %v775_v52, %v1085_v55  ;;  %v376_v59 = vpop.f32.mrf.mxu0  ;;  %v707_v60 = vpop.f32.mrf.mxu1  ;;  %v9306_v52 = vld [vmem:[%s11959_s0 + $0xe4] sm:$0xff]  ;;  %v9338_v53 = vld [vmem:[%s11959_s0 + $0x3f4] sm:$0xff] }
 0x1c7   :  { %v776_v1 = vmax.f32 %v376_v59, %v707_v60  ;;  %v9362_v59 = vld [vmem:[%s11959_s0 + $0x704] sm:$0xff]  ;;  %v9386_v60 = vld [vmem:[%s11959_s0 + $0xa14] sm:$0xff] }
 0x1c8   :  { %1735 = vst.msk [vmem:[%s11961_s3 + $0x8c] sm:$0xf] %vm1699_vm0, %v1685_v57  ;;  %v1535_v61 = vmax.f32 %v1155_v58, %v1465_v56 }
 0x1ca   :  { %v1588_v63 = vadd.f32 %v10161_v54, %v1535_v61 }
 0x1cc   :  { %v1637_v0 = vmax.f32 %v1588_v63, 0.0 }
 0x1cd   :  { %v1087_v2 = vpop.f32.mrf.mxu2  ;;  %v1467_v3 = vpop.f32.mrf.mxu3 }
 0x1ce   :  { %v1686_v6 = vpack.c.bf16 %v1637_v0, %v1637_v0  ;;  %v1156_v7 = vmax.f32 %v776_v1, %v1087_v2  ;;  %v379_v8 = vpop.f32.mrf.mxu0  ;;  %v710_v9 = vpop.f32.mrf.mxu1 }
 0x1cf   :  { %v777_v14 = vmax.f32 %v379_v8, %v710_v9 }
 0x1d0   :  { %1736 = vst.msk [vmem:[%s11961_s3 + $0x90] sm:$0xf] %vm1699_vm0, %v1686_v6  ;;  %v1536_v12 = vmax.f32 %v1156_v7, %v1467_v3 }
 0x1d1   :  { %2028 = vmatmul.bf16.gmra.mxu0 %v9304_v4  ;;  %2358 = vmatmul.bf16.gmra.mxu1 %v9336_v5 }
 0x1d2   :  { %v1589_v13 = vadd.f32 %v10161_v54, %v1536_v12  ;;  %2737 = vmatmul.bf16.gmra.mxu2 %v9360_v10  ;;  %3116 = vmatmul.bf16.gmra.mxu3 %v9384_v11 }
 0x1d4   :  { %v1638_v15 = vmax.f32 %v1589_v13, 0.0  ;;  %v9307_v13 = vld [vmem:[%s11959_s0 + $0xec] sm:$0xff] }
 0x1d5   :  { %v1090_v16 = vpop.f32.mrf.mxu2  ;;  %v1470_v17 = vpop.f32.mrf.mxu3 }
 0x1d6   :  { %v1687_v18 = vpack.c.bf16 %v1638_v15, %v1638_v15  ;;  %v1157_v19 = vmax.f32 %v777_v14, %v1090_v16  ;;  %v381_v20 = vpop.f32.mrf.mxu0  ;;  %v712_v21 = vpop.f32.mrf.mxu1  ;;  %v9339_v14 = vld [vmem:[%s11959_s0 + $0x3fc] sm:$0xff] }
 0x1d7   :  { %v778_v25 = vmax.f32 %v381_v20, %v712_v21  ;;  %v9387_v20 = vld [vmem:[%s11959_s0 + $0xa1c] sm:$0xff] }
 0x1d8   :  { %1737 = vst.msk [vmem:[%s11961_s3 + $0x94] sm:$0xf] %vm1699_vm0, %v1687_v18  ;;  %v1537_v22 = vmax.f32 %v1157_v19, %v1470_v17  ;;  %v9363_v19 = vld [vmem:[%s11959_s0 + $0x70c] sm:$0xff] }
 0x1da   :  { %v1590_v23 = vadd.f32 %v10161_v54, %v1537_v22  ;;  %v9435_v22 = vld [vmem:[%s11958_s1 + $0x28] sm:$0xff] }
 0x1db   :  { %4452 = vmatpush.bf16.msra.mxu2 %v9435_v22  ;;  %4831 = vmatpush.bf16.msra.mxu3 %v9435_v22 }
 0x1dc   :  { %v1639_v24 = vmax.f32 %v1590_v23, 0.0  ;;  %3743 = vmatpush.bf16.msra.mxu0 %v9435_v22  ;;  %4073 = vmatpush.bf16.msra.mxu1 %v9435_v22  ;;  %v9310_v22 = vld [vmem:[%s11959_s0 + $0x104] sm:$0xff] }
 0x1dd   :  { %v1092_v26 = vpop.f32.mrf.mxu2  ;;  %v1472_v27 = vpop.f32.mrf.mxu3 }
 0x1de   :  { %v1688_v30 = vpack.c.bf16 %v1639_v24, %v1639_v24  ;;  %v1158_v31 = vmax.f32 %v778_v25, %v1092_v26  ;;  %v384_v32 = vpop.f32.mrf.mxu0  ;;  %v715_v33 = vpop.f32.mrf.mxu1 }
 0x1df   :  { %v779_v38 = vmax.f32 %v384_v32, %v715_v33 }
 0x1e0   :  { %1738 = vst.msk [vmem:[%s11961_s3 + $0x98] sm:$0xf] %vm1699_vm0, %v1688_v30  ;;  %v1538_v36 = vmax.f32 %v1158_v31, %v1472_v27 }
 0x1e1   :  { %2033 = vmatmul.bf16.gmra.mxu0 %v9305_v28  ;;  %2363 = vmatmul.bf16.gmra.mxu1 %v9337_v29 }
 0x1e2   :  { %v1591_v37 = vadd.f32 %v10161_v54, %v1538_v36  ;;  %2742 = vmatmul.bf16.gmra.mxu2 %v9361_v34  ;;  %3121 = vmatmul.bf16.gmra.mxu3 %v9385_v35 }
 0x1e4   :  { %v1640_v39 = vmax.f32 %v1591_v37, 0.0 }
 0x1e5   :  { %v1095_v40 = vpop.f32.mrf.mxu2  ;;  %v1475_v41 = vpop.f32.mrf.mxu3 }
 0x1e6   :  { %v1689_v42 = vpack.c.bf16 %v1640_v39, %v1640_v39  ;;  %v1159_v43 = vmax.f32 %v779_v38, %v1095_v40  ;;  %v386_v44 = vpop.f32.mrf.mxu0  ;;  %v717_v45 = vpop.f32.mrf.mxu1  ;;  %v9308_v38 = vld [vmem:[%s11959_s0 + $0xf4] sm:$0xff]  ;;  %v9340_v39 = vld [vmem:[%s11959_s0 + $0x404] sm:$0xff] }
 0x1e7   :  { %v780_v49 = vmax.f32 %v386_v44, %v717_v45  ;;  %v9364_v44 = vld [vmem:[%s11959_s0 + $0x714] sm:$0xff]  ;;  %v9388_v45 = vld [vmem:[%s11959_s0 + $0xa24] sm:$0xff] }
 0x1e8   :  { %1739 = vst.msk [vmem:[%s11961_s3 + $0x9c] sm:$0xf] %vm1699_vm0, %v1689_v42  ;;  %v1539_v46 = vmax.f32 %v1159_v43, %v1475_v41 }
 0x1ea   :  { %v1592_v47 = vadd.f32 %v10161_v54, %v1539_v46 }
 0x1ec   :  { %v1641_v48 = vmax.f32 %v1592_v47, 0.0 }
 0x1ed   :  { %v1097_v50 = vpop.f32.mrf.mxu2  ;;  %v1477_v51 = vpop.f32.mrf.mxu3 }
 0x1ee   :  { %v1690_v55 = vpack.c.bf16 %v1641_v48, %v1641_v48  ;;  %v1160_v56 = vmax.f32 %v780_v49, %v1097_v50  ;;  %v389_v57 = vpop.f32.mrf.mxu0  ;;  %v720_v58 = vpop.f32.mrf.mxu1 }
 0x1ef   :  { %v781_v63 = vmax.f32 %v389_v57, %v720_v58 }
 0x1f0   :  { %1740 = vst.msk [vmem:[%s11961_s3 + $0xa0] sm:$0xf] %vm1699_vm0, %v1690_v55  ;;  %v1540_v61 = vmax.f32 %v1160_v56, %v1477_v51 }
 0x1f1   :  { %2038 = vmatmul.bf16.gmra.mxu0 %v9306_v52  ;;  %2368 = vmatmul.bf16.gmra.mxu1 %v9338_v53 }
 0x1f2   :  { %v1593_v62 = vadd.f32 %v10161_v54, %v1540_v61  ;;  %2747 = vmatmul.bf16.gmra.mxu2 %v9362_v59  ;;  %3126 = vmatmul.bf16.gmra.mxu3 %v9386_v60 }
 0x1f4   :  { %v1642_v0 = vmax.f32 %v1593_v62, 0.0 }
 0x1f5   :  { %v1100_v1 = vpop.f32.mrf.mxu2  ;;  %v1480_v2 = vpop.f32.mrf.mxu3 }
 0x1f6   :  { %v1691_v3 = vpack.c.bf16 %v1642_v0, %v1642_v0  ;;  %v1161_v4 = vmax.f32 %v781_v63, %v1100_v1  ;;  %v391_v5 = vpop.f32.mrf.mxu0  ;;  %v722_v6 = vpop.f32.mrf.mxu1  ;;  %v9309_v63 = vld [vmem:[%s11959_s0 + $0xfc] sm:$0xff]  ;;  %v9341_v0 = vld [vmem:[%s11959_s0 + $0x40c] sm:$0xff] }
 0x1f7   :  { %v782_v10 = vmax.f32 %v391_v5, %v722_v6  ;;  %v9365_v5 = vld [vmem:[%s11959_s0 + $0x71c] sm:$0xff]  ;;  %v9389_v6 = vld [vmem:[%s11959_s0 + $0xa2c] sm:$0xff] }
 0x1f8   :  { %1741 = vst.msk [vmem:[%s11961_s3 + $0xa4] sm:$0xf] %vm1699_vm0, %v1691_v3  ;;  %v1541_v7 = vmax.f32 %v1161_v4, %v1480_v2 }
 0x1fa   :  { %v1594_v8 = vadd.f32 %v10161_v54, %v1541_v7 }
 0x1fc   :  { %v1643_v9 = vmax.f32 %v1594_v8, 0.0 }
 0x1fd   :  { %v1102_v11 = vpop.f32.mrf.mxu2  ;;  %v1482_v12 = vpop.f32.mrf.mxu3 }
 0x1fe   :  { %v1692_v15 = vpack.c.bf16 %v1643_v9, %v1643_v9  ;;  %v1162_v16 = vmax.f32 %v782_v10, %v1102_v11  ;;  %v394_v17 = vpop.f32.mrf.mxu0  ;;  %v725_v18 = vpop.f32.mrf.mxu1 }
 0x1ff   :  { %v783_v24 = vmax.f32 %v394_v17, %v725_v18 }
 0x200   :  { %1742 = vst.msk [vmem:[%s11961_s3 + $0xa8] sm:$0xf] %vm1699_vm0, %v1692_v15  ;;  %v1542_v21 = vmax.f32 %v1162_v16, %v1482_v12 }
 0x201   :  { %2043 = vmatmul.bf16.gmra.mxu0 %v9307_v13  ;;  %2373 = vmatmul.bf16.gmra.mxu1 %v9339_v14 }
 0x202   :  { %v1595_v23 = vadd.f32 %v10161_v54, %v1542_v21  ;;  %2752 = vmatmul.bf16.gmra.mxu2 %v9363_v19  ;;  %3131 = vmatmul.bf16.gmra.mxu3 %v9387_v20 }
 0x204   :  { %v1644_v25 = vmax.f32 %v1595_v23, 0.0  ;;  %v9342_v23 = vld [vmem:[%s11959_s0 + $0x414] sm:$0xff] }
 0x205   :  { %v1105_v26 = vpop.f32.mrf.mxu2  ;;  %v1485_v27 = vpop.f32.mrf.mxu3 }
 0x206   :  { %v1693_v28 = vpack.c.bf16 %v1644_v25, %v1644_v25  ;;  %v1163_v29 = vmax.f32 %v783_v24, %v1105_v26  ;;  %v396_v30 = vpop.f32.mrf.mxu0  ;;  %v727_v31 = vpop.f32.mrf.mxu1 }
 0x207   :  { %v784_v35 = vmax.f32 %v396_v30, %v727_v31 }
 0x208   :  { %1743 = vst.msk [vmem:[%s11961_s3 + $0xac] sm:$0xf] %vm1699_vm0, %v1693_v28  ;;  %v1543_v32 = vmax.f32 %v1163_v29, %v1485_v27  ;;  %v9366_v27 = vld [vmem:[%s11959_s0 + $0x724] sm:$0xff] }
 0x209   :  { %v9434_v28 = vld [vmem:[%s11958_s1 + $0x20] sm:$0xff] }
 0x20a   :  { %v1596_v33 = vadd.f32 %v10161_v54, %v1543_v32  ;;  %4453 = vmatpush.bf16.msra.mxu2 %v9434_v28  ;;  %4832 = vmatpush.bf16.msra.mxu3 %v9434_v28 }
 0x20b   :  { %3744 = vmatpush.bf16.msra.mxu0 %v9434_v28  ;;  %4074 = vmatpush.bf16.msra.mxu1 %v9434_v28 }
 0x20c   :  { %v1645_v34 = vmax.f32 %v1596_v33, 0.0  ;;  %v10368_v33 = vld [vmem:[%s11960_s2] ss:$0 sm:$0xff] }
 0x20d   :  { %v1107_v36 = vpop.f32.mrf.mxu2  ;;  %v1487_v37 = vpop.f32.mrf.mxu3 }
 0x20e   :  { %v1694_v40 = vpack.c.bf16 %v1645_v34, %v1645_v34  ;;  %v1164_v41 = vmax.f32 %v784_v35, %v1107_v36  ;;  %v399_v42 = vpop.f32.mrf.mxu0  ;;  %v730_v43 = vpop.f32.mrf.mxu1 }
 0x20f   :  { %v785_v48 = vmax.f32 %v399_v42, %v730_v43  ;;  %v9311_v42 = vld [vmem:[%s11959_s0 + $0x10c] sm:$0xff]  ;;  %v9343_v43 = vld [vmem:[%s11959_s0 + $0x41c] sm:$0xff] }
 0x210   :  { %1744 = vst.msk [vmem:[%s11961_s3 + $0xb0] sm:$0xf] %vm1699_vm0, %v1694_v40  ;;  %v1544_v46 = vmax.f32 %v1164_v41, %v1487_v37 }
 0x211   :  { %2048 = vmatmul.bf16.gmra.mxu0 %v9308_v38  ;;  %2378 = vmatmul.bf16.gmra.mxu1 %v9340_v39 }
 0x212   :  { %v1597_v47 = vadd.f32 %v10161_v54, %v1544_v46  ;;  %2757 = vmatmul.bf16.gmra.mxu2 %v9364_v44  ;;  %3136 = vmatmul.bf16.gmra.mxu3 %v9388_v45 }
 0x214   :  { %v1646_v49 = vmax.f32 %v1597_v47, 0.0 }
 0x215   :  { %v1110_v50 = vpop.f32.mrf.mxu2  ;;  %v1490_v51 = vpop.f32.mrf.mxu3 }
 0x216   :  { %v1695_v52 = vpack.c.bf16 %v1646_v49, %v1646_v49  ;;  %v1165_v53 = vmax.f32 %v785_v48, %v1110_v50  ;;  %v401_v55 = vpop.f32.mrf.mxu0  ;;  %v732_v56 = vpop.f32.mrf.mxu1  ;;  %v9367_v48 = vld [vmem:[%s11959_s0 + $0x72c] sm:$0xff]  ;;  %v9391_v49 = vld [vmem:[%s11959_s0 + $0xa3c] sm:$0xff] }
 0x217   :  { %v786_v60 = vmax.f32 %v401_v55, %v732_v56 }
 0x218   :  { %1745 = vst.msk [vmem:[%s11961_s3 + $0xb4] sm:$0xf] %vm1699_vm0, %v1695_v52  ;;  %v1545_v57 = vmax.f32 %v1165_v53, %v1490_v51 }
 0x21a   :  { %v1598_v58 = vadd.f32 %v10161_v54, %v1545_v57 }
 0x21c   :  { %v1647_v59 = vmax.f32 %v1598_v58, 0.0 }
 0x21d   :  { %v1112_v61 = vpop.f32.mrf.mxu2  ;;  %v1492_v62 = vpop.f32.mrf.mxu3 }
 0x21e   :  { %v1696_v1 = vpack.c.bf16 %v1647_v59, %v1647_v59  ;;  %v1166_v2 = vmax.f32 %v786_v60, %v1112_v61  ;;  %v404_v3 = vpop.f32.mrf.mxu0  ;;  %v735_v4 = vpop.f32.mrf.mxu1 }
 0x21f   :  { %v787_v9 = vmax.f32 %v404_v3, %v735_v4  ;;  %v9312_v3 = vld [vmem:[%s11959_s0 + $0x114] sm:$0xff]  ;;  %v9344_v4 = vld [vmem:[%s11959_s0 + $0x424] sm:$0xff] }
 0x220   :  { %1746 = vst.msk [vmem:[%s11961_s3 + $0xb8] sm:$0xf] %vm1699_vm0, %v1696_v1  ;;  %v1546_v7 = vmax.f32 %v1166_v2, %v1492_v62 }
 0x221   :  { %2053 = vmatmul.bf16.gmra.mxu0 %v9309_v63  ;;  %2383 = vmatmul.bf16.gmra.mxu1 %v9341_v0 }
 0x222   :  { %v1599_v8 = vadd.f32 %v10161_v54, %v1546_v7  ;;  %2762 = vmatmul.bf16.gmra.mxu2 %v9365_v5  ;;  %3141 = vmatmul.bf16.gmra.mxu3 %v9389_v6 }
 0x224   :  { %v1648_v10 = vmax.f32 %v1599_v8, 0.0 }
 0x225   :  { %v1115_v11 = vpop.f32.mrf.mxu2  ;;  %v1495_v12 = vpop.f32.mrf.mxu3 }
 0x226   :  { %v1697_v13 = vpack.c.bf16 %v1648_v10, %v1648_v10  ;;  %v1167_v14 = vmax.f32 %v787_v9, %v1115_v11  ;;  %v406_v15 = vpop.f32.mrf.mxu0  ;;  %v737_v16 = vpop.f32.mrf.mxu1  ;;  %v9368_v9 = vld [vmem:[%s11959_s0 + $0x734] sm:$0xff]  ;;  %v9392_v10 = vld [vmem:[%s11959_s0 + $0xa44] sm:$0xff] }
 0x228   :  { %1747 = vst.msk [vmem:[%s11961_s3 + $0xbc] sm:$0xf] %vm1699_vm0, %v1697_v13  ;;  %v1547_v17 = vmax.f32 %v1167_v14, %v1495_v12 }
 0x22a   :  { %v1600_v18 = vadd.f32 %v10161_v54, %v1547_v17  ;;  %v9390_v54 = vld [vmem:[%s11959_s0 + $0xa34] sm:$0xff] }
 0x22c   :  { %v1649_v19 = vmax.f32 %v1600_v18, 0.0 }
 0x22d   :  { %v1117_v20 = vpop.f32.mrf.mxu2  ;;  %v1497_v21 = vpop.f32.mrf.mxu3 }
 0x22e   :  { %v1698_v24 = vpack.c.bf16 %v1649_v19, %v1649_v19  ;;  %v2019_v25 = vpop.f32.mrf.mxu0  ;;  %v2349_v26 = vpop.f32.mrf.mxu1 }
 0x22f   :  { %v2473_v29 = vmax.f32 %v2019_v25, %v2349_v26 }
 0x230   :  { %1748 = vst.msk [vmem:[%s11961_s3 + $0xc0] sm:$0xf] %vm1699_vm0, %v1698_v24 }
 0x231   :  { %2058 = vmatmul.bf16.gmra.mxu0 %v9310_v22  ;;  %2388 = vmatmul.bf16.gmra.mxu1 %v9342_v23 }
 0x232   :  { %2767 = vmatmul.bf16.gmra.mxu2 %v9366_v27  ;;  %3146 = vmatmul.bf16.gmra.mxu3 %v9390_v54  ;;  %v9313_v27 = vld [vmem:[%s11959_s0 + $0x11c] sm:$0xff]  ;;  %v9345_v54 = vld [vmem:[%s11959_s0 + $0x42c] sm:$0xff] }
 0x235   :  { %v2728_v30 = vpop.f32.mrf.mxu2  ;;  %v3107_v31 = vpop.f32.mrf.mxu3 }
 0x236   :  { %v2852_v32 = vmax.f32 %v2473_v29, %v2728_v30  ;;  %v2021_v34 = vpop.f32.mrf.mxu0  ;;  %v2351_v35 = vpop.f32.mrf.mxu1 }
 0x237   :  { %v2474_v39 = vmax.f32 %v2021_v34, %v2351_v35  ;;  %v9393_v34 = vld [vmem:[%s11959_s0 + $0xa4c] sm:$0xff] }
 0x238   :  { %v3231_v36 = vmax.f32 %v2852_v32, %v3107_v31  ;;  %v9369_v32 = vld [vmem:[%s11959_s0 + $0x73c] sm:$0xff] }
 0x23a   :  { %v3284_v37 = vadd.f32 %v10368_v33, %v3231_v36  ;;  %v9433_v36 = vld [vmem:[%s11958_s1 + $0x18] sm:$0xff] }
 0x23b   :  { %4454 = vmatpush.bf16.msra.mxu2 %v9433_v36  ;;  %4833 = vmatpush.bf16.msra.mxu3 %v9433_v36 }
 0x23c   :  { %v3333_v38 = vmax.f32 %v3284_v37, 0.0  ;;  %3745 = vmatpush.bf16.msra.mxu0 %v9433_v36  ;;  %4075 = vmatpush.bf16.msra.mxu1 %v9433_v36 }
 0x23d   :  { %v2730_v40 = vpop.f32.mrf.mxu2  ;;  %v3109_v41 = vpop.f32.mrf.mxu3 }
 0x23e   :  { %v3382_v44 = vpack.c.bf16 %v3333_v38, %v3333_v38  ;;  %v2853_v45 = vmax.f32 %v2474_v39, %v2730_v40  ;;  %v2024_v46 = vpop.f32.mrf.mxu0  ;;  %v2354_v47 = vpop.f32.mrf.mxu1 }
 0x23f   :  { %v2475_v52 = vmax.f32 %v2024_v46, %v2354_v47 }
 0x240   :  { %3431 = vst.msk [vmem:[%s11961_s3 + $0xc4] sm:$0xf] %vm1699_vm0, %v3382_v44  ;;  %v3232_v50 = vmax.f32 %v2853_v45, %v3109_v41 }
 0x241   :  { %2063 = vmatmul.bf16.gmra.mxu0 %v9311_v42  ;;  %2393 = vmatmul.bf16.gmra.mxu1 %v9343_v43 }
 0x242   :  { %v3285_v51 = vadd.f32 %v10368_v33, %v3232_v50  ;;  %2772 = vmatmul.bf16.gmra.mxu2 %v9367_v48  ;;  %3151 = vmatmul.bf16.gmra.mxu3 %v9391_v49 }
 0x244   :  { %v3334_v53 = vmax.f32 %v3285_v51, 0.0 }
 0x245   :  { %v2733_v55 = vpop.f32.mrf.mxu2  ;;  %v3112_v56 = vpop.f32.mrf.mxu3 }
 0x246   :  { %v3383_v57 = vpack.c.bf16 %v3334_v53, %v3334_v53  ;;  %v2854_v58 = vmax.f32 %v2475_v52, %v2733_v55  ;;  %v2026_v59 = vpop.f32.mrf.mxu0  ;;  %v2356_v60 = vpop.f32.mrf.mxu1  ;;  %v9314_v52 = vld [vmem:[%s11959_s0 + $0x124] sm:$0xff]  ;;  %v9346_v53 = vld [vmem:[%s11959_s0 + $0x434] sm:$0xff] }
 0x247   :  { %v2476_v0 = vmax.f32 %v2026_v59, %v2356_v60  ;;  %v9370_v59 = vld [vmem:[%s11959_s0 + $0x744] sm:$0xff]  ;;  %v9394_v60 = vld [vmem:[%s11959_s0 + $0xa54] sm:$0xff] }
 0x248   :  { %3432 = vst.msk [vmem:[%s11961_s3 + $0xc8] sm:$0xf] %vm1699_vm0, %v3383_v57  ;;  %v3233_v61 = vmax.f32 %v2854_v58, %v3112_v56 }
 0x24a   :  { %v3286_v62 = vadd.f32 %v10368_v33, %v3233_v61 }
 0x24c   :  { %v3335_v63 = vmax.f32 %v3286_v62, 0.0 }
 0x24d   :  { %v2735_v1 = vpop.f32.mrf.mxu2  ;;  %v3114_v2 = vpop.f32.mrf.mxu3 }
 0x24e   :  { %v3384_v5 = vpack.c.bf16 %v3335_v63, %v3335_v63  ;;  %v2855_v6 = vmax.f32 %v2476_v0, %v2735_v1  ;;  %v2029_v7 = vpop.f32.mrf.mxu0  ;;  %v2359_v8 = vpop.f32.mrf.mxu1 }
 0x24f   :  { %v2477_v13 = vmax.f32 %v2029_v7, %v2359_v8 }
 0x250   :  { %3433 = vst.msk [vmem:[%s11961_s3 + $0xcc] sm:$0xf] %vm1699_vm0, %v3384_v5  ;;  %v3234_v11 = vmax.f32 %v2855_v6, %v3114_v2 }
 0x251   :  { %2068 = vmatmul.bf16.gmra.mxu0 %v9312_v3  ;;  %2398 = vmatmul.bf16.gmra.mxu1 %v9344_v4 }
 0x252   :  { %v3287_v12 = vadd.f32 %v10368_v33, %v3234_v11  ;;  %2777 = vmatmul.bf16.gmra.mxu2 %v9368_v9  ;;  %3156 = vmatmul.bf16.gmra.mxu3 %v9392_v10 }
 0x254   :  { %v3336_v14 = vmax.f32 %v3287_v12, 0.0 }
 0x255   :  { %v2738_v15 = vpop.f32.mrf.mxu2  ;;  %v3117_v16 = vpop.f32.mrf.mxu3 }
 0x256   :  { %v3385_v17 = vpack.c.bf16 %v3336_v14, %v3336_v14  ;;  %v2856_v18 = vmax.f32 %v2477_v13, %v2738_v15  ;;  %v2031_v19 = vpop.f32.mrf.mxu0  ;;  %v2361_v20 = vpop.f32.mrf.mxu1  ;;  %v9315_v13 = vld [vmem:[%s11959_s0 + $0x12c] sm:$0xff]  ;;  %v9347_v14 = vld [vmem:[%s11959_s0 + $0x43c] sm:$0xff] }
 0x257   :  { %v2478_v24 = vmax.f32 %v2031_v19, %v2361_v20  ;;  %v9371_v19 = vld [vmem:[%s11959_s0 + $0x74c] sm:$0xff]  ;;  %v9395_v20 = vld [vmem:[%s11959_s0 + $0xa5c] sm:$0xff] }
 0x258   :  { %3434 = vst.msk [vmem:[%s11961_s3 + $0xd0] sm:$0xf] %vm1699_vm0, %v3385_v17  ;;  %v3235_v21 = vmax.f32 %v2856_v18, %v3117_v16 }
 0x25a   :  { %v3288_v22 = vadd.f32 %v10368_v33, %v3235_v21 }
 0x25c   :  { %v3337_v23 = vmax.f32 %v3288_v22, 0.0 }
 0x25d   :  { %v2740_v25 = vpop.f32.mrf.mxu2  ;;  %v3119_v26 = vpop.f32.mrf.mxu3 }
 0x25e   :  { %v3386_v28 = vpack.c.bf16 %v3337_v23, %v3337_v23  ;;  %v2857_v29 = vmax.f32 %v2478_v24, %v2740_v25  ;;  %v2034_v30 = vpop.f32.mrf.mxu0  ;;  %v2364_v31 = vpop.f32.mrf.mxu1 }
 0x25f   :  { %v2479_v38 = vmax.f32 %v2034_v30, %v2364_v31 }
 0x260   :  { %3435 = vst.msk [vmem:[%s11961_s3 + $0xd4] sm:$0xf] %vm1699_vm0, %v3386_v28  ;;  %v3236_v35 = vmax.f32 %v2857_v29, %v3119_v26 }
 0x261   :  { %2073 = vmatmul.bf16.gmra.mxu0 %v9313_v27  ;;  %2403 = vmatmul.bf16.gmra.mxu1 %v9345_v54 }
 0x262   :  { %v3289_v37 = vadd.f32 %v10368_v33, %v3236_v35  ;;  %2782 = vmatmul.bf16.gmra.mxu2 %v9369_v32  ;;  %3161 = vmatmul.bf16.gmra.mxu3 %v9393_v34 }
 0x264   :  { %v3338_v39 = vmax.f32 %v3289_v37, 0.0  ;;  %v9316_v37 = vld [vmem:[%s11959_s0 + $0x134] sm:$0xff] }
 0x265   :  { %v2743_v40 = vpop.f32.mrf.mxu2  ;;  %v3122_v41 = vpop.f32.mrf.mxu3 }
 0x266   :  { %v3387_v42 = vpack.c.bf16 %v3338_v39, %v3338_v39  ;;  %v2858_v43 = vmax.f32 %v2479_v38, %v2743_v40  ;;  %v2036_v44 = vpop.f32.mrf.mxu0  ;;  %v2366_v45 = vpop.f32.mrf.mxu1  ;;  %v9348_v38 = vld [vmem:[%s11959_s0 + $0x444] sm:$0xff] }
 0x267   :  { %v2480_v49 = vmax.f32 %v2036_v44, %v2366_v45  ;;  %v9396_v44 = vld [vmem:[%s11959_s0 + $0xa64] sm:$0xff] }
 0x268   :  { %3436 = vst.msk [vmem:[%s11961_s3 + $0xd8] sm:$0xf] %vm1699_vm0, %v3387_v42  ;;  %v3237_v46 = vmax.f32 %v2858_v43, %v3122_v41  ;;  %v9372_v43 = vld [vmem:[%s11959_s0 + $0x754] sm:$0xff] }
 0x26a   :  { %v3290_v47 = vadd.f32 %v10368_v33, %v3237_v46  ;;  %v9432_v46 = vld [vmem:[%s11958_s1 + $0x10] sm:$0xff] }
 0x26b   :  { %4455 = vmatpush.bf16.msra.mxu2 %v9432_v46  ;;  %4834 = vmatpush.bf16.msra.mxu3 %v9432_v46 }
 0x26c   :  { %v3339_v48 = vmax.f32 %v3290_v47, 0.0  ;;  %3746 = vmatpush.bf16.msra.mxu0 %v9432_v46  ;;  %4076 = vmatpush.bf16.msra.mxu1 %v9432_v46 }
 0x26d   :  { %v2745_v50 = vpop.f32.mrf.mxu2  ;;  %v3124_v51 = vpop.f32.mrf.mxu3 }
 0x26e   :  { %v3388_v55 = vpack.c.bf16 %v3339_v48, %v3339_v48  ;;  %v2859_v56 = vmax.f32 %v2480_v49, %v2745_v50  ;;  %v2039_v57 = vpop.f32.mrf.mxu0  ;;  %v2369_v58 = vpop.f32.mrf.mxu1 }
 0x26f   :  { %v2481_v63 = vmax.f32 %v2039_v57, %v2369_v58 }
 0x270   :  { %3437 = vst.msk [vmem:[%s11961_s3 + $0xdc] sm:$0xf] %vm1699_vm0, %v3388_v55  ;;  %v3238_v61 = vmax.f32 %v2859_v56, %v3124_v51 }
 0x271   :  { %2078 = vmatmul.bf16.gmra.mxu0 %v9314_v52  ;;  %2408 = vmatmul.bf16.gmra.mxu1 %v9346_v53 }
 0x272   :  { %v3291_v62 = vadd.f32 %v10368_v33, %v3238_v61  ;;  %2787 = vmatmul.bf16.gmra.mxu2 %v9370_v59  ;;  %3166 = vmatmul.bf16.gmra.mxu3 %v9394_v60 }
 0x274   :  { %v3340_v0 = vmax.f32 %v3291_v62, 0.0 }
 0x275   :  { %v2748_v1 = vpop.f32.mrf.mxu2  ;;  %v3127_v2 = vpop.f32.mrf.mxu3 }
 0x276   :  { %v3389_v3 = vpack.c.bf16 %v3340_v0, %v3340_v0  ;;  %v2860_v4 = vmax.f32 %v2481_v63, %v2748_v1  ;;  %v2041_v5 = vpop.f32.mrf.mxu0  ;;  %v2371_v6 = vpop.f32.mrf.mxu1  ;;  %v9317_v63 = vld [vmem:[%s11959_s0 + $0x13c] sm:$0xff]  ;;  %v9349_v0 = vld [vmem:[%s11959_s0 + $0x44c] sm:$0xff] }
 0x277   :  { %v2482_v10 = vmax.f32 %v2041_v5, %v2371_v6  ;;  %v9373_v5 = vld [vmem:[%s11959_s0 + $0x75c] sm:$0xff]  ;;  %v9397_v6 = vld [vmem:[%s11959_s0 + $0xa6c] sm:$0xff] }
 0x278   :  { %3438 = vst.msk [vmem:[%s11961_s3 + $0xe0] sm:$0xf] %vm1699_vm0, %v3389_v3  ;;  %v3239_v7 = vmax.f32 %v2860_v4, %v3127_v2 }
 0x27a   :  { %v3292_v8 = vadd.f32 %v10368_v33, %v3239_v7 }
 0x27c   :  { %v3341_v9 = vmax.f32 %v3292_v8, 0.0 }
 0x27d   :  { %v2750_v11 = vpop.f32.mrf.mxu2  ;;  %v3129_v12 = vpop.f32.mrf.mxu3 }
 0x27e   :  { %v3390_v15 = vpack.c.bf16 %v3341_v9, %v3341_v9  ;;  %v2861_v16 = vmax.f32 %v2482_v10, %v2750_v11  ;;  %v2044_v17 = vpop.f32.mrf.mxu0  ;;  %v2374_v18 = vpop.f32.mrf.mxu1 }
 0x27f   :  { %v2483_v23 = vmax.f32 %v2044_v17, %v2374_v18 }
 0x280   :  { %3439 = vst.msk [vmem:[%s11961_s3 + $0xe4] sm:$0xf] %vm1699_vm0, %v3390_v15  ;;  %v3240_v21 = vmax.f32 %v2861_v16, %v3129_v12 }
 0x281   :  { %2083 = vmatmul.bf16.gmra.mxu0 %v9315_v13  ;;  %2413 = vmatmul.bf16.gmra.mxu1 %v9347_v14 }
 0x282   :  { %v3293_v22 = vadd.f32 %v10368_v33, %v3240_v21  ;;  %2792 = vmatmul.bf16.gmra.mxu2 %v9371_v19  ;;  %3171 = vmatmul.bf16.gmra.mxu3 %v9395_v20 }
 0x284   :  { %v3342_v24 = vmax.f32 %v3293_v22, 0.0 }
 0x285   :  { %v2753_v25 = vpop.f32.mrf.mxu2  ;;  %v3132_v26 = vpop.f32.mrf.mxu3 }
 0x286   :  { %v3391_v27 = vpack.c.bf16 %v3342_v24, %v3342_v24  ;;  %v2862_v54 = vmax.f32 %v2483_v23, %v2753_v25  ;;  %v2046_v28 = vpop.f32.mrf.mxu0  ;;  %v2376_v29 = vpop.f32.mrf.mxu1  ;;  %v9318_v23 = vld [vmem:[%s11959_s0 + $0x144] sm:$0xff]  ;;  %v9350_v24 = vld [vmem:[%s11959_s0 + $0x454] sm:$0xff] }
 0x287   :  { %v2484_v34 = vmax.f32 %v2046_v28, %v2376_v29  ;;  %v9374_v28 = vld [vmem:[%s11959_s0 + $0x764] sm:$0xff]  ;;  %v9398_v29 = vld [vmem:[%s11959_s0 + $0xa74] sm:$0xff] }
 0x288   :  { %3440 = vst.msk [vmem:[%s11961_s3 + $0xe8] sm:$0xf] %vm1699_vm0, %v3391_v27  ;;  %v3241_v30 = vmax.f32 %v2862_v54, %v3132_v26 }
 0x28a   :  { %v3294_v31 = vadd.f32 %v10368_v33, %v3241_v30 }
 0x28c   :  { %v3343_v32 = vmax.f32 %v3294_v31, 0.0 }
 0x28d   :  { %v2755_v35 = vpop.f32.mrf.mxu2  ;;  %v3134_v36 = vpop.f32.mrf.mxu3 }
 0x28e   :  { %v3392_v39 = vpack.c.bf16 %v3343_v32, %v3343_v32  ;;  %v2863_v40 = vmax.f32 %v2484_v34, %v2755_v35  ;;  %v2049_v41 = vpop.f32.mrf.mxu0  ;;  %v2379_v42 = vpop.f32.mrf.mxu1 }
 0x28f   :  { %v2485_v48 = vmax.f32 %v2049_v41, %v2379_v42 }
 0x290   :  { %3441 = vst.msk [vmem:[%s11961_s3 + $0xec] sm:$0xf] %vm1699_vm0, %v3392_v39  ;;  %v3242_v45 = vmax.f32 %v2863_v40, %v3134_v36 }
 0x291   :  { %2088 = vmatmul.bf16.gmra.mxu0 %v9316_v37  ;;  %2418 = vmatmul.bf16.gmra.mxu1 %v9348_v38 }
 0x292   :  { %v3295_v47 = vadd.f32 %v10368_v33, %v3242_v45  ;;  %2797 = vmatmul.bf16.gmra.mxu2 %v9372_v43  ;;  %3176 = vmatmul.bf16.gmra.mxu3 %v9396_v44 }
 0x294   :  { %v3344_v49 = vmax.f32 %v3295_v47, 0.0  ;;  %v9319_v47 = vld [vmem:[%s11959_s0 + $0x14c] sm:$0xff] }
 0x295   :  { %v2758_v50 = vpop.f32.mrf.mxu2  ;;  %v3137_v51 = vpop.f32.mrf.mxu3 }
 0x296   :  { %v3393_v52 = vpack.c.bf16 %v3344_v49, %v3344_v49  ;;  %v2864_v53 = vmax.f32 %v2485_v48, %v2758_v50  ;;  %v2051_v55 = vpop.f32.mrf.mxu0  ;;  %v2381_v56 = vpop.f32.mrf.mxu1  ;;  %v9351_v48 = vld [vmem:[%s11959_s0 + $0x45c] sm:$0xff] }
 0x297   :  { %v2486_v60 = vmax.f32 %v2051_v55, %v2381_v56  ;;  %v9399_v55 = vld [vmem:[%s11959_s0 + $0xa7c] sm:$0xff] }
 0x298   :  { %3442 = vst.msk [vmem:[%s11961_s3 + $0xf0] sm:$0xf] %vm1699_vm0, %v3393_v52  ;;  %v3243_v57 = vmax.f32 %v2864_v53, %v3137_v51  ;;  %v9375_v53 = vld [vmem:[%s11959_s0 + $0x76c] sm:$0xff] }
 0x29a   :  { %v3296_v58 = vadd.f32 %v10368_v33, %v3243_v57 }
 0x29c   :  { %v3345_v59 = vmax.f32 %v3296_v58, 0.0 }
 0x29d   :  { %v2760_v61 = vpop.f32.mrf.mxu2  ;;  %v3139_v62 = vpop.f32.mrf.mxu3 }
 0x29e   :  { %v3394_v1 = vpack.c.bf16 %v3345_v59, %v3345_v59  ;;  %v2865_v2 = vmax.f32 %v2486_v60, %v2760_v61  ;;  %v2054_v3 = vpop.f32.mrf.mxu0  ;;  %v2384_v4 = vpop.f32.mrf.mxu1 }
 0x29f   :  { %v2487_v9 = vmax.f32 %v2054_v3, %v2384_v4  ;;  %v9431_v3 = vld [vmem:[%s11958_s1 + $0x8] sm:$0xff] }
 0x2a0   :  { %3443 = vst.msk [vmem:[%s11961_s3 + $0xf4] sm:$0xf] %vm1699_vm0, %v3394_v1  ;;  %v3244_v7 = vmax.f32 %v2865_v2, %v3139_v62  ;;  %4456 = vmatpush.bf16.msra.mxu2 %v9431_v3  ;;  %4835 = vmatpush.bf16.msra.mxu3 %v9431_v3 }
 0x2a1   :  { %2093 = vmatmul.bf16.gmra.mxu0 %v9317_v63  ;;  %2423 = vmatmul.bf16.gmra.mxu1 %v9349_v0 }
 0x2a2   :  { %v3297_v8 = vadd.f32 %v10368_v33, %v3244_v7  ;;  %2802 = vmatmul.bf16.gmra.mxu2 %v9373_v5  ;;  %3181 = vmatmul.bf16.gmra.mxu3 %v9397_v6 }
 0x2a3   :  { %3747 = vmatpush.bf16.msra.mxu0 %v9431_v3  ;;  %4077 = vmatpush.bf16.msra.mxu1 %v9431_v3 }
 0x2a4   :  { %v3346_v10 = vmax.f32 %v3297_v8, 0.0 }
 0x2a5   :  { %v2763_v11 = vpop.f32.mrf.mxu2  ;;  %v3142_v12 = vpop.f32.mrf.mxu3 }
 0x2a6   :  { %v3395_v13 = vpack.c.bf16 %v3346_v10, %v3346_v10  ;;  %v2866_v14 = vmax.f32 %v2487_v9, %v2763_v11  ;;  %v2056_v15 = vpop.f32.mrf.mxu0  ;;  %v2386_v16 = vpop.f32.mrf.mxu1  ;;  %v9320_v9 = vld [vmem:[%s11959_s0 + $0x154] sm:$0xff]  ;;  %v9352_v10 = vld [vmem:[%s11959_s0 + $0x464] sm:$0xff] }
 0x2a7   :  { %v2488_v20 = vmax.f32 %v2056_v15, %v2386_v16  ;;  %v9376_v15 = vld [vmem:[%s11959_s0 + $0x774] sm:$0xff]  ;;  %v9400_v16 = vld [vmem:[%s11959_s0 + $0xa84] sm:$0xff] }
 0x2a8   :  { %3444 = vst.msk [vmem:[%s11961_s3 + $0xf8] sm:$0xf] %vm1699_vm0, %v3395_v13  ;;  %v3245_v17 = vmax.f32 %v2866_v14, %v3142_v12 }
 0x2aa   :  { %v3298_v18 = vadd.f32 %v10368_v33, %v3245_v17 }
 0x2ac   :  { %v3347_v19 = vmax.f32 %v3298_v18, 0.0 }
 0x2ad   :  { %v2765_v21 = vpop.f32.mrf.mxu2  ;;  %v3144_v22 = vpop.f32.mrf.mxu3 }
 0x2ae   :  { %v3396_v25 = vpack.c.bf16 %v3347_v19, %v3347_v19  ;;  %v2867_v26 = vmax.f32 %v2488_v20, %v2765_v21  ;;  %v2059_v27 = vpop.f32.mrf.mxu0  ;;  %v2389_v54 = vpop.f32.mrf.mxu1 }
 0x2af   :  { %v2489_v32 = vmax.f32 %v2059_v27, %v2389_v54 }
 0x2b0   :  { %3445 = vst.msk [vmem:[%s11961_s3 + $0xfc] sm:$0xf] %vm1699_vm0, %v3396_v25  ;;  %v3246_v30 = vmax.f32 %v2867_v26, %v3144_v22 }
 0x2b1   :  { %2098 = vmatmul.bf16.gmra.mxu0 %v9318_v23  ;;  %2428 = vmatmul.bf16.gmra.mxu1 %v9350_v24 }
 0x2b2   :  { %v3299_v31 = vadd.f32 %v10368_v33, %v3246_v30  ;;  %2807 = vmatmul.bf16.gmra.mxu2 %v9374_v28  ;;  %3186 = vmatmul.bf16.gmra.mxu3 %v9398_v29 }
 0x2b4   :  { %v3348_v34 = vmax.f32 %v3299_v31, 0.0 }
 0x2b5   :  { %v2768_v35 = vpop.f32.mrf.mxu2  ;;  %v3147_v36 = vpop.f32.mrf.mxu3 }
 0x2b6   :  { %v3397_v37 = vpack.c.bf16 %v3348_v34, %v3348_v34  ;;  %v2868_v38 = vmax.f32 %v2489_v32, %v2768_v35  ;;  %v2061_v39 = vpop.f32.mrf.mxu0  ;;  %v2391_v40 = vpop.f32.mrf.mxu1  ;;  %v9321_v32 = vld [vmem:[%s11959_s0 + $0x15c] sm:$0xff]  ;;  %v9353_v34 = vld [vmem:[%s11959_s0 + $0x46c] sm:$0xff] }
 0x2b7   :  { %v2490_v44 = vmax.f32 %v2061_v39, %v2391_v40  ;;  %v9377_v39 = vld [vmem:[%s11959_s0 + $0x77c] sm:$0xff]  ;;  %v9401_v40 = vld [vmem:[%s11959_s0 + $0xa8c] sm:$0xff] }
 0x2b8   :  { %3446 = vst.msk [vmem:[%s11961_s3 + $0x100] sm:$0xf] %vm1699_vm0, %v3397_v37  ;;  %v3247_v41 = vmax.f32 %v2868_v38, %v3147_v36 }
 0x2ba   :  { %v3300_v42 = vadd.f32 %v10368_v33, %v3247_v41 }
 0x2bc   :  { %v3349_v43 = vmax.f32 %v3300_v42, 0.0 }
 0x2bd   :  { %v2770_v45 = vpop.f32.mrf.mxu2  ;;  %v3149_v46 = vpop.f32.mrf.mxu3 }
 0x2be   :  { %v3398_v49 = vpack.c.bf16 %v3349_v43, %v3349_v43  ;;  %v2869_v50 = vmax.f32 %v2490_v44, %v2770_v45  ;;  %v2064_v51 = vpop.f32.mrf.mxu0  ;;  %v2394_v52 = vpop.f32.mrf.mxu1 }
 0x2bf   :  { %v2491_v58 = vmax.f32 %v2064_v51, %v2394_v52 }
 0x2c0   :  { %3447 = vst.msk [vmem:[%s11961_s3 + $0x104] sm:$0xf] %vm1699_vm0, %v3398_v49  ;;  %v3248_v56 = vmax.f32 %v2869_v50, %v3149_v46 }
 0x2c1   :  { %2103 = vmatmul.bf16.gmra.mxu0 %v9319_v47  ;;  %2433 = vmatmul.bf16.gmra.mxu1 %v9351_v48 }
 0x2c2   :  { %v3301_v57 = vadd.f32 %v10368_v33, %v3248_v56  ;;  %2812 = vmatmul.bf16.gmra.mxu2 %v9375_v53  ;;  %3191 = vmatmul.bf16.gmra.mxu3 %v9399_v55 }
 0x2c4   :  { %v3350_v59 = vmax.f32 %v3301_v57, 0.0 }
 0x2c5   :  { %v2773_v60 = vpop.f32.mrf.mxu2  ;;  %v3152_v61 = vpop.f32.mrf.mxu3 }
 0x2c6   :  { %v3399_v62 = vpack.c.bf16 %v3350_v59, %v3350_v59  ;;  %v2870_v63 = vmax.f32 %v2491_v58, %v2773_v60  ;;  %v2066_v0 = vpop.f32.mrf.mxu0  ;;  %v2396_v1 = vpop.f32.mrf.mxu1  ;;  %v9322_v58 = vld [vmem:[%s11959_s0 + $0x164] sm:$0xff]  ;;  %v9354_v59 = vld [vmem:[%s11959_s0 + $0x474] sm:$0xff] }
 0x2c7   :  { %v2492_v6 = vmax.f32 %v2066_v0, %v2396_v1  ;;  %v9378_v0 = vld [vmem:[%s11959_s0 + $0x784] sm:$0xff]  ;;  %v9402_v1 = vld [vmem:[%s11959_s0 + $0xa94] sm:$0xff] }
 0x2c8   :  { %3448 = vst.msk [vmem:[%s11961_s3 + $0x108] sm:$0xf] %vm1699_vm0, %v3399_v62  ;;  %v3249_v2 = vmax.f32 %v2870_v63, %v3152_v61 }
 0x2ca   :  { %v3302_v4 = vadd.f32 %v10368_v33, %v3249_v2 }
 0x2cc   :  { %v3351_v5 = vmax.f32 %v3302_v4, 0.0 }
 0x2cd   :  { %v2775_v7 = vpop.f32.mrf.mxu2  ;;  %v3154_v8 = vpop.f32.mrf.mxu3 }
 0x2ce   :  { %v3400_v11 = vpack.c.bf16 %v3351_v5, %v3351_v5  ;;  %v2871_v12 = vmax.f32 %v2492_v6, %v2775_v7  ;;  %v2069_v13 = vpop.f32.mrf.mxu0  ;;  %v2399_v14 = vpop.f32.mrf.mxu1 }
 0x2cf   :  { %v2493_v19 = vmax.f32 %v2069_v13, %v2399_v14  ;;  %v9430_v13 = vld [vmem:[%s11958_s1] sm:$0xff] }
 0x2d0   :  { %3449 = vst.msk [vmem:[%s11961_s3 + $0x10c] sm:$0xf] %vm1699_vm0, %v3400_v11  ;;  %v3250_v17 = vmax.f32 %v2871_v12, %v3154_v8  ;;  %4457 = vmatpush.bf16.msra.mxu2 %v9430_v13  ;;  %4836 = vmatpush.bf16.msra.mxu3 %v9430_v13 }
 0x2d1   :  { %2108 = vmatmul.bf16.gmra.mxu0 %v9320_v9  ;;  %2438 = vmatmul.bf16.gmra.mxu1 %v9352_v10 }
 0x2d2   :  { %v3303_v18 = vadd.f32 %v10368_v33, %v3250_v17  ;;  %2817 = vmatmul.bf16.gmra.mxu2 %v9376_v15  ;;  %3196 = vmatmul.bf16.gmra.mxu3 %v9400_v16 }
 0x2d3   :  { %3748 = vmatpush.bf16.msra.mxu0 %v9430_v13  ;;  %4078 = vmatpush.bf16.msra.mxu1 %v9430_v13 }
 0x2d4   :  { %v3352_v20 = vmax.f32 %v3303_v18, 0.0 }
 0x2d5   :  { %v2778_v21 = vpop.f32.mrf.mxu2  ;;  %v3157_v22 = vpop.f32.mrf.mxu3 }
 0x2d6   :  { %v3401_v23 = vpack.c.bf16 %v3352_v20, %v3352_v20  ;;  %v2872_v24 = vmax.f32 %v2493_v19, %v2778_v21  ;;  %v2071_v25 = vpop.f32.mrf.mxu0  ;;  %v2401_v26 = vpop.f32.mrf.mxu1  ;;  %v9323_v19 = vld [vmem:[%s11959_s0 + $0x16c] sm:$0xff]  ;;  %v9355_v20 = vld [vmem:[%s11959_s0 + $0x47c] sm:$0xff] }
 0x2d7   :  { %v2494_v29 = vmax.f32 %v2071_v25, %v2401_v26  ;;  %v9379_v25 = vld [vmem:[%s11959_s0 + $0x78c] sm:$0xff]  ;;  %v9403_v26 = vld [vmem:[%s11959_s0 + $0xa9c] sm:$0xff] }
 0x2d8   :  { %3450 = vst.msk [vmem:[%s11961_s3 + $0x110] sm:$0xf] %vm1699_vm0, %v3401_v23  ;;  %v3251_v27 = vmax.f32 %v2872_v24, %v3157_v22 }
 0x2da   :  { %v3304_v54 = vadd.f32 %v10368_v33, %v3251_v27 }
 0x2dc   :  { %v3353_v28 = vmax.f32 %v3304_v54, 0.0 }
 0x2dd   :  { %v2780_v30 = vpop.f32.mrf.mxu2  ;;  %v3159_v31 = vpop.f32.mrf.mxu3 }
 0x2de   :  { %v3402_v35 = vpack.c.bf16 %v3353_v28, %v3353_v28  ;;  %v2873_v36 = vmax.f32 %v2494_v29, %v2780_v30  ;;  %v2074_v37 = vpop.f32.mrf.mxu0  ;;  %v2404_v38 = vpop.f32.mrf.mxu1 }
 0x2df   :  { %v2495_v43 = vmax.f32 %v2074_v37, %v2404_v38 }
 0x2e0   :  { %3451 = vst.msk [vmem:[%s11961_s3 + $0x114] sm:$0xf] %vm1699_vm0, %v3402_v35  ;;  %v3252_v41 = vmax.f32 %v2873_v36, %v3159_v31 }
 0x2e1   :  { %2113 = vmatmul.bf16.gmra.mxu0 %v9321_v32  ;;  %2443 = vmatmul.bf16.gmra.mxu1 %v9353_v34 }
 0x2e2   :  { %v3305_v42 = vadd.f32 %v10368_v33, %v3252_v41  ;;  %2822 = vmatmul.bf16.gmra.mxu2 %v9377_v39  ;;  %3201 = vmatmul.bf16.gmra.mxu3 %v9401_v40 }
 0x2e4   :  { %v3354_v44 = vmax.f32 %v3305_v42, 0.0 }
 0x2e5   :  { %v2783_v45 = vpop.f32.mrf.mxu2  ;;  %v3162_v46 = vpop.f32.mrf.mxu3 }
 0x2e6   :  { %v3403_v47 = vpack.c.bf16 %v3354_v44, %v3354_v44  ;;  %v2874_v48 = vmax.f32 %v2495_v43, %v2783_v45  ;;  %v2076_v49 = vpop.f32.mrf.mxu0  ;;  %v2406_v50 = vpop.f32.mrf.mxu1  ;;  %v9324_v43 = vld [vmem:[%s11959_s0 + $0x174] sm:$0xff]  ;;  %v9356_v44 = vld [vmem:[%s11959_s0 + $0x484] sm:$0xff] }
 0x2e7   :  { %v2496_v55 = vmax.f32 %v2076_v49, %v2406_v50  ;;  %v9380_v49 = vld [vmem:[%s11959_s0 + $0x794] sm:$0xff]  ;;  %v9404_v50 = vld [vmem:[%s11959_s0 + $0xaa4] sm:$0xff] }
 0x2e8   :  { %3452 = vst.msk [vmem:[%s11961_s3 + $0x118] sm:$0xf] %vm1699_vm0, %v3403_v47  ;;  %v3253_v51 = vmax.f32 %v2874_v48, %v3162_v46 }
 0x2ea   :  { %v3306_v52 = vadd.f32 %v10368_v33, %v3253_v51 }
 0x2ec   :  { %v3355_v53 = vmax.f32 %v3306_v52, 0.0 }
 0x2ed   :  { %v2785_v56 = vpop.f32.mrf.mxu2  ;;  %v3164_v57 = vpop.f32.mrf.mxu3 }
 0x2ee   :  { %v3404_v60 = vpack.c.bf16 %v3355_v53, %v3355_v53  ;;  %v2875_v61 = vmax.f32 %v2496_v55, %v2785_v56  ;;  %v2079_v62 = vpop.f32.mrf.mxu0  ;;  %v2409_v63 = vpop.f32.mrf.mxu1 }
 0x2ef   :  { %v2497_v4 = vmax.f32 %v2079_v62, %v2409_v63 }
 0x2f0   :  { %3453 = vst.msk [vmem:[%s11961_s3 + $0x11c] sm:$0xf] %vm1699_vm0, %v3404_v60  ;;  %v3254_v2 = vmax.f32 %v2875_v61, %v3164_v57 }
 0x2f1   :  { %2118 = vmatmul.bf16.gmra.mxu0 %v9322_v58  ;;  %2448 = vmatmul.bf16.gmra.mxu1 %v9354_v59 }
 0x2f2   :  { %v3307_v3 = vadd.f32 %v10368_v33, %v3254_v2  ;;  %2827 = vmatmul.bf16.gmra.mxu2 %v9378_v0  ;;  %3206 = vmatmul.bf16.gmra.mxu3 %v9402_v1 }
 0x2f4   :  { %v3356_v5 = vmax.f32 %v3307_v3, 0.0 }
 0x2f5   :  { %v2788_v6 = vpop.f32.mrf.mxu2  ;;  %v3167_v7 = vpop.f32.mrf.mxu3 }
 0x2f6   :  { %v3405_v8 = vpack.c.bf16 %v3356_v5, %v3356_v5  ;;  %v2876_v9 = vmax.f32 %v2497_v4, %v2788_v6  ;;  %v2081_v10 = vpop.f32.mrf.mxu0  ;;  %v2411_v11 = vpop.f32.mrf.mxu1  ;;  %v9325_v4 = vld [vmem:[%s11959_s0 + $0x17c] sm:$0xff]  ;;  %v9357_v5 = vld [vmem:[%s11959_s0 + $0x48c] sm:$0xff] }
 0x2f7   :  { %v2498_v16 = vmax.f32 %v2081_v10, %v2411_v11  ;;  %v9381_v10 = vld [vmem:[%s11959_s0 + $0x79c] sm:$0xff]  ;;  %v9405_v11 = vld [vmem:[%s11959_s0 + $0xaac] sm:$0xff] }
 0x2f8   :  { %3454 = vst.msk [vmem:[%s11961_s3 + $0x120] sm:$0xf] %vm1699_vm0, %v3405_v8  ;;  %v3255_v12 = vmax.f32 %v2876_v9, %v3167_v7 }
 0x2fa   :  { %v3308_v14 = vadd.f32 %v10368_v33, %v3255_v12 }
 0x2fc   :  { %v3357_v15 = vmax.f32 %v3308_v14, 0.0 }
 0x2fd   :  { %v2790_v17 = vpop.f32.mrf.mxu2  ;;  %v3169_v18 = vpop.f32.mrf.mxu3 }
 0x2fe   :  { %v3406_v21 = vpack.c.bf16 %v3357_v15, %v3357_v15  ;;  %v2877_v22 = vmax.f32 %v2498_v16, %v2790_v17  ;;  %v2084_v23 = vpop.f32.mrf.mxu0  ;;  %v2414_v24 = vpop.f32.mrf.mxu1 }
 0x2ff   :  { %v2499_v28 = vmax.f32 %v2084_v23, %v2414_v24  ;;  %v7685_v23 = vld [vmem:[%s11959_s0 + $0x494] sm:$0xf]  ;;  %v7830_v24 = vld [vmem:[%s11959_s0 + $0x7a4] sm:$0xf] }
 0x300   :  { %3455 = vst.msk [vmem:[%s11961_s3 + $0x124] sm:$0xf] %vm1699_vm0, %v3406_v21  ;;  %v3256_v27 = vmax.f32 %v2877_v22, %v3169_v18  ;;  %v1797_v22 = vld [vmem:[%s11959_s0 + $0x184] sm:$0xf] }
 0x301   :  { %2123 = vmatmul.bf16.gmra.mxu0 %v9323_v19  ;;  %2453 = vmatmul.bf16.gmra.mxu1 %v9355_v20 }
 0x302   :  { %v3309_v54 = vadd.f32 %v10368_v33, %v3256_v27  ;;  %2832 = vmatmul.bf16.gmra.mxu2 %v9379_v25  ;;  %3211 = vmatmul.bf16.gmra.mxu3 %v9403_v26  ;;  %v7975_v25 = vld [vmem:[%s11959_s0 + $0xab4] sm:$0xf]  ;;  %v9541_v27 = vld [vmem:[%s11958_s1 + $0x38] sm:$0xff] }
 0x303   :  { %6181 = vmatpush.bf16.msrb.mxu2 %v9541_v27  ;;  %6560 = vmatpush.bf16.msrb.mxu3 %v9541_v27 }
 0x304   :  { %v3358_v29 = vmax.f32 %v3309_v54, 0.0  ;;  %v1911_v54 = vunpack.c.l.b16 %v1797_v22  ;;  %5472 = vmatpush.bf16.msrb.mxu0 %v9541_v27  ;;  %5802 = vmatpush.bf16.msrb.mxu1 %v9541_v27  ;;  %v9407_v22 = vld [vmem:[%s11959_s0 + $0x190] sm:$0xff] }
 0x305   :  { %v2793_v30 = vpop.f32.mrf.mxu2  ;;  %v3172_v31 = vpop.f32.mrf.mxu3 }
 0x306   :  { %v3407_v32 = vpack.c.bf16 %v3358_v29, %v3358_v29  ;;  %v2878_v34 = vmax.f32 %v2499_v28, %v2793_v30  ;;  %v2086_v35 = vpop.f32.mrf.mxu0  ;;  %v2416_v36 = vpop.f32.mrf.mxu1  ;;  %v2289_v28 = vunpack.c.l.b16 %v7685_v23  ;;  %v2668_v30 = vunpack.c.l.b16 %v7830_v24  ;;  %v9439_v23 = vld [vmem:[%s11959_s0 + $0x4a0] sm:$0xff] }
 0x307   :  { %v2500_v40 = vmax.f32 %v2086_v35, %v2416_v36 }
 0x308   :  { %3456 = vst.msk [vmem:[%s11961_s3 + $0x128] sm:$0xf] %vm1699_vm0, %v3407_v32  ;;  %v3257_v37 = vmax.f32 %v2878_v34, %v3172_v31  ;;  %v3047_v31 = vunpack.c.l.b16 %v7975_v25 }
 0x30a   :  { %v3310_v38 = vadd.f32 %v10368_v33, %v3257_v37  ;;  %v1936_v37 = vpack.c.b16 %v1911_v54, %v1911_v54  ;;  %v9463_v54 = vld [vmem:[%s11959_s0 + $0x7b0] sm:$0xff] }
 0x30c   :  { %v3359_v39 = vmax.f32 %v3310_v38, 0.0  ;;  %v2314_v38 = vpack.c.b16 %v2289_v28, %v2289_v28  ;;  %v9487_v28 = vld [vmem:[%s11959_s0 + $0xac0] sm:$0xff] }
 0x30d   :  { %v2795_v41 = vpop.f32.mrf.mxu2  ;;  %v3174_v42 = vpop.f32.mrf.mxu3 }
 0x30e   :  { %v3408_v45 = vpack.c.bf16 %v3359_v39, %v3359_v39  ;;  %v2879_v46 = vmax.f32 %v2500_v40, %v2795_v41  ;;  %v2089_v47 = vpop.f32.mrf.mxu0  ;;  %v2419_v48 = vpop.f32.mrf.mxu1 }
 0x30f   :  { %v2501_v53 = vmax.f32 %v2089_v47, %v2419_v48 }
 0x310   :  { %3457 = vst.msk [vmem:[%s11961_s3 + $0x12c] sm:$0xf] %vm1699_vm0, %v3408_v45  ;;  %v3258_v51 = vmax.f32 %v2879_v46, %v3174_v42 }
 0x311   :  { %2128 = vmatmul.bf16.gmra.mxu0 %v9324_v43  ;;  %2458 = vmatmul.bf16.gmra.mxu1 %v9356_v44  ;;  %v2693_v43 = vpack.c.b16 %v2668_v30, %v2668_v30  ;;  %v3072_v44 = vpack.c.b16 %v3047_v31, %v3047_v31 }
 0x312   :  { %v3311_v52 = vadd.f32 %v10368_v33, %v3258_v51  ;;  %2837 = vmatmul.bf16.gmra.mxu2 %v9380_v49  ;;  %3216 = vmatmul.bf16.gmra.mxu3 %v9404_v50 }
 0x314   :  { %v3360_v55 = vmax.f32 %v3311_v52, 0.0 }
 0x315   :  { %v2798_v56 = vpop.f32.mrf.mxu2  ;;  %v3177_v57 = vpop.f32.mrf.mxu3 }
 0x316   :  { %v3409_v58 = vpack.c.bf16 %v3360_v55, %v3360_v55  ;;  %v2880_v59 = vmax.f32 %v2501_v53, %v2798_v56  ;;  %v2091_v60 = vpop.f32.mrf.mxu0  ;;  %v2421_v61 = vpop.f32.mrf.mxu1 }
 0x317   :  { %v2502_v1 = vmax.f32 %v2091_v60, %v2421_v61 }
 0x318   :  { %3458 = vst.msk [vmem:[%s11961_s3 + $0x130] sm:$0xf] %vm1699_vm0, %v3409_v58  ;;  %v3259_v62 = vmax.f32 %v2880_v59, %v3177_v57 }
 0x31a   :  { %v3312_v63 = vadd.f32 %v10368_v33, %v3259_v62  ;;  %v9406_v62 = vld [vmem:[%s11959_s0 + $0x188] sm:$0xff] }
 0x31c   :  { %v3361_v0 = vmax.f32 %v3312_v63, 0.0  ;;  %v9438_v63 = vld [vmem:[%s11959_s0 + $0x498] sm:$0xff] }
 0x31d   :  { %v2800_v2 = vpop.f32.mrf.mxu2  ;;  %v3179_v3 = vpop.f32.mrf.mxu3 }
 0x31e   :  { %v3410_v6 = vpack.c.bf16 %v3361_v0, %v3361_v0  ;;  %v2881_v7 = vmax.f32 %v2502_v1, %v2800_v2  ;;  %v2094_v8 = vpop.f32.mrf.mxu0  ;;  %v2424_v9 = vpop.f32.mrf.mxu1 }
 0x31f   :  { %v2503_v14 = vmax.f32 %v2094_v8, %v2424_v9 }
 0x320   :  { %3459 = vst.msk [vmem:[%s11961_s3 + $0x134] sm:$0xf] %vm1699_vm0, %v3410_v6  ;;  %v3260_v12 = vmax.f32 %v2881_v7, %v3179_v3 }
 0x321   :  { %2133 = vmatmul.bf16.gmra.mxu0 %v9325_v4  ;;  %2463 = vmatmul.bf16.gmra.mxu1 %v9357_v5  ;;  %v9462_v4 = vld [vmem:[%s11959_s0 + $0x7a8] sm:$0xff]  ;;  %v9486_v5 = vld [vmem:[%s11959_s0 + $0xab8] sm:$0xff] }
 0x322   :  { %v3313_v13 = vadd.f32 %v10368_v33, %v3260_v12  ;;  %2842 = vmatmul.bf16.gmra.mxu2 %v9381_v10  ;;  %3221 = vmatmul.bf16.gmra.mxu3 %v9405_v11 }
 0x324   :  { %v3362_v15 = vmax.f32 %v3313_v13, 0.0 }
 0x325   :  { %v2803_v16 = vpop.f32.mrf.mxu2  ;;  %v3182_v17 = vpop.f32.mrf.mxu3 }
 0x326   :  { %v3411_v18 = vpack.c.bf16 %v3362_v15, %v3362_v15  ;;  %v2882_v19 = vmax.f32 %v2503_v14, %v2803_v16  ;;  %v2096_v20 = vpop.f32.mrf.mxu0  ;;  %v2426_v21 = vpop.f32.mrf.mxu1 }
 0x327   :  { %v2504_v34 = vmax.f32 %v2096_v20, %v2426_v21 }
 0x328   :  { %3460 = vst.msk [vmem:[%s11961_s3 + $0x138] sm:$0xf] %vm1699_vm0, %v3411_v18  ;;  %v3261_v26 = vmax.f32 %v2882_v19, %v3182_v17 }
 0x32a   :  { %v3314_v29 = vadd.f32 %v10368_v33, %v3261_v26 }
 0x32c   :  { %v3363_v32 = vmax.f32 %v3314_v29, 0.0 }
 0x32d   :  { %v2805_v35 = vpop.f32.mrf.mxu2  ;;  %v3184_v36 = vpop.f32.mrf.mxu3 }
 0x32e   :  { %v3412_v39 = vpack.c.bf16 %v3363_v32, %v3363_v32  ;;  %v2883_v40 = vmax.f32 %v2504_v34, %v2805_v35  ;;  %v2099_v41 = vpop.f32.mrf.mxu0  ;;  %v2429_v42 = vpop.f32.mrf.mxu1 }
 0x32f   :  { %v2505_v47 = vmax.f32 %v2099_v41, %v2429_v42  ;;  %v9540_v41 = vld [vmem:[%s11958_s1 + $0x30] sm:$0xff] }
 0x330   :  { %3461 = vst.msk [vmem:[%s11961_s3 + $0x13c] sm:$0xf] %vm1699_vm0, %v3412_v39  ;;  %v3262_v45 = vmax.f32 %v2883_v40, %v3184_v36  ;;  %6182 = vmatpush.bf16.msrb.mxu2 %v9540_v41  ;;  %6561 = vmatpush.bf16.msrb.mxu3 %v9540_v41 }
 0x331   :  { %2138 = vmatmul.bf16.gmra.mxu0 %v1936_v37  ;;  %2468 = vmatmul.bf16.gmra.mxu1 %v2314_v38 }
 0x332   :  { %v3315_v46 = vadd.f32 %v10368_v33, %v3262_v45  ;;  %2847 = vmatmul.bf16.gmra.mxu2 %v2693_v43  ;;  %3226 = vmatmul.bf16.gmra.mxu3 %v3072_v44  ;;  %v10740_v33 = vld [vmem:[%s11960_s2] ss:$0 sm:$0xff] }
 0x333   :  { %5473 = vmatpush.bf16.msrb.mxu0 %v9540_v41  ;;  %5803 = vmatpush.bf16.msrb.mxu1 %v9540_v41 }
 0x334   :  { %v3364_v48 = vmax.f32 %v3315_v46, 0.0 }
 0x335   :  { %v2808_v49 = vpop.f32.mrf.mxu2  ;;  %v3187_v50 = vpop.f32.mrf.mxu3 }
 0x336   :  { %v3413_v51 = vpack.c.bf16 %v3364_v48, %v3364_v48  ;;  %v2884_v52 = vmax.f32 %v2505_v47, %v2808_v49  ;;  %v2101_v53 = vpop.f32.mrf.mxu0  ;;  %v2431_v55 = vpop.f32.mrf.mxu1  ;;  %v9408_v47 = vld [vmem:[%s11959_s0 + $0x198] sm:$0xff]  ;;  %v9440_v48 = vld [vmem:[%s11959_s0 + $0x4a8] sm:$0xff] }
 0x337   :  { %v2506_v59 = vmax.f32 %v2101_v53, %v2431_v55  ;;  %v9464_v53 = vld [vmem:[%s11959_s0 + $0x7b8] sm:$0xff]  ;;  %v9488_v55 = vld [vmem:[%s11959_s0 + $0xac8] sm:$0xff] }
 0x338   :  { %3462 = vst.msk [vmem:[%s11961_s3 + $0x140] sm:$0xf] %vm1699_vm0, %v3413_v51  ;;  %v3263_v56 = vmax.f32 %v2884_v52, %v3187_v50 }
 0x33a   :  { %v3316_v57 = vadd.f32 %v10740_v33, %v3263_v56 }
 0x33c   :  { %v3365_v58 = vmax.f32 %v3316_v57, 0.0 }
 0x33d   :  { %v2810_v60 = vpop.f32.mrf.mxu2  ;;  %v3189_v61 = vpop.f32.mrf.mxu3 }
 0x33e   :  { %v3414_v0 = vpack.c.bf16 %v3365_v58, %v3365_v58  ;;  %v2885_v1 = vmax.f32 %v2506_v59, %v2810_v60  ;;  %v2104_v2 = vpop.f32.mrf.mxu0  ;;  %v2434_v3 = vpop.f32.mrf.mxu1 }
 0x33f   :  { %v2507_v8 = vmax.f32 %v2104_v2, %v2434_v3 }
 0x340   :  { %3463 = vst.msk [vmem:[%s11961_s3 + $0x144] sm:$0xf] %vm1699_vm0, %v3414_v0  ;;  %v3264_v6 = vmax.f32 %v2885_v1, %v3189_v61 }
 0x341   :  { %3749 = vmatmul.bf16.vlgmr.msra.gmra.mxu0 %v9406_v62  ;;  %4079 = vmatmul.bf16.vlgmr.msra.gmra.mxu1 %v9438_v63 }
 0x342   :  { %v3317_v7 = vadd.f32 %v10740_v33, %v3264_v6  ;;  %4458 = vmatmul.bf16.vlgmr.msra.gmra.mxu2 %v9462_v4  ;;  %4837 = vmatmul.bf16.vlgmr.msra.gmra.mxu3 %v9486_v5 }
 0x344   :  { %v3366_v9 = vmax.f32 %v3317_v7, 0.0 }
 0x345   :  { %v2813_v10 = vpop.f32.mrf.mxu2  ;;  %v3192_v11 = vpop.f32.mrf.mxu3 }
 0x346   :  { %v3415_v12 = vpack.c.bf16 %v3366_v9, %v3366_v9  ;;  %v2886_v13 = vmax.f32 %v2507_v8, %v2813_v10  ;;  %v2106_v14 = vpop.f32.mrf.mxu0  ;;  %v2436_v15 = vpop.f32.mrf.mxu1  ;;  %v9409_v8 = vld [vmem:[%s11959_s0 + $0x1a0] sm:$0xff]  ;;  %v9441_v9 = vld [vmem:[%s11959_s0 + $0x4b0] sm:$0xff] }
 0x347   :  { %v2508_v19 = vmax.f32 %v2106_v14, %v2436_v15  ;;  %v9465_v14 = vld [vmem:[%s11959_s0 + $0x7c0] sm:$0xff]  ;;  %v9489_v15 = vld [vmem:[%s11959_s0 + $0xad0] sm:$0xff] }
 0x348   :  { %3464 = vst.msk [vmem:[%s11961_s3 + $0x148] sm:$0xf] %vm1699_vm0, %v3415_v12  ;;  %v3265_v16 = vmax.f32 %v2886_v13, %v3192_v11 }
 0x34a   :  { %v3318_v17 = vadd.f32 %v10740_v33, %v3265_v16 }
 0x34c   :  { %v3367_v18 = vmax.f32 %v3318_v17, 0.0 }
 0x34d   :  { %v2815_v20 = vpop.f32.mrf.mxu2  ;;  %v3194_v21 = vpop.f32.mrf.mxu3 }
 0x34e   :  { %v3416_v24 = vpack.c.bf16 %v3367_v18, %v3367_v18  ;;  %v2887_v25 = vmax.f32 %v2508_v19, %v2815_v20  ;;  %v2109_v26 = vpop.f32.mrf.mxu0  ;;  %v2439_v27 = vpop.f32.mrf.mxu1 }
 0x34f   :  { %v2509_v31 = vmax.f32 %v2109_v26, %v2439_v27 }
 0x350   :  { %3465 = vst.msk [vmem:[%s11961_s3 + $0x14c] sm:$0xf] %vm1699_vm0, %v3416_v24  ;;  %v3266_v29 = vmax.f32 %v2887_v25, %v3194_v21 }
 0x351   :  { %3754 = vmatmul.bf16.gmra.mxu0 %v9407_v22  ;;  %4084 = vmatmul.bf16.gmra.mxu1 %v9439_v23 }
 0x352   :  { %v3319_v30 = vadd.f32 %v10740_v33, %v3266_v29  ;;  %4463 = vmatmul.bf16.gmra.mxu2 %v9463_v54  ;;  %4842 = vmatmul.bf16.gmra.mxu3 %v9487_v28 }
 0x354   :  { %v3368_v32 = vmax.f32 %v3319_v30, 0.0 }
 0x355   :  { %v2818_v34 = vpop.f32.mrf.mxu2  ;;  %v3197_v35 = vpop.f32.mrf.mxu3 }
 0x356   :  { %v3417_v36 = vpack.c.bf16 %v3368_v32, %v3368_v32  ;;  %v2888_v37 = vmax.f32 %v2509_v31, %v2818_v34  ;;  %v2111_v38 = vpop.f32.mrf.mxu0  ;;  %v2441_v39 = vpop.f32.mrf.mxu1  ;;  %v9410_v31 = vld [vmem:[%s11959_s0 + $0x1a8] sm:$0xff]  ;;  %v9442_v32 = vld [vmem:[%s11959_s0 + $0x4b8] sm:$0xff] }
 0x357   :  { %v2510_v44 = vmax.f32 %v2111_v38, %v2441_v39  ;;  %v9466_v38 = vld [vmem:[%s11959_s0 + $0x7c8] sm:$0xff]  ;;  %v9490_v39 = vld [vmem:[%s11959_s0 + $0xad8] sm:$0xff] }
 0x358   :  { %3466 = vst.msk [vmem:[%s11961_s3 + $0x150] sm:$0xf] %vm1699_vm0, %v3417_v36  ;;  %v3267_v40 = vmax.f32 %v2888_v37, %v3197_v35 }
 0x35a   :  { %v3320_v42 = vadd.f32 %v10740_v33, %v3267_v40 }
 0x35c   :  { %v3369_v43 = vmax.f32 %v3320_v42, 0.0 }
 0x35d   :  { %v2820_v45 = vpop.f32.mrf.mxu2  ;;  %v3199_v46 = vpop.f32.mrf.mxu3 }
 0x35e   :  { %v3418_v49 = vpack.c.bf16 %v3369_v43, %v3369_v43  ;;  %v2889_v50 = vmax.f32 %v2510_v44, %v2820_v45  ;;  %v2114_v51 = vpop.f32.mrf.mxu0  ;;  %v2444_v52 = vpop.f32.mrf.mxu1 }
 0x35f   :  { %v2511_v58 = vmax.f32 %v2114_v51, %v2444_v52 }
 0x360   :  { %3467 = vst.msk [vmem:[%s11961_s3 + $0x154] sm:$0xf] %vm1699_vm0, %v3418_v49  ;;  %v3268_v56 = vmax.f32 %v2889_v50, %v3199_v46 }
 0x361   :  { %3759 = vmatmul.bf16.gmra.mxu0 %v9408_v47  ;;  %4089 = vmatmul.bf16.gmra.mxu1 %v9440_v48 }
 0x362   :  { %v3321_v57 = vadd.f32 %v10740_v33, %v3268_v56  ;;  %4468 = vmatmul.bf16.gmra.mxu2 %v9464_v53  ;;  %4847 = vmatmul.bf16.gmra.mxu3 %v9488_v55 }
 0x364   :  { %v3370_v59 = vmax.f32 %v3321_v57, 0.0  ;;  %v9411_v57 = vld [vmem:[%s11959_s0 + $0x1b0] sm:$0xff] }
 0x365   :  { %v2823_v60 = vpop.f32.mrf.mxu2  ;;  %v3202_v61 = vpop.f32.mrf.mxu3 }
 0x366   :  { %v3419_v62 = vpack.c.bf16 %v3370_v59, %v3370_v59  ;;  %v2890_v63 = vmax.f32 %v2511_v58, %v2823_v60  ;;  %v2116_v0 = vpop.f32.mrf.mxu0  ;;  %v2446_v1 = vpop.f32.mrf.mxu1  ;;  %v9443_v58 = vld [vmem:[%s11959_s0 + $0x4c0] sm:$0xff] }
 0x367   :  { %v2512_v5 = vmax.f32 %v2116_v0, %v2446_v1  ;;  %v9491_v0 = vld [vmem:[%s11959_s0 + $0xae0] sm:$0xff] }
 0x368   :  { %3468 = vst.msk [vmem:[%s11961_s3 + $0x158] sm:$0xf] %vm1699_vm0, %v3419_v62  ;;  %v3269_v2 = vmax.f32 %v2890_v63, %v3202_v61  ;;  %v9467_v63 = vld [vmem:[%s11959_s0 + $0x7d0] sm:$0xff] }
 0x36a   :  { %v3322_v3 = vadd.f32 %v10740_v33, %v3269_v2  ;;  %v9539_v2 = vld [vmem:[%s11958_s1 + $0x28] sm:$0xff] }
 0x36b   :  { %6183 = vmatpush.bf16.msrb.mxu2 %v9539_v2  ;;  %6562 = vmatpush.bf16.msrb.mxu3 %v9539_v2 }
 0x36c   :  { %v3371_v4 = vmax.f32 %v3322_v3, 0.0  ;;  %5474 = vmatpush.bf16.msrb.mxu0 %v9539_v2  ;;  %5804 = vmatpush.bf16.msrb.mxu1 %v9539_v2  ;;  %v9414_v2 = vld [vmem:[%s11959_s0 + $0x1c8] sm:$0xff] }
 0x36d   :  { %v2825_v6 = vpop.f32.mrf.mxu2  ;;  %v3204_v7 = vpop.f32.mrf.mxu3 }
 0x36e   :  { %v3420_v10 = vpack.c.bf16 %v3371_v4, %v3371_v4  ;;  %v2891_v11 = vmax.f32 %v2512_v5, %v2825_v6  ;;  %v2119_v12 = vpop.f32.mrf.mxu0  ;;  %v2449_v13 = vpop.f32.mrf.mxu1 }
 0x36f   :  { %v2513_v18 = vmax.f32 %v2119_v12, %v2449_v13 }
 0x370   :  { %3469 = vst.msk [vmem:[%s11961_s3 + $0x15c] sm:$0xf] %vm1699_vm0, %v3420_v10  ;;  %v3270_v16 = vmax.f32 %v2891_v11, %v3204_v7 }
 0x371   :  { %3764 = vmatmul.bf16.gmra.mxu0 %v9409_v8  ;;  %4094 = vmatmul.bf16.gmra.mxu1 %v9441_v9 }
 0x372   :  { %v3323_v17 = vadd.f32 %v10740_v33, %v3270_v16  ;;  %4473 = vmatmul.bf16.gmra.mxu2 %v9465_v14  ;;  %4852 = vmatmul.bf16.gmra.mxu3 %v9489_v15 }
 0x374   :  { %v3372_v19 = vmax.f32 %v3323_v17, 0.0 }
 0x375   :  { %v2828_v20 = vpop.f32.mrf.mxu2  ;;  %v3207_v21 = vpop.f32.mrf.mxu3 }
 0x376   :  { %v3421_v22 = vpack.c.bf16 %v3372_v19, %v3372_v19  ;;  %v2892_v23 = vmax.f32 %v2513_v18, %v2828_v20  ;;  %v2121_v24 = vpop.f32.mrf.mxu0  ;;  %v2451_v25 = vpop.f32.mrf.mxu1  ;;  %v9412_v18 = vld [vmem:[%s11959_s0 + $0x1b8] sm:$0xff]  ;;  %v9444_v19 = vld [vmem:[%s11959_s0 + $0x4c8] sm:$0xff] }
 0x377   :  { %v2514_v28 = vmax.f32 %v2121_v24, %v2451_v25  ;;  %v9468_v24 = vld [vmem:[%s11959_s0 + $0x7d8] sm:$0xff]  ;;  %v9492_v25 = vld [vmem:[%s11959_s0 + $0xae8] sm:$0xff] }
 0x378   :  { %3470 = vst.msk [vmem:[%s11961_s3 + $0x160] sm:$0xf] %vm1699_vm0, %v3421_v22  ;;  %v3271_v26 = vmax.f32 %v2892_v23, %v3207_v21 }
 0x37a   :  { %v3324_v27 = vadd.f32 %v10740_v33, %v3271_v26 }
 0x37c   :  { %v3373_v54 = vmax.f32 %v3324_v27, 0.0 }
 0x37d   :  { %v2830_v29 = vpop.f32.mrf.mxu2  ;;  %v3209_v30 = vpop.f32.mrf.mxu3 }
 0x37e   :  { %v3422_v34 = vpack.c.bf16 %v3373_v54, %v3373_v54  ;;  %v2893_v35 = vmax.f32 %v2514_v28, %v2830_v29  ;;  %v2124_v36 = vpop.f32.mrf.mxu0  ;;  %v2454_v37 = vpop.f32.mrf.mxu1 }
 0x37f   :  { %v2515_v42 = vmax.f32 %v2124_v36, %v2454_v37 }
 0x380   :  { %3471 = vst.msk [vmem:[%s11961_s3 + $0x164] sm:$0xf] %vm1699_vm0, %v3422_v34  ;;  %v3272_v40 = vmax.f32 %v2893_v35, %v3209_v30 }
 0x381   :  { %3769 = vmatmul.bf16.gmra.mxu0 %v9410_v31  ;;  %4099 = vmatmul.bf16.gmra.mxu1 %v9442_v32 }
 0x382   :  { %v3325_v41 = vadd.f32 %v10740_v33, %v3272_v40  ;;  %4478 = vmatmul.bf16.gmra.mxu2 %v9466_v38  ;;  %4857 = vmatmul.bf16.gmra.mxu3 %v9490_v39 }
 0x384   :  { %v3374_v43 = vmax.f32 %v3325_v41, 0.0 }
 0x385   :  { %v2833_v44 = vpop.f32.mrf.mxu2  ;;  %v3212_v45 = vpop.f32.mrf.mxu3 }
 0x386   :  { %v3423_v46 = vpack.c.bf16 %v3374_v43, %v3374_v43  ;;  %v2894_v47 = vmax.f32 %v2515_v42, %v2833_v44  ;;  %v2126_v48 = vpop.f32.mrf.mxu0  ;;  %v2456_v49 = vpop.f32.mrf.mxu1  ;;  %v9413_v42 = vld [vmem:[%s11959_s0 + $0x1c0] sm:$0xff]  ;;  %v9445_v43 = vld [vmem:[%s11959_s0 + $0x4d0] sm:$0xff] }
 0x387   :  { %v2516_v53 = vmax.f32 %v2126_v48, %v2456_v49  ;;  %v9469_v48 = vld [vmem:[%s11959_s0 + $0x7e0] sm:$0xff]  ;;  %v9493_v49 = vld [vmem:[%s11959_s0 + $0xaf0] sm:$0xff] }
 0x388   :  { %3472 = vst.msk [vmem:[%s11961_s3 + $0x168] sm:$0xf] %vm1699_vm0, %v3423_v46  ;;  %v3273_v50 = vmax.f32 %v2894_v47, %v3212_v45 }
 0x38a   :  { %v3326_v51 = vadd.f32 %v10740_v33, %v3273_v50 }
 0x38c   :  { %v3375_v52 = vmax.f32 %v3326_v51, 0.0 }
 0x38d   :  { %v2835_v55 = vpop.f32.mrf.mxu2  ;;  %v3214_v56 = vpop.f32.mrf.mxu3 }
 0x38e   :  { %v3424_v59 = vpack.c.bf16 %v3375_v52, %v3375_v52  ;;  %v2895_v60 = vmax.f32 %v2516_v53, %v2835_v55  ;;  %v2129_v61 = vpop.f32.mrf.mxu0  ;;  %v2459_v62 = vpop.f32.mrf.mxu1 }
 0x38f   :  { %v2517_v4 = vmax.f32 %v2129_v61, %v2459_v62 }
 0x390   :  { %3473 = vst.msk [vmem:[%s11961_s3 + $0x16c] sm:$0xf] %vm1699_vm0, %v3424_v59  ;;  %v3274_v1 = vmax.f32 %v2895_v60, %v3214_v56 }
 0x391   :  { %3774 = vmatmul.bf16.gmra.mxu0 %v9411_v57  ;;  %4104 = vmatmul.bf16.gmra.mxu1 %v9443_v58 }
 0x392   :  { %v3327_v3 = vadd.f32 %v10740_v33, %v3274_v1  ;;  %4483 = vmatmul.bf16.gmra.mxu2 %v9467_v63  ;;  %4862 = vmatmul.bf16.gmra.mxu3 %v9491_v0 }
 0x394   :  { %v3376_v5 = vmax.f32 %v3327_v3, 0.0  ;;  %v9446_v3 = vld [vmem:[%s11959_s0 + $0x4d8] sm:$0xff] }
 0x395   :  { %v2838_v6 = vpop.f32.mrf.mxu2  ;;  %v3217_v7 = vpop.f32.mrf.mxu3 }
 0x396   :  { %v3425_v8 = vpack.c.bf16 %v3376_v5, %v3376_v5  ;;  %v2896_v9 = vmax.f32 %v2517_v4, %v2838_v6  ;;  %v2131_v10 = vpop.f32.mrf.mxu0  ;;  %v2461_v11 = vpop.f32.mrf.mxu1 }
 0x397   :  { %v2518_v15 = vmax.f32 %v2131_v10, %v2461_v11 }
 0x398   :  { %3474 = vst.msk [vmem:[%s11961_s3 + $0x170] sm:$0xf] %vm1699_vm0, %v3425_v8  ;;  %v3275_v12 = vmax.f32 %v2896_v9, %v3217_v7  ;;  %v9470_v7 = vld [vmem:[%s11959_s0 + $0x7e8] sm:$0xff]  ;;  %v9538_v8 = vld [vmem:[%s11958_s1 + $0x20] sm:$0xff] }
 0x399   :  { %6184 = vmatpush.bf16.msrb.mxu2 %v9538_v8  ;;  %6563 = vmatpush.bf16.msrb.mxu3 %v9538_v8 }
 0x39a   :  { %v3328_v13 = vadd.f32 %v10740_v33, %v3275_v12  ;;  %5475 = vmatpush.bf16.msrb.mxu0 %v9538_v8  ;;  %5805 = vmatpush.bf16.msrb.mxu1 %v9538_v8 }
 0x39c   :  { %v3377_v14 = vmax.f32 %v3328_v13, 0.0  ;;  %v10947_v13 = vld [vmem:[%s11960_s2] ss:$0 sm:$0xff] }
 0x39d   :  { %v2840_v16 = vpop.f32.mrf.mxu2  ;;  %v3219_v17 = vpop.f32.mrf.mxu3 }
 0x39e   :  { %v3426_v20 = vpack.c.bf16 %v3377_v14, %v3377_v14  ;;  %v2897_v21 = vmax.f32 %v2518_v15, %v2840_v16  ;;  %v2134_v22 = vpop.f32.mrf.mxu0  ;;  %v2464_v23 = vpop.f32.mrf.mxu1 }
 0x39f   :  { %v2519_v54 = vmax.f32 %v2134_v22, %v2464_v23  ;;  %v9415_v22 = vld [vmem:[%s11959_s0 + $0x1d0] sm:$0xff]  ;;  %v9447_v23 = vld [vmem:[%s11959_s0 + $0x4e0] sm:$0xff] }
 0x3a0   :  { %3475 = vst.msk [vmem:[%s11961_s3 + $0x174] sm:$0xf] %vm1699_vm0, %v3426_v20  ;;  %v3276_v26 = vmax.f32 %v2897_v21, %v3219_v17 }
 0x3a1   :  { %3779 = vmatmul.bf16.gmra.mxu0 %v9412_v18  ;;  %4109 = vmatmul.bf16.gmra.mxu1 %v9444_v19 }
 0x3a2   :  { %v3329_v27 = vadd.f32 %v10740_v33, %v3276_v26  ;;  %4488 = vmatmul.bf16.gmra.mxu2 %v9468_v24  ;;  %4867 = vmatmul.bf16.gmra.mxu3 %v9492_v25 }
 0x3a4   :  { %v3378_v28 = vmax.f32 %v3329_v27, 0.0 }
 0x3a5   :  { %v2843_v29 = vpop.f32.mrf.mxu2  ;;  %v3222_v30 = vpop.f32.mrf.mxu3 }
 0x3a6   :  { %v3427_v31 = vpack.c.bf16 %v3378_v28, %v3378_v28  ;;  %v2898_v32 = vmax.f32 %v2519_v54, %v2843_v29  ;;  %v2136_v34 = vpop.f32.mrf.mxu0  ;;  %v2466_v35 = vpop.f32.mrf.mxu1  ;;  %v9471_v54 = vld [vmem:[%s11959_s0 + $0x7f0] sm:$0xff]  ;;  %v9495_v28 = vld [vmem:[%s11959_s0 + $0xb00] sm:$0xff] }
 0x3a7   :  { %v2520_v39 = vmax.f32 %v2136_v34, %v2466_v35 }
 0x3a8   :  { %3476 = vst.msk [vmem:[%s11961_s3 + $0x178] sm:$0xf] %vm1699_vm0, %v3427_v31  ;;  %v3277_v36 = vmax.f32 %v2898_v32, %v3222_v30 }
 0x3aa   :  { %v3330_v37 = vadd.f32 %v10740_v33, %v3277_v36 }
 0x3ac   :  { %v3379_v38 = vmax.f32 %v3330_v37, 0.0 }
 0x3ad   :  { %v2845_v40 = vpop.f32.mrf.mxu2  ;;  %v3224_v41 = vpop.f32.mrf.mxu3 }
 0x3ae   :  { %v3428_v44 = vpack.c.bf16 %v3379_v38, %v3379_v38  ;;  %v2899_v45 = vmax.f32 %v2520_v39, %v2845_v40  ;;  %v2139_v46 = vpop.f32.mrf.mxu0  ;;  %v2469_v47 = vpop.f32.mrf.mxu1 }
 0x3af   :  { %v2521_v52 = vmax.f32 %v2139_v46, %v2469_v47  ;;  %v9416_v46 = vld [vmem:[%s11959_s0 + $0x1d8] sm:$0xff]  ;;  %v9448_v47 = vld [vmem:[%s11959_s0 + $0x4e8] sm:$0xff] }
 0x3b0   :  { %3477 = vst.msk [vmem:[%s11961_s3 + $0x17c] sm:$0xf] %vm1699_vm0, %v3428_v44  ;;  %v3278_v50 = vmax.f32 %v2899_v45, %v3224_v41 }
 0x3b1   :  { %3784 = vmatmul.bf16.gmra.mxu0 %v9413_v42  ;;  %4114 = vmatmul.bf16.gmra.mxu1 %v9445_v43 }
 0x3b2   :  { %v3331_v51 = vadd.f32 %v10740_v33, %v3278_v50  ;;  %4493 = vmatmul.bf16.gmra.mxu2 %v9469_v48  ;;  %4872 = vmatmul.bf16.gmra.mxu3 %v9493_v49 }
 0x3b4   :  { %v3380_v53 = vmax.f32 %v3331_v51, 0.0 }
 0x3b5   :  { %v2848_v55 = vpop.f32.mrf.mxu2  ;;  %v3227_v56 = vpop.f32.mrf.mxu3 }
 0x3b6   :  { %v3429_v57 = vpack.c.bf16 %v3380_v53, %v3380_v53  ;;  %v2900_v58 = vmax.f32 %v2521_v52, %v2848_v55  ;;  %v2141_v59 = vpop.f32.mrf.mxu0  ;;  %v2471_v60 = vpop.f32.mrf.mxu1  ;;  %v9472_v52 = vld [vmem:[%s11959_s0 + $0x7f8] sm:$0xff]  ;;  %v9496_v53 = vld [vmem:[%s11959_s0 + $0xb08] sm:$0xff] }
 0x3b8   :  { %3478 = vst.msk [vmem:[%s11961_s3 + $0x180] sm:$0xf] %vm1699_vm0, %v3429_v57  ;;  %v3279_v61 = vmax.f32 %v2900_v58, %v3227_v56 }
 0x3ba   :  { %v3332_v62 = vadd.f32 %v10740_v33, %v3279_v61  ;;  %v9494_v33 = vld [vmem:[%s11959_s0 + $0xaf8] sm:$0xff] }
 0x3bc   :  { %v3381_v63 = vmax.f32 %v3332_v62, 0.0 }
 0x3bd   :  { %v2850_v0 = vpop.f32.mrf.mxu2  ;;  %v3229_v1 = vpop.f32.mrf.mxu3 }
 0x3be   :  { %v3430_v4 = vpack.c.bf16 %v3381_v63, %v3381_v63  ;;  %v3750_v5 = vpop.f32.mrf.mxu0  ;;  %v4080_v6 = vpop.f32.mrf.mxu1 }
 0x3bf   :  { %v4204_v9 = vmax.f32 %v3750_v5, %v4080_v6 }
 0x3c0   :  { %3479 = vst.msk [vmem:[%s11961_s3 + $0x184] sm:$0xf] %vm1699_vm0, %v3430_v4 }
 0x3c1   :  { %3789 = vmatmul.bf16.gmra.mxu0 %v9414_v2  ;;  %4119 = vmatmul.bf16.gmra.mxu1 %v9446_v3 }
 0x3c2   :  { %4498 = vmatmul.bf16.gmra.mxu2 %v9470_v7  ;;  %4877 = vmatmul.bf16.gmra.mxu3 %v9494_v33  ;;  %v9417_v7 = vld [vmem:[%s11959_s0 + $0x1e0] sm:$0xff]  ;;  %v9449_v33 = vld [vmem:[%s11959_s0 + $0x4f0] sm:$0xff] }
 0x3c5   :  { %v4459_v10 = vpop.f32.mrf.mxu2  ;;  %v4838_v11 = vpop.f32.mrf.mxu3 }
 0x3c6   :  { %v4583_v12 = vmax.f32 %v4204_v9, %v4459_v10  ;;  %v3752_v14 = vpop.f32.mrf.mxu0  ;;  %v4082_v15 = vpop.f32.mrf.mxu1 }
 0x3c7   :  { %v4205_v19 = vmax.f32 %v3752_v14, %v4082_v15  ;;  %v9497_v14 = vld [vmem:[%s11959_s0 + $0xb10] sm:$0xff] }
 0x3c8   :  { %v4962_v16 = vmax.f32 %v4583_v12, %v4838_v11  ;;  %v9473_v12 = vld [vmem:[%s11959_s0 + $0x800] sm:$0xff] }
 0x3ca   :  { %v5015_v17 = vadd.f32 %v10947_v13, %v4962_v16  ;;  %v9537_v16 = vld [vmem:[%s11958_s1 + $0x18] sm:$0xff] }
 0x3cb   :  { %6185 = vmatpush.bf16.msrb.mxu2 %v9537_v16  ;;  %6564 = vmatpush.bf16.msrb.mxu3 %v9537_v16 }
 0x3cc   :  { %v5064_v18 = vmax.f32 %v5015_v17, 0.0  ;;  %5476 = vmatpush.bf16.msrb.mxu0 %v9537_v16  ;;  %5806 = vmatpush.bf16.msrb.mxu1 %v9537_v16 }
 0x3cd   :  { %v4461_v20 = vpop.f32.mrf.mxu2  ;;  %v4840_v21 = vpop.f32.mrf.mxu3 }
 0x3ce   :  { %v5113_v24 = vpack.c.bf16 %v5064_v18, %v5064_v18  ;;  %v4584_v25 = vmax.f32 %v4205_v19, %v4461_v20  ;;  %v3755_v26 = vpop.f32.mrf.mxu0  ;;  %v4085_v27 = vpop.f32.mrf.mxu1 }
 0x3cf   :  { %v4206_v31 = vmax.f32 %v3755_v26, %v4085_v27 }
 0x3d0   :  { %5162 = vst.msk [vmem:[%s11961_s3 + $0x188] sm:$0xf] %vm1699_vm0, %v5113_v24  ;;  %v4963_v29 = vmax.f32 %v4584_v25, %v4840_v21 }
 0x3d1   :  { %3794 = vmatmul.bf16.gmra.mxu0 %v9415_v22  ;;  %4124 = vmatmul.bf16.gmra.mxu1 %v9447_v23 }
 0x3d2   :  { %v5016_v30 = vadd.f32 %v10947_v13, %v4963_v29  ;;  %4503 = vmatmul.bf16.gmra.mxu2 %v9471_v54  ;;  %4882 = vmatmul.bf16.gmra.mxu3 %v9495_v28 }
 0x3d4   :  { %v5065_v32 = vmax.f32 %v5016_v30, 0.0 }
 0x3d5   :  { %v4464_v34 = vpop.f32.mrf.mxu2  ;;  %v4843_v35 = vpop.f32.mrf.mxu3 }
 0x3d6   :  { %v5114_v36 = vpack.c.bf16 %v5065_v32, %v5065_v32  ;;  %v4585_v37 = vmax.f32 %v4206_v31, %v4464_v34  ;;  %v3757_v38 = vpop.f32.mrf.mxu0  ;;  %v4087_v39 = vpop.f32.mrf.mxu1  ;;  %v9418_v31 = vld [vmem:[%s11959_s0 + $0x1e8] sm:$0xff]  ;;  %v9450_v32 = vld [vmem:[%s11959_s0 + $0x4f8] sm:$0xff] }
 0x3d7   :  { %v4207_v43 = vmax.f32 %v3757_v38, %v4087_v39  ;;  %v9474_v38 = vld [vmem:[%s11959_s0 + $0x808] sm:$0xff]  ;;  %v9498_v39 = vld [vmem:[%s11959_s0 + $0xb18] sm:$0xff] }
 0x3d8   :  { %5163 = vst.msk [vmem:[%s11961_s3 + $0x18c] sm:$0xf] %vm1699_vm0, %v5114_v36  ;;  %v4964_v40 = vmax.f32 %v4585_v37, %v4843_v35 }
 0x3da   :  { %v5017_v41 = vadd.f32 %v10947_v13, %v4964_v40 }
 0x3dc   :  { %v5066_v42 = vmax.f32 %v5017_v41, 0.0 }
 0x3dd   :  { %v4466_v44 = vpop.f32.mrf.mxu2  ;;  %v4845_v45 = vpop.f32.mrf.mxu3 }
 0x3de   :  { %v5115_v48 = vpack.c.bf16 %v5066_v42, %v5066_v42  ;;  %v4586_v49 = vmax.f32 %v4207_v43, %v4466_v44  ;;  %v3760_v50 = vpop.f32.mrf.mxu0  ;;  %v4090_v51 = vpop.f32.mrf.mxu1 }
 0x3df   :  { %v4208_v57 = vmax.f32 %v3760_v50, %v4090_v51 }
 0x3e0   :  { %5164 = vst.msk [vmem:[%s11961_s3 + $0x190] sm:$0xf] %vm1699_vm0, %v5115_v48  ;;  %v4965_v55 = vmax.f32 %v4586_v49, %v4845_v45 }
 0x3e1   :  { %3799 = vmatmul.bf16.gmra.mxu0 %v9416_v46  ;;  %4129 = vmatmul.bf16.gmra.mxu1 %v9448_v47 }
 0x3e2   :  { %v5018_v56 = vadd.f32 %v10947_v13, %v4965_v55  ;;  %4508 = vmatmul.bf16.gmra.mxu2 %v9472_v52  ;;  %4887 = vmatmul.bf16.gmra.mxu3 %v9496_v53 }
 0x3e4   :  { %v5067_v58 = vmax.f32 %v5018_v56, 0.0 }
 0x3e5   :  { %v4469_v59 = vpop.f32.mrf.mxu2  ;;  %v4848_v60 = vpop.f32.mrf.mxu3 }
 0x3e6   :  { %v5116_v61 = vpack.c.bf16 %v5067_v58, %v5067_v58  ;;  %v4587_v62 = vmax.f32 %v4208_v57, %v4469_v59  ;;  %v3762_v63 = vpop.f32.mrf.mxu0  ;;  %v4092_v0 = vpop.f32.mrf.mxu1  ;;  %v9419_v57 = vld [vmem:[%s11959_s0 + $0x1f0] sm:$0xff]  ;;  %v9451_v58 = vld [vmem:[%s11959_s0 + $0x500] sm:$0xff] }
 0x3e7   :  { %v4209_v4 = vmax.f32 %v3762_v63, %v4092_v0  ;;  %v9475_v63 = vld [vmem:[%s11959_s0 + $0x810] sm:$0xff]  ;;  %v9499_v0 = vld [vmem:[%s11959_s0 + $0xb20] sm:$0xff] }
 0x3e8   :  { %5165 = vst.msk [vmem:[%s11961_s3 + $0x194] sm:$0xf] %vm1699_vm0, %v5116_v61  ;;  %v4966_v1 = vmax.f32 %v4587_v62, %v4848_v60 }
 0x3ea   :  { %v5019_v2 = vadd.f32 %v10947_v13, %v4966_v1 }
 0x3ec   :  { %v5068_v3 = vmax.f32 %v5019_v2, 0.0 }
 0x3ed   :  { %v4471_v5 = vpop.f32.mrf.mxu2  ;;  %v4850_v6 = vpop.f32.mrf.mxu3 }
 0x3ee   :  { %v5117_v8 = vpack.c.bf16 %v5068_v3, %v5068_v3  ;;  %v4588_v9 = vmax.f32 %v4209_v4, %v4471_v5  ;;  %v3765_v10 = vpop.f32.mrf.mxu0  ;;  %v4095_v11 = vpop.f32.mrf.mxu1 }
 0x3ef   :  { %v4210_v18 = vmax.f32 %v3765_v10, %v4095_v11 }
 0x3f0   :  { %5166 = vst.msk [vmem:[%s11961_s3 + $0x198] sm:$0xf] %vm1699_vm0, %v5117_v8  ;;  %v4967_v15 = vmax.f32 %v4588_v9, %v4850_v6 }
 0x3f1   :  { %3804 = vmatmul.bf16.gmra.mxu0 %v9417_v7  ;;  %4134 = vmatmul.bf16.gmra.mxu1 %v9449_v33 }
 0x3f2   :  { %v5020_v17 = vadd.f32 %v10947_v13, %v4967_v15  ;;  %4513 = vmatmul.bf16.gmra.mxu2 %v9473_v12  ;;  %4892 = vmatmul.bf16.gmra.mxu3 %v9497_v14 }
 0x3f4   :  { %v5069_v19 = vmax.f32 %v5020_v17, 0.0  ;;  %v9420_v17 = vld [vmem:[%s11959_s0 + $0x1f8] sm:$0xff] }
 0x3f5   :  { %v4474_v20 = vpop.f32.mrf.mxu2  ;;  %v4853_v21 = vpop.f32.mrf.mxu3 }
 0x3f6   :  { %v5118_v22 = vpack.c.bf16 %v5069_v19, %v5069_v19  ;;  %v4589_v23 = vmax.f32 %v4210_v18, %v4474_v20  ;;  %v3767_v24 = vpop.f32.mrf.mxu0  ;;  %v4097_v25 = vpop.f32.mrf.mxu1  ;;  %v9452_v18 = vld [vmem:[%s11959_s0 + $0x508] sm:$0xff] }
 0x3f7   :  { %v4211_v28 = vmax.f32 %v3767_v24, %v4097_v25  ;;  %v9500_v24 = vld [vmem:[%s11959_s0 + $0xb28] sm:$0xff] }
 0x3f8   :  { %5167 = vst.msk [vmem:[%s11961_s3 + $0x19c] sm:$0xf] %vm1699_vm0, %v5118_v22  ;;  %v4968_v26 = vmax.f32 %v4589_v23, %v4853_v21  ;;  %v9476_v23 = vld [vmem:[%s11959_s0 + $0x818] sm:$0xff] }
 0x3fa   :  { %v5021_v27 = vadd.f32 %v10947_v13, %v4968_v26  ;;  %v9536_v26 = vld [vmem:[%s11958_s1 + $0x10] sm:$0xff] }
 0x3fb   :  { %6186 = vmatpush.bf16.msrb.mxu2 %v9536_v26  ;;  %6565 = vmatpush.bf16.msrb.mxu3 %v9536_v26 }
 0x3fc   :  { %v5070_v54 = vmax.f32 %v5021_v27, 0.0  ;;  %5477 = vmatpush.bf16.msrb.mxu0 %v9536_v26  ;;  %5807 = vmatpush.bf16.msrb.mxu1 %v9536_v26 }
 0x3fd   :  { %v4476_v29 = vpop.f32.mrf.mxu2  ;;  %v4855_v30 = vpop.f32.mrf.mxu3 }
 0x3fe   :  { %v5119_v34 = vpack.c.bf16 %v5070_v54, %v5070_v54  ;;  %v4590_v35 = vmax.f32 %v4211_v28, %v4476_v29  ;;  %v3770_v36 = vpop.f32.mrf.mxu0  ;;  %v4100_v37 = vpop.f32.mrf.mxu1 }
 0x3ff   :  { %v4212_v42 = vmax.f32 %v3770_v36, %v4100_v37 }
 0x400   :  { %5168 = vst.msk [vmem:[%s11961_s3 + $0x1a0] sm:$0xf] %vm1699_vm0, %v5119_v34  ;;  %v4969_v40 = vmax.f32 %v4590_v35, %v4855_v30 }
 0x401   :  { %3809 = vmatmul.bf16.gmra.mxu0 %v9418_v31  ;;  %4139 = vmatmul.bf16.gmra.mxu1 %v9450_v32 }
 0x402   :  { %v5022_v41 = vadd.f32 %v10947_v13, %v4969_v40  ;;  %4518 = vmatmul.bf16.gmra.mxu2 %v9474_v38  ;;  %4897 = vmatmul.bf16.gmra.mxu3 %v9498_v39 }
 0x404   :  { %v5071_v43 = vmax.f32 %v5022_v41, 0.0 }
 0x405   :  { %v4479_v44 = vpop.f32.mrf.mxu2  ;;  %v4858_v45 = vpop.f32.mrf.mxu3 }
 0x406   :  { %v5120_v46 = vpack.c.bf16 %v5071_v43, %v5071_v43  ;;  %v4591_v47 = vmax.f32 %v4212_v42, %v4479_v44  ;;  %v3772_v48 = vpop.f32.mrf.mxu0  ;;  %v4102_v49 = vpop.f32.mrf.mxu1  ;;  %v9421_v42 = vld [vmem:[%s11959_s0 + $0x200] sm:$0xff]  ;;  %v9453_v43 = vld [vmem:[%s11959_s0 + $0x510] sm:$0xff] }
 0x407   :  { %v4213_v53 = vmax.f32 %v3772_v48, %v4102_v49  ;;  %v9477_v48 = vld [vmem:[%s11959_s0 + $0x820] sm:$0xff]  ;;  %v9501_v49 = vld [vmem:[%s11959_s0 + $0xb30] sm:$0xff] }
 0x408   :  { %5169 = vst.msk [vmem:[%s11961_s3 + $0x1a4] sm:$0xf] %vm1699_vm0, %v5120_v46  ;;  %v4970_v50 = vmax.f32 %v4591_v47, %v4858_v45 }
 0x40a   :  { %v5023_v51 = vadd.f32 %v10947_v13, %v4970_v50 }
 0x40c   :  { %v5072_v52 = vmax.f32 %v5023_v51, 0.0 }
 0x40d   :  { %v4481_v55 = vpop.f32.mrf.mxu2  ;;  %v4860_v56 = vpop.f32.mrf.mxu3 }
 0x40e   :  { %v5121_v59 = vpack.c.bf16 %v5072_v52, %v5072_v52  ;;  %v4592_v60 = vmax.f32 %v4213_v53, %v4481_v55  ;;  %v3775_v61 = vpop.f32.mrf.mxu0  ;;  %v4105_v62 = vpop.f32.mrf.mxu1 }
 0x40f   :  { %v4214_v3 = vmax.f32 %v3775_v61, %v4105_v62 }
 0x410   :  { %5170 = vst.msk [vmem:[%s11961_s3 + $0x1a8] sm:$0xf] %vm1699_vm0, %v5121_v59  ;;  %v4971_v1 = vmax.f32 %v4592_v60, %v4860_v56 }
 0x411   :  { %3814 = vmatmul.bf16.gmra.mxu0 %v9419_v57  ;;  %4144 = vmatmul.bf16.gmra.mxu1 %v9451_v58 }
 0x412   :  { %v5024_v2 = vadd.f32 %v10947_v13, %v4971_v1  ;;  %4523 = vmatmul.bf16.gmra.mxu2 %v9475_v63  ;;  %4902 = vmatmul.bf16.gmra.mxu3 %v9499_v0 }
 0x414   :  { %v5073_v4 = vmax.f32 %v5024_v2, 0.0 }
 0x415   :  { %v4484_v5 = vpop.f32.mrf.mxu2  ;;  %v4863_v6 = vpop.f32.mrf.mxu3 }
 0x416   :  { %v5122_v7 = vpack.c.bf16 %v5073_v4, %v5073_v4  ;;  %v4593_v33 = vmax.f32 %v4214_v3, %v4484_v5  ;;  %v3777_v8 = vpop.f32.mrf.mxu0  ;;  %v4107_v9 = vpop.f32.mrf.mxu1  ;;  %v9422_v3 = vld [vmem:[%s11959_s0 + $0x208] sm:$0xff]  ;;  %v9454_v4 = vld [vmem:[%s11959_s0 + $0x518] sm:$0xff] }
 0x417   :  { %v4215_v14 = vmax.f32 %v3777_v8, %v4107_v9  ;;  %v9478_v8 = vld [vmem:[%s11959_s0 + $0x828] sm:$0xff]  ;;  %v9502_v9 = vld [vmem:[%s11959_s0 + $0xb38] sm:$0xff] }
 0x418   :  { %5171 = vst.msk [vmem:[%s11961_s3 + $0x1ac] sm:$0xf] %vm1699_vm0, %v5122_v7  ;;  %v4972_v10 = vmax.f32 %v4593_v33, %v4863_v6 }
 0x41a   :  { %v5025_v11 = vadd.f32 %v10947_v13, %v4972_v10 }
 0x41c   :  { %v5074_v12 = vmax.f32 %v5025_v11, 0.0 }
 0x41d   :  { %v4486_v15 = vpop.f32.mrf.mxu2  ;;  %v4865_v16 = vpop.f32.mrf.mxu3 }
 0x41e   :  { %v5123_v19 = vpack.c.bf16 %v5074_v12, %v5074_v12  ;;  %v4594_v20 = vmax.f32 %v4215_v14, %v4486_v15  ;;  %v3780_v21 = vpop.f32.mrf.mxu0  ;;  %v4110_v22 = vpop.f32.mrf.mxu1 }
 0x41f   :  { %v4216_v54 = vmax.f32 %v3780_v21, %v4110_v22 }
 0x420   :  { %5172 = vst.msk [vmem:[%s11961_s3 + $0x1b0] sm:$0xf] %vm1699_vm0, %v5123_v19  ;;  %v4973_v25 = vmax.f32 %v4594_v20, %v4865_v16 }
 0x421   :  { %3819 = vmatmul.bf16.gmra.mxu0 %v9420_v17  ;;  %4149 = vmatmul.bf16.gmra.mxu1 %v9452_v18 }
 0x422   :  { %v5026_v27 = vadd.f32 %v10947_v13, %v4973_v25  ;;  %4528 = vmatmul.bf16.gmra.mxu2 %v9476_v23  ;;  %4907 = vmatmul.bf16.gmra.mxu3 %v9500_v24 }
 0x424   :  { %v5075_v28 = vmax.f32 %v5026_v27, 0.0  ;;  %v9423_v27 = vld [vmem:[%s11959_s0 + $0x210] sm:$0xff] }
 0x425   :  { %v4489_v29 = vpop.f32.mrf.mxu2  ;;  %v4868_v30 = vpop.f32.mrf.mxu3 }
 0x426   :  { %v5124_v31 = vpack.c.bf16 %v5075_v28, %v5075_v28  ;;  %v4595_v32 = vmax.f32 %v4216_v54, %v4489_v29  ;;  %v3782_v34 = vpop.f32.mrf.mxu0  ;;  %v4112_v35 = vpop.f32.mrf.mxu1  ;;  %v9455_v54 = vld [vmem:[%s11959_s0 + $0x520] sm:$0xff] }
 0x427   :  { %v4217_v39 = vmax.f32 %v3782_v34, %v4112_v35  ;;  %v9503_v34 = vld [vmem:[%s11959_s0 + $0xb40] sm:$0xff] }
 0x428   :  { %5173 = vst.msk [vmem:[%s11961_s3 + $0x1b4] sm:$0xf] %vm1699_vm0, %v5124_v31  ;;  %v4974_v36 = vmax.f32 %v4595_v32, %v4868_v30  ;;  %v9479_v32 = vld [vmem:[%s11959_s0 + $0x830] sm:$0xff] }
 0x42a   :  { %v5027_v37 = vadd.f32 %v10947_v13, %v4974_v36 }
 0x42c   :  { %v5076_v38 = vmax.f32 %v5027_v37, 0.0 }
 0x42d   :  { %v4491_v40 = vpop.f32.mrf.mxu2  ;;  %v4870_v41 = vpop.f32.mrf.mxu3 }
 0x42e   :  { %v5125_v44 = vpack.c.bf16 %v5076_v38, %v5076_v38  ;;  %v4596_v45 = vmax.f32 %v4217_v39, %v4491_v40  ;;  %v3785_v46 = vpop.f32.mrf.mxu0  ;;  %v4115_v47 = vpop.f32.mrf.mxu1 }
 0x42f   :  { %v4218_v52 = vmax.f32 %v3785_v46, %v4115_v47  ;;  %v9535_v46 = vld [vmem:[%s11958_s1 + $0x8] sm:$0xff] }
 0x430   :  { %5174 = vst.msk [vmem:[%s11961_s3 + $0x1b8] sm:$0xf] %vm1699_vm0, %v5125_v44  ;;  %v4975_v50 = vmax.f32 %v4596_v45, %v4870_v41  ;;  %6187 = vmatpush.bf16.msrb.mxu2 %v9535_v46  ;;  %6566 = vmatpush.bf16.msrb.mxu3 %v9535_v46 }
 0x431   :  { %3824 = vmatmul.bf16.gmra.mxu0 %v9421_v42  ;;  %4154 = vmatmul.bf16.gmra.mxu1 %v9453_v43 }
 0x432   :  { %v5028_v51 = vadd.f32 %v10947_v13, %v4975_v50  ;;  %4533 = vmatmul.bf16.gmra.mxu2 %v9477_v48  ;;  %4912 = vmatmul.bf16.gmra.mxu3 %v9501_v49 }
 0x433   :  { %5478 = vmatpush.bf16.msrb.mxu0 %v9535_v46  ;;  %5808 = vmatpush.bf16.msrb.mxu1 %v9535_v46 }
 0x434   :  { %v5077_v53 = vmax.f32 %v5028_v51, 0.0 }
 0x435   :  { %v4494_v55 = vpop.f32.mrf.mxu2  ;;  %v4873_v56 = vpop.f32.mrf.mxu3 }
 0x436   :  { %v5126_v57 = vpack.c.bf16 %v5077_v53, %v5077_v53  ;;  %v4597_v58 = vmax.f32 %v4218_v52, %v4494_v55  ;;  %v3787_v59 = vpop.f32.mrf.mxu0  ;;  %v4117_v60 = vpop.f32.mrf.mxu1  ;;  %v9424_v52 = vld [vmem:[%s11959_s0 + $0x218] sm:$0xff]  ;;  %v9456_v53 = vld [vmem:[%s11959_s0 + $0x528] sm:$0xff] }
 0x437   :  { %v4219_v0 = vmax.f32 %v3787_v59, %v4117_v60  ;;  %v9480_v59 = vld [vmem:[%s11959_s0 + $0x838] sm:$0xff]  ;;  %v9504_v60 = vld [vmem:[%s11959_s0 + $0xb48] sm:$0xff] }
 0x438   :  { %5175 = vst.msk [vmem:[%s11961_s3 + $0x1bc] sm:$0xf] %vm1699_vm0, %v5126_v57  ;;  %v4976_v61 = vmax.f32 %v4597_v58, %v4873_v56 }
 0x43a   :  { %v5029_v62 = vadd.f32 %v10947_v13, %v4976_v61 }
 0x43c   :  { %v5078_v63 = vmax.f32 %v5029_v62, 0.0 }
 0x43d   :  { %v4496_v1 = vpop.f32.mrf.mxu2  ;;  %v4875_v2 = vpop.f32.mrf.mxu3 }
 0x43e   :  { %v5127_v5 = vpack.c.bf16 %v5078_v63, %v5078_v63  ;;  %v4598_v6 = vmax.f32 %v4219_v0, %v4496_v1  ;;  %v3790_v7 = vpop.f32.mrf.mxu0  ;;  %v4120_v33 = vpop.f32.mrf.mxu1 }
 0x43f   :  { %v4220_v12 = vmax.f32 %v3790_v7, %v4120_v33 }
 0x440   :  { %5176 = vst.msk [vmem:[%s11961_s3 + $0x1c0] sm:$0xf] %vm1699_vm0, %v5127_v5  ;;  %v4977_v10 = vmax.f32 %v4598_v6, %v4875_v2 }
 0x441   :  { %3829 = vmatmul.bf16.gmra.mxu0 %v9422_v3  ;;  %4159 = vmatmul.bf16.gmra.mxu1 %v9454_v4 }
 0x442   :  { %v5030_v11 = vadd.f32 %v10947_v13, %v4977_v10  ;;  %4538 = vmatmul.bf16.gmra.mxu2 %v9478_v8  ;;  %4917 = vmatmul.bf16.gmra.mxu3 %v9502_v9 }
 0x444   :  { %v5079_v14 = vmax.f32 %v5030_v11, 0.0 }
 0x445   :  { %v4499_v15 = vpop.f32.mrf.mxu2  ;;  %v4878_v16 = vpop.f32.mrf.mxu3 }
 0x446   :  { %v5128_v17 = vpack.c.bf16 %v5079_v14, %v5079_v14  ;;  %v4599_v18 = vmax.f32 %v4220_v12, %v4499_v15  ;;  %v3792_v19 = vpop.f32.mrf.mxu0  ;;  %v4122_v20 = vpop.f32.mrf.mxu1  ;;  %v9425_v12 = vld [vmem:[%s11959_s0 + $0x220] sm:$0xff]  ;;  %v9457_v14 = vld [vmem:[%s11959_s0 + $0x530] sm:$0xff] }
 0x447   :  { %v4221_v24 = vmax.f32 %v3792_v19, %v4122_v20  ;;  %v9481_v19 = vld [vmem:[%s11959_s0 + $0x840] sm:$0xff]  ;;  %v9505_v20 = vld [vmem:[%s11959_s0 + $0xb50] sm:$0xff] }
 0x448   :  { %5177 = vst.msk [vmem:[%s11961_s3 + $0x1c4] sm:$0xf] %vm1699_vm0, %v5128_v17  ;;  %v4978_v21 = vmax.f32 %v4599_v18, %v4878_v16 }
 0x44a   :  { %v5031_v22 = vadd.f32 %v10947_v13, %v4978_v21 }
 0x44c   :  { %v5080_v23 = vmax.f32 %v5031_v22, 0.0 }
 0x44d   :  { %v4501_v25 = vpop.f32.mrf.mxu2  ;;  %v4880_v26 = vpop.f32.mrf.mxu3 }
 0x44e   :  { %v5129_v28 = vpack.c.bf16 %v5080_v23, %v5080_v23  ;;  %v4600_v29 = vmax.f32 %v4221_v24, %v4501_v25  ;;  %v3795_v30 = vpop.f32.mrf.mxu0  ;;  %v4125_v31 = vpop.f32.mrf.mxu1 }
 0x44f   :  { %v4222_v37 = vmax.f32 %v3795_v30, %v4125_v31 }
 0x450   :  { %5178 = vst.msk [vmem:[%s11961_s3 + $0x1c8] sm:$0xf] %vm1699_vm0, %v5129_v28  ;;  %v4979_v35 = vmax.f32 %v4600_v29, %v4880_v26 }
 0x451   :  { %3834 = vmatmul.bf16.gmra.mxu0 %v9423_v27  ;;  %4164 = vmatmul.bf16.gmra.mxu1 %v9455_v54 }
 0x452   :  { %v5032_v36 = vadd.f32 %v10947_v13, %v4979_v35  ;;  %4543 = vmatmul.bf16.gmra.mxu2 %v9479_v32  ;;  %4922 = vmatmul.bf16.gmra.mxu3 %v9503_v34 }
 0x454   :  { %v5081_v38 = vmax.f32 %v5032_v36, 0.0 }
 0x455   :  { %v4504_v39 = vpop.f32.mrf.mxu2  ;;  %v4883_v40 = vpop.f32.mrf.mxu3 }
 0x456   :  { %v5130_v41 = vpack.c.bf16 %v5081_v38, %v5081_v38  ;;  %v4601_v42 = vmax.f32 %v4222_v37, %v4504_v39  ;;  %v3797_v43 = vpop.f32.mrf.mxu0  ;;  %v4127_v44 = vpop.f32.mrf.mxu1  ;;  %v9426_v37 = vld [vmem:[%s11959_s0 + $0x228] sm:$0xff]  ;;  %v9458_v38 = vld [vmem:[%s11959_s0 + $0x538] sm:$0xff] }
 0x457   :  { %v4223_v49 = vmax.f32 %v3797_v43, %v4127_v44  ;;  %v9482_v43 = vld [vmem:[%s11959_s0 + $0x848] sm:$0xff]  ;;  %v9506_v44 = vld [vmem:[%s11959_s0 + $0xb58] sm:$0xff] }
 0x458   :  { %5179 = vst.msk [vmem:[%s11961_s3 + $0x1cc] sm:$0xf] %vm1699_vm0, %v5130_v41  ;;  %v4980_v45 = vmax.f32 %v4601_v42, %v4883_v40 }
 0x45a   :  { %v5033_v47 = vadd.f32 %v10947_v13, %v4980_v45 }
 0x45c   :  { %v5082_v48 = vmax.f32 %v5033_v47, 0.0 }
 0x45d   :  { %v4506_v50 = vpop.f32.mrf.mxu2  ;;  %v4885_v51 = vpop.f32.mrf.mxu3 }
 0x45e   :  { %v5131_v55 = vpack.c.bf16 %v5082_v48, %v5082_v48  ;;  %v4602_v56 = vmax.f32 %v4223_v49, %v4506_v50  ;;  %v3800_v57 = vpop.f32.mrf.mxu0  ;;  %v4130_v58 = vpop.f32.mrf.mxu1 }
 0x45f   :  { %v4224_v63 = vmax.f32 %v3800_v57, %v4130_v58  ;;  %v9534_v57 = vld [vmem:[%s11958_s1] sm:$0xff] }
 0x460   :  { %5180 = vst.msk [vmem:[%s11961_s3 + $0x1d0] sm:$0xf] %vm1699_vm0, %v5131_v55  ;;  %v4981_v61 = vmax.f32 %v4602_v56, %v4885_v51  ;;  %6188 = vmatpush.bf16.msrb.mxu2 %v9534_v57  ;;  %6567 = vmatpush.bf16.msrb.mxu3 %v9534_v57 }
 0x461   :  { %3839 = vmatmul.bf16.gmra.mxu0 %v9424_v52  ;;  %4169 = vmatmul.bf16.gmra.mxu1 %v9456_v53 }
 0x462   :  { %v5034_v62 = vadd.f32 %v10947_v13, %v4981_v61  ;;  %4548 = vmatmul.bf16.gmra.mxu2 %v9480_v59  ;;  %4927 = vmatmul.bf16.gmra.mxu3 %v9504_v60 }
 0x463   :  { %5479 = vmatpush.bf16.msrb.mxu0 %v9534_v57  ;;  %5809 = vmatpush.bf16.msrb.mxu1 %v9534_v57 }
 0x464   :  { %v5083_v0 = vmax.f32 %v5034_v62, 0.0 }
 0x465   :  { %v4509_v1 = vpop.f32.mrf.mxu2  ;;  %v4888_v2 = vpop.f32.mrf.mxu3 }
 0x466   :  { %v5132_v3 = vpack.c.bf16 %v5083_v0, %v5083_v0  ;;  %v4603_v4 = vmax.f32 %v4224_v63, %v4509_v1  ;;  %v3802_v5 = vpop.f32.mrf.mxu0  ;;  %v4132_v6 = vpop.f32.mrf.mxu1  ;;  %v9427_v63 = vld [vmem:[%s11959_s0 + $0x230] sm:$0xff]  ;;  %v9459_v0 = vld [vmem:[%s11959_s0 + $0x540] sm:$0xff] }
 0x467   :  { %v4225_v9 = vmax.f32 %v3802_v5, %v4132_v6  ;;  %v9483_v5 = vld [vmem:[%s11959_s0 + $0x850] sm:$0xff]  ;;  %v9507_v6 = vld [vmem:[%s11959_s0 + $0xb60] sm:$0xff] }
 0x468   :  { %5181 = vst.msk [vmem:[%s11961_s3 + $0x1d4] sm:$0xf] %vm1699_vm0, %v5132_v3  ;;  %v4982_v7 = vmax.f32 %v4603_v4, %v4888_v2 }
 0x46a   :  { %v5035_v33 = vadd.f32 %v10947_v13, %v4982_v7 }
 0x46c   :  { %v5084_v8 = vmax.f32 %v5035_v33, 0.0 }
 0x46d   :  { %v4511_v10 = vpop.f32.mrf.mxu2  ;;  %v4890_v11 = vpop.f32.mrf.mxu3 }
 0x46e   :  { %v5133_v15 = vpack.c.bf16 %v5084_v8, %v5084_v8  ;;  %v4604_v16 = vmax.f32 %v4225_v9, %v4511_v10  ;;  %v3805_v17 = vpop.f32.mrf.mxu0  ;;  %v4135_v18 = vpop.f32.mrf.mxu1 }
 0x46f   :  { %v4226_v23 = vmax.f32 %v3805_v17, %v4135_v18 }
 0x470   :  { %5182 = vst.msk [vmem:[%s11961_s3 + $0x1d8] sm:$0xf] %vm1699_vm0, %v5133_v15  ;;  %v4983_v21 = vmax.f32 %v4604_v16, %v4890_v11 }
 0x471   :  { %3844 = vmatmul.bf16.gmra.mxu0 %v9425_v12  ;;  %4174 = vmatmul.bf16.gmra.mxu1 %v9457_v14 }
 0x472   :  { %v5036_v22 = vadd.f32 %v10947_v13, %v4983_v21  ;;  %4553 = vmatmul.bf16.gmra.mxu2 %v9481_v19  ;;  %4932 = vmatmul.bf16.gmra.mxu3 %v9505_v20 }
 0x474   :  { %v5085_v24 = vmax.f32 %v5036_v22, 0.0 }
 0x475   :  { %v4514_v25 = vpop.f32.mrf.mxu2  ;;  %v4893_v26 = vpop.f32.mrf.mxu3 }
 0x476   :  { %v5134_v27 = vpack.c.bf16 %v5085_v24, %v5085_v24  ;;  %v4605_v54 = vmax.f32 %v4226_v23, %v4514_v25  ;;  %v3807_v28 = vpop.f32.mrf.mxu0  ;;  %v4137_v29 = vpop.f32.mrf.mxu1  ;;  %v9428_v23 = vld [vmem:[%s11959_s0 + $0x238] sm:$0xff]  ;;  %v9460_v24 = vld [vmem:[%s11959_s0 + $0x548] sm:$0xff] }
 0x477   :  { %v4227_v34 = vmax.f32 %v3807_v28, %v4137_v29  ;;  %v9484_v28 = vld [vmem:[%s11959_s0 + $0x858] sm:$0xff]  ;;  %v9508_v29 = vld [vmem:[%s11959_s0 + $0xb68] sm:$0xff] }
 0x478   :  { %5183 = vst.msk [vmem:[%s11961_s3 + $0x1dc] sm:$0xf] %vm1699_vm0, %v5134_v27  ;;  %v4984_v30 = vmax.f32 %v4605_v54, %v4893_v26 }
 0x47a   :  { %v5037_v31 = vadd.f32 %v10947_v13, %v4984_v30 }
 0x47c   :  { %v5086_v32 = vmax.f32 %v5037_v31, 0.0 }
 0x47d   :  { %v4516_v35 = vpop.f32.mrf.mxu2  ;;  %v4895_v36 = vpop.f32.mrf.mxu3 }
 0x47e   :  { %v5135_v39 = vpack.c.bf16 %v5086_v32, %v5086_v32  ;;  %v4606_v40 = vmax.f32 %v4227_v34, %v4516_v35  ;;  %v3810_v41 = vpop.f32.mrf.mxu0  ;;  %v4140_v42 = vpop.f32.mrf.mxu1 }
 0x47f   :  { %v4228_v47 = vmax.f32 %v3810_v41, %v4140_v42 }
 0x480   :  { %5184 = vst.msk [vmem:[%s11961_s3 + $0x1e0] sm:$0xf] %vm1699_vm0, %v5135_v39  ;;  %v4985_v45 = vmax.f32 %v4606_v40, %v4895_v36 }
 0x481   :  { %3849 = vmatmul.bf16.gmra.mxu0 %v9426_v37  ;;  %4179 = vmatmul.bf16.gmra.mxu1 %v9458_v38 }
 0x482   :  { %v5038_v46 = vadd.f32 %v10947_v13, %v4985_v45  ;;  %4558 = vmatmul.bf16.gmra.mxu2 %v9482_v43  ;;  %4937 = vmatmul.bf16.gmra.mxu3 %v9506_v44 }
 0x484   :  { %v5087_v48 = vmax.f32 %v5038_v46, 0.0 }
 0x485   :  { %v4519_v49 = vpop.f32.mrf.mxu2  ;;  %v4898_v50 = vpop.f32.mrf.mxu3 }
 0x486   :  { %v5136_v51 = vpack.c.bf16 %v5087_v48, %v5087_v48  ;;  %v4607_v52 = vmax.f32 %v4228_v47, %v4519_v49  ;;  %v3812_v53 = vpop.f32.mrf.mxu0  ;;  %v4142_v55 = vpop.f32.mrf.mxu1  ;;  %v9429_v47 = vld [vmem:[%s11959_s0 + $0x240] sm:$0xff]  ;;  %v9461_v48 = vld [vmem:[%s11959_s0 + $0x550] sm:$0xff] }
 0x487   :  { %v4229_v60 = vmax.f32 %v3812_v53, %v4142_v55  ;;  %v9485_v53 = vld [vmem:[%s11959_s0 + $0x860] sm:$0xff]  ;;  %v9509_v55 = vld [vmem:[%s11959_s0 + $0xb70] sm:$0xff] }
 0x488   :  { %5185 = vst.msk [vmem:[%s11961_s3 + $0x1e4] sm:$0xf] %vm1699_vm0, %v5136_v51  ;;  %v4986_v56 = vmax.f32 %v4607_v52, %v4898_v50 }
 0x48a   :  { %v5039_v58 = vadd.f32 %v10947_v13, %v4986_v56 }
 0x48c   :  { %v5088_v59 = vmax.f32 %v5039_v58, 0.0 }
 0x48d   :  { %v4521_v61 = vpop.f32.mrf.mxu2  ;;  %v4900_v62 = vpop.f32.mrf.mxu3 }
 0x48e   :  { %v5137_v1 = vpack.c.bf16 %v5088_v59, %v5088_v59  ;;  %v4608_v2 = vmax.f32 %v4229_v60, %v4521_v61  ;;  %v3815_v3 = vpop.f32.mrf.mxu0  ;;  %v4145_v4 = vpop.f32.mrf.mxu1 }
 0x48f   :  { %v4230_v8 = vmax.f32 %v3815_v3, %v4145_v4  ;;  %v8248_v3 = vld [vmem:[%s11959_s0 + $0x558] sm:$0xf]  ;;  %v8393_v4 = vld [vmem:[%s11959_s0 + $0x868] sm:$0xf] }
 0x490   :  { %5186 = vst.msk [vmem:[%s11961_s3 + $0x1e8] sm:$0xf] %vm1699_vm0, %v5137_v1  ;;  %v4987_v7 = vmax.f32 %v4608_v2, %v4900_v62  ;;  %v3528_v2 = vld [vmem:[%s11959_s0 + $0x248] sm:$0xf] }
 0x491   :  { %3854 = vmatmul.bf16.gmra.mxu0 %v9427_v63  ;;  %4184 = vmatmul.bf16.gmra.mxu1 %v9459_v0 }
 0x492   :  { %v5040_v33 = vadd.f32 %v10947_v13, %v4987_v7  ;;  %4563 = vmatmul.bf16.gmra.mxu2 %v9483_v5  ;;  %4942 = vmatmul.bf16.gmra.mxu3 %v9507_v6  ;;  %v8538_v5 = vld [vmem:[%s11959_s0 + $0xb78] sm:$0xf]  ;;  %v3642_v7 = vunpack.c.l.b16 %v3528_v2  ;;  %v9543_v2 = vld [vmem:[%s11959_s0 + $0x564] sm:$0xff] }
 0x494   :  { %v5089_v9 = vmax.f32 %v5040_v33, 0.0  ;;  %v4020_v33 = vunpack.c.l.b16 %v8248_v3 }
 0x495   :  { %v4524_v10 = vpop.f32.mrf.mxu2  ;;  %v4903_v11 = vpop.f32.mrf.mxu3 }
 0x496   :  { %v5138_v12 = vpack.c.bf16 %v5089_v9, %v5089_v9  ;;  %v4609_v14 = vmax.f32 %v4230_v8, %v4524_v10  ;;  %v3817_v15 = vpop.f32.mrf.mxu0  ;;  %v4147_v16 = vpop.f32.mrf.mxu1  ;;  %v4399_v9 = vunpack.c.l.b16 %v8393_v4  ;;  %v4778_v10 = vunpack.c.l.b16 %v8538_v5 }
 0x497   :  { %v4231_v20 = vmax.f32 %v3817_v15, %v4147_v16  ;;  %v3667_v16 = vpack.c.b16 %v3642_v7, %v3642_v7  ;;  %v9567_v7 = vld [vmem:[%s11959_s0 + $0x874] sm:$0xff] }
 0x498   :  { %5187 = vst.msk [vmem:[%s11961_s3 + $0x1ec] sm:$0xf] %vm1699_vm0, %v5138_v12  ;;  %v4988_v17 = vmax.f32 %v4609_v14, %v4903_v11 }
 0x49a   :  { %v5041_v18 = vadd.f32 %v10947_v13, %v4988_v17  ;;  %v4045_v17 = vpack.c.b16 %v4020_v33, %v4020_v33  ;;  %v9591_v33 = vld [vmem:[%s11959_s0 + $0xb84] sm:$0xff] }
 0x49c   :  { %v5090_v19 = vmax.f32 %v5041_v18, 0.0 }
 0x49d   :  { %v4526_v21 = vpop.f32.mrf.mxu2  ;;  %v4905_v22 = vpop.f32.mrf.mxu3 }
 0x49e   :  { %v5139_v25 = vpack.c.bf16 %v5090_v19, %v5090_v19  ;;  %v4610_v26 = vmax.f32 %v4231_v20, %v4526_v21  ;;  %v3820_v27 = vpop.f32.mrf.mxu0  ;;  %v4150_v54 = vpop.f32.mrf.mxu1 }
 0x49f   :  { %v4232_v32 = vmax.f32 %v3820_v27, %v4150_v54 }
 0x4a0   :  { %5188 = vst.msk [vmem:[%s11961_s3 + $0x1f0] sm:$0xf] %vm1699_vm0, %v5139_v25  ;;  %v4989_v30 = vmax.f32 %v4610_v26, %v4905_v22  ;;  %v4424_v22 = vpack.c.b16 %v4399_v9, %v4399_v9 }
 0x4a1   :  { %3859 = vmatmul.bf16.gmra.mxu0 %v9428_v23  ;;  %4189 = vmatmul.bf16.gmra.mxu1 %v9460_v24  ;;  %v4803_v23 = vpack.c.b16 %v4778_v10, %v4778_v10 }
 0x4a2   :  { %v5042_v31 = vadd.f32 %v10947_v13, %v4989_v30  ;;  %4568 = vmatmul.bf16.gmra.mxu2 %v9484_v28  ;;  %4947 = vmatmul.bf16.gmra.mxu3 %v9508_v29 }
 0x4a4   :  { %v5091_v34 = vmax.f32 %v5042_v31, 0.0 }
 0x4a5   :  { %v4529_v35 = vpop.f32.mrf.mxu2  ;;  %v4908_v36 = vpop.f32.mrf.mxu3 }
 0x4a6   :  { %v5140_v37 = vpack.c.bf16 %v5091_v34, %v5091_v34  ;;  %v4611_v38 = vmax.f32 %v4232_v32, %v4529_v35  ;;  %v3822_v39 = vpop.f32.mrf.mxu0  ;;  %v4152_v40 = vpop.f32.mrf.mxu1 }
 0x4a7   :  { %v4233_v44 = vmax.f32 %v3822_v39, %v4152_v40  ;;  %v9510_v40 = vld [vmem:[%s11959_s0 + $0x24c] sm:$0xff] }
 0x4a8   :  { %5189 = vst.msk [vmem:[%s11961_s3 + $0x1f4] sm:$0xf] %vm1699_vm0, %v5140_v37  ;;  %v4990_v41 = vmax.f32 %v4611_v38, %v4908_v36 }
 0x4aa   :  { %v5043_v42 = vadd.f32 %v10947_v13, %v4990_v41  ;;  %v9542_v41 = vld [vmem:[%s11959_s0 + $0x55c] sm:$0xff] }
 0x4ac   :  { %v5092_v43 = vmax.f32 %v5043_v42, 0.0 }
 0x4ad   :  { %v4531_v45 = vpop.f32.mrf.mxu2  ;;  %v4910_v46 = vpop.f32.mrf.mxu3 }
 0x4ae   :  { %v5141_v49 = vpack.c.bf16 %v5092_v43, %v5092_v43  ;;  %v4612_v50 = vmax.f32 %v4233_v44, %v4531_v45  ;;  %v3825_v51 = vpop.f32.mrf.mxu0  ;;  %v4155_v52 = vpop.f32.mrf.mxu1 }
 0x4af   :  { %v4234_v58 = vmax.f32 %v3825_v51, %v4155_v52 }
 0x4b0   :  { %5190 = vst.msk [vmem:[%s11961_s3 + $0x1f8] sm:$0xf] %vm1699_vm0, %v5141_v49  ;;  %v4991_v56 = vmax.f32 %v4612_v50, %v4910_v46  ;;  %v9566_v46 = vld [vmem:[%s11959_s0 + $0x86c] sm:$0xff] }
 0x4b1   :  { %3864 = vmatmul.bf16.gmra.mxu0 %v9429_v47  ;;  %4194 = vmatmul.bf16.gmra.mxu1 %v9461_v48  ;;  %v9590_v47 = vld [vmem:[%s11959_s0 + $0xb7c] sm:$0xff] }
 0x4b2   :  { %v5044_v57 = vadd.f32 %v10947_v13, %v4991_v56  ;;  %4573 = vmatmul.bf16.gmra.mxu2 %v9485_v53  ;;  %4952 = vmatmul.bf16.gmra.mxu3 %v9509_v55 }
 0x4b4   :  { %v5093_v59 = vmax.f32 %v5044_v57, 0.0 }
 0x4b5   :  { %v4534_v60 = vpop.f32.mrf.mxu2  ;;  %v4913_v61 = vpop.f32.mrf.mxu3 }
 0x4b6   :  { %v5142_v62 = vpack.c.bf16 %v5093_v59, %v5093_v59  ;;  %v4613_v63 = vmax.f32 %v4234_v58, %v4534_v60  ;;  %v3827_v0 = vpop.f32.mrf.mxu0  ;;  %v4157_v1 = vpop.f32.mrf.mxu1 }
 0x4b7   :  { %v4235_v12 = vmax.f32 %v3827_v0, %v4157_v1  ;;  %v9511_v1 = vld [vmem:[%s11959_s0 + $0x254] sm:$0xff] }
 0x4b8   :  { %5191 = vst.msk [vmem:[%s11961_s3 + $0x1fc] sm:$0xf] %vm1699_vm0, %v5142_v62  ;;  %v4992_v6 = vmax.f32 %v4613_v63, %v4913_v61 }
 0x4ba   :  { %v5045_v8 = vadd.f32 %v10947_v13, %v4992_v6 }
 0x4bc   :  { %v5094_v11 = vmax.f32 %v5045_v8, 0.0 }
 0x4bd   :  { %v4536_v14 = vpop.f32.mrf.mxu2  ;;  %v4915_v15 = vpop.f32.mrf.mxu3 }
 0x4be   :  { %v5143_v18 = vpack.c.bf16 %v5094_v11, %v5094_v11  ;;  %v4614_v19 = vmax.f32 %v4235_v12, %v4536_v14  ;;  %v3830_v20 = vpop.f32.mrf.mxu0  ;;  %v4160_v21 = vpop.f32.mrf.mxu1 }
 0x4bf   :  { %v4236_v26 = vmax.f32 %v3830_v20, %v4160_v21 }
 0x4c0   :  { %5192 = vst.msk [vmem:[%s11961_s3 + $0x200] sm:$0xf] %vm1699_vm0, %v5143_v18  ;;  %v4993_v24 = vmax.f32 %v4614_v19, %v4915_v15 }
 0x4c1   :  { %3869 = vmatmul.bf16.gmra.mxu0 %v3667_v16  ;;  %4199 = vmatmul.bf16.gmra.mxu1 %v4045_v17 }
 0x4c2   :  { %v5046_v25 = vadd.f32 %v10947_v13, %v4993_v24  ;;  %4578 = vmatmul.bf16.gmra.mxu2 %v4424_v22  ;;  %4957 = vmatmul.bf16.gmra.mxu3 %v4803_v23  ;;  %v11316_v13 = vld [vmem:[%s11960_s2] ss:$0 sm:$0xff] }
 0x4c4   :  { %v5095_v27 = vmax.f32 %v5046_v25, 0.0  ;;  %v9512_v25 = vld [vmem:[%s11959_s0 + $0x25c] sm:$0xff] }
 0x4c5   :  { %v4539_v54 = vpop.f32.mrf.mxu2  ;;  %v4918_v28 = vpop.f32.mrf.mxu3 }
 0x4c6   :  { %v5144_v29 = vpack.c.bf16 %v5095_v27, %v5095_v27  ;;  %v4615_v30 = vmax.f32 %v4236_v26, %v4539_v54  ;;  %v3832_v31 = vpop.f32.mrf.mxu0  ;;  %v4162_v32 = vpop.f32.mrf.mxu1  ;;  %v9544_v26 = vld [vmem:[%s11959_s0 + $0x56c] sm:$0xff] }
 0x4c7   :  { %v4237_v37 = vmax.f32 %v3832_v31, %v4162_v32  ;;  %v9592_v31 = vld [vmem:[%s11959_s0 + $0xb8c] sm:$0xff] }
 0x4c8   :  { %5193 = vst.msk [vmem:[%s11961_s3 + $0x204] sm:$0xf] %vm1699_vm0, %v5144_v29  ;;  %v4994_v34 = vmax.f32 %v4615_v30, %v4918_v28  ;;  %v9568_v30 = vld [vmem:[%s11959_s0 + $0x87c] sm:$0xff] }
 0x4ca   :  { %v5047_v35 = vadd.f32 %v11316_v13, %v4994_v34 }
 0x4cc   :  { %v5096_v36 = vmax.f32 %v5047_v35, 0.0 }
 0x4cd   :  { %v4541_v38 = vpop.f32.mrf.mxu2  ;;  %v4920_v39 = vpop.f32.mrf.mxu3 }
 0x4ce   :  { %v5145_v42 = vpack.c.bf16 %v5096_v36, %v5096_v36  ;;  %v4616_v43 = vmax.f32 %v4237_v37, %v4541_v38  ;;  %v3835_v44 = vpop.f32.mrf.mxu0  ;;  %v4165_v45 = vpop.f32.mrf.mxu1 }
 0x4cf   :  { %v4238_v50 = vmax.f32 %v3835_v44, %v4165_v45 }
 0x4d0   :  { %5194 = vst.msk [vmem:[%s11961_s3 + $0x208] sm:$0xf] %vm1699_vm0, %v5145_v42  ;;  %v4995_v48 = vmax.f32 %v4616_v43, %v4920_v39 }
 0x4d1   :  { %5480 = vmatmul.bf16.vlgmr.msrb.gmra.mxu0 %v9510_v40  ;;  %5810 = vmatmul.bf16.vlgmr.msrb.gmra.mxu1 %v9542_v41 }
 0x4d2   :  { %v5048_v49 = vadd.f32 %v11316_v13, %v4995_v48  ;;  %6189 = vmatmul.bf16.vlgmr.msrb.gmra.mxu2 %v9566_v46  ;;  %6568 = vmatmul.bf16.vlgmr.msrb.gmra.mxu3 %v9590_v47 }
 0x4d4   :  { %v5097_v51 = vmax.f32 %v5048_v49, 0.0  ;;  %v9513_v49 = vld [vmem:[%s11959_s0 + $0x264] sm:$0xff] }
 0x4d5   :  { %v4544_v52 = vpop.f32.mrf.mxu2  ;;  %v4923_v53 = vpop.f32.mrf.mxu3 }
 0x4d6   :  { %v5146_v55 = vpack.c.bf16 %v5097_v51, %v5097_v51  ;;  %v4617_v56 = vmax.f32 %v4238_v50, %v4544_v52  ;;  %v3837_v57 = vpop.f32.mrf.mxu0  ;;  %v4167_v58 = vpop.f32.mrf.mxu1  ;;  %v9545_v50 = vld [vmem:[%s11959_s0 + $0x574] sm:$0xff] }
 0x4d7   :  { %v4239_v62 = vmax.f32 %v3837_v57, %v4167_v58  ;;  %v9593_v57 = vld [vmem:[%s11959_s0 + $0xb94] sm:$0xff] }
 0x4d8   :  { %5195 = vst.msk [vmem:[%s11961_s3 + $0x20c] sm:$0xf] %vm1699_vm0, %v5146_v55  ;;  %v4996_v59 = vmax.f32 %v4617_v56, %v4923_v53  ;;  %v9569_v56 = vld [vmem:[%s11959_s0 + $0x884] sm:$0xff] }
 0x4da   :  { %v5049_v60 = vadd.f32 %v11316_v13, %v4996_v59 }
 0x4dc   :  { %v5098_v61 = vmax.f32 %v5049_v60, 0.0 }
 0x4dd   :  { %v4546_v63 = vpop.f32.mrf.mxu2  ;;  %v4925_v0 = vpop.f32.mrf.mxu3 }
 0x4de   :  { %v5147_v3 = vpack.c.bf16 %v5098_v61, %v5098_v61  ;;  %v4618_v4 = vmax.f32 %v4239_v62, %v4546_v63  ;;  %v3840_v5 = vpop.f32.mrf.mxu0  ;;  %v4170_v6 = vpop.f32.mrf.mxu1 }
 0x4df   :  { %v4240_v10 = vmax.f32 %v3840_v5, %v4170_v6 }
 0x4e0   :  { %5196 = vst.msk [vmem:[%s11961_s3 + $0x210] sm:$0xf] %vm1699_vm0, %v5147_v3  ;;  %v4997_v8 = vmax.f32 %v4618_v4, %v4925_v0 }
 0x4e1   :  { %5485 = vmatmul.bf16.gmra.mxu0 %v9511_v1  ;;  %5815 = vmatmul.bf16.gmra.mxu1 %v9543_v2 }
 0x4e2   :  { %v5050_v9 = vadd.f32 %v11316_v13, %v4997_v8  ;;  %6194 = vmatmul.bf16.gmra.mxu2 %v9567_v7  ;;  %6573 = vmatmul.bf16.gmra.mxu3 %v9591_v33 }
 0x4e4   :  { %v5099_v11 = vmax.f32 %v5050_v9, 0.0  ;;  %v9514_v9 = vld [vmem:[%s11959_s0 + $0x26c] sm:$0xff] }
 0x4e5   :  { %v4549_v12 = vpop.f32.mrf.mxu2  ;;  %v4928_v14 = vpop.f32.mrf.mxu3 }
 0x4e6   :  { %v5148_v15 = vpack.c.bf16 %v5099_v11, %v5099_v11  ;;  %v4619_v16 = vmax.f32 %v4240_v10, %v4549_v12  ;;  %v3842_v17 = vpop.f32.mrf.mxu0  ;;  %v4172_v18 = vpop.f32.mrf.mxu1  ;;  %v9546_v10 = vld [vmem:[%s11959_s0 + $0x57c] sm:$0xff] }
 0x4e7   :  { %v4241_v22 = vmax.f32 %v3842_v17, %v4172_v18  ;;  %v9594_v17 = vld [vmem:[%s11959_s0 + $0xb9c] sm:$0xff] }
 0x4e8   :  { %5197 = vst.msk [vmem:[%s11961_s3 + $0x214] sm:$0xf] %vm1699_vm0, %v5148_v15  ;;  %v4998_v19 = vmax.f32 %v4619_v16, %v4928_v14  ;;  %v9570_v16 = vld [vmem:[%s11959_s0 + $0x88c] sm:$0xff] }
 0x4ea   :  { %v5051_v20 = vadd.f32 %v11316_v13, %v4998_v19 }
 0x4ec   :  { %v5100_v21 = vmax.f32 %v5051_v20, 0.0 }
 0x4ed   :  { %v4551_v23 = vpop.f32.mrf.mxu2  ;;  %v4930_v24 = vpop.f32.mrf.mxu3 }
 0x4ee   :  { %v5149_v27 = vpack.c.bf16 %v5100_v21, %v5100_v21  ;;  %v4620_v54 = vmax.f32 %v4241_v22, %v4551_v23  ;;  %v3845_v28 = vpop.f32.mrf.mxu0  ;;  %v4175_v29 = vpop.f32.mrf.mxu1 }
 0x4ef   :  { %v4242_v35 = vmax.f32 %v3845_v28, %v4175_v29 }
 0x4f0   :  { %5198 = vst.msk [vmem:[%s11961_s3 + $0x218] sm:$0xf] %vm1699_vm0, %v5149_v27  ;;  %v4999_v32 = vmax.f32 %v4620_v54, %v4930_v24 }
 0x4f1   :  { %5490 = vmatmul.bf16.gmra.mxu0 %v9512_v25  ;;  %5820 = vmatmul.bf16.gmra.mxu1 %v9544_v26 }
 0x4f2   :  { %v5052_v34 = vadd.f32 %v11316_v13, %v4999_v32  ;;  %6199 = vmatmul.bf16.gmra.mxu2 %v9568_v30  ;;  %6578 = vmatmul.bf16.gmra.mxu3 %v9592_v31 }
 0x4f4   :  { %v5101_v36 = vmax.f32 %v5052_v34, 0.0  ;;  %v9515_v34 = vld [vmem:[%s11959_s0 + $0x274] sm:$0xff] }
 0x4f5   :  { %v4554_v37 = vpop.f32.mrf.mxu2  ;;  %v4933_v38 = vpop.f32.mrf.mxu3 }
 0x4f6   :  { %v5150_v39 = vpack.c.bf16 %v5101_v36, %v5101_v36  ;;  %v4621_v40 = vmax.f32 %v4242_v35, %v4554_v37  ;;  %v3847_v41 = vpop.f32.mrf.mxu0  ;;  %v4177_v42 = vpop.f32.mrf.mxu1  ;;  %v9547_v35 = vld [vmem:[%s11959_s0 + $0x584] sm:$0xff] }
 0x4f7   :  { %v4243_v46 = vmax.f32 %v3847_v41, %v4177_v42  ;;  %v9595_v41 = vld [vmem:[%s11959_s0 + $0xba4] sm:$0xff] }
 0x4f8   :  { %5199 = vst.msk [vmem:[%s11961_s3 + $0x21c] sm:$0xf] %vm1699_vm0, %v5150_v39  ;;  %v5000_v43 = vmax.f32 %v4621_v40, %v4933_v38  ;;  %v9571_v40 = vld [vmem:[%s11959_s0 + $0x894] sm:$0xff] }
 0x4fa   :  { %v5053_v44 = vadd.f32 %v11316_v13, %v5000_v43 }
 0x4fc   :  { %v5102_v45 = vmax.f32 %v5053_v44, 0.0 }
 0x4fd   :  { %v4556_v47 = vpop.f32.mrf.mxu2  ;;  %v4935_v48 = vpop.f32.mrf.mxu3 }
 0x4fe   :  { %v5151_v51 = vpack.c.bf16 %v5102_v45, %v5102_v45  ;;  %v4622_v52 = vmax.f32 %v4243_v46, %v4556_v47  ;;  %v3850_v53 = vpop.f32.mrf.mxu0  ;;  %v4180_v55 = vpop.f32.mrf.mxu1 }
 0x4ff   :  { %v4244_v60 = vmax.f32 %v3850_v53, %v4180_v55 }
 0x500   :  { %5200 = vst.msk [vmem:[%s11961_s3 + $0x220] sm:$0xf] %vm1699_vm0, %v5151_v51  ;;  %v5001_v58 = vmax.f32 %v4622_v52, %v4935_v48 }
 0x501   :  { %5495 = vmatmul.bf16.gmra.mxu0 %v9513_v49  ;;  %5825 = vmatmul.bf16.gmra.mxu1 %v9545_v50 }
 0x502   :  { %v5054_v59 = vadd.f32 %v11316_v13, %v5001_v58  ;;  %6204 = vmatmul.bf16.gmra.mxu2 %v9569_v56  ;;  %6583 = vmatmul.bf16.gmra.mxu3 %v9593_v57 }
 0x504   :  { %v5103_v61 = vmax.f32 %v5054_v59, 0.0  ;;  %v9516_v59 = vld [vmem:[%s11959_s0 + $0x27c] sm:$0xff] }
 0x505   :  { %v4559_v62 = vpop.f32.mrf.mxu2  ;;  %v4938_v63 = vpop.f32.mrf.mxu3 }
 0x506   :  { %v5152_v0 = vpack.c.bf16 %v5103_v61, %v5103_v61  ;;  %v4623_v1 = vmax.f32 %v4244_v60, %v4559_v62  ;;  %v3852_v2 = vpop.f32.mrf.mxu0  ;;  %v4182_v3 = vpop.f32.mrf.mxu1  ;;  %v9548_v60 = vld [vmem:[%s11959_s0 + $0x58c] sm:$0xff] }
 0x507   :  { %v4245_v7 = vmax.f32 %v3852_v2, %v4182_v3  ;;  %v9596_v2 = vld [vmem:[%s11959_s0 + $0xbac] sm:$0xff] }
 0x508   :  { %5201 = vst.msk [vmem:[%s11961_s3 + $0x224] sm:$0xf] %vm1699_vm0, %v5152_v0  ;;  %v5002_v4 = vmax.f32 %v4623_v1, %v4938_v63  ;;  %v9572_v1 = vld [vmem:[%s11959_s0 + $0x89c] sm:$0xff] }
 0x50a   :  { %v5055_v5 = vadd.f32 %v11316_v13, %v5002_v4 }
 0x50c   :  { %v5104_v6 = vmax.f32 %v5055_v5, 0.0 }
 0x50d   :  { %v4561_v33 = vpop.f32.mrf.mxu2  ;;  %v4940_v8 = vpop.f32.mrf.mxu3 }
 0x50e   :  { %v5153_v11 = vpack.c.bf16 %v5104_v6, %v5104_v6  ;;  %v4624_v12 = vmax.f32 %v4245_v7, %v4561_v33  ;;  %v3855_v14 = vpop.f32.mrf.mxu0  ;;  %v4185_v15 = vpop.f32.mrf.mxu1 }
 0x50f   :  { %v4246_v20 = vmax.f32 %v3855_v14, %v4185_v15 }
 0x510   :  { %5202 = vst.msk [vmem:[%s11961_s3 + $0x228] sm:$0xf] %vm1699_vm0, %v5153_v11  ;;  %v5003_v18 = vmax.f32 %v4624_v12, %v4940_v8 }
 0x511   :  { %5500 = vmatmul.bf16.gmra.mxu0 %v9514_v9  ;;  %5830 = vmatmul.bf16.gmra.mxu1 %v9546_v10 }
 0x512   :  { %v5056_v19 = vadd.f32 %v11316_v13, %v5003_v18  ;;  %6209 = vmatmul.bf16.gmra.mxu2 %v9570_v16  ;;  %6588 = vmatmul.bf16.gmra.mxu3 %v9594_v17 }
 0x514   :  { %v5105_v21 = vmax.f32 %v5056_v19, 0.0  ;;  %v9517_v19 = vld [vmem:[%s11959_s0 + $0x284] sm:$0xff] }
 0x515   :  { %v4564_v22 = vpop.f32.mrf.mxu2  ;;  %v4943_v23 = vpop.f32.mrf.mxu3 }
 0x516   :  { %v5154_v24 = vpack.c.bf16 %v5105_v21, %v5105_v21  ;;  %v4625_v25 = vmax.f32 %v4246_v20, %v4564_v22  ;;  %v3857_v26 = vpop.f32.mrf.mxu0  ;;  %v4187_v27 = vpop.f32.mrf.mxu1  ;;  %v9549_v20 = vld [vmem:[%s11959_s0 + $0x594] sm:$0xff] }
 0x517   :  { %v4247_v30 = vmax.f32 %v3857_v26, %v4187_v27  ;;  %v9597_v26 = vld [vmem:[%s11959_s0 + $0xbb4] sm:$0xff] }
 0x518   :  { %5203 = vst.msk [vmem:[%s11961_s3 + $0x22c] sm:$0xf] %vm1699_vm0, %v5154_v24  ;;  %v5004_v54 = vmax.f32 %v4625_v25, %v4943_v23  ;;  %v9573_v25 = vld [vmem:[%s11959_s0 + $0x8a4] sm:$0xff] }
 0x51a   :  { %v5057_v28 = vadd.f32 %v11316_v13, %v5004_v54 }
 0x51c   :  { %v5106_v29 = vmax.f32 %v5057_v28, 0.0 }
 0x51d   :  { %v4566_v31 = vpop.f32.mrf.mxu2  ;;  %v4945_v32 = vpop.f32.mrf.mxu3 }
 0x51e   :  { %v5155_v36 = vpack.c.bf16 %v5106_v29, %v5106_v29  ;;  %v4626_v37 = vmax.f32 %v4247_v30, %v4566_v31  ;;  %v3860_v38 = vpop.f32.mrf.mxu0  ;;  %v4190_v39 = vpop.f32.mrf.mxu1 }
 0x51f   :  { %v4248_v44 = vmax.f32 %v3860_v38, %v4190_v39 }
 0x520   :  { %5204 = vst.msk [vmem:[%s11961_s3 + $0x230] sm:$0xf] %vm1699_vm0, %v5155_v36  ;;  %v5005_v42 = vmax.f32 %v4626_v37, %v4945_v32 }
 0x521   :  { %5505 = vmatmul.bf16.gmra.mxu0 %v9515_v34  ;;  %5835 = vmatmul.bf16.gmra.mxu1 %v9547_v35 }
 0x522   :  { %v5058_v43 = vadd.f32 %v11316_v13, %v5005_v42  ;;  %6214 = vmatmul.bf16.gmra.mxu2 %v9571_v40  ;;  %6593 = vmatmul.bf16.gmra.mxu3 %v9595_v41  ;;  %v9518_v42 = vld [vmem:[%s11959_s0 + $0x28c] sm:$0xff] }
 0x524   :  { %v5107_v45 = vmax.f32 %v5058_v43, 0.0  ;;  %v9550_v43 = vld [vmem:[%s11959_s0 + $0x59c] sm:$0xff] }
 0x525   :  { %v4569_v46 = vpop.f32.mrf.mxu2  ;;  %v4948_v47 = vpop.f32.mrf.mxu3 }
 0x526   :  { %v5156_v48 = vpack.c.bf16 %v5107_v45, %v5107_v45  ;;  %v4627_v49 = vmax.f32 %v4248_v44, %v4569_v46  ;;  %v3862_v50 = vpop.f32.mrf.mxu0  ;;  %v4192_v51 = vpop.f32.mrf.mxu1 }
 0x527   :  { %v4249_v56 = vmax.f32 %v3862_v50, %v4192_v51 }
 0x528   :  { %5205 = vst.msk [vmem:[%s11961_s3 + $0x234] sm:$0xf] %vm1699_vm0, %v5156_v48  ;;  %v5006_v52 = vmax.f32 %v4627_v49, %v4948_v47  ;;  %v9574_v47 = vld [vmem:[%s11959_s0 + $0x8ac] sm:$0xff] }
 0x52a   :  { %v5059_v53 = vadd.f32 %v11316_v13, %v5006_v52  ;;  %v11514_v52 = vld [vmem:[%s11960_s2] ss:$0 sm:$0xff] }
 0x52c   :  { %v5108_v55 = vmax.f32 %v5059_v53, 0.0 }
 0x52d   :  { %v4571_v57 = vpop.f32.mrf.mxu2  ;;  %v4950_v58 = vpop.f32.mrf.mxu3 }
 0x52e   :  { %v5157_v61 = vpack.c.bf16 %v5108_v55, %v5108_v55  ;;  %v4628_v62 = vmax.f32 %v4249_v56, %v4571_v57  ;;  %v3865_v63 = vpop.f32.mrf.mxu0  ;;  %v4195_v0 = vpop.f32.mrf.mxu1 }
 0x52f   :  { %v4250_v5 = vmax.f32 %v3865_v63, %v4195_v0  ;;  %v9551_v63 = vld [vmem:[%s11959_s0 + $0x5a4] sm:$0xff] }
 0x530   :  { %5206 = vst.msk [vmem:[%s11961_s3 + $0x238] sm:$0xf] %vm1699_vm0, %v5157_v61  ;;  %v5007_v3 = vmax.f32 %v4628_v62, %v4950_v58  ;;  %v9519_v62 = vld [vmem:[%s11959_s0 + $0x294] sm:$0xff] }
 0x531   :  { %5510 = vmatmul.bf16.gmra.mxu0 %v9516_v59  ;;  %5840 = vmatmul.bf16.gmra.mxu1 %v9548_v60 }
 0x532   :  { %v5060_v4 = vadd.f32 %v11316_v13, %v5007_v3  ;;  %6219 = vmatmul.bf16.gmra.mxu2 %v9572_v1  ;;  %6598 = vmatmul.bf16.gmra.mxu3 %v9596_v2 }
 0x534   :  { %v5109_v6 = vmax.f32 %v5060_v4, 0.0  ;;  %v9575_v4 = vld [vmem:[%s11959_s0 + $0x8b4] sm:$0xff] }
 0x535   :  { %v4574_v7 = vpop.f32.mrf.mxu2  ;;  %v4953_v33 = vpop.f32.mrf.mxu3 }
 0x536   :  { %v5158_v8 = vpack.c.bf16 %v5109_v6, %v5109_v6  ;;  %v4629_v9 = vmax.f32 %v4250_v5, %v4574_v7  ;;  %v3867_v10 = vpop.f32.mrf.mxu0  ;;  %v4197_v11 = vpop.f32.mrf.mxu1  ;;  %v9599_v5 = vld [vmem:[%s11959_s0 + $0xbc4] sm:$0xff] }
 0x537   :  { %v4251_v16 = vmax.f32 %v3867_v10, %v4197_v11 }
 0x538   :  { %5207 = vst.msk [vmem:[%s11961_s3 + $0x23c] sm:$0xf] %vm1699_vm0, %v5158_v8  ;;  %v5008_v12 = vmax.f32 %v4629_v9, %v4953_v33 }
 0x53a   :  { %v5061_v14 = vadd.f32 %v11316_v13, %v5008_v12 }
 0x53c   :  { %v5110_v15 = vmax.f32 %v5061_v14, 0.0 }
 0x53d   :  { %v4576_v17 = vpop.f32.mrf.mxu2  ;;  %v4955_v18 = vpop.f32.mrf.mxu3 }
 0x53e   :  { %v5159_v21 = vpack.c.bf16 %v5110_v15, %v5110_v15  ;;  %v4630_v22 = vmax.f32 %v4251_v16, %v4576_v17  ;;  %v3870_v23 = vpop.f32.mrf.mxu0  ;;  %v4200_v24 = vpop.f32.mrf.mxu1 }
 0x53f   :  { %v4252_v28 = vmax.f32 %v3870_v23, %v4200_v24  ;;  %v9552_v23 = vld [vmem:[%s11959_s0 + $0x5ac] sm:$0xff] }
 0x540   :  { %5208 = vst.msk [vmem:[%s11961_s3 + $0x240] sm:$0xf] %vm1699_vm0, %v5159_v21  ;;  %v5009_v27 = vmax.f32 %v4630_v22, %v4955_v18  ;;  %v9520_v22 = vld [vmem:[%s11959_s0 + $0x29c] sm:$0xff] }
 0x541   :  { %5515 = vmatmul.bf16.gmra.mxu0 %v9517_v19  ;;  %5845 = vmatmul.bf16.gmra.mxu1 %v9549_v20 }
 0x542   :  { %v5062_v54 = vadd.f32 %v11316_v13, %v5009_v27  ;;  %6224 = vmatmul.bf16.gmra.mxu2 %v9573_v25  ;;  %6603 = vmatmul.bf16.gmra.mxu3 %v9597_v26 }
 0x544   :  { %v5111_v29 = vmax.f32 %v5062_v54, 0.0  ;;  %v9576_v54 = vld [vmem:[%s11959_s0 + $0x8bc] sm:$0xff] }
 0x545   :  { %v4579_v30 = vpop.f32.mrf.mxu2  ;;  %v4958_v31 = vpop.f32.mrf.mxu3 }
 0x546   :  { %v5160_v32 = vpack.c.bf16 %v5111_v29, %v5111_v29  ;;  %v4631_v34 = vmax.f32 %v4252_v28, %v4579_v30  ;;  %v3872_v35 = vpop.f32.mrf.mxu0  ;;  %v4202_v36 = vpop.f32.mrf.mxu1  ;;  %v9600_v28 = vld [vmem:[%s11959_s0 + $0xbcc] sm:$0xff] }
 0x548   :  { %5209 = vst.msk [vmem:[%s11961_s3 + $0x244] sm:$0xf] %vm1699_vm0, %v5160_v32  ;;  %v5010_v37 = vmax.f32 %v4631_v34, %v4958_v31 }
 0x54a   :  { %v5063_v38 = vadd.f32 %v11316_v13, %v5010_v37  ;;  %v9598_v13 = vld [vmem:[%s11959_s0 + $0xbbc] sm:$0xff] }
 0x54c   :  { %v5112_v39 = vmax.f32 %v5063_v38, 0.0 }
 0x54d   :  { %v4581_v40 = vpop.f32.mrf.mxu2  ;;  %v4960_v41 = vpop.f32.mrf.mxu3 }
 0x54e   :  { %v5161_v44 = vpack.c.bf16 %v5112_v39, %v5112_v39  ;;  %v5481_v45 = vpop.f32.mrf.mxu0  ;;  %v5811_v46 = vpop.f32.mrf.mxu1 }
 0x54f   :  { %v5935_v48 = vmax.f32 %v5481_v45, %v5811_v46  ;;  %v9521_v46 = vld [vmem:[%s11959_s0 + $0x2a4] sm:$0xff] }
 0x550   :  { %5210 = vst.msk [vmem:[%s11961_s3 + $0x248] sm:$0xf] %vm1699_vm0, %v5161_v44 }
 0x551   :  { %5520 = vmatmul.bf16.gmra.mxu0 %v9518_v42  ;;  %5850 = vmatmul.bf16.gmra.mxu1 %v9550_v43 }
 0x552   :  { %6229 = vmatmul.bf16.gmra.mxu2 %v9574_v47  ;;  %6608 = vmatmul.bf16.gmra.mxu3 %v9598_v13  ;;  %v9553_v47 = vld [vmem:[%s11959_s0 + $0x5b4] sm:$0xff] }
 0x555   :  { %v6190_v49 = vpop.f32.mrf.mxu2  ;;  %v6569_v50 = vpop.f32.mrf.mxu3 }
 0x556   :  { %v6314_v51 = vmax.f32 %v5935_v48, %v6190_v49  ;;  %v5483_v53 = vpop.f32.mrf.mxu0  ;;  %v5813_v55 = vpop.f32.mrf.mxu1 }
 0x557   :  { %v5936_v59 = vmax.f32 %v5483_v53, %v5813_v55  ;;  %v9601_v53 = vld [vmem:[%s11959_s0 + $0xbd4] sm:$0xff] }
 0x558   :  { %v6693_v56 = vmax.f32 %v6314_v51, %v6569_v50  ;;  %v9577_v51 = vld [vmem:[%s11959_s0 + $0x8c4] sm:$0xff] }
 0x55a   :  { %v6746_v57 = vadd.f32 %v11514_v52, %v6693_v56 }
 0x55c   :  { %v6795_v58 = vmax.f32 %v6746_v57, 0.0 }
 0x55d   :  { %v6192_v60 = vpop.f32.mrf.mxu2  ;;  %v6571_v61 = vpop.f32.mrf.mxu3 }
 0x55e   :  { %v6844_v0 = vpack.c.bf16 %v6795_v58, %v6795_v58  ;;  %v6315_v1 = vmax.f32 %v5936_v59, %v6192_v60  ;;  %v5486_v2 = vpop.f32.mrf.mxu0  ;;  %v5816_v3 = vpop.f32.mrf.mxu1 }
 0x55f   :  { %v5937_v33 = vmax.f32 %v5486_v2, %v5816_v3 }
 0x560   :  { %6893 = vst.msk [vmem:[%s11961_s3 + $0x24c] sm:$0xf] %vm1699_vm0, %v6844_v0  ;;  %v6694_v6 = vmax.f32 %v6315_v1, %v6571_v61 }
 0x561   :  { %5525 = vmatmul.bf16.gmra.mxu0 %v9519_v62  ;;  %5855 = vmatmul.bf16.gmra.mxu1 %v9551_v63 }
 0x562   :  { %v6747_v7 = vadd.f32 %v11514_v52, %v6694_v6  ;;  %6234 = vmatmul.bf16.gmra.mxu2 %v9575_v4  ;;  %6613 = vmatmul.bf16.gmra.mxu3 %v9599_v5 }
 0x564   :  { %v6796_v8 = vmax.f32 %v6747_v7, 0.0  ;;  %v9522_v7 = vld [vmem:[%s11959_s0 + $0x2ac] sm:$0xff] }
 0x565   :  { %v6195_v9 = vpop.f32.mrf.mxu2  ;;  %v6574_v10 = vpop.f32.mrf.mxu3 }
 0x566   :  { %v6845_v11 = vpack.c.bf16 %v6796_v8, %v6796_v8  ;;  %v6316_v12 = vmax.f32 %v5937_v33, %v6195_v9  ;;  %v5488_v14 = vpop.f32.mrf.mxu0  ;;  %v5818_v15 = vpop.f32.mrf.mxu1  ;;  %v9554_v33 = vld [vmem:[%s11959_s0 + $0x5bc] sm:$0xff] }
 0x567   :  { %v5938_v19 = vmax.f32 %v5488_v14, %v5818_v15  ;;  %v9602_v14 = vld [vmem:[%s11959_s0 + $0xbdc] sm:$0xff] }
 0x568   :  { %6894 = vst.msk [vmem:[%s11961_s3 + $0x250] sm:$0xf] %vm1699_vm0, %v6845_v11  ;;  %v6695_v16 = vmax.f32 %v6316_v12, %v6574_v10  ;;  %v9578_v12 = vld [vmem:[%s11959_s0 + $0x8cc] sm:$0xff] }
 0x56a   :  { %v6748_v17 = vadd.f32 %v11514_v52, %v6695_v16 }
 0x56c   :  { %v6797_v18 = vmax.f32 %v6748_v17, 0.0 }
 0x56d   :  { %v6197_v20 = vpop.f32.mrf.mxu2  ;;  %v6576_v21 = vpop.f32.mrf.mxu3 }
 0x56e   :  { %v6846_v24 = vpack.c.bf16 %v6797_v18, %v6797_v18  ;;  %v6317_v25 = vmax.f32 %v5938_v19, %v6197_v20  ;;  %v5491_v26 = vpop.f32.mrf.mxu0  ;;  %v5821_v27 = vpop.f32.mrf.mxu1 }
 0x56f   :  { %v5939_v31 = vmax.f32 %v5491_v26, %v5821_v27 }
 0x570   :  { %6895 = vst.msk [vmem:[%s11961_s3 + $0x254] sm:$0xf] %vm1699_vm0, %v6846_v24  ;;  %v6696_v29 = vmax.f32 %v6317_v25, %v6576_v21 }
 0x571   :  { %5530 = vmatmul.bf16.gmra.mxu0 %v9520_v22  ;;  %5860 = vmatmul.bf16.gmra.mxu1 %v9552_v23 }
 0x572   :  { %v6749_v30 = vadd.f32 %v11514_v52, %v6696_v29  ;;  %6239 = vmatmul.bf16.gmra.mxu2 %v9576_v54  ;;  %6618 = vmatmul.bf16.gmra.mxu3 %v9600_v28 }
 0x574   :  { %v6798_v32 = vmax.f32 %v6749_v30, 0.0  ;;  %v9523_v30 = vld [vmem:[%s11959_s0 + $0x2b4] sm:$0xff] }
 0x575   :  { %v6200_v34 = vpop.f32.mrf.mxu2  ;;  %v6579_v35 = vpop.f32.mrf.mxu3 }
 0x576   :  { %v6847_v36 = vpack.c.bf16 %v6798_v32, %v6798_v32  ;;  %v6318_v37 = vmax.f32 %v5939_v31, %v6200_v34  ;;  %v5493_v38 = vpop.f32.mrf.mxu0  ;;  %v5823_v39 = vpop.f32.mrf.mxu1  ;;  %v9555_v31 = vld [vmem:[%s11959_s0 + $0x5c4] sm:$0xff] }
 0x577   :  { %v5940_v43 = vmax.f32 %v5493_v38, %v5823_v39  ;;  %v9603_v38 = vld [vmem:[%s11959_s0 + $0xbe4] sm:$0xff] }
 0x578   :  { %6896 = vst.msk [vmem:[%s11961_s3 + $0x258] sm:$0xf] %vm1699_vm0, %v6847_v36  ;;  %v6697_v40 = vmax.f32 %v6318_v37, %v6579_v35  ;;  %v9579_v37 = vld [vmem:[%s11959_s0 + $0x8d4] sm:$0xff] }
 0x57a   :  { %v6750_v41 = vadd.f32 %v11514_v52, %v6697_v40 }
 0x57c   :  { %v6799_v42 = vmax.f32 %v6750_v41, 0.0 }
 0x57d   :  { %v6202_v44 = vpop.f32.mrf.mxu2  ;;  %v6581_v45 = vpop.f32.mrf.mxu3 }
 0x57e   :  { %v6848_v13 = vpack.c.bf16 %v6799_v42, %v6799_v42  ;;  %v6319_v48 = vmax.f32 %v5940_v43, %v6202_v44  ;;  %v5496_v49 = vpop.f32.mrf.mxu0  ;;  %v5826_v50 = vpop.f32.mrf.mxu1 }
 0x57f   :  { %v5941_v57 = vmax.f32 %v5496_v49, %v5826_v50 }
 0x580   :  { %6897 = vst.msk [vmem:[%s11961_s3 + $0x25c] sm:$0xf] %vm1699_vm0, %v6848_v13  ;;  %v6698_v55 = vmax.f32 %v6319_v48, %v6581_v45 }
 0x581   :  { %5535 = vmatmul.bf16.gmra.mxu0 %v9521_v46  ;;  %5865 = vmatmul.bf16.gmra.mxu1 %v9553_v47 }
 0x582   :  { %v6751_v56 = vadd.f32 %v11514_v52, %v6698_v55  ;;  %6244 = vmatmul.bf16.gmra.mxu2 %v9577_v51  ;;  %6623 = vmatmul.bf16.gmra.mxu3 %v9601_v53 }
 0x584   :  { %v6800_v58 = vmax.f32 %v6751_v56, 0.0  ;;  %v9524_v56 = vld [vmem:[%s11959_s0 + $0x2bc] sm:$0xff] }
 0x585   :  { %v6205_v59 = vpop.f32.mrf.mxu2  ;;  %v6584_v60 = vpop.f32.mrf.mxu3 }
 0x586   :  { %v6849_v61 = vpack.c.bf16 %v6800_v58, %v6800_v58  ;;  %v6320_v62 = vmax.f32 %v5941_v57, %v6205_v59  ;;  %v5498_v63 = vpop.f32.mrf.mxu0  ;;  %v5828_v0 = vpop.f32.mrf.mxu1  ;;  %v9556_v57 = vld [vmem:[%s11959_s0 + $0x5cc] sm:$0xff] }
 0x587   :  { %v5942_v4 = vmax.f32 %v5498_v63, %v5828_v0  ;;  %v9604_v63 = vld [vmem:[%s11959_s0 + $0xbec] sm:$0xff] }
 0x588   :  { %6898 = vst.msk [vmem:[%s11961_s3 + $0x260] sm:$0xf] %vm1699_vm0, %v6849_v61  ;;  %v6699_v1 = vmax.f32 %v6320_v62, %v6584_v60  ;;  %v9580_v62 = vld [vmem:[%s11959_s0 + $0x8dc] sm:$0xff] }
 0x58a   :  { %v6752_v2 = vadd.f32 %v11514_v52, %v6699_v1 }
 0x58c   :  { %v6801_v3 = vmax.f32 %v6752_v2, 0.0 }
 0x58d   :  { %v6207_v5 = vpop.f32.mrf.mxu2  ;;  %v6586_v6 = vpop.f32.mrf.mxu3 }
 0x58e   :  { %v6850_v8 = vpack.c.bf16 %v6801_v3, %v6801_v3  ;;  %v6321_v9 = vmax.f32 %v5942_v4, %v6207_v5  ;;  %v5501_v10 = vpop.f32.mrf.mxu0  ;;  %v5831_v11 = vpop.f32.mrf.mxu1 }
 0x58f   :  { %v5943_v17 = vmax.f32 %v5501_v10, %v5831_v11 }
 0x590   :  { %6899 = vst.msk [vmem:[%s11961_s3 + $0x264] sm:$0xf] %vm1699_vm0, %v6850_v8  ;;  %v6700_v15 = vmax.f32 %v6321_v9, %v6586_v6 }
 0x591   :  { %5540 = vmatmul.bf16.gmra.mxu0 %v9522_v7  ;;  %5870 = vmatmul.bf16.gmra.mxu1 %v9554_v33 }
 0x592   :  { %v6753_v16 = vadd.f32 %v11514_v52, %v6700_v15  ;;  %6249 = vmatmul.bf16.gmra.mxu2 %v9578_v12  ;;  %6628 = vmatmul.bf16.gmra.mxu3 %v9602_v14 }
 0x594   :  { %v6802_v18 = vmax.f32 %v6753_v16, 0.0  ;;  %v9525_v16 = vld [vmem:[%s11959_s0 + $0x2c4] sm:$0xff] }
 0x595   :  { %v6210_v19 = vpop.f32.mrf.mxu2  ;;  %v6589_v20 = vpop.f32.mrf.mxu3 }
 0x596   :  { %v6851_v21 = vpack.c.bf16 %v6802_v18, %v6802_v18  ;;  %v6322_v22 = vmax.f32 %v5943_v17, %v6210_v19  ;;  %v5503_v23 = vpop.f32.mrf.mxu0  ;;  %v5833_v24 = vpop.f32.mrf.mxu1  ;;  %v9557_v17 = vld [vmem:[%s11959_s0 + $0x5d4] sm:$0xff] }
 0x597   :  { %v5944_v54 = vmax.f32 %v5503_v23, %v5833_v24  ;;  %v9605_v23 = vld [vmem:[%s11959_s0 + $0xbf4] sm:$0xff] }
 0x598   :  { %6900 = vst.msk [vmem:[%s11961_s3 + $0x268] sm:$0xf] %vm1699_vm0, %v6851_v21  ;;  %v6701_v25 = vmax.f32 %v6322_v22, %v6589_v20  ;;  %v9581_v22 = vld [vmem:[%s11959_s0 + $0x8e4] sm:$0xff] }
 0x59a   :  { %v6754_v26 = vadd.f32 %v11514_v52, %v6701_v25 }
 0x59c   :  { %v6803_v27 = vmax.f32 %v6754_v26, 0.0 }
 0x59d   :  { %v6212_v28 = vpop.f32.mrf.mxu2  ;;  %v6591_v29 = vpop.f32.mrf.mxu3 }
 0x59e   :  { %v6852_v32 = vpack.c.bf16 %v6803_v27, %v6803_v27  ;;  %v6323_v34 = vmax.f32 %v5944_v54, %v6212_v28  ;;  %v5506_v35 = vpop.f32.mrf.mxu0  ;;  %v5836_v36 = vpop.f32.mrf.mxu1 }
 0x59f   :  { %v5945_v41 = vmax.f32 %v5506_v35, %v5836_v36 }
 0x5a0   :  { %6901 = vst.msk [vmem:[%s11961_s3 + $0x26c] sm:$0xf] %vm1699_vm0, %v6852_v32  ;;  %v6702_v39 = vmax.f32 %v6323_v34, %v6591_v29 }
 0x5a1   :  { %5545 = vmatmul.bf16.gmra.mxu0 %v9523_v30  ;;  %5875 = vmatmul.bf16.gmra.mxu1 %v9555_v31 }
 0x5a2   :  { %v6755_v40 = vadd.f32 %v11514_v52, %v6702_v39  ;;  %6254 = vmatmul.bf16.gmra.mxu2 %v9579_v37  ;;  %6633 = vmatmul.bf16.gmra.mxu3 %v9603_v38 }
 0x5a4   :  { %v6804_v42 = vmax.f32 %v6755_v40, 0.0  ;;  %v9526_v40 = vld [vmem:[%s11959_s0 + $0x2cc] sm:$0xff] }
 0x5a5   :  { %v6215_v43 = vpop.f32.mrf.mxu2  ;;  %v6594_v44 = vpop.f32.mrf.mxu3 }
 0x5a6   :  { %v6853_v45 = vpack.c.bf16 %v6804_v42, %v6804_v42  ;;  %v6324_v46 = vmax.f32 %v5945_v41, %v6215_v43  ;;  %v5508_v47 = vpop.f32.mrf.mxu0  ;;  %v5838_v13 = vpop.f32.mrf.mxu1  ;;  %v9558_v41 = vld [vmem:[%s11959_s0 + $0x5dc] sm:$0xff] }
 0x5a7   :  { %v5946_v51 = vmax.f32 %v5508_v47, %v5838_v13  ;;  %v9606_v47 = vld [vmem:[%s11959_s0 + $0xbfc] sm:$0xff] }
 0x5a8   :  { %6902 = vst.msk [vmem:[%s11961_s3 + $0x270] sm:$0xf] %vm1699_vm0, %v6853_v45  ;;  %v6703_v48 = vmax.f32 %v6324_v46, %v6594_v44  ;;  %v9582_v46 = vld [vmem:[%s11959_s0 + $0x8ec] sm:$0xff] }
 0x5aa   :  { %v6756_v49 = vadd.f32 %v11514_v52, %v6703_v48 }
 0x5ac   :  { %v6805_v50 = vmax.f32 %v6756_v49, 0.0 }
 0x5ad   :  { %v6217_v53 = vpop.f32.mrf.mxu2  ;;  %v6596_v55 = vpop.f32.mrf.mxu3 }
 0x5ae   :  { %v6854_v58 = vpack.c.bf16 %v6805_v50, %v6805_v50  ;;  %v6325_v59 = vmax.f32 %v5946_v51, %v6217_v53  ;;  %v5511_v60 = vpop.f32.mrf.mxu0  ;;  %v5841_v61 = vpop.f32.mrf.mxu1 }
 0x5af   :  { %v5947_v2 = vmax.f32 %v5511_v60, %v5841_v61 }
 0x5b0   :  { %6903 = vst.msk [vmem:[%s11961_s3 + $0x274] sm:$0xf] %vm1699_vm0, %v6854_v58  ;;  %v6704_v0 = vmax.f32 %v6325_v59, %v6596_v55 }
 0x5b1   :  { %5550 = vmatmul.bf16.gmra.mxu0 %v9524_v56  ;;  %5880 = vmatmul.bf16.gmra.mxu1 %v9556_v57 }
 0x5b2   :  { %v6757_v1 = vadd.f32 %v11514_v52, %v6704_v0  ;;  %6259 = vmatmul.bf16.gmra.mxu2 %v9580_v62  ;;  %6638 = vmatmul.bf16.gmra.mxu3 %v9604_v63 }
 0x5b4   :  { %v6806_v3 = vmax.f32 %v6757_v1, 0.0  ;;  %v9527_v1 = vld [vmem:[%s11959_s0 + $0x2d4] sm:$0xff] }
 0x5b5   :  { %v6220_v4 = vpop.f32.mrf.mxu2  ;;  %v6599_v5 = vpop.f32.mrf.mxu3 }
 0x5b6   :  { %v6855_v6 = vpack.c.bf16 %v6806_v3, %v6806_v3  ;;  %v6326_v7 = vmax.f32 %v5947_v2, %v6220_v4  ;;  %v5513_v33 = vpop.f32.mrf.mxu0  ;;  %v5843_v8 = vpop.f32.mrf.mxu1  ;;  %v9559_v2 = vld [vmem:[%s11959_s0 + $0x5e4] sm:$0xff] }
 0x5b7   :  { %v5948_v12 = vmax.f32 %v5513_v33, %v5843_v8  ;;  %v9607_v33 = vld [vmem:[%s11959_s0 + $0xc04] sm:$0xff] }
 0x5b8   :  { %6904 = vst.msk [vmem:[%s11961_s3 + $0x278] sm:$0xf] %vm1699_vm0, %v6855_v6  ;;  %v6705_v9 = vmax.f32 %v6326_v7, %v6599_v5  ;;  %v9583_v7 = vld [vmem:[%s11959_s0 + $0x8f4] sm:$0xff] }
 0x5ba   :  { %v6758_v10 = vadd.f32 %v11514_v52, %v6705_v9 }
 0x5bc   :  { %v6807_v11 = vmax.f32 %v6758_v10, 0.0 }
 0x5bd   :  { %v6222_v14 = vpop.f32.mrf.mxu2  ;;  %v6601_v15 = vpop.f32.mrf.mxu3 }
 0x5be   :  { %v6856_v18 = vpack.c.bf16 %v6807_v11, %v6807_v11  ;;  %v6327_v19 = vmax.f32 %v5948_v12, %v6222_v14  ;;  %v5516_v20 = vpop.f32.mrf.mxu0  ;;  %v5846_v21 = vpop.f32.mrf.mxu1 }
 0x5bf   :  { %v5949_v26 = vmax.f32 %v5516_v20, %v5846_v21 }
 0x5c0   :  { %6905 = vst.msk [vmem:[%s11961_s3 + $0x27c] sm:$0xf] %vm1699_vm0, %v6856_v18  ;;  %v6706_v24 = vmax.f32 %v6327_v19, %v6601_v15 }
 0x5c1   :  { %5555 = vmatmul.bf16.gmra.mxu0 %v9525_v16  ;;  %5885 = vmatmul.bf16.gmra.mxu1 %v9557_v17 }
 0x5c2   :  { %v6759_v25 = vadd.f32 %v11514_v52, %v6706_v24  ;;  %6264 = vmatmul.bf16.gmra.mxu2 %v9581_v22  ;;  %6643 = vmatmul.bf16.gmra.mxu3 %v9605_v23 }
 0x5c4   :  { %v6808_v27 = vmax.f32 %v6759_v25, 0.0  ;;  %v9528_v25 = vld [vmem:[%s11959_s0 + $0x2dc] sm:$0xff] }
 0x5c5   :  { %v6225_v54 = vpop.f32.mrf.mxu2  ;;  %v6604_v28 = vpop.f32.mrf.mxu3 }
 0x5c6   :  { %v6857_v29 = vpack.c.bf16 %v6808_v27, %v6808_v27  ;;  %v6328_v30 = vmax.f32 %v5949_v26, %v6225_v54  ;;  %v5518_v31 = vpop.f32.mrf.mxu0  ;;  %v5848_v32 = vpop.f32.mrf.mxu1  ;;  %v9560_v26 = vld [vmem:[%s11959_s0 + $0x5ec] sm:$0xff] }
 0x5c7   :  { %v5950_v37 = vmax.f32 %v5518_v31, %v5848_v32  ;;  %v9608_v31 = vld [vmem:[%s11959_s0 + $0xc0c] sm:$0xff] }
 0x5c8   :  { %6906 = vst.msk [vmem:[%s11961_s3 + $0x280] sm:$0xf] %vm1699_vm0, %v6857_v29  ;;  %v6707_v34 = vmax.f32 %v6328_v30, %v6604_v28  ;;  %v9584_v30 = vld [vmem:[%s11959_s0 + $0x8fc] sm:$0xff] }
 0x5ca   :  { %v6760_v35 = vadd.f32 %v11514_v52, %v6707_v34 }
 0x5cc   :  { %v6809_v36 = vmax.f32 %v6760_v35, 0.0 }
 0x5cd   :  { %v6227_v38 = vpop.f32.mrf.mxu2  ;;  %v6606_v39 = vpop.f32.mrf.mxu3 }
 0x5ce   :  { %v6858_v42 = vpack.c.bf16 %v6809_v36, %v6809_v36  ;;  %v6329_v43 = vmax.f32 %v5950_v37, %v6227_v38  ;;  %v5521_v44 = vpop.f32.mrf.mxu0  ;;  %v5851_v45 = vpop.f32.mrf.mxu1 }
 0x5cf   :  { %v5951_v49 = vmax.f32 %v5521_v44, %v5851_v45 }
 0x5d0   :  { %6907 = vst.msk [vmem:[%s11961_s3 + $0x284] sm:$0xf] %vm1699_vm0, %v6858_v42  ;;  %v6708_v13 = vmax.f32 %v6329_v43, %v6606_v39 }
 0x5d1   :  { %5560 = vmatmul.bf16.gmra.mxu0 %v9526_v40  ;;  %5890 = vmatmul.bf16.gmra.mxu1 %v9558_v41 }
 0x5d2   :  { %v6761_v48 = vadd.f32 %v11514_v52, %v6708_v13  ;;  %6269 = vmatmul.bf16.gmra.mxu2 %v9582_v46  ;;  %6648 = vmatmul.bf16.gmra.mxu3 %v9606_v47 }
 0x5d4   :  { %v6810_v50 = vmax.f32 %v6761_v48, 0.0  ;;  %v9529_v48 = vld [vmem:[%s11959_s0 + $0x2e4] sm:$0xff] }
 0x5d5   :  { %v6230_v51 = vpop.f32.mrf.mxu2  ;;  %v6609_v53 = vpop.f32.mrf.mxu3 }
 0x5d6   :  { %v6859_v55 = vpack.c.bf16 %v6810_v50, %v6810_v50  ;;  %v6330_v56 = vmax.f32 %v5951_v49, %v6230_v51  ;;  %v5523_v57 = vpop.f32.mrf.mxu0  ;;  %v5853_v58 = vpop.f32.mrf.mxu1  ;;  %v9561_v49 = vld [vmem:[%s11959_s0 + $0x5f4] sm:$0xff] }
 0x5d7   :  { %v5952_v62 = vmax.f32 %v5523_v57, %v5853_v58  ;;  %v9609_v57 = vld [vmem:[%s11959_s0 + $0xc14] sm:$0xff] }
 0x5d8   :  { %6908 = vst.msk [vmem:[%s11961_s3 + $0x288] sm:$0xf] %vm1699_vm0, %v6859_v55  ;;  %v6709_v59 = vmax.f32 %v6330_v56, %v6609_v53  ;;  %v9585_v56 = vld [vmem:[%s11959_s0 + $0x904] sm:$0xff] }
 0x5da   :  { %v6762_v60 = vadd.f32 %v11514_v52, %v6709_v59 }
 0x5dc   :  { %v6811_v61 = vmax.f32 %v6762_v60, 0.0 }
 0x5dd   :  { %v6232_v63 = vpop.f32.mrf.mxu2  ;;  %v6611_v0 = vpop.f32.mrf.mxu3 }
 0x5de   :  { %v6860_v3 = vpack.c.bf16 %v6811_v61, %v6811_v61  ;;  %v6331_v4 = vmax.f32 %v5952_v62, %v6232_v63  ;;  %v5526_v5 = vpop.f32.mrf.mxu0  ;;  %v5856_v6 = vpop.f32.mrf.mxu1 }
 0x5df   :  { %v5953_v10 = vmax.f32 %v5526_v5, %v5856_v6 }
 0x5e0   :  { %6909 = vst.msk [vmem:[%s11961_s3 + $0x28c] sm:$0xf] %vm1699_vm0, %v6860_v3  ;;  %v6710_v8 = vmax.f32 %v6331_v4, %v6611_v0 }
 0x5e1   :  { %5565 = vmatmul.bf16.gmra.mxu0 %v9527_v1  ;;  %5895 = vmatmul.bf16.gmra.mxu1 %v9559_v2 }
 0x5e2   :  { %v6763_v9 = vadd.f32 %v11514_v52, %v6710_v8  ;;  %6274 = vmatmul.bf16.gmra.mxu2 %v9583_v7  ;;  %6653 = vmatmul.bf16.gmra.mxu3 %v9607_v33 }
 0x5e4   :  { %v6812_v11 = vmax.f32 %v6763_v9, 0.0  ;;  %v9530_v9 = vld [vmem:[%s11959_s0 + $0x2ec] sm:$0xff] }
 0x5e5   :  { %v6235_v12 = vpop.f32.mrf.mxu2  ;;  %v6614_v14 = vpop.f32.mrf.mxu3 }
 0x5e6   :  { %v6861_v15 = vpack.c.bf16 %v6812_v11, %v6812_v11  ;;  %v6332_v16 = vmax.f32 %v5953_v10, %v6235_v12  ;;  %v5528_v17 = vpop.f32.mrf.mxu0  ;;  %v5858_v18 = vpop.f32.mrf.mxu1  ;;  %v9562_v10 = vld [vmem:[%s11959_s0 + $0x5fc] sm:$0xff] }
 0x5e7   :  { %v5954_v22 = vmax.f32 %v5528_v17, %v5858_v18  ;;  %v9610_v17 = vld [vmem:[%s11959_s0 + $0xc1c] sm:$0xff] }
 0x5e8   :  { %6910 = vst.msk [vmem:[%s11961_s3 + $0x290] sm:$0xf] %vm1699_vm0, %v6861_v15  ;;  %v6711_v19 = vmax.f32 %v6332_v16, %v6614_v14  ;;  %v9586_v16 = vld [vmem:[%s11959_s0 + $0x90c] sm:$0xff] }
 0x5ea   :  { %v6764_v20 = vadd.f32 %v11514_v52, %v6711_v19 }
 0x5ec   :  { %v6813_v21 = vmax.f32 %v6764_v20, 0.0 }
 0x5ed   :  { %v6237_v23 = vpop.f32.mrf.mxu2  ;;  %v6616_v24 = vpop.f32.mrf.mxu3 }
 0x5ee   :  { %v6862_v27 = vpack.c.bf16 %v6813_v21, %v6813_v21  ;;  %v6333_v54 = vmax.f32 %v5954_v22, %v6237_v23  ;;  %v5531_v28 = vpop.f32.mrf.mxu0  ;;  %v5861_v29 = vpop.f32.mrf.mxu1 }
 0x5ef   :  { %v5955_v35 = vmax.f32 %v5531_v28, %v5861_v29 }
 0x5f0   :  { %6911 = vst.msk [vmem:[%s11961_s3 + $0x294] sm:$0xf] %vm1699_vm0, %v6862_v27  ;;  %v6712_v32 = vmax.f32 %v6333_v54, %v6616_v24 }
 0x5f1   :  { %5570 = vmatmul.bf16.gmra.mxu0 %v9528_v25  ;;  %5900 = vmatmul.bf16.gmra.mxu1 %v9560_v26 }
 0x5f2   :  { %v6765_v34 = vadd.f32 %v11514_v52, %v6712_v32  ;;  %6279 = vmatmul.bf16.gmra.mxu2 %v9584_v30  ;;  %6658 = vmatmul.bf16.gmra.mxu3 %v9608_v31 }
 0x5f4   :  { %v6814_v36 = vmax.f32 %v6765_v34, 0.0  ;;  %v9531_v34 = vld [vmem:[%s11959_s0 + $0x2f4] sm:$0xff] }
 0x5f5   :  { %v6240_v37 = vpop.f32.mrf.mxu2  ;;  %v6619_v38 = vpop.f32.mrf.mxu3 }
 0x5f6   :  { %v6863_v39 = vpack.c.bf16 %v6814_v36, %v6814_v36  ;;  %v6334_v40 = vmax.f32 %v5955_v35, %v6240_v37  ;;  %v5533_v41 = vpop.f32.mrf.mxu0  ;;  %v5863_v42 = vpop.f32.mrf.mxu1  ;;  %v9563_v35 = vld [vmem:[%s11959_s0 + $0x604] sm:$0xff] }
 0x5f7   :  { %v5956_v46 = vmax.f32 %v5533_v41, %v5863_v42  ;;  %v9611_v41 = vld [vmem:[%s11959_s0 + $0xc24] sm:$0xff] }
 0x5f8   :  { %6912 = vst.msk [vmem:[%s11961_s3 + $0x298] sm:$0xf] %vm1699_vm0, %v6863_v39  ;;  %v6713_v43 = vmax.f32 %v6334_v40, %v6619_v38  ;;  %v9587_v40 = vld [vmem:[%s11959_s0 + $0x914] sm:$0xff] }
 0x5fa   :  { %v6766_v44 = vadd.f32 %v11514_v52, %v6713_v43 }
 0x5fc   :  { %v6815_v45 = vmax.f32 %v6766_v44, 0.0 }
 0x5fd   :  { %v6242_v47 = vpop.f32.mrf.mxu2  ;;  %v6621_v13 = vpop.f32.mrf.mxu3 }
 0x5fe   :  { %v6864_v50 = vpack.c.bf16 %v6815_v45, %v6815_v45  ;;  %v6335_v51 = vmax.f32 %v5956_v46, %v6242_v47  ;;  %v5536_v53 = vpop.f32.mrf.mxu0  ;;  %v5866_v55 = vpop.f32.mrf.mxu1 }
 0x5ff   :  { %v5957_v60 = vmax.f32 %v5536_v53, %v5866_v55 }
 0x600   :  { %6913 = vst.msk [vmem:[%s11961_s3 + $0x29c] sm:$0xf] %vm1699_vm0, %v6864_v50  ;;  %v6714_v58 = vmax.f32 %v6335_v51, %v6621_v13 }
 0x601   :  { %5575 = vmatmul.bf16.gmra.mxu0 %v9529_v48  ;;  %5905 = vmatmul.bf16.gmra.mxu1 %v9561_v49 }
 0x602   :  { %v6767_v59 = vadd.f32 %v11514_v52, %v6714_v58  ;;  %6284 = vmatmul.bf16.gmra.mxu2 %v9585_v56  ;;  %6663 = vmatmul.bf16.gmra.mxu3 %v9609_v57 }
 0x604   :  { %v6816_v61 = vmax.f32 %v6767_v59, 0.0  ;;  %v9532_v59 = vld [vmem:[%s11959_s0 + $0x2fc] sm:$0xff] }
 0x605   :  { %v6245_v62 = vpop.f32.mrf.mxu2  ;;  %v6624_v63 = vpop.f32.mrf.mxu3 }
 0x606   :  { %v6865_v0 = vpack.c.bf16 %v6816_v61, %v6816_v61  ;;  %v6336_v1 = vmax.f32 %v5957_v60, %v6245_v62  ;;  %v5538_v2 = vpop.f32.mrf.mxu0  ;;  %v5868_v3 = vpop.f32.mrf.mxu1  ;;  %v9564_v60 = vld [vmem:[%s11959_s0 + $0x60c] sm:$0xff] }
 0x607   :  { %v5958_v7 = vmax.f32 %v5538_v2, %v5868_v3  ;;  %v9612_v2 = vld [vmem:[%s11959_s0 + $0xc2c] sm:$0xff] }
 0x608   :  { %6914 = vst.msk [vmem:[%s11961_s3 + $0x2a0] sm:$0xf] %vm1699_vm0, %v6865_v0  ;;  %v6715_v4 = vmax.f32 %v6336_v1, %v6624_v63  ;;  %v9588_v1 = vld [vmem:[%s11959_s0 + $0x91c] sm:$0xff] }
 0x60a   :  { %v6768_v5 = vadd.f32 %v11514_v52, %v6715_v4 }
 0x60c   :  { %v6817_v6 = vmax.f32 %v6768_v5, 0.0 }
 0x60d   :  { %v6247_v33 = vpop.f32.mrf.mxu2  ;;  %v6626_v8 = vpop.f32.mrf.mxu3 }
 0x60e   :  { %v6866_v11 = vpack.c.bf16 %v6817_v6, %v6817_v6  ;;  %v6337_v12 = vmax.f32 %v5958_v7, %v6247_v33  ;;  %v5541_v14 = vpop.f32.mrf.mxu0  ;;  %v5871_v15 = vpop.f32.mrf.mxu1 }
 0x60f   :  { %v5959_v20 = vmax.f32 %v5541_v14, %v5871_v15 }
 0x610   :  { %6915 = vst.msk [vmem:[%s11961_s3 + $0x2a4] sm:$0xf] %vm1699_vm0, %v6866_v11  ;;  %v6716_v18 = vmax.f32 %v6337_v12, %v6626_v8 }
 0x611   :  { %5580 = vmatmul.bf16.gmra.mxu0 %v9530_v9  ;;  %5910 = vmatmul.bf16.gmra.mxu1 %v9562_v10 }
 0x612   :  { %v6769_v19 = vadd.f32 %v11514_v52, %v6716_v18  ;;  %6289 = vmatmul.bf16.gmra.mxu2 %v9586_v16  ;;  %6668 = vmatmul.bf16.gmra.mxu3 %v9610_v17 }
 0x614   :  { %v6818_v21 = vmax.f32 %v6769_v19, 0.0  ;;  %v9533_v19 = vld [vmem:[%s11959_s0 + $0x304] sm:$0xff] }
 0x615   :  { %v6250_v22 = vpop.f32.mrf.mxu2  ;;  %v6629_v23 = vpop.f32.mrf.mxu3 }
 0x616   :  { %v6867_v24 = vpack.c.bf16 %v6818_v21, %v6818_v21  ;;  %v6338_v25 = vmax.f32 %v5959_v20, %v6250_v22  ;;  %v5543_v26 = vpop.f32.mrf.mxu0  ;;  %v5873_v27 = vpop.f32.mrf.mxu1  ;;  %v9565_v20 = vld [vmem:[%s11959_s0 + $0x614] sm:$0xff] }
 0x617   :  { %v5960_v30 = vmax.f32 %v5543_v26, %v5873_v27  ;;  %v9613_v26 = vld [vmem:[%s11959_s0 + $0xc34] sm:$0xff] }
 0x618   :  { %6916 = vst.msk [vmem:[%s11961_s3 + $0x2a8] sm:$0xf] %vm1699_vm0, %v6867_v24  ;;  %v6717_v54 = vmax.f32 %v6338_v25, %v6629_v23  ;;  %v9589_v25 = vld [vmem:[%s11959_s0 + $0x924] sm:$0xff] }
 0x61a   :  { %v6770_v28 = vadd.f32 %v11514_v52, %v6717_v54 }
 0x61c   :  { %v6819_v29 = vmax.f32 %v6770_v28, 0.0 }
 0x61d   :  { %v6252_v31 = vpop.f32.mrf.mxu2  ;;  %v6631_v32 = vpop.f32.mrf.mxu3 }
 0x61e   :  { %v6868_v36 = vpack.c.bf16 %v6819_v29, %v6819_v29  ;;  %v6339_v37 = vmax.f32 %v5960_v30, %v6252_v31  ;;  %v5546_v38 = vpop.f32.mrf.mxu0  ;;  %v5876_v39 = vpop.f32.mrf.mxu1 }
 0x61f   :  { %v5961_v44 = vmax.f32 %v5546_v38, %v5876_v39  ;;  %v8811_v38 = vld [vmem:[%s11959_s0 + $0x61c] sm:$0xf]  ;;  %v8956_v39 = vld [vmem:[%s11959_s0 + $0x92c] sm:$0xf] }
 0x620   :  { %6917 = vst.msk [vmem:[%s11961_s3 + $0x2ac] sm:$0xf] %vm1699_vm0, %v6868_v36  ;;  %v6718_v42 = vmax.f32 %v6339_v37, %v6631_v32  ;;  %v5259_v37 = vld [vmem:[%s11959_s0 + $0x30c] sm:$0xf] }
 0x621   :  { %5585 = vmatmul.bf16.gmra.mxu0 %v9531_v34  ;;  %5915 = vmatmul.bf16.gmra.mxu1 %v9563_v35 }
 0x622   :  { %v6771_v43 = vadd.f32 %v11514_v52, %v6718_v42  ;;  %6294 = vmatmul.bf16.gmra.mxu2 %v9587_v40  ;;  %6673 = vmatmul.bf16.gmra.mxu3 %v9611_v41  ;;  %v9101_v40 = vld [vmem:[%s11959_s0 + $0xc3c] sm:$0xf]  ;;  %v5373_v42 = vunpack.c.l.b16 %v5259_v37 }
 0x624   :  { %v6820_v45 = vmax.f32 %v6771_v43, 0.0  ;;  %v5751_v43 = vunpack.c.l.b16 %v8811_v38 }
 0x625   :  { %v6255_v46 = vpop.f32.mrf.mxu2  ;;  %v6634_v47 = vpop.f32.mrf.mxu3 }
 0x626   :  { %v6869_v13 = vpack.c.bf16 %v6820_v45, %v6820_v45  ;;  %v6340_v48 = vmax.f32 %v5961_v44, %v6255_v46  ;;  %v5548_v49 = vpop.f32.mrf.mxu0  ;;  %v5878_v50 = vpop.f32.mrf.mxu1  ;;  %v6130_v45 = vunpack.c.l.b16 %v8956_v39  ;;  %v6509_v46 = vunpack.c.l.b16 %v9101_v40 }
 0x627   :  { %v5962_v56 = vmax.f32 %v5548_v49, %v5878_v50  ;;  %v5398_v50 = vpack.c.b16 %v5373_v42, %v5373_v42 }
 0x628   :  { %6918 = vst.msk [vmem:[%s11961_s3 + $0x2b0] sm:$0xf] %vm1699_vm0, %v6869_v13  ;;  %v6719_v51 = vmax.f32 %v6340_v48, %v6634_v47 }
 0x62a   :  { %v6772_v53 = vadd.f32 %v11514_v52, %v6719_v51  ;;  %v5776_v51 = vpack.c.b16 %v5751_v43, %v5751_v43 }
 0x62c   :  { %v6821_v55 = vmax.f32 %v6772_v53, 0.0 }
 0x62d   :  { %v6257_v57 = vpop.f32.mrf.mxu2  ;;  %v6636_v58 = vpop.f32.mrf.mxu3 }
 0x62e   :  { %v6870_v61 = vpack.c.bf16 %v6821_v55, %v6821_v55  ;;  %v6341_v62 = vmax.f32 %v5962_v56, %v6257_v57  ;;  %v5551_v63 = vpop.f32.mrf.mxu0  ;;  %v5881_v0 = vpop.f32.mrf.mxu1 }
 0x62f   :  { %v5963_v5 = vmax.f32 %v5551_v63, %v5881_v0 }
 0x630   :  { %6919 = vst.msk [vmem:[%s11961_s3 + $0x2b4] sm:$0xf] %vm1699_vm0, %v6870_v61  ;;  %v6720_v3 = vmax.f32 %v6341_v62, %v6636_v58  ;;  %v6155_v58 = vpack.c.b16 %v6130_v45, %v6130_v45 }
 0x631   :  { %5590 = vmatmul.bf16.gmra.mxu0 %v9532_v59  ;;  %5920 = vmatmul.bf16.gmra.mxu1 %v9564_v60  ;;  %v6534_v59 = vpack.c.b16 %v6509_v46, %v6509_v46 }
 0x632   :  { %v6773_v4 = vadd.f32 %v11514_v52, %v6720_v3  ;;  %6299 = vmatmul.bf16.gmra.mxu2 %v9588_v1  ;;  %6678 = vmatmul.bf16.gmra.mxu3 %v9612_v2 }
 0x634   :  { %v6822_v6 = vmax.f32 %v6773_v4, 0.0 }
 0x635   :  { %v6260_v7 = vpop.f32.mrf.mxu2  ;;  %v6639_v33 = vpop.f32.mrf.mxu3 }
 0x636   :  { %v6871_v8 = vpack.c.bf16 %v6822_v6, %v6822_v6  ;;  %v6342_v9 = vmax.f32 %v5963_v5, %v6260_v7  ;;  %v5553_v10 = vpop.f32.mrf.mxu0  ;;  %v5883_v11 = vpop.f32.mrf.mxu1 }
 0x637   :  { %v5964_v16 = vmax.f32 %v5553_v10, %v5883_v11 }
 0x638   :  { %6920 = vst.msk [vmem:[%s11961_s3 + $0x2b8] sm:$0xf] %vm1699_vm0, %v6871_v8  ;;  %v6721_v12 = vmax.f32 %v6342_v9, %v6639_v33 }
 0x63a   :  { %v6774_v14 = vadd.f32 %v11514_v52, %v6721_v12 }
 0x63c   :  { %v6823_v15 = vmax.f32 %v6774_v14, 0.0 }
 0x63d   :  { %v6262_v17 = vpop.f32.mrf.mxu2  ;;  %v6641_v18 = vpop.f32.mrf.mxu3 }
 0x63e   :  { %v6872_v21 = vpack.c.bf16 %v6823_v15, %v6823_v15  ;;  %v6343_v22 = vmax.f32 %v5964_v16, %v6262_v17  ;;  %v5556_v23 = vpop.f32.mrf.mxu0  ;;  %v5886_v24 = vpop.f32.mrf.mxu1 }
 0x63f   :  { %v5965_v28 = vmax.f32 %v5556_v23, %v5886_v24 }
 0x640   :  { %6921 = vst.msk [vmem:[%s11961_s3 + $0x2bc] sm:$0xf] %vm1699_vm0, %v6872_v21  ;;  %v6722_v27 = vmax.f32 %v6343_v22, %v6641_v18 }
 0x641   :  { %5595 = vmatmul.bf16.gmra.mxu0 %v9533_v19  ;;  %5925 = vmatmul.bf16.gmra.mxu1 %v9565_v20 }
 0x642   :  { %v6775_v54 = vadd.f32 %v11514_v52, %v6722_v27  ;;  %6304 = vmatmul.bf16.gmra.mxu2 %v9589_v25  ;;  %6683 = vmatmul.bf16.gmra.mxu3 %v9613_v26  ;;  %v11881_v27 = vld [vmem:[%s11960_s2] ss:$0 sm:$0xff] }
 0x644   :  { %v6824_v29 = vmax.f32 %v6775_v54, 0.0 }
 0x645   :  { %v6265_v30 = vpop.f32.mrf.mxu2  ;;  %v6644_v31 = vpop.f32.mrf.mxu3 }
 0x646   :  { %v6873_v32 = vpack.c.bf16 %v6824_v29, %v6824_v29  ;;  %v6344_v34 = vmax.f32 %v5965_v28, %v6265_v30  ;;  %v5558_v35 = vpop.f32.mrf.mxu0  ;;  %v5888_v36 = vpop.f32.mrf.mxu1 }
 0x647   :  { %v5966_v13 = vmax.f32 %v5558_v35, %v5888_v36 }
 0x648   :  { %6922 = vst.msk [vmem:[%s11961_s3 + $0x2c0] sm:$0xf] %vm1699_vm0, %v6873_v32  ;;  %v6723_v41 = vmax.f32 %v6344_v34, %v6644_v31 }
 0x64a   :  { %v6776_v44 = vadd.f32 %v11514_v52, %v6723_v41 }
 0x64c   :  { %v6825_v47 = vmax.f32 %v6776_v44, 0.0 }
 0x64d   :  { %v6267_v48 = vpop.f32.mrf.mxu2  ;;  %v6646_v49 = vpop.f32.mrf.mxu3 }
 0x64e   :  { %v6874_v53 = vpack.c.bf16 %v6825_v47, %v6825_v47  ;;  %v6345_v55 = vmax.f32 %v5966_v13, %v6267_v48  ;;  %v5561_v56 = vpop.f32.mrf.mxu0  ;;  %v5891_v57 = vpop.f32.mrf.mxu1 }
 0x64f   :  { %v5967_v62 = vmax.f32 %v5561_v56, %v5891_v57 }
 0x650   :  { %6923 = vst.msk [vmem:[%s11961_s3 + $0x2c4] sm:$0xf] %vm1699_vm0, %v6874_v53  ;;  %v6724_v60 = vmax.f32 %v6345_v55, %v6646_v49 }
 0x651   :  { %5600 = vmatmul.bf16.gmra.mxu0 %v5398_v50  ;;  %5930 = vmatmul.bf16.gmra.mxu1 %v5776_v51 }
 0x652   :  { %v6777_v61 = vadd.f32 %v11514_v52, %v6724_v60  ;;  %6309 = vmatmul.bf16.gmra.mxu2 %v6155_v58  ;;  %6688 = vmatmul.bf16.gmra.mxu3 %v6534_v59 }
 0x654   :  { %v6826_v63 = vmax.f32 %v6777_v61, 0.0 }
 0x655   :  { %v6270_v0 = vpop.f32.mrf.mxu2  ;;  %v6649_v1 = vpop.f32.mrf.mxu3 }
 0x656   :  { %v6875_v2 = vpack.c.bf16 %v6826_v63, %v6826_v63  ;;  %v6346_v3 = vmax.f32 %v5967_v62, %v6270_v0  ;;  %v5563_v4 = vpop.f32.mrf.mxu0  ;;  %v5893_v5 = vpop.f32.mrf.mxu1 }
 0x657   :  { %v5968_v8 = vmax.f32 %v5563_v4, %v5893_v5 }
 0x658   :  { %6924 = vst.msk [vmem:[%s11961_s3 + $0x2c8] sm:$0xf] %vm1699_vm0, %v6875_v2  ;;  %v6725_v6 = vmax.f32 %v6346_v3, %v6649_v1 }
 0x65a   :  { %v6778_v7 = vadd.f32 %v11514_v52, %v6725_v6 }
 0x65c   :  { %v6827_v33 = vmax.f32 %v6778_v7, 0.0 }
 0x65d   :  { %v6272_v9 = vpop.f32.mrf.mxu2  ;;  %v6651_v10 = vpop.f32.mrf.mxu3 }
 0x65e   :  { %v6876_v11 = vpack.c.bf16 %v6827_v33, %v6827_v33  ;;  %v6347_v12 = vmax.f32 %v5968_v8, %v6272_v9  ;;  %v5566_v14 = vpop.f32.mrf.mxu0  ;;  %v5896_v15 = vpop.f32.mrf.mxu1 }
 0x65f   :  { %v5969_v18 = vmax.f32 %v5566_v14, %v5896_v15 }
 0x660   :  { %6925 = vst.msk [vmem:[%s11961_s3 + $0x2cc] sm:$0xf] %vm1699_vm0, %v6876_v11  ;;  %v6726_v16 = vmax.f32 %v6347_v12, %v6651_v10 }
 0x662   :  { %v6779_v17 = vadd.f32 %v11514_v52, %v6726_v16 }
 0x664   :  { %v6828_v19 = vmax.f32 %v6779_v17, 0.0 }
 0x665   :  { %v6275_v20 = vpop.f32.mrf.mxu2  ;;  %v6654_v21 = vpop.f32.mrf.mxu3 }
 0x666   :  { %v6877_v22 = vpack.c.bf16 %v6828_v19, %v6828_v19  ;;  %v6348_v23 = vmax.f32 %v5969_v18, %v6275_v20  ;;  %v5568_v24 = vpop.f32.mrf.mxu0  ;;  %v5898_v25 = vpop.f32.mrf.mxu1 }
 0x667   :  { %v5970_v28 = vmax.f32 %v5568_v24, %v5898_v25 }
 0x668   :  { %6926 = vst.msk [vmem:[%s11961_s3 + $0x2d0] sm:$0xf] %vm1699_vm0, %v6877_v22  ;;  %v6727_v26 = vmax.f32 %v6348_v23, %v6654_v21 }
 0x66a   :  { %v6780_v52 = vadd.f32 %v11881_v27, %v6727_v26 }
 0x66c   :  { %v6829_v54 = vmax.f32 %v6780_v52, 0.0 }
 0x66d   :  { %v6277_v29 = vpop.f32.mrf.mxu2  ;;  %v6656_v30 = vpop.f32.mrf.mxu3 }
 0x66e   :  { %v6878_v31 = vpack.c.bf16 %v6829_v54, %v6829_v54  ;;  %v6349_v32 = vmax.f32 %v5970_v28, %v6277_v29  ;;  %v5571_v34 = vpop.f32.mrf.mxu0  ;;  %v5901_v35 = vpop.f32.mrf.mxu1 }
 0x66f   :  { %v5971_v38 = vmax.f32 %v5571_v34, %v5901_v35 }
 0x670   :  { %6927 = vst.msk [vmem:[%s11961_s3 + $0x2d4] sm:$0xf] %vm1699_vm0, %v6878_v31  ;;  %v6728_v36 = vmax.f32 %v6349_v32, %v6656_v30 }
 0x672   :  { %v6781_v37 = vadd.f32 %v11881_v27, %v6728_v36 }
 0x674   :  { %v6830_v39 = vmax.f32 %v6781_v37, 0.0 }
 0x675   :  { %v6280_v40 = vpop.f32.mrf.mxu2  ;;  %v6659_v41 = vpop.f32.mrf.mxu3 }
 0x676   :  { %v6879_v42 = vpack.c.bf16 %v6830_v39, %v6830_v39  ;;  %v6350_v43 = vmax.f32 %v5971_v38, %v6280_v40  ;;  %v5573_v44 = vpop.f32.mrf.mxu0  ;;  %v5903_v45 = vpop.f32.mrf.mxu1 }
 0x677   :  { %v5972_v48 = vmax.f32 %v5573_v44, %v5903_v45 }
 0x678   :  { %6928 = vst.msk [vmem:[%s11961_s3 + $0x2d8] sm:$0xf] %vm1699_vm0, %v6879_v42  ;;  %v6729_v46 = vmax.f32 %v6350_v43, %v6659_v41 }
 0x67a   :  { %v6782_v47 = vadd.f32 %v11881_v27, %v6729_v46 }
 0x67c   :  { %v6831_v13 = vmax.f32 %v6782_v47, 0.0 }
 0x67d   :  { %v6282_v49 = vpop.f32.mrf.mxu2  ;;  %v6661_v50 = vpop.f32.mrf.mxu3 }
 0x67e   :  { %v6880_v51 = vpack.c.bf16 %v6831_v13, %v6831_v13  ;;  %v6351_v53 = vmax.f32 %v5972_v48, %v6282_v49  ;;  %v5576_v55 = vpop.f32.mrf.mxu0  ;;  %v5906_v56 = vpop.f32.mrf.mxu1 }
 0x67f   :  { %v5973_v59 = vmax.f32 %v5576_v55, %v5906_v56 }
 0x680   :  { %6929 = vst.msk [vmem:[%s11961_s3 + $0x2dc] sm:$0xf] %vm1699_vm0, %v6880_v51  ;;  %v6730_v57 = vmax.f32 %v6351_v53, %v6661_v50 }
 0x682   :  { %v6783_v58 = vadd.f32 %v11881_v27, %v6730_v57 }
 0x684   :  { %v6832_v60 = vmax.f32 %v6783_v58, 0.0 }
 0x685   :  { %v6285_v61 = vpop.f32.mrf.mxu2  ;;  %v6664_v62 = vpop.f32.mrf.mxu3 }
 0x686   :  { %v6881_v63 = vpack.c.bf16 %v6832_v60, %v6832_v60  ;;  %v6352_v0 = vmax.f32 %v5973_v59, %v6285_v61  ;;  %v5578_v1 = vpop.f32.mrf.mxu0  ;;  %v5908_v2 = vpop.f32.mrf.mxu1 }
 0x687   :  { %v5974_v6 = vmax.f32 %v5578_v1, %v5908_v2 }
 0x688   :  { %6930 = vst.msk [vmem:[%s11961_s3 + $0x2e0] sm:$0xf] %vm1699_vm0, %v6881_v63  ;;  %v6731_v3 = vmax.f32 %v6352_v0, %v6664_v62 }
 0x68a   :  { %v6784_v4 = vadd.f32 %v11881_v27, %v6731_v3 }
 0x68c   :  { %v6833_v5 = vmax.f32 %v6784_v4, 0.0 }
 0x68d   :  { %v6287_v7 = vpop.f32.mrf.mxu2  ;;  %v6666_v33 = vpop.f32.mrf.mxu3 }
 0x68e   :  { %v6882_v8 = vpack.c.bf16 %v6833_v5, %v6833_v5  ;;  %v6353_v9 = vmax.f32 %v5974_v6, %v6287_v7  ;;  %v5581_v10 = vpop.f32.mrf.mxu0  ;;  %v5911_v11 = vpop.f32.mrf.mxu1 }
 0x68f   :  { %v5975_v15 = vmax.f32 %v5581_v10, %v5911_v11 }
 0x690   :  { %6931 = vst.msk [vmem:[%s11961_s3 + $0x2e4] sm:$0xf] %vm1699_vm0, %v6882_v8  ;;  %v6732_v12 = vmax.f32 %v6353_v9, %v6666_v33 }
 0x692   :  { %v6785_v14 = vadd.f32 %v11881_v27, %v6732_v12 }
 0x694   :  { %v6834_v16 = vmax.f32 %v6785_v14, 0.0 }
 0x695   :  { %v6290_v17 = vpop.f32.mrf.mxu2  ;;  %v6669_v18 = vpop.f32.mrf.mxu3 }
 0x696   :  { %v6883_v19 = vpack.c.bf16 %v6834_v16, %v6834_v16  ;;  %v6354_v20 = vmax.f32 %v5975_v15, %v6290_v17  ;;  %v5583_v21 = vpop.f32.mrf.mxu0  ;;  %v5913_v22 = vpop.f32.mrf.mxu1 }
 0x697   :  { %v5976_v26 = vmax.f32 %v5583_v21, %v5913_v22 }
 0x698   :  { %6932 = vst.msk [vmem:[%s11961_s3 + $0x2e8] sm:$0xf] %vm1699_vm0, %v6883_v19  ;;  %v6733_v23 = vmax.f32 %v6354_v20, %v6669_v18 }
 0x69a   :  { %v6786_v24 = vadd.f32 %v11881_v27, %v6733_v23 }
 0x69c   :  { %v6835_v25 = vmax.f32 %v6786_v24, 0.0 }
 0x69d   :  { %v6292_v52 = vpop.f32.mrf.mxu2  ;;  %v6671_v54 = vpop.f32.mrf.mxu3 }
 0x69e   :  { %v6884_v28 = vpack.c.bf16 %v6835_v25, %v6835_v25  ;;  %v6355_v29 = vmax.f32 %v5976_v26, %v6292_v52  ;;  %v5586_v30 = vpop.f32.mrf.mxu0  ;;  %v5916_v31 = vpop.f32.mrf.mxu1 }
 0x69f   :  { %v5977_v35 = vmax.f32 %v5586_v30, %v5916_v31 }
 0x6a0   :  { %6933 = vst.msk [vmem:[%s11961_s3 + $0x2ec] sm:$0xf] %vm1699_vm0, %v6884_v28  ;;  %v6734_v32 = vmax.f32 %v6355_v29, %v6671_v54 }
 0x6a2   :  { %v6787_v34 = vadd.f32 %v11881_v27, %v6734_v32 }
 0x6a4   :  { %v6836_v36 = vmax.f32 %v6787_v34, 0.0 }
 0x6a5   :  { %v6295_v37 = vpop.f32.mrf.mxu2  ;;  %v6674_v38 = vpop.f32.mrf.mxu3 }
 0x6a6   :  { %v6885_v39 = vpack.c.bf16 %v6836_v36, %v6836_v36  ;;  %v6356_v40 = vmax.f32 %v5977_v35, %v6295_v37  ;;  %v5588_v41 = vpop.f32.mrf.mxu0  ;;  %v5918_v42 = vpop.f32.mrf.mxu1 }
 0x6a7   :  { %v5978_v46 = vmax.f32 %v5588_v41, %v5918_v42 }
 0x6a8   :  { %6934 = vst.msk [vmem:[%s11961_s3 + $0x2f0] sm:$0xf] %vm1699_vm0, %v6885_v39  ;;  %v6735_v43 = vmax.f32 %v6356_v40, %v6674_v38 }
 0x6aa   :  { %v6788_v44 = vadd.f32 %v11881_v27, %v6735_v43 }
 0x6ac   :  { %v6837_v45 = vmax.f32 %v6788_v44, 0.0 }
 0x6ad   :  { %v6297_v47 = vpop.f32.mrf.mxu2  ;;  %v6676_v13 = vpop.f32.mrf.mxu3 }
 0x6ae   :  { %v6886_v48 = vpack.c.bf16 %v6837_v45, %v6837_v45  ;;  %v6357_v49 = vmax.f32 %v5978_v46, %v6297_v47  ;;  %v5591_v50 = vpop.f32.mrf.mxu0  ;;  %v5921_v51 = vpop.f32.mrf.mxu1 }
 0x6af   :  { %v5979_v56 = vmax.f32 %v5591_v50, %v5921_v51 }
 0x6b0   :  { %6935 = vst.msk [vmem:[%s11961_s3 + $0x2f4] sm:$0xf] %vm1699_vm0, %v6886_v48  ;;  %v6736_v53 = vmax.f32 %v6357_v49, %v6676_v13 }
 0x6b2   :  { %v6789_v55 = vadd.f32 %v11881_v27, %v6736_v53 }
 0x6b4   :  { %v6838_v57 = vmax.f32 %v6789_v55, 0.0 }
 0x6b5   :  { %v6300_v58 = vpop.f32.mrf.mxu2  ;;  %v6679_v59 = vpop.f32.mrf.mxu3 }
 0x6b6   :  { %v6887_v60 = vpack.c.bf16 %v6838_v57, %v6838_v57  ;;  %v6358_v61 = vmax.f32 %v5979_v56, %v6300_v58  ;;  %v5593_v62 = vpop.f32.mrf.mxu0  ;;  %v5923_v63 = vpop.f32.mrf.mxu1 }
 0x6b7   :  { %v5980_v3 = vmax.f32 %v5593_v62, %v5923_v63 }
 0x6b8   :  { %6936 = vst.msk [vmem:[%s11961_s3 + $0x2f8] sm:$0xf] %vm1699_vm0, %v6887_v60  ;;  %v6737_v0 = vmax.f32 %v6358_v61, %v6679_v59 }
 0x6ba   :  { %v6790_v1 = vadd.f32 %v11881_v27, %v6737_v0 }
 0x6bc   :  { %v6839_v2 = vmax.f32 %v6790_v1, 0.0 }
 0x6bd   :  { %v6302_v4 = vpop.f32.mrf.mxu2  ;;  %v6681_v5 = vpop.f32.mrf.mxu3 }
 0x6be   :  { %v6888_v6 = vpack.c.bf16 %v6839_v2, %v6839_v2  ;;  %v6359_v7 = vmax.f32 %v5980_v3, %v6302_v4  ;;  %v5596_v33 = vpop.f32.mrf.mxu0  ;;  %v5926_v8 = vpop.f32.mrf.mxu1 }
 0x6bf   :  { %v5981_v11 = vmax.f32 %v5596_v33, %v5926_v8 }
 0x6c0   :  { %6937 = vst.msk [vmem:[%s11961_s3 + $0x2fc] sm:$0xf] %vm1699_vm0, %v6888_v6  ;;  %v6738_v9 = vmax.f32 %v6359_v7, %v6681_v5 }
 0x6c2   :  { %v6791_v10 = vadd.f32 %v11881_v27, %v6738_v9 }
 0x6c4   :  { %v6840_v12 = vmax.f32 %v6791_v10, 0.0 }
 0x6c5   :  { %v6305_v14 = vpop.f32.mrf.mxu2  ;;  %v6684_v15 = vpop.f32.mrf.mxu3 }
 0x6c6   :  { %v6889_v16 = vpack.c.bf16 %v6840_v12, %v6840_v12  ;;  %v6360_v17 = vmax.f32 %v5981_v11, %v6305_v14  ;;  %v5598_v18 = vpop.f32.mrf.mxu0  ;;  %v5928_v19 = vpop.f32.mrf.mxu1 }
 0x6c7   :  { %v5982_v23 = vmax.f32 %v5598_v18, %v5928_v19 }
 0x6c8   :  { %6938 = vst.msk [vmem:[%s11961_s3 + $0x300] sm:$0xf] %vm1699_vm0, %v6889_v16  ;;  %v6739_v20 = vmax.f32 %v6360_v17, %v6684_v15 }
 0x6ca   :  { %v6792_v21 = vadd.f32 %v11881_v27, %v6739_v20 }
 0x6cc   :  { %v6841_v22 = vmax.f32 %v6792_v21, 0.0 }
 0x6cd   :  { %v6307_v24 = vpop.f32.mrf.mxu2  ;;  %v6686_v25 = vpop.f32.mrf.mxu3 }
 0x6ce   :  { %v6890_v26 = vpack.c.bf16 %v6841_v22, %v6841_v22  ;;  %v6361_v52 = vmax.f32 %v5982_v23, %v6307_v24  ;;  %v5601_v54 = vpop.f32.mrf.mxu0  ;;  %v5931_v28 = vpop.f32.mrf.mxu1 }
 0x6cf   :  { %v5983_v31 = vmax.f32 %v5601_v54, %v5931_v28 }
 0x6d0   :  { %6939 = vst.msk [vmem:[%s11961_s3 + $0x304] sm:$0xf] %vm1699_vm0, %v6890_v26  ;;  %v6740_v29 = vmax.f32 %v6361_v52, %v6686_v25 }
 0x6d2   :  { %v6793_v30 = vadd.f32 %v11881_v27, %v6740_v29 }
 0x6d4   :  { %v6842_v32 = vmax.f32 %v6793_v30, 0.0 }
 0x6d5   :  { %v6310_v34 = vpop.f32.mrf.mxu2  ;;  %v6689_v35 = vpop.f32.mrf.mxu3 }
 0x6d6   :  { %v6891_v36 = vpack.c.bf16 %v6842_v32, %v6842_v32  ;;  %v6362_v37 = vmax.f32 %v5983_v31, %v6310_v34  ;;  %v5603_v38 = vpop.f32.mrf.mxu0  ;;  %v5933_v39 = vpop.f32.mrf.mxu1 }
 0x6d8   :  { %6940 = vst.msk [vmem:[%s11961_s3 + $0x308] sm:$0xf] %vm1699_vm0, %v6891_v36  ;;  %v6741_v40 = vmax.f32 %v6362_v37, %v6689_v35 }
 0x6da   :  { %v6794_v41 = vadd.f32 %v11881_v27, %v6741_v40 }
 0x6dc   :  { %v6843_v42 = vmax.f32 %v6794_v41, 0.0 }
 0x6dd   :  { %v6312_v43 = vpop.f32.mrf.mxu2  ;;  %v6691_v44 = vpop.f32.mrf.mxu3 }
 0x6de   :  { %v6892_v45 = vpack.c.bf16 %v6843_v42, %v6843_v42 }
 0x6e0   :  { %6941 = vst.msk [vmem:[%s11961_s3 + $0x30c] sm:$0xf] %vm1699_vm0, %v6892_v45 }

// kernel: net_forward.3
= control target key start
LH: loop header
LB: loop body
LE: loop exit
PB: predicated region body
PF: predicated region fallthrough
CT: control target
= control target key end

     0   :  { %s7214_s1 = inlined_call_operand.vmem [shape: bf16[256,128], index: 1, kind: input, shape index: {}]   ;;  %s7215_s0 = inlined_call_operand.vmem [shape: bf16[1,4,200,256], index: 0, kind: input, shape index: {}]   ;;  %s7216_s2 = inlined_call_operand.vmem [shape: f32[1,128], index: 2, kind: input, shape index: {}]   ;;  %s7217_s3 = inlined_call_operand.vmem [shape: bf16[3200,128], index: 3, kind: input, shape index: {}]   ;;  %s7218_s4 = inlined_call_operand.vmem [shape: f32[1,128], index: 4, kind: input, shape index: {}]   ;;  %s7219_s6 = inlined_call_operand.vmem [shape: f32[1,128], index: 6, kind: input, shape index: {}]   ;;  %s7220_s5 = inlined_call_operand.vmem [shape: bf16[128,128], index: 5, kind: input, shape index: {}]   ;;  %s7221_s7 = inlined_call_operand.vmem [shape: bf16[128,128], index: 7, kind: input, shape index: {}]   ;;  %s7222_s8 = inlined_call_operand.vmem [shape: f32[1,128], index: 8, kind: input, shape index: {}]   ;;  %s7223_s9 = inlined_call_operand.vmem [shape: f32[8,128], index: 9, kind: output, shape index: {}]  }
   0x1   :  { %v5406_v0 = vld [vmem:[%s7214_s1 + $0x38] sm:$0xff]  ;;  %v5418_v2 = vld [vmem:[%s7214_s1 + $0x30] sm:$0xff]  ;;  %v5432_v4 = vld [vmem:[%s7214_s1 + $0x28] sm:$0xff] }
   0x2   :  { %v5411_v1 = vld [vmem:[%s7214_s1 + $0x78] sm:$0xff]  ;;  %312 = vmatpush.bf16.msra.mxu0 %v5406_v0  ;;  %v5423_v3 = vld [vmem:[%s7214_s1 + $0x70] sm:$0xff]  ;;  %611 = vmatpush.bf16.msra.mxu2 %v5406_v0  ;;  %v5437_v5 = vld [vmem:[%s7214_s1 + $0x68] sm:$0xff] }
   0x3   :  { %385 = vmatpush.bf16.msra.mxu1 %v5411_v1  ;;  %684 = vmatpush.bf16.msra.mxu3 %v5411_v1  ;;  %v5446_v6 = vld [vmem:[%s7214_s1 + $0x20] sm:$0xff]  ;;  %v5460_v8 = vld [vmem:[%s7214_s1 + $0x18] sm:$0xff]  ;;  %v5474_v10 = vld [vmem:[%s7214_s1 + $0x10] sm:$0xff] }
   0x4   :  { %v5451_v7 = vld [vmem:[%s7214_s1 + $0x60] sm:$0xff]  ;;  %v5465_v9 = vld [vmem:[%s7214_s1 + $0x58] sm:$0xff]  ;;  %v5479_v11 = vld [vmem:[%s7214_s1 + $0x50] sm:$0xff] }
   0x5   :  { %v5488_v12 = vld [vmem:[%s7214_s1 + $0x8] sm:$0xff]  ;;  %v5500_v14 = vld [vmem:[%s7214_s1] sm:$0xff]  ;;  %v5061_v21 = vld [vmem:[%s7215_s0 + $0xcc] sm:$0xf0] }
   0x6   :  { %313 = vmatpush.bf16.msra.mxu0 %v5418_v2  ;;  %612 = vmatpush.bf16.msra.mxu2 %v5418_v2  ;;  %v5493_v13 = vld [vmem:[%s7214_s1 + $0x48] sm:$0xff]  ;;  %v5505_v15 = vld [vmem:[%s7214_s1 + $0x40] sm:$0xff]  ;;  %v3822_v23 = vld [vmem:[%s7215_s0 + $0xd0] sm:$0xf0] }
   0x7   :  { %386 = vmatpush.bf16.msra.mxu1 %v5423_v3  ;;  %685 = vmatpush.bf16.msra.mxu3 %v5423_v3  ;;  %v3635_v16 = vld [vmem:[%s7215_s0] sm:$0xf]  ;;  %v5021_v17 = vld [vmem:[%s7215_s0 + $0x4] sm:$0xf0]  ;;  %v5020_v18 = vld [vmem:[%s7215_s0 + $0x4] sm:$0xf] }
   0x8   :  { %v3637_v19 = vld [vmem:[%s7215_s0 + $0x8] sm:$0xf0]  ;;  %v3820_v20 = vld [vmem:[%s7215_s0 + $0xc8] sm:$0xf]  ;;  %v3636_v24 = vor.u32 %v5021_v17, %v3635_v16  ;;  %v3643_v28 = vld [vmem:[%s7215_s0 + $0x10] sm:$0xf] }
   0x9   :  { %v5060_v22 = vld [vmem:[%s7215_s0 + $0xcc] sm:$0xf]  ;;  %v3640_v25 = vor.u32 %v5020_v18, %v3637_v19  ;;  %v3821_v26 = vor.u32 %v5061_v21, %v3820_v20  ;;  %v5023_v29 = vld [vmem:[%s7215_s0 + $0x14] sm:$0xf0]  ;;  %v5022_v30 = vld [vmem:[%s7215_s0 + $0x14] sm:$0xf] }
   0xa   :  { %314 = vmatpush.bf16.msra.mxu0 %v5432_v4  ;;  %613 = vmatpush.bf16.msra.mxu2 %v5432_v4  ;;  %v3825_v27 = vor.u32 %v5060_v22, %v3822_v23  ;;  %v3645_v31 = vld [vmem:[%s7215_s0 + $0x18] sm:$0xf0]  ;;  %v3828_v32 = vld [vmem:[%s7215_s0 + $0xd8] sm:$0xf]  ;;  %v5063_v33 = vld [vmem:[%s7215_s0 + $0xdc] sm:$0xf0]  ;;  %v3644_v36 = vor.u32 %v5023_v29, %v3643_v28 }
   0xb   :  { %387 = vmatpush.bf16.msra.mxu1 %v5437_v5  ;;  %686 = vmatpush.bf16.msra.mxu3 %v5437_v5  ;;  %v5062_v34 = vld [vmem:[%s7215_s0 + $0xdc] sm:$0xf]  ;;  %v3830_v35 = vld [vmem:[%s7215_s0 + $0xe0] sm:$0xf0]  ;;  %v3648_v37 = vor.u32 %v5022_v30, %v3645_v31  ;;  %v3829_v38 = vor.u32 %v5063_v33, %v3828_v32  ;;  %v3651_v40 = vld [vmem:[%s7215_s0 + $0x20] sm:$0xf] }
   0xc   :  { %v3833_v39 = vor.u32 %v5062_v34, %v3830_v35  ;;  %v5025_v41 = vld [vmem:[%s7215_s0 + $0x24] sm:$0xf0]  ;;  %v5024_v42 = vld [vmem:[%s7215_s0 + $0x24] sm:$0xf]  ;;  %v3653_v43 = vld [vmem:[%s7215_s0 + $0x28] sm:$0xf0] }
   0xd   :  { %v3836_v44 = vld [vmem:[%s7215_s0 + $0xe8] sm:$0xf]  ;;  %v5065_v45 = vld [vmem:[%s7215_s0 + $0xec] sm:$0xf0]  ;;  %v5064_v46 = vld [vmem:[%s7215_s0 + $0xec] sm:$0xf]  ;;  %v3652_v48 = vor.u32 %v5025_v41, %v3651_v40  ;;  %v3656_v49 = vor.u32 %v5024_v42, %v3653_v43 }
   0xe   :  { %315 = vmatpush.bf16.msra.mxu0 %v5446_v6  ;;  %614 = vmatpush.bf16.msra.mxu2 %v5446_v6  ;;  %v3838_v47 = vld [vmem:[%s7215_s0 + $0xf0] sm:$0xf0]  ;;  %v3837_v50 = vor.u32 %v5065_v45, %v3836_v44  ;;  %v3659_v52 = vld [vmem:[%s7215_s0 + $0x30] sm:$0xf]  ;;  %v5027_v53 = vld [vmem:[%s7215_s0 + $0x34] sm:$0xf0] }
   0xf   :  { %388 = vmatpush.bf16.msra.mxu1 %v5451_v7  ;;  %687 = vmatpush.bf16.msra.mxu3 %v5451_v7  ;;  %v3841_v51 = vor.u32 %v5064_v46, %v3838_v47  ;;  %v5026_v54 = vld [vmem:[%s7215_s0 + $0x34] sm:$0xf]  ;;  %v3661_v55 = vld [vmem:[%s7215_s0 + $0x38] sm:$0xf0]  ;;  %v3844_v56 = vld [vmem:[%s7215_s0 + $0xf8] sm:$0xf]  ;;  %v3660_v60 = vor.u32 %v5027_v53, %v3659_v52 }
  0x10   :  { %v5067_v57 = vld [vmem:[%s7215_s0 + $0xfc] sm:$0xf0]  ;;  %v5066_v58 = vld [vmem:[%s7215_s0 + $0xfc] sm:$0xf]  ;;  %v3846_v59 = vld [vmem:[%s7215_s0 + $0x100] sm:$0xf0]  ;;  %v3664_v61 = vor.u32 %v5026_v54, %v3661_v55 }
  0x11   :  { %v3845_v62 = vor.u32 %v5067_v57, %v3844_v56  ;;  %v3849_v63 = vor.u32 %v5066_v58, %v3846_v59  ;;  %v3860_v16 = vld [vmem:[%s7215_s0 + $0x118] sm:$0xf]  ;;  %v5071_v17 = vld [vmem:[%s7215_s0 + $0x11c] sm:$0xf0]  ;;  %v5070_v18 = vld [vmem:[%s7215_s0 + $0x11c] sm:$0xf] }
  0x12   :  { %316 = vmatpush.bf16.msra.mxu0 %v5460_v8  ;;  %615 = vmatpush.bf16.msra.mxu2 %v5460_v8  ;;  %v3862_v19 = vld [vmem:[%s7215_s0 + $0x120] sm:$0xf0]  ;;  %v3861_v22 = vor.u32 %v5071_v17, %v3860_v16  ;;  %v3868_v28 = vld [vmem:[%s7215_s0 + $0x128] sm:$0xf]  ;;  %v5073_v29 = vld [vmem:[%s7215_s0 + $0x12c] sm:$0xf0] }
  0x13   :  { %389 = vmatpush.bf16.msra.mxu1 %v5465_v9  ;;  %688 = vmatpush.bf16.msra.mxu3 %v5465_v9  ;;  %v3865_v23 = vor.u32 %v5070_v18, %v3862_v19  ;;  %v5072_v30 = vld [vmem:[%s7215_s0 + $0x12c] sm:$0xf]  ;;  %v3870_v31 = vld [vmem:[%s7215_s0 + $0x130] sm:$0xf0]  ;;  %v3869_v34 = vor.u32 %v5073_v29, %v3868_v28  ;;  %v3876_v40 = vld [vmem:[%s7215_s0 + $0x138] sm:$0xf] }
  0x14   :  { %v3873_v35 = vor.u32 %v5072_v30, %v3870_v31  ;;  %v5075_v41 = vld [vmem:[%s7215_s0 + $0x13c] sm:$0xf0]  ;;  %v5074_v42 = vld [vmem:[%s7215_s0 + $0x13c] sm:$0xf]  ;;  %v3878_v43 = vld [vmem:[%s7215_s0 + $0x140] sm:$0xf0] }
  0x15   :  { %v3877_v46 = vor.u32 %v5075_v41, %v3876_v40  ;;  %v3881_v47 = vor.u32 %v5074_v42, %v3878_v43  ;;  %v3884_v52 = vld [vmem:[%s7215_s0 + $0x148] sm:$0xf]  ;;  %v5077_v53 = vld [vmem:[%s7215_s0 + $0x14c] sm:$0xf0]  ;;  %v5076_v54 = vld [vmem:[%s7215_s0 + $0x14c] sm:$0xf] }
  0x16   :  { %317 = vmatpush.bf16.msra.mxu0 %v5474_v10  ;;  %616 = vmatpush.bf16.msra.mxu2 %v5474_v10  ;;  %v3886_v55 = vld [vmem:[%s7215_s0 + $0x150] sm:$0xf0] }
  0x17   :  { %390 = vmatpush.bf16.msra.mxu1 %v5479_v11  ;;  %689 = vmatpush.bf16.msra.mxu3 %v5479_v11 }
  0x1a   :  { %318 = vmatpush.bf16.msra.mxu0 %v5488_v12  ;;  %617 = vmatpush.bf16.msra.mxu2 %v5488_v12 }
  0x1b   :  { %391 = vmatpush.bf16.msra.mxu1 %v5493_v13  ;;  %690 = vmatpush.bf16.msra.mxu3 %v5493_v13 }
  0x1e   :  { %319 = vmatpush.bf16.msra.mxu0 %v5500_v14  ;;  %618 = vmatpush.bf16.msra.mxu2 %v5500_v14 }
  0x1f   :  { %392 = vmatpush.bf16.msra.mxu1 %v5505_v15  ;;  %691 = vmatpush.bf16.msra.mxu3 %v5505_v15 }
  0x21   :  { %320 = vmatmul.bf16.vlgmr.msra.gmra.mxu0 %v3636_v24  ;;  %619 = vmatmul.bf16.vlgmr.msra.gmra.mxu2 %v3821_v26  ;;  %v3683_v24 = vld [vmem:[%s7215_s0 + $0x60] sm:$0xf]  ;;  %v5032_v26 = vld [vmem:[%s7215_s0 + $0x64] sm:$0xf] }
  0x22   :  { %1259 = vmatpush.bf16.msrb.mxu2 %v5406_v0  ;;  %393 = vmatmul.bf16.vlgmr.msra.gmra.mxu1 %v3640_v25  ;;  %v5033_v25 = vld [vmem:[%s7215_s0 + $0x64] sm:$0xf0] }
  0x23   :  { %1332 = vmatpush.bf16.msrb.mxu3 %v5411_v1  ;;  %935 = vmatpush.bf16.msrb.mxu0 %v5406_v0  ;;  %v3667_v0 = vld [vmem:[%s7215_s0 + $0x40] sm:$0xf]  ;;  %v3684_v32 = vor.u32 %v5033_v25, %v3683_v24 }
  0x24   :  { %692 = vmatmul.bf16.vlgmr.msra.gmra.mxu3 %v3825_v27  ;;  %1008 = vmatpush.bf16.msrb.mxu1 %v5411_v1  ;;  %v5029_v1 = vld [vmem:[%s7215_s0 + $0x44] sm:$0xf0]  ;;  %v3685_v27 = vld [vmem:[%s7215_s0 + $0x68] sm:$0xf0] }
  0x25   :  { %v3688_v33 = vor.u32 %v5032_v26, %v3685_v27 }
  0x26   :  { %1260 = vmatpush.bf16.msrb.mxu2 %v5418_v2 }
  0x27   :  { %1333 = vmatpush.bf16.msrb.mxu3 %v5423_v3  ;;  %936 = vmatpush.bf16.msrb.mxu0 %v5418_v2  ;;  %v5028_v2 = vld [vmem:[%s7215_s0 + $0x44] sm:$0xf] }
  0x28   :  { %1009 = vmatpush.bf16.msrb.mxu1 %v5423_v3  ;;  %v3669_v3 = vld [vmem:[%s7215_s0 + $0x48] sm:$0xf0] }
  0x2a   :  { %1261 = vmatpush.bf16.msrb.mxu2 %v5432_v4 }
  0x2b   :  { %1334 = vmatpush.bf16.msrb.mxu3 %v5437_v5  ;;  %937 = vmatpush.bf16.msrb.mxu0 %v5432_v4  ;;  %v3852_v4 = vld [vmem:[%s7215_s0 + $0x108] sm:$0xf] }
  0x2c   :  { %1010 = vmatpush.bf16.msrb.mxu1 %v5437_v5  ;;  %v5069_v5 = vld [vmem:[%s7215_s0 + $0x10c] sm:$0xf0] }
  0x2e   :  { %1262 = vmatpush.bf16.msrb.mxu2 %v5446_v6 }
  0x2f   :  { %1335 = vmatpush.bf16.msrb.mxu3 %v5451_v7  ;;  %938 = vmatpush.bf16.msrb.mxu0 %v5446_v6  ;;  %v5068_v6 = vld [vmem:[%s7215_s0 + $0x10c] sm:$0xf] }
  0x30   :  { %1011 = vmatpush.bf16.msrb.mxu1 %v5451_v7  ;;  %v3854_v7 = vld [vmem:[%s7215_s0 + $0x110] sm:$0xf0] }
  0x31   :  { %325 = vmatmul.bf16.gmra.mxu0 %v3644_v36  ;;  %624 = vmatmul.bf16.gmra.mxu2 %v3829_v38  ;;  %v3691_v36 = vld [vmem:[%s7215_s0 + $0x70] sm:$0xf]  ;;  %v5034_v38 = vld [vmem:[%s7215_s0 + $0x74] sm:$0xf] }
  0x32   :  { %1263 = vmatpush.bf16.msrb.mxu2 %v5460_v8  ;;  %398 = vmatmul.bf16.gmra.mxu1 %v3648_v37  ;;  %v5035_v37 = vld [vmem:[%s7215_s0 + $0x74] sm:$0xf0] }
  0x33   :  { %1336 = vmatpush.bf16.msrb.mxu3 %v5465_v9  ;;  %939 = vmatpush.bf16.msrb.mxu0 %v5460_v8  ;;  %v3668_v8 = vor.u32 %v5029_v1, %v3667_v0  ;;  %v3692_v44 = vor.u32 %v5035_v37, %v3691_v36  ;;  %v3900_v36 = vld [vmem:[%s7215_s0 + $0x168] sm:$0xf]  ;;  %v5081_v37 = vld [vmem:[%s7215_s0 + $0x16c] sm:$0xf0] }
  0x34   :  { %697 = vmatmul.bf16.gmra.mxu3 %v3833_v39  ;;  %1012 = vmatpush.bf16.msrb.mxu1 %v5465_v9  ;;  %v3672_v9 = vor.u32 %v5028_v2, %v3669_v3  ;;  %v3693_v39 = vld [vmem:[%s7215_s0 + $0x78] sm:$0xf0] }
  0x35   :  { %v3696_v45 = vor.u32 %v5034_v38, %v3693_v39  ;;  %v5080_v38 = vld [vmem:[%s7215_s0 + $0x16c] sm:$0xf]  ;;  %v3902_v39 = vld [vmem:[%s7215_s0 + $0x170] sm:$0xf0] }
  0x36   :  { %1264 = vmatpush.bf16.msrb.mxu2 %v5474_v10 }
  0x37   :  { %1337 = vmatpush.bf16.msrb.mxu3 %v5479_v11  ;;  %940 = vmatpush.bf16.msrb.mxu0 %v5474_v10  ;;  %v3853_v10 = vor.u32 %v5069_v5, %v3852_v4 }
  0x38   :  { %1013 = vmatpush.bf16.msrb.mxu1 %v5479_v11  ;;  %v3857_v11 = vor.u32 %v5068_v6, %v3854_v7  ;;  %v3707_v6 = vld [vmem:[%s7215_s0 + $0x90] sm:$0xf]  ;;  %v5039_v7 = vld [vmem:[%s7215_s0 + $0x94] sm:$0xf0] }
  0x39   :  { %v3708_v16 = vor.u32 %v5039_v7, %v3707_v6 }
  0x3a   :  { %1265 = vmatpush.bf16.msrb.mxu2 %v5488_v12 }
  0x3b   :  { %1338 = vmatpush.bf16.msrb.mxu3 %v5493_v13  ;;  %941 = vmatpush.bf16.msrb.mxu0 %v5488_v12  ;;  %v3675_v12 = vld [vmem:[%s7215_s0 + $0x50] sm:$0xf] }
  0x3c   :  { %1014 = vmatpush.bf16.msrb.mxu1 %v5493_v13  ;;  %v5031_v13 = vld [vmem:[%s7215_s0 + $0x54] sm:$0xf0] }
  0x3d   :  { %v3676_v20 = vor.u32 %v5031_v13, %v3675_v12  ;;  %v5078_v12 = vld [vmem:[%s7215_s0 + $0x15c] sm:$0xf]  ;;  %v3894_v13 = vld [vmem:[%s7215_s0 + $0x160] sm:$0xf0] }
  0x3e   :  { %1266 = vmatpush.bf16.msrb.mxu2 %v5500_v14 }
  0x3f   :  { %1339 = vmatpush.bf16.msrb.mxu3 %v5505_v15  ;;  %942 = vmatpush.bf16.msrb.mxu0 %v5500_v14  ;;  %v5030_v14 = vld [vmem:[%s7215_s0 + $0x54] sm:$0xf] }
  0x40   :  { %1015 = vmatpush.bf16.msrb.mxu1 %v5505_v15  ;;  %v3677_v15 = vld [vmem:[%s7215_s0 + $0x58] sm:$0xf0] }
  0x41   :  { %330 = vmatmul.bf16.gmra.mxu0 %v3652_v48  ;;  %629 = vmatmul.bf16.gmra.mxu2 %v3837_v50  ;;  %v3680_v21 = vor.u32 %v5030_v14, %v3677_v15  ;;  %v3699_v48 = vld [vmem:[%s7215_s0 + $0x80] sm:$0xf]  ;;  %v5036_v50 = vld [vmem:[%s7215_s0 + $0x84] sm:$0xf] }
  0x42   :  { %403 = vmatmul.bf16.gmra.mxu1 %v3656_v49  ;;  %v5037_v49 = vld [vmem:[%s7215_s0 + $0x84] sm:$0xf0] }
  0x43   :  { %v3700_v56 = vor.u32 %v5037_v49, %v3699_v48  ;;  %v3905_v48 = vor.u32 %v5080_v38, %v3902_v39 }
  0x44   :  { %702 = vmatmul.bf16.gmra.mxu3 %v3841_v51  ;;  %v3701_v51 = vld [vmem:[%s7215_s0 + $0x88] sm:$0xf0] }
  0x45   :  { %v3704_v57 = vor.u32 %v5036_v50, %v3701_v51 }
  0x51   :  { %335 = vmatmul.bf16.gmra.mxu0 %v3660_v60  ;;  %634 = vmatmul.bf16.gmra.mxu2 %v3845_v62  ;;  %v3885_v60 = vor.u32 %v5077_v53, %v3884_v52 }
  0x52   :  { %408 = vmatmul.bf16.gmra.mxu1 %v3664_v61  ;;  %v3889_v61 = vor.u32 %v5076_v54, %v3886_v55 }
  0x54   :  { %707 = vmatmul.bf16.gmra.mxu3 %v3849_v63 }
  0x61   :  { %340 = vmatmul.bf16.gmra.mxu0 %v3668_v8  ;;  %639 = vmatmul.bf16.gmra.mxu2 %v3853_v10  ;;  %v5038_v8 = vld [vmem:[%s7215_s0 + $0x94] sm:$0xf]  ;;  %v3892_v10 = vld [vmem:[%s7215_s0 + $0x158] sm:$0xf] }
  0x62   :  { %413 = vmatmul.bf16.gmra.mxu1 %v3672_v9  ;;  %v3709_v9 = vld [vmem:[%s7215_s0 + $0x98] sm:$0xf0] }
  0x63   :  { %v3712_v17 = vor.u32 %v5038_v8, %v3709_v9 }
  0x64   :  { %712 = vmatmul.bf16.gmra.mxu3 %v3857_v11  ;;  %v5079_v11 = vld [vmem:[%s7215_s0 + $0x15c] sm:$0xf0] }
  0x71   :  { %345 = vmatmul.bf16.gmra.mxu0 %v3676_v20  ;;  %644 = vmatmul.bf16.gmra.mxu2 %v3861_v22  ;;  %v3897_v22 = vor.u32 %v5078_v12, %v3894_v13 }
  0x72   :  { %418 = vmatmul.bf16.gmra.mxu1 %v3680_v21  ;;  %v3893_v21 = vor.u32 %v5079_v11, %v3892_v10 }
  0x74   :  { %717 = vmatmul.bf16.gmra.mxu3 %v3865_v23 }
  0x81   :  { %350 = vmatmul.bf16.gmra.mxu0 %v3684_v32  ;;  %649 = vmatmul.bf16.gmra.mxu2 %v3869_v34  ;;  %v3715_v32 = vld [vmem:[%s7215_s0 + $0xa0] sm:$0xf]  ;;  %v5040_v34 = vld [vmem:[%s7215_s0 + $0xa4] sm:$0xf] }
  0x82   :  { %423 = vmatmul.bf16.gmra.mxu1 %v3688_v33  ;;  %v5041_v33 = vld [vmem:[%s7215_s0 + $0xa4] sm:$0xf0] }
  0x83   :  { %v3716_v42 = vor.u32 %v5041_v33, %v3715_v32 }
  0x84   :  { %722 = vmatmul.bf16.gmra.mxu3 %v3873_v35  ;;  %v3717_v35 = vld [vmem:[%s7215_s0 + $0xa8] sm:$0xf0] }
  0x85   :  { %v3720_v43 = vor.u32 %v5040_v34, %v3717_v35 }
  0x91   :  { %355 = vmatmul.bf16.gmra.mxu0 %v3692_v44  ;;  %654 = vmatmul.bf16.gmra.mxu2 %v3877_v46 }
  0x92   :  { %428 = vmatmul.bf16.gmra.mxu1 %v3696_v45 }
  0x94   :  { %727 = vmatmul.bf16.gmra.mxu3 %v3881_v47  ;;  %v3901_v47 = vor.u32 %v5081_v37, %v3900_v36 }
  0x9e   :  { %v321_v58 = vpop.f32.mrf.mxu0 }
  0x9f   :  { %v394_v59 = vpop.f32.mrf.mxu1 }
  0xa0   :  { %v5763_v62 = vadd.f32 %v394_v59, %v321_v58  ;;  %v3723_v58 = vld [vmem:[%s7215_s0 + $0xb0] sm:$0xf]  ;;  %v5043_v59 = vld [vmem:[%s7215_s0 + $0xb4] sm:$0xf0] }
  0xa1   :  { %360 = vmatmul.bf16.gmra.mxu0 %v3700_v56  ;;  %659 = vmatmul.bf16.gmra.mxu2 %v3885_v60  ;;  %v5042_v60 = vld [vmem:[%s7215_s0 + $0xb4] sm:$0xf]  ;;  %v3724_v8 = vor.u32 %v5043_v59, %v3723_v58 }
  0xa2   :  { %433 = vmatmul.bf16.gmra.mxu1 %v3704_v57 }
  0xa4   :  { %732 = vmatmul.bf16.gmra.mxu3 %v3889_v61  ;;  %v620_v63 = vpop.f32.mrf.mxu2  ;;  %v3725_v61 = vld [vmem:[%s7215_s0 + $0xb8] sm:$0xf0] }
  0xa5   :  { %v3728_v9 = vor.u32 %v5042_v60, %v3725_v61  ;;  %v3941_v60 = vld [vmem:[%s7215_s0 + $0x190] sm:$0xf]  ;;  %v5085_v61 = vld [vmem:[%s7215_s0 + $0x194] sm:$0xf0] }
  0xa6   :  { %v323_v2 = vpop.f32.mrf.mxu0 }
  0xa7   :  { %v693_v0 = vpop.f32.mrf.mxu3  ;;  %v396_v3 = vpop.f32.mrf.mxu1 }
  0xa8   :  { %v5765_v1 = vadd.f32 %v693_v0, %v620_v63  ;;  %v5767_v4 = vadd.f32 %v396_v3, %v323_v2  ;;  %v3908_v63 = vld [vmem:[%s7215_s0 + $0x178] sm:$0xf]  ;;  %v5083_v0 = vld [vmem:[%s7215_s0 + $0x17c] sm:$0xf0]  ;;  %v5082_v2 = vld [vmem:[%s7215_s0 + $0x17c] sm:$0xf] }
  0xa9   :  { %v3910_v3 = vld [vmem:[%s7215_s0 + $0x180] sm:$0xf0]  ;;  %v3909_v13 = vor.u32 %v5083_v0, %v3908_v63  ;;  %v5084_v63 = vld [vmem:[%s7215_s0 + $0x194] sm:$0xf]  ;;  %v3943_v0 = vld [vmem:[%s7215_s0 + $0x198] sm:$0xf0] }
  0xac   :  { %v622_v14 = vpop.f32.mrf.mxu2 }
  0xae   :  { %v326_v19 = vpop.f32.mrf.mxu0 }
  0xaf   :  { %v695_v15 = vpop.f32.mrf.mxu3  ;;  %v399_v20 = vpop.f32.mrf.mxu1 }
  0xb0   :  { %v5795_v18 = vadd.f32 %v695_v15, %v622_v14  ;;  %v5797_v23 = vadd.f32 %v399_v20, %v326_v19  ;;  %v3913_v14 = vor.u32 %v5082_v2, %v3910_v3  ;;  %v4062_v2 = vld [vmem:[%s7215_s0 + $0x258] sm:$0xf]  ;;  %v5109_v3 = vld [vmem:[%s7215_s0 + $0x25c] sm:$0xf0] }
  0xb1   :  { %365 = vmatmul.bf16.gmra.mxu0 %v3708_v16  ;;  %664 = vmatmul.bf16.gmra.mxu2 %v3893_v21  ;;  %v5153_v16 = vld [vmem:[%s7217_s3 + $0xa8] sm:$0xff] }
  0xb2   :  { %438 = vmatmul.bf16.gmra.mxu1 %v3712_v17 }
  0xb4   :  { %737 = vmatmul.bf16.gmra.mxu3 %v3897_v22  ;;  %v625_v25 = vpop.f32.mrf.mxu2 }
  0xb6   :  { %v328_v28 = vpop.f32.mrf.mxu0 }
  0xb7   :  { %v698_v26 = vpop.f32.mrf.mxu3  ;;  %v401_v29 = vpop.f32.mrf.mxu1 }
  0xb8   :  { %v5801_v27 = vadd.f32 %v698_v26, %v625_v25  ;;  %v5803_v30 = vadd.f32 %v401_v29, %v328_v28  ;;  %v56_v25 = vld [vmem:[%s7215_s0 + $0xc0] sm:$0xff]  ;;  %v3817_v28 = vld [vmem:[%s7215_s0 + $0x188] sm:$0xff] }
  0xb9   :  { %v162_v32 = vunpack.c.l.b16 %v56_v25  ;;  %v163_v33 = vunpack.c.h.b16 %v56_v25  ;;  %v557_v34 = vunpack.c.l.b16 %v3817_v28  ;;  %v558_v35 = vunpack.c.h.b16 %v3817_v28 }
  0xbb   :  { %v188_v38 = vpack.c.b16 %v162_v32, %v162_v32  ;;  %v189_v39 = vpack.c.b16 %v163_v33, %v163_v33 }
  0xbc   :  { %v627_v40 = vpop.f32.mrf.mxu2 }
  0xbe   :  { %v331_v45 = vpop.f32.mrf.mxu0 }
  0xbf   :  { %v700_v41 = vpop.f32.mrf.mxu3  ;;  %v404_v46 = vpop.f32.mrf.mxu1 }
  0xc0   :  { %v5831_v44 = vadd.f32 %v700_v41, %v627_v40  ;;  %v5833_v49 = vadd.f32 %v404_v46, %v331_v45  ;;  %v584_v45 = vpack.c.b16 %v558_v35, %v558_v35 }
  0xc1   :  { %370 = vmatmul.bf16.gmra.mxu0 %v3716_v42  ;;  %669 = vmatmul.bf16.gmra.mxu2 %v3901_v47 }
  0xc2   :  { %443 = vmatmul.bf16.gmra.mxu1 %v3720_v43  ;;  %v583_v43 = vpack.c.b16 %v557_v34, %v557_v34 }
  0xc4   :  { %742 = vmatmul.bf16.gmra.mxu3 %v3905_v48  ;;  %v630_v51 = vpop.f32.mrf.mxu2 }
  0xc6   :  { %v333_v54 = vpop.f32.mrf.mxu0 }
  0xc7   :  { %v703_v52 = vpop.f32.mrf.mxu3  ;;  %v406_v55 = vpop.f32.mrf.mxu1 }
  0xc8   :  { %v5837_v53 = vadd.f32 %v703_v52, %v630_v51  ;;  %v5839_v56 = vadd.f32 %v406_v55, %v333_v54 }
  0xcc   :  { %v632_v6 = vpop.f32.mrf.mxu2 }
  0xce   :  { %v336_v11 = vpop.f32.mrf.mxu0 }
  0xcf   :  { %v705_v7 = vpop.f32.mrf.mxu3  ;;  %v409_v12 = vpop.f32.mrf.mxu1 }
  0xd0   :  { %v5867_v10 = vadd.f32 %v705_v7, %v632_v6  ;;  %v5869_v15 = vadd.f32 %v409_v12, %v336_v11  ;;  %v5108_v6 = vld [vmem:[%s7215_s0 + $0x25c] sm:$0xf]  ;;  %v4064_v7 = vld [vmem:[%s7215_s0 + $0x260] sm:$0xf0]  ;;  %v3942_v11 = vor.u32 %v5085_v61, %v3941_v60  ;;  %v3946_v12 = vor.u32 %v5084_v63, %v3943_v0 }
  0xd1   :  { %375 = vmatmul.bf16.gmra.mxu0 %v3724_v8  ;;  %674 = vmatmul.bf16.gmra.mxu2 %v3909_v13 }
  0xd2   :  { %448 = vmatmul.bf16.gmra.mxu1 %v3728_v9 }
  0xd4   :  { %747 = vmatmul.bf16.gmra.mxu3 %v3913_v14  ;;  %v635_v17 = vpop.f32.mrf.mxu2 }
  0xd6   :  { %v338_v21 = vpop.f32.mrf.mxu0 }
  0xd7   :  { %v708_v19 = vpop.f32.mrf.mxu3  ;;  %v411_v22 = vpop.f32.mrf.mxu1 }
  0xd8   :  { %v5873_v20 = vadd.f32 %v708_v19, %v635_v17  ;;  %v5878_v26 = vadd.f32 %v411_v22, %v338_v21  ;;  %v4063_v19 = vor.u32 %v5109_v3, %v4062_v2  ;;  %v4067_v21 = vor.u32 %v5108_v6, %v4064_v7 }
  0xdc   :  { %v637_v36 = vpop.f32.mrf.mxu2 }
  0xde   :  { %v341_v41 = vpop.f32.mrf.mxu0 }
  0xdf   :  { %v710_v37 = vpop.f32.mrf.mxu3  ;;  %v414_v42 = vpop.f32.mrf.mxu1 }
  0xe0   :  { %v5885_v40 = vadd.f32 %v710_v37, %v637_v36  ;;  %v5887_v46 = vadd.f32 %v414_v42, %v341_v41  ;;  %v5086_v41 = vld [vmem:[%s7215_s0 + $0x1a4] sm:$0xf]  ;;  %v3951_v42 = vld [vmem:[%s7215_s0 + $0x1a8] sm:$0xf0] }
  0xe1   :  { %380 = vmatmul.bf16.gmra.mxu0 %v188_v38  ;;  %679 = vmatmul.bf16.gmra.mxu2 %v583_v43  ;;  %v3949_v38 = vld [vmem:[%s7215_s0 + $0x1a0] sm:$0xf]  ;;  %v4070_v43 = vld [vmem:[%s7215_s0 + $0x268] sm:$0xf]  ;;  %v3954_v61 = vor.u32 %v5086_v41, %v3951_v42  ;;  %v4078_v41 = vld [vmem:[%s7215_s0 + $0x278] sm:$0xf] }
  0xe2   :  { %453 = vmatmul.bf16.gmra.mxu1 %v189_v39  ;;  %v5087_v39 = vld [vmem:[%s7215_s0 + $0x1a4] sm:$0xf0]  ;;  %v5113_v42 = vld [vmem:[%s7215_s0 + $0x27c] sm:$0xf0] }
  0xe3   :  { %v3950_v60 = vor.u32 %v5087_v39, %v3949_v38  ;;  %v5088_v38 = vld [vmem:[%s7215_s0 + $0x1b4] sm:$0xf]  ;;  %v3959_v39 = vld [vmem:[%s7215_s0 + $0x1b8] sm:$0xf0] }
  0xe4   :  { %752 = vmatmul.bf16.gmra.mxu3 %v584_v45  ;;  %v640_v48 = vpop.f32.mrf.mxu2  ;;  %v5111_v45 = vld [vmem:[%s7215_s0 + $0x26c] sm:$0xf0] }
  0xe5   :  { %v4071_v3 = vor.u32 %v5111_v45, %v4070_v43  ;;  %v5112_v43 = vld [vmem:[%s7215_s0 + $0x27c] sm:$0xf]  ;;  %v4080_v45 = vld [vmem:[%s7215_s0 + $0x280] sm:$0xf0] }
  0xe6   :  { %v343_v54 = vpop.f32.mrf.mxu0 }
  0xe7   :  { %v713_v51 = vpop.f32.mrf.mxu3  ;;  %v416_v55 = vpop.f32.mrf.mxu1 }
  0xe8   :  { %v5891_v52 = vadd.f32 %v713_v51, %v640_v48  ;;  %v5893_v58 = vadd.f32 %v416_v55, %v343_v54  ;;  %v5110_v48 = vld [vmem:[%s7215_s0 + $0x26c] sm:$0xf]  ;;  %v4072_v51 = vld [vmem:[%s7215_s0 + $0x270] sm:$0xf0] }
  0xe9   :  { %v4075_v6 = vor.u32 %v5110_v48, %v4072_v51 }
  0xec   :  { %v642_v8 = vpop.f32.mrf.mxu2 }
  0xee   :  { %v346_v14 = vpop.f32.mrf.mxu0 }
  0xef   :  { %v715_v9 = vpop.f32.mrf.mxu3  ;;  %v419_v17 = vpop.f32.mrf.mxu1 }
  0xf0   :  { %v5921_v13 = vadd.f32 %v715_v9, %v642_v8  ;;  %v5923_v22 = vadd.f32 %v419_v17, %v346_v14 }
  0xf1   :  { %943 = vmatmul.bf16.vlgmr.msrb.gmra.mxu0 %v3942_v11  ;;  %1267 = vmatmul.bf16.vlgmr.msrb.gmra.mxu2 %v4063_v19 }
  0xf2   :  { %1016 = vmatmul.bf16.vlgmr.msrb.gmra.mxu1 %v3946_v12 }
  0xf4   :  { %1340 = vmatmul.bf16.vlgmr.msrb.gmra.mxu3 %v4067_v21  ;;  %v645_v28 = vpop.f32.mrf.mxu2 }
  0xf6   :  { %v348_v34 = vpop.f32.mrf.mxu0 }
  0xf7   :  { %v718_v32 = vpop.f32.mrf.mxu3  ;;  %v421_v35 = vpop.f32.mrf.mxu1 }
  0xf8   :  { %v5927_v33 = vadd.f32 %v718_v32, %v645_v28  ;;  %v5929_v36 = vadd.f32 %v421_v35, %v348_v34  ;;  %v5147_v28 = vld [vmem:[%s7217_s3 + $0x78] sm:$0xff]  ;;  %v3957_v34 = vld [vmem:[%s7215_s0 + $0x1b0] sm:$0xf] }
  0xf9   :  { %v5155_v32 = vld [vmem:[%s7217_s3 + $0xb8] sm:$0xff]  ;;  %1566 = vmatpush.bf16.msra.mxu0 %v5147_v28 }
  0xfa   :  { %7252 = vst [vmem:[#allocation2_spill] sm:$0xff] %v5929_v36  ;;  %v5089_v35 = vld [vmem:[%s7215_s0 + $0x1b4] sm:$0xf0]  ;;  %1705 = vmatpush.bf16.msra.mxu2 %v5155_v32 }
  0xfc   :  { %v647_v54 = vpop.f32.mrf.mxu2 }
  0xfe   :  { %v351_v0 = vpop.f32.mrf.mxu0 }
  0xff   :  { %v720_v55 = vpop.f32.mrf.mxu3  ;;  %v424_v2 = vpop.f32.mrf.mxu1 }
 0x100   :  { %v5957_v63 = vadd.f32 %v720_v55, %v647_v54  ;;  %v5959_v7 = vadd.f32 %v424_v2, %v351_v0  ;;  %v3958_v54 = vor.u32 %v5089_v35, %v3957_v34  ;;  %v3962_v55 = vor.u32 %v5088_v38, %v3959_v39 }
 0x101   :  { %948 = vmatmul.bf16.gmra.mxu0 %v3950_v60  ;;  %1272 = vmatmul.bf16.gmra.mxu2 %v4071_v3  ;;  %v4079_v2 = vor.u32 %v5113_v42, %v4078_v41  ;;  %v4083_v3 = vor.u32 %v5112_v43, %v4080_v45  ;;  %v3965_v41 = vld [vmem:[%s7215_s0 + $0x1c0] sm:$0xf]  ;;  %v5091_v42 = vld [vmem:[%s7215_s0 + $0x1c4] sm:$0xf0]  ;;  %v5090_v43 = vld [vmem:[%s7215_s0 + $0x1c4] sm:$0xf] }
 0x102   :  { %7253 = vst [vmem:[#allocation3_spill] sm:$0xff] %v5957_v63  ;;  %1021 = vmatmul.bf16.gmra.mxu1 %v3954_v61  ;;  %v3967_v45 = vld [vmem:[%s7215_s0 + $0x1c8] sm:$0xf0] }
 0x103   :  { %7254 = vst [vmem:[#allocation4_spill] sm:$0xff] %v5959_v7  ;;  %v5180_v7 = vld [vmem:[%s7217_s3 + $0x180] sm:$0xff] }
 0x104   :  { %1345 = vmatmul.bf16.gmra.mxu3 %v4075_v6  ;;  %v650_v9 = vpop.f32.mrf.mxu2 }
 0x106   :  { %v353_v14 = vpop.f32.mrf.mxu0 }
 0x107   :  { %v723_v11 = vpop.f32.mrf.mxu3  ;;  %v426_v17 = vpop.f32.mrf.mxu1 }
 0x108   :  { %v5963_v12 = vadd.f32 %v723_v11, %v650_v9  ;;  %v5965_v19 = vadd.f32 %v426_v17, %v353_v14  ;;  %v5163_v11 = vld [vmem:[%s7217_s3 + $0xf8] sm:$0xff]  ;;  %v5146_v9 = vld [vmem:[%s7217_s3 + $0x70] sm:$0xff] }
 0x109   :  { %v5139_v14 = vld [vmem:[%s7217_s3 + $0x38] sm:$0xff]  ;;  %1784 = vmatpush.bf16.msra.mxu3 %v5163_v11  ;;  %1567 = vmatpush.bf16.msra.mxu0 %v5146_v9  ;;  %v5138_v9 = vld [vmem:[%s7217_s3 + $0x30] sm:$0xff] }
 0x10a   :  { %7255 = vst [vmem:[#allocation5_spill] sm:$0xff] %v5963_v12  ;;  %1627 = vmatpush.bf16.msra.mxu1 %v5139_v14  ;;  %v5164_v12 = vld [vmem:[%s7217_s3 + $0x100] sm:$0xff] }
 0x10b   :  { %7256 = vst [vmem:[#allocation6_spill] sm:$0xff] %v5965_v19 }
 0x10c   :  { %v652_v48 = vpop.f32.mrf.mxu2 }
 0x10e   :  { %v356_v61 = vpop.f32.mrf.mxu0  ;;  %1628 = vmatpush.bf16.msra.mxu1 %v5138_v9 }
 0x10f   :  { %v725_v51 = vpop.f32.mrf.mxu3  ;;  %v429_v0 = vpop.f32.mrf.mxu1 }
 0x110   :  { %v5999_v60 = vadd.f32 %v725_v51, %v652_v48  ;;  %v6001_v6 = vadd.f32 %v429_v0, %v356_v61  ;;  %v4086_v48 = vld [vmem:[%s7215_s0 + $0x288] sm:$0xf]  ;;  %v5115_v51 = vld [vmem:[%s7215_s0 + $0x28c] sm:$0xf0] }
 0x111   :  { %953 = vmatmul.bf16.gmra.mxu0 %v3958_v54  ;;  %1277 = vmatmul.bf16.gmra.mxu2 %v4079_v2  ;;  %v5114_v54 = vld [vmem:[%s7215_s0 + $0x28c] sm:$0xf]  ;;  %v3966_v2 = vor.u32 %v5091_v42, %v3965_v41 }
 0x112   :  { %7257 = vst [vmem:[#allocation7_spill] sm:$0xff] %v5999_v60  ;;  %1026 = vmatmul.bf16.gmra.mxu1 %v3962_v55  ;;  %v4088_v55 = vld [vmem:[%s7215_s0 + $0x290] sm:$0xf0] }
 0x113   :  { %7258 = vst [vmem:[#allocation8_spill] sm:$0xff] %v6001_v6 }
 0x114   :  { %1350 = vmatmul.bf16.gmra.mxu3 %v4083_v3  ;;  %v655_v17 = vpop.f32.mrf.mxu2  ;;  %v3970_v3 = vor.u32 %v5090_v43, %v3967_v45 }
 0x116   :  { %v358_v34 = vpop.f32.mrf.mxu0 }
 0x117   :  { %v728_v28 = vpop.f32.mrf.mxu3  ;;  %v431_v35 = vpop.f32.mrf.mxu1 }
 0x118   :  { %v6011_v32 = vadd.f32 %v728_v28, %v655_v17  ;;  %v6013_v38 = vadd.f32 %v431_v35, %v358_v34  ;;  %v4087_v28 = vor.u32 %v5115_v51, %v4086_v48  ;;  %v4091_v34 = vor.u32 %v5114_v54, %v4088_v55  ;;  %v5154_v55 = vld [vmem:[%s7217_s3 + $0xb0] sm:$0xff] }
 0x119   :  { %1706 = vmatpush.bf16.msra.mxu2 %v5154_v55 }
 0x11a   :  { %7259 = vst [vmem:[#allocation9_spill] sm:$0xff] %v6011_v32 }
 0x11b   :  { %7260 = vst [vmem:[#allocation10_spill] sm:$0xff] %v6013_v38  ;;  %v5189_v38 = vld [vmem:[%s7217_s3 + $0x1c8] sm:$0xff] }
 0x11c   :  { %v657_v61 = vpop.f32.mrf.mxu2 }
 0x11d   :  { %1707 = vmatpush.bf16.msra.mxu2 %v5153_v16  ;;  %v5097_v16 = vld [vmem:[%s7215_s0 + $0x1f4] sm:$0xf0] }
 0x11e   :  { %v361_v14 = vpop.f32.mrf.mxu0 }
 0x11f   :  { %v730_v0 = vpop.f32.mrf.mxu3  ;;  %v434_v17 = vpop.f32.mrf.mxu1 }
 0x120   :  { %v6041_v11 = vadd.f32 %v730_v0, %v657_v61  ;;  %v6043_v35 = vadd.f32 %v434_v17, %v361_v14  ;;  %v5162_v61 = vld [vmem:[%s7217_s3 + $0xf0] sm:$0xff]  ;;  %v3975_v14 = vld [vmem:[%s7215_s0 + $0x1d8] sm:$0xf0]  ;;  %v4094_v17 = vld [vmem:[%s7215_s0 + $0x298] sm:$0xf] }
 0x121   :  { %958 = vmatmul.bf16.gmra.mxu0 %v3966_v2  ;;  %1282 = vmatmul.bf16.gmra.mxu2 %v4087_v28  ;;  %v3973_v0 = vld [vmem:[%s7215_s0 + $0x1d0] sm:$0xf]  ;;  %v5093_v2 = vld [vmem:[%s7215_s0 + $0x1d4] sm:$0xf0]  ;;  %v5117_v28 = vld [vmem:[%s7215_s0 + $0x29c] sm:$0xf0] }
 0x122   :  { %7261 = vst [vmem:[#allocation11_spill] sm:$0xff] %v6041_v11  ;;  %1031 = vmatmul.bf16.gmra.mxu1 %v3970_v3  ;;  %v5092_v3 = vld [vmem:[%s7215_s0 + $0x1d4] sm:$0xf]  ;;  %1785 = vmatpush.bf16.msra.mxu3 %v5162_v61  ;;  %v4095_v21 = vor.u32 %v5117_v28, %v4094_v17  ;;  %v5145_v17 = vld [vmem:[%s7217_s3 + $0x68] sm:$0xff] }
 0x123   :  { %7262 = vst [vmem:[#allocation12_spill] sm:$0xff] %v6043_v35  ;;  %v3978_v54 = vor.u32 %v5092_v3, %v3975_v14  ;;  %v4102_v28 = vld [vmem:[%s7215_s0 + $0x2a8] sm:$0xf]  ;;  %1568 = vmatpush.bf16.msra.mxu0 %v5145_v17  ;;  %v5184_v35 = vld [vmem:[%s7217_s3 + $0x1a0] sm:$0xff] }
 0x124   :  { %1355 = vmatmul.bf16.gmra.mxu3 %v4091_v34  ;;  %v660_v41 = vpop.f32.mrf.mxu2  ;;  %v5116_v34 = vld [vmem:[%s7215_s0 + $0x29c] sm:$0xf]  ;;  %v5173_v11 = vld [vmem:[%s7217_s3 + $0x148] sm:$0xff] }
 0x126   :  { %v363_v45 = vpop.f32.mrf.mxu0 }
 0x127   :  { %v733_v42 = vpop.f32.mrf.mxu3  ;;  %v436_v48 = vpop.f32.mrf.mxu1 }
 0x128   :  { %v6050_v43 = vadd.f32 %v733_v42, %v660_v41  ;;  %v6052_v51 = vadd.f32 %v436_v48, %v363_v45  ;;  %v4096_v41 = vld [vmem:[%s7215_s0 + $0x2a0] sm:$0xf0]  ;;  %v3974_v48 = vor.u32 %v5093_v2, %v3973_v0 }
 0x129   :  { %v4099_v8 = vor.u32 %v5116_v34, %v4096_v41  ;;  %v5119_v34 = vld [vmem:[%s7215_s0 + $0x2ac] sm:$0xf0]  ;;  %v5118_v41 = vld [vmem:[%s7215_s0 + $0x2ac] sm:$0xf] }
 0x12a   :  { %7263 = vst [vmem:[#allocation13_spill] sm:$0xff] %v6050_v43  ;;  %v4103_v17 = vor.u32 %v5119_v34, %v4102_v28  ;;  %v5168_v43 = vld [vmem:[%s7217_s3 + $0x120] sm:$0xff] }
 0x12b   :  { %7264 = vst [vmem:[#allocation14_spill] sm:$0xff] %v6052_v51 }
 0x12c   :  { %v662_v42 = vpop.f32.mrf.mxu2 }
 0x12e   :  { %v366_v55 = vpop.f32.mrf.mxu0 }
 0x12f   :  { %v735_v45 = vpop.f32.mrf.mxu3  ;;  %v439_v61 = vpop.f32.mrf.mxu1 }
 0x130   :  { %v6089_v39 = vadd.f32 %v735_v45, %v662_v42  ;;  %v6091_v37 = vadd.f32 %v439_v61, %v366_v55  ;;  %v4104_v42 = vld [vmem:[%s7215_s0 + $0x2b0] sm:$0xf0] }
 0x131   :  { %963 = vmatmul.bf16.gmra.mxu0 %v3974_v48  ;;  %1287 = vmatmul.bf16.gmra.mxu2 %v4095_v21  ;;  %v3981_v21 = vld [vmem:[%s7215_s0 + $0x1e0] sm:$0xf]  ;;  %v4107_v14 = vor.u32 %v5118_v41, %v4104_v42 }
 0x132   :  { %7265 = vst [vmem:[#allocation15_spill] sm:$0xff] %v6089_v39  ;;  %1036 = vmatmul.bf16.gmra.mxu1 %v3978_v54  ;;  %v3983_v54 = vld [vmem:[%s7215_s0 + $0x1e8] sm:$0xf0] }
 0x133   :  { %7266 = vst [vmem:[#allocation16_spill] sm:$0xff] %v6091_v37 }
 0x134   :  { %1360 = vmatmul.bf16.gmra.mxu3 %v4099_v8  ;;  %v665_v9 = vpop.f32.mrf.mxu2  ;;  %v5094_v8 = vld [vmem:[%s7215_s0 + $0x1e4] sm:$0xf] }
 0x135   :  { %v3986_v61 = vor.u32 %v5094_v8, %v3983_v54 }
 0x136   :  { %v368_v0 = vpop.f32.mrf.mxu0 }
 0x137   :  { %v738_v59 = vpop.f32.mrf.mxu3  ;;  %v441_v2 = vpop.f32.mrf.mxu1 }
 0x138   :  { %v6095_v47 = vadd.f32 %v738_v59, %v665_v9  ;;  %v6097_v3 = vadd.f32 %v441_v2, %v368_v0  ;;  %v5095_v59 = vld [vmem:[%s7215_s0 + $0x1e4] sm:$0xf0] }
 0x139   :  { %v3982_v55 = vor.u32 %v5095_v59, %v3981_v21  ;;  %v5161_v21 = vld [vmem:[%s7217_s3 + $0xe8] sm:$0xff] }
 0x13a   :  { %7267 = vst [vmem:[#allocation17_spill] sm:$0xff] %v6095_v47  ;;  %v5137_v59 = vld [vmem:[%s7217_s3 + $0x28] sm:$0xff]  ;;  %1786 = vmatpush.bf16.msra.mxu3 %v5161_v21 }
 0x13b   :  { %7268 = vst [vmem:[#allocation18_spill] sm:$0xff] %v6097_v3  ;;  %1629 = vmatpush.bf16.msra.mxu1 %v5137_v59 }
 0x13c   :  { %v667_v45 = vpop.f32.mrf.mxu2 }
 0x13e   :  { %v371_v0 = vpop.f32.mrf.mxu0 }
 0x13f   :  { %v740_v48 = vpop.f32.mrf.mxu3  ;;  %v444_v2 = vpop.f32.mrf.mxu1 }
 0x140   :  { %v6128_v9 = vadd.f32 %v740_v48, %v667_v45  ;;  %v6130_v25 = vadd.f32 %v444_v2, %v371_v0  ;;  %v5096_v48 = vld [vmem:[%s7215_s0 + $0x1f4] sm:$0xf]  ;;  %v5121_v0 = vld [vmem:[%s7215_s0 + $0x2bc] sm:$0xf0]  ;;  %v5120_v2 = vld [vmem:[%s7215_s0 + $0x2bc] sm:$0xf] }
 0x141   :  { %968 = vmatmul.bf16.gmra.mxu0 %v3982_v55  ;;  %1292 = vmatmul.bf16.gmra.mxu2 %v4103_v17  ;;  %v3991_v55 = vld [vmem:[%s7215_s0 + $0x1f8] sm:$0xf0]  ;;  %v4112_v17 = vld [vmem:[%s7215_s0 + $0x2c0] sm:$0xf0] }
 0x142   :  { %7269 = vst [vmem:[#allocation19_spill] sm:$0xff] %v6128_v9  ;;  %1041 = vmatmul.bf16.gmra.mxu1 %v3986_v61  ;;  %v4110_v61 = vld [vmem:[%s7215_s0 + $0x2b8] sm:$0xf]  ;;  %v4115_v57 = vor.u32 %v5120_v2, %v4112_v17  ;;  %v5098_v17 = vld [vmem:[%s7215_s0 + $0x204] sm:$0xf] }
 0x143   :  { %7270 = vst [vmem:[#allocation20_spill] sm:$0xff] %v6130_v25  ;;  %v4111_v29 = vor.u32 %v5121_v0, %v4110_v61  ;;  %v5177_v25 = vld [vmem:[%s7217_s3 + $0x168] sm:$0xff] }
 0x144   :  { %1365 = vmatmul.bf16.gmra.mxu3 %v4107_v14  ;;  %v670_v8 = vpop.f32.mrf.mxu2  ;;  %v3989_v14 = vld [vmem:[%s7215_s0 + $0x1f0] sm:$0xf] }
 0x146   :  { %v373_v34 = vpop.f32.mrf.mxu0 }
 0x147   :  { %v743_v54 = vpop.f32.mrf.mxu3  ;;  %v446_v41 = vpop.f32.mrf.mxu1 }
 0x148   :  { %v6143_v28 = vadd.f32 %v743_v54, %v670_v8  ;;  %v6145_v42 = vadd.f32 %v446_v41, %v373_v34  ;;  %v3990_v8 = vor.u32 %v5097_v16, %v3989_v14  ;;  %v3994_v54 = vor.u32 %v5096_v48, %v3991_v55  ;;  %v5144_v14 = vld [vmem:[%s7217_s3 + $0x60] sm:$0xff] }
 0x149   :  { %1569 = vmatpush.bf16.msra.mxu0 %v5144_v14 }
 0x14a   :  { %7271 = vst [vmem:[#allocation21_spill] sm:$0xff] %v6143_v28  ;;  %v5141_v28 = vld [vmem:[%s7217_s3 + $0x48] sm:$0xff] }
 0x14b   :  { %7272 = vst [vmem:[#allocation22_spill] sm:$0xff] %v6145_v42 }
 0x14c   :  { %v672_v21 = vpop.f32.mrf.mxu2 }
 0x14e   :  { %v376_v41 = vpop.f32.mrf.mxu0 }
 0x14f   :  { %v745_v59 = vpop.f32.mrf.mxu3  ;;  %v449_v45 = vpop.f32.mrf.mxu1 }
 0x150   :  { %v6173_v34 = vadd.f32 %v745_v59, %v672_v21  ;;  %v6175_v50 = vadd.f32 %v449_v45, %v376_v41  ;;  %v3999_v21 = vld [vmem:[%s7215_s0 + $0x208] sm:$0xf0]  ;;  %v4118_v59 = vld [vmem:[%s7215_s0 + $0x2c8] sm:$0xf]  ;;  %v4120_v41 = vld [vmem:[%s7215_s0 + $0x2d0] sm:$0xf0] }
 0x151   :  { %973 = vmatmul.bf16.gmra.mxu0 %v3990_v8  ;;  %1297 = vmatmul.bf16.gmra.mxu2 %v4111_v29  ;;  %v5099_v29 = vld [vmem:[%s7215_s0 + $0x204] sm:$0xf0]  ;;  %v5123_v8 = vld [vmem:[%s7215_s0 + $0x2cc] sm:$0xf0] }
 0x152   :  { %7273 = vst [vmem:[#allocation23_spill] sm:$0xff] %v6173_v34  ;;  %1046 = vmatmul.bf16.gmra.mxu1 %v3994_v54  ;;  %v5122_v54 = vld [vmem:[%s7215_s0 + $0x2cc] sm:$0xf]  ;;  %v4119_v24 = vor.u32 %v5123_v8, %v4118_v59 }
 0x153   :  { %7274 = vst [vmem:[#allocation24_spill] sm:$0xff] %v6175_v50  ;;  %v4123_v5 = vor.u32 %v5122_v54, %v4120_v41  ;;  %v5160_v50 = vld [vmem:[%s7217_s3 + $0xe0] sm:$0xff]  ;;  %v4126_v54 = vld [vmem:[%s7215_s0 + $0x2d8] sm:$0xf] }
 0x154   :  { %1370 = vmatmul.bf16.gmra.mxu3 %v4115_v57  ;;  %v675_v16 = vpop.f32.mrf.mxu2  ;;  %v3997_v57 = vld [vmem:[%s7215_s0 + $0x200] sm:$0xf] }
 0x155   :  { %1787 = vmatpush.bf16.msra.mxu3 %v5160_v50  ;;  %v4005_v50 = vld [vmem:[%s7215_s0 + $0x210] sm:$0xf]  ;;  %v5125_v41 = vld [vmem:[%s7215_s0 + $0x2dc] sm:$0xf0] }
 0x156   :  { %v378_v61 = vpop.f32.mrf.mxu0 }
 0x157   :  { %v748_v48 = vpop.f32.mrf.mxu3  ;;  %v451_v0 = vpop.f32.mrf.mxu1 }
 0x158   :  { %v6182_v55 = vadd.f32 %v748_v48, %v675_v16  ;;  %v6184_v45 = vadd.f32 %v451_v0, %v378_v61  ;;  %v3998_v48 = vor.u32 %v5099_v29, %v3997_v57  ;;  %v4002_v61 = vor.u32 %v5098_v17, %v3999_v21 }
 0x15a   :  { %7275 = vst [vmem:[#allocation25_spill] sm:$0xff] %v6182_v55  ;;  %v5152_v55 = vld [vmem:[%s7217_s3 + $0xa0] sm:$0xff] }
 0x15b   :  { %7276 = vst [vmem:[#allocation26_spill] sm:$0xff] %v6184_v45  ;;  %1708 = vmatpush.bf16.msra.mxu2 %v5152_v55  ;;  %v4007_v55 = vld [vmem:[%s7215_s0 + $0x218] sm:$0xf0] }
 0x15c   :  { %v677_v14 = vpop.f32.mrf.mxu2 }
 0x15e   :  { %v381_v2 = vpop.f32.mrf.mxu0 }
 0x15f   :  { %v750_v16 = vpop.f32.mrf.mxu3  ;;  %v454_v31 = vpop.f32.mrf.mxu1 }
 0x160   :  { %v6212_v0 = vadd.f32 %v750_v16, %v677_v14  ;;  %v6220_v34 = vadd.f32 %v454_v31, %v381_v2  ;;  %v5136_v31 = vld [vmem:[%s7217_s3 + $0x20] sm:$0xff]  ;;  %v5124_v14 = vld [vmem:[%s7215_s0 + $0x2dc] sm:$0xf] }
 0x161   :  { %978 = vmatmul.bf16.gmra.mxu0 %v3998_v48  ;;  %1302 = vmatmul.bf16.gmra.mxu2 %v4119_v24  ;;  %v5100_v24 = vld [vmem:[%s7215_s0 + $0x214] sm:$0xf]  ;;  %v4128_v16 = vld [vmem:[%s7215_s0 + $0x2e0] sm:$0xf0] }
 0x162   :  { %7277 = vst [vmem:[#allocation27_spill] sm:$0xff] %v6212_v0  ;;  %1051 = vmatmul.bf16.gmra.mxu1 %v4002_v61  ;;  %v4131_v2 = vor.u32 %v5124_v14, %v4128_v16  ;;  %v5142_v14 = vld [vmem:[%s7217_s3 + $0x50] sm:$0xff] }
 0x163   :  { %7278 = vst [vmem:[#allocation28_spill] sm:$0xff] %v6220_v34  ;;  %1630 = vmatpush.bf16.msra.mxu1 %v5136_v31  ;;  %v4127_v31 = vor.u32 %v5125_v41, %v4126_v54  ;;  %v4134_v54 = vld [vmem:[%s7215_s0 + $0x2e8] sm:$0xf]  ;;  %v5127_v41 = vld [vmem:[%s7215_s0 + $0x2ec] sm:$0xf0] }
 0x164   :  { %1375 = vmatmul.bf16.gmra.mxu3 %v4123_v5  ;;  %v680_v29 = vpop.f32.mrf.mxu2  ;;  %v5101_v5 = vld [vmem:[%s7215_s0 + $0x214] sm:$0xf0]  ;;  %v5134_v16 = vld [vmem:[%s7217_s3 + $0x10] sm:$0xff] }
 0x166   :  { %v383_v59 = vpop.f32.mrf.mxu0 }
 0x167   :  { %v753_v17 = vpop.f32.mrf.mxu3  ;;  %v456_v8 = vpop.f32.mrf.mxu1 }
 0x168   :  { %v6224_v21 = vadd.f32 %v753_v17, %v680_v29  ;;  %v4006_v29 = vor.u32 %v5101_v5, %v4005_v50  ;;  %v4010_v17 = vor.u32 %v5100_v24, %v4007_v55  ;;  %v5143_v24 = vld [vmem:[%s7217_s3 + $0x58] sm:$0xff]  ;;  %v4015_v55 = vld [vmem:[%s7215_s0 + $0x228] sm:$0xf0] }
 0x169   :  { %1570 = vmatpush.bf16.msra.mxu0 %v5143_v24 }
 0x16a   :  { %7279 = vst [vmem:[#allocation29_spill] sm:$0xff] %v6224_v21  ;;  %v7280_v21 = vmax.f32 %v5763_v62, %v5765_v1  ;;  %v5151_v62 = vld [vmem:[%s7217_s3 + $0x98] sm:$0xff] }
 0x16b   :  { %v5159_v1 = vld [vmem:[%s7217_s3 + $0xd8] sm:$0xff]  ;;  %1709 = vmatpush.bf16.msra.mxu2 %v5151_v62 }
 0x16c   :  { %v682_v48 = vpop.f32.mrf.mxu2  ;;  %1788 = vmatpush.bf16.msra.mxu3 %v5159_v1 }
 0x16d   :  { %1571 = vmatpush.bf16.msra.mxu0 %v5142_v14  ;;  %v5149_v14 = vld [vmem:[%s7217_s3 + $0x88] sm:$0xff] }
 0x16e   :  { %v944_v59 = vpop.f32.mrf.mxu0 }
 0x16f   :  { %v755_v61 = vpop.f32.mrf.mxu3  ;;  %v1017_v8 = vpop.f32.mrf.mxu1 }
 0x170   :  { %v1018_v57 = vadd.f32 %v1017_v8, %v944_v59  ;;  %v5150_v61 = vld [vmem:[%s7217_s3 + $0x90] sm:$0xff] }
 0x171   :  { %983 = vmatmul.bf16.gmra.mxu0 %v4006_v29  ;;  %1307 = vmatmul.bf16.gmra.mxu2 %v4127_v31  ;;  %v5126_v29 = vld [vmem:[%s7215_s0 + $0x2ec] sm:$0xf]  ;;  %v5158_v59 = vld [vmem:[%s7217_s3 + $0xd0] sm:$0xff] }
 0x172   :  { %v6258_v34 = vmax.f32 %v7280_v21, %v1018_v57  ;;  %1056 = vmatmul.bf16.gmra.mxu1 %v4010_v17  ;;  %v4013_v57 = vld [vmem:[%s7215_s0 + $0x220] sm:$0xf]  ;;  %v5103_v21 = vld [vmem:[%s7215_s0 + $0x224] sm:$0xf0]  ;;  %v4136_v17 = vld [vmem:[%s7215_s0 + $0x2f0] sm:$0xf0]  ;;  %1710 = vmatpush.bf16.msra.mxu2 %v5150_v61 }
 0x173   :  { %v4014_v24 = vor.u32 %v5103_v21, %v4013_v57  ;;  %1789 = vmatpush.bf16.msra.mxu3 %v5158_v59  ;;  %v4139_v42 = vor.u32 %v5126_v29, %v4136_v17  ;;  %v5133_v57 = vld [vmem:[%s7217_s3 + $0x8] sm:$0xff]  ;;  %1572 = vmatpush.bf16.msra.mxu0 %v5141_v28  ;;  %v5156_v28 = vld [vmem:[%s7217_s3 + $0xc0] sm:$0xff] }
 0x174   :  { %1380 = vmatmul.bf16.gmra.mxu3 %v4131_v2  ;;  %v1268_v0 = vpop.f32.mrf.mxu2  ;;  %v5102_v2 = vld [vmem:[%s7215_s0 + $0x224] sm:$0xf]  ;;  %v5157_v21 = vld [vmem:[%s7217_s3 + $0xc8] sm:$0xff] }
 0x175   :  { %v4018_v62 = vor.u32 %v5102_v2, %v4015_v55  ;;  %v5140_v2 = vld [vmem:[%s7217_s3 + $0x40] sm:$0xff] }
 0x176   :  { %v6262_v50 = vpop.f32.mrf.mxu0  ;;  %1711 = vmatpush.bf16.msra.mxu2 %v5149_v14  ;;  %v5148_v55 = vld [vmem:[%s7217_s3 + $0x80] sm:$0xff]  ;;  %v4021_v14 = vld [vmem:[%s7215_s0 + $0x230] sm:$0xf] }
 0x177   :  { %v1341_v45 = vpop.f32.mrf.mxu3  ;;  %v6264_v5 = vpop.f32.mrf.mxu1  ;;  %1790 = vmatpush.bf16.msra.mxu3 %v5157_v21  ;;  %1573 = vmatpush.bf16.msra.mxu0 %v5140_v2  ;;  %v5194_v21 = vld [vmem:[%s7217_s3 + $0x1f0] sm:$0xff]  ;;  %v5105_v2 = vld [vmem:[%s7215_s0 + $0x234] sm:$0xf0] }
 0x178   :  { %v6260_v48 = vadd.f32 %v1341_v45, %v1268_v0  ;;  %v5135_v45 = vld [vmem:[%s7217_s3 + $0x18] sm:$0xff]  ;;  %v4135_v0 = vor.u32 %v5127_v41, %v4134_v54  ;;  %v5132_v54 = vld [vmem:[%s7217_s3] sm:$0xff]  ;;  %v4022_v47 = vor.u32 %v5105_v2, %v4021_v14 }
 0x179   :  { %1631 = vmatpush.bf16.msra.mxu1 %v5135_v45  ;;  %v5187_v41 = vld [vmem:[%s7217_s3 + $0x1b8] sm:$0xff]  ;;  %v5176_v14 = vld [vmem:[%s7217_s3 + $0x160] sm:$0xff] }
 0x17a   :  { %1712 = vmatpush.bf16.msra.mxu2 %v5148_v55  ;;  %v5104_v55 = vld [vmem:[%s7215_s0 + $0x234] sm:$0xf]  ;;  %v5192_v2 = vld [vmem:[%s7217_s3 + $0x1e0] sm:$0xff] }
 0x17b   :  { %1791 = vmatpush.bf16.msra.mxu3 %v5156_v28  ;;  %v4142_v28 = vld [vmem:[%s7215_s0 + $0x2f8] sm:$0xf] }
 0x17c   :  { %v6316_v8 = vpop.f32.mrf.mxu2 }
 0x17d   :  { %1632 = vmatpush.bf16.msra.mxu1 %v5134_v16  ;;  %v5195_v16 = vld [vmem:[%s7217_s3 + $0x1f8] sm:$0xff] }
 0x17e   :  { %v6320_v1 = vpop.f32.mrf.mxu0  ;;  %2021 = vmatpush.bf16.msrb.mxu2 %v5187_v41  ;;  %v4144_v41 = vld [vmem:[%s7215_s0 + $0x300] sm:$0xf0] }
 0x17f   :  { %v6318_v31 = vpop.f32.mrf.mxu3  ;;  %v6322_v45 = vpop.f32.mrf.mxu1  ;;  %2100 = vmatpush.bf16.msrb.mxu3 %v5195_v16  ;;  %v5169_v16 = vld [vmem:[%s7217_s3 + $0x128] sm:$0xff] }
 0x181   :  { %988 = vmatmul.bf16.gmra.mxu0 %v4014_v24  ;;  %1312 = vmatmul.bf16.gmra.mxu2 %v4135_v0  ;;  %v5179_v0 = vld [vmem:[%s7217_s3 + $0x178] sm:$0xff]  ;;  %v5170_v24 = vld [vmem:[%s7217_s3 + $0x130] sm:$0xff] }
 0x182   :  { %1061 = vmatmul.bf16.gmra.mxu1 %v4018_v62  ;;  %v5186_v62 = vld [vmem:[%s7217_s3 + $0x1b0] sm:$0xff] }
 0x183   :  { %1633 = vmatpush.bf16.msra.mxu1 %v5133_v57  ;;  %v5178_v57 = vld [vmem:[%s7217_s3 + $0x170] sm:$0xff]  ;;  %2022 = vmatpush.bf16.msrb.mxu2 %v5186_v62  ;;  %v5193_v62 = vld [vmem:[%s7217_s3 + $0x1e8] sm:$0xff] }
 0x184   :  { %1385 = vmatmul.bf16.gmra.mxu3 %v4139_v42  ;;  %v5171_v42 = vld [vmem:[%s7217_s3 + $0x138] sm:$0xff]  ;;  %v6360_v61 = vpop.f32.mrf.mxu2 }
 0x185   :  { %1863 = vmatpush.bf16.msrb.mxu0 %v5171_v42  ;;  %v5129_v42 = vld [vmem:[%s7215_s0 + $0x2fc] sm:$0xf0]  ;;  %2101 = vmatpush.bf16.msrb.mxu3 %v5194_v21 }
 0x186   :  { %v6364_v17 = vpop.f32.mrf.mxu0 }
 0x187   :  { %v6362_v29 = vpop.f32.mrf.mxu3  ;;  %v6366_v59 = vpop.f32.mrf.mxu1  ;;  %1634 = vmatpush.bf16.msra.mxu1 %v5132_v54  ;;  %v4023_v54 = vld [vmem:[%s7215_s0 + $0x238] sm:$0xf0] }
 0x188   :  { %v4026_v37 = vor.u32 %v5104_v55, %v4023_v54  ;;  %v5167_v55 = vld [vmem:[%s7217_s3 + $0x118] sm:$0xff] }
 0x189   :  { %1864 = vmatpush.bf16.msrb.mxu0 %v5170_v24  ;;  %v5185_v24 = vld [vmem:[%s7217_s3 + $0x1a8] sm:$0xff]  ;;  %2102 = vmatpush.bf16.msrb.mxu3 %v5193_v62  ;;  %v5175_v54 = vld [vmem:[%s7217_s3 + $0x158] sm:$0xff] }
 0x18a   :  { %2023 = vmatpush.bf16.msrb.mxu2 %v5185_v24  ;;  %v5190_v24 = vld [vmem:[%s7217_s3 + $0x1d0] sm:$0xff]  ;;  %v5107_v62 = vld [vmem:[%s7215_s0 + $0x244] sm:$0xf0] }
 0x18b   :  { %1942 = vmatpush.bf16.msrb.mxu1 %v5179_v0  ;;  %v5128_v0 = vld [vmem:[%s7215_s0 + $0x2fc] sm:$0xf] }
 0x18c   :  { %v6416_v9 = vpop.f32.mrf.mxu2  ;;  %v4147_v21 = vor.u32 %v5128_v0, %v4144_v41  ;;  %v5182_v0 = vld [vmem:[%s7217_s3 + $0x190] sm:$0xff]  ;;  %v4029_v41 = vld [vmem:[%s7215_s0 + $0x240] sm:$0xf] }
 0x18d   :  { %1865 = vmatpush.bf16.msrb.mxu0 %v5169_v16  ;;  %2103 = vmatpush.bf16.msrb.mxu3 %v5192_v2  ;;  %v5174_v16 = vld [vmem:[%s7217_s3 + $0x150] sm:$0xff]  ;;  %v4030_v32 = vor.u32 %v5107_v62, %v4029_v41  ;;  %v5172_v41 = vld [vmem:[%s7217_s3 + $0x140] sm:$0xff] }
 0x18e   :  { %v6420_v39 = vpop.f32.mrf.mxu0  ;;  %2024 = vmatpush.bf16.msrb.mxu2 %v5184_v35  ;;  %v5131_v2 = vld [vmem:[%s7215_s0 + $0x30c] sm:$0xf0]  ;;  %v5188_v62 = vld [vmem:[%s7217_s3 + $0x1c0] sm:$0xff] }
 0x18f   :  { %1943 = vmatpush.bf16.msrb.mxu1 %v5178_v57  ;;  %v6418_v3 = vpop.f32.mrf.mxu3  ;;  %v6422_v51 = vpop.f32.mrf.mxu1  ;;  %v4143_v57 = vor.u32 %v5129_v42, %v4142_v28  ;;  %v5166_v42 = vld [vmem:[%s7217_s3 + $0x110] sm:$0xff] }
 0x191   :  { %993 = vmatmul.bf16.gmra.mxu0 %v4022_v47  ;;  %1317 = vmatmul.bf16.gmra.mxu2 %v4143_v57  ;;  %v5191_v47 = vld [vmem:[%s7217_s3 + $0x1d8] sm:$0xff]  ;;  %v5106_v57 = vld [vmem:[%s7215_s0 + $0x244] sm:$0xf] }
 0x192   :  { %1066 = vmatmul.bf16.gmra.mxu1 %v4026_v37  ;;  %1866 = vmatpush.bf16.msrb.mxu0 %v5168_v43 }
 0x193   :  { %1944 = vmatpush.bf16.msrb.mxu1 %v5177_v25  ;;  %v5183_v25 = vld [vmem:[%s7217_s3 + $0x198] sm:$0xff]  ;;  %2104 = vmatpush.bf16.msrb.mxu3 %v5191_v47  ;;  %v5181_v47 = vld [vmem:[%s7217_s3 + $0x188] sm:$0xff] }
 0x194   :  { %1390 = vmatmul.bf16.gmra.mxu3 %v4147_v21  ;;  %v6448_v37 = vpop.f32.mrf.mxu2  ;;  %2025 = vmatpush.bf16.msrb.mxu2 %v5183_v25  ;;  %v4031_v21 = vld [vmem:[%s7215_s0 + $0x248] sm:$0xf0]  ;;  %v4152_v25 = vld [vmem:[%s7215_s0 + $0x310] sm:$0xf0] }
 0x195   :  { %v4034_v6 = vor.u32 %v5106_v57, %v4031_v21 }
 0x196   :  { %v6452_v43 = vpop.f32.mrf.mxu0  ;;  %1867 = vmatpush.bf16.msrb.mxu0 %v5167_v55  ;;  %v5130_v55 = vld [vmem:[%s7215_s0 + $0x30c] sm:$0xf] }
 0x197   :  { %1945 = vmatpush.bf16.msrb.mxu1 %v5176_v14  ;;  %v6450_v35 = vpop.f32.mrf.mxu3  ;;  %v6454_v28 = vpop.f32.mrf.mxu1  ;;  %v4150_v14 = vld [vmem:[%s7215_s0 + $0x308] sm:$0xf]  ;;  %2105 = vmatpush.bf16.msrb.mxu3 %v5190_v24  ;;  %v4155_v24 = vor.u32 %v5130_v55, %v4152_v25 }
 0x198   :  { %2026 = vmatpush.bf16.msrb.mxu2 %v5182_v0 }
 0x19a   :  { %1868 = vmatpush.bf16.msrb.mxu0 %v5166_v42 }
 0x19b   :  { %1946 = vmatpush.bf16.msrb.mxu1 %v5175_v54  ;;  %v5165_v54 = vld [vmem:[%s7217_s3 + $0x108] sm:$0xff]  ;;  %2106 = vmatpush.bf16.msrb.mxu3 %v5189_v38 }
 0x19c   :  { %v6504_v42 = vpop.f32.mrf.mxu2  ;;  %2027 = vmatpush.bf16.msrb.mxu2 %v5181_v47 }
 0x19e   :  { %v6508_v60 = vpop.f32.mrf.mxu0  ;;  %1869 = vmatpush.bf16.msrb.mxu0 %v5165_v54 }
 0x19f   :  { %1947 = vmatpush.bf16.msrb.mxu1 %v5174_v16  ;;  %v6506_v0 = vpop.f32.mrf.mxu3  ;;  %v6510_v19 = vpop.f32.mrf.mxu1  ;;  %v4151_v16 = vor.u32 %v5131_v2, %v4150_v14  ;;  %2107 = vmatpush.bf16.msrb.mxu3 %v5188_v62  ;;  %v3938_v14 = vld [vmem:[%s7215_s0 + $0x250] sm:$0xff]  ;;  %v4059_v2 = vld [vmem:[%s7215_s0 + $0x318] sm:$0xff] }
 0x1a0   :  { %2028 = vmatpush.bf16.msrb.mxu2 %v5180_v7  ;;  %v1205_v55 = vunpack.c.l.b16 %v4059_v2  ;;  %v1206_v25 = vunpack.c.h.b16 %v4059_v2  ;;  %v1020_v7 = vadd.f32 %v6264_v5, %v6262_v50  ;;  %v1344_v2 = vadd.f32 %v6318_v31, %v6316_v8 }
 0x1a1   :  { %998 = vmatmul.bf16.gmra.mxu0 %v4030_v32  ;;  %1322 = vmatmul.bf16.gmra.mxu2 %v4151_v16  ;;  %v881_v32 = vunpack.c.l.b16 %v3938_v14  ;;  %v1347_v50 = vadd.f32 %v6362_v29, %v6360_v61  ;;  %v1349_v5 = vadd.f32 %v6418_v3, %v6416_v9  ;;  %v6558_v3 = vld [vmem:[%s7216_s2] ss:$0 sm:$0xff] }
 0x1a2   :  { %1071 = vmatmul.bf16.gmra.mxu1 %v4034_v6  ;;  %1870 = vmatpush.bf16.msrb.mxu0 %v5164_v12  ;;  %v882_v6 = vunpack.c.h.b16 %v3938_v14  ;;  %v1023_v12 = vadd.f32 %v6322_v45, %v6320_v1  ;;  %v1231_v14 = vpack.c.b16 %v1205_v55, %v1205_v55  ;;  %v1232_v36 = vpack.c.b16 %v1206_v25, %v1206_v25 }
 0x1a3   :  { %1948 = vmatpush.bf16.msrb.mxu1 %v5173_v11  ;;  %v907_v16 = vpack.c.b16 %v881_v32, %v881_v32  ;;  %v7281_v1 = vmax.f32 %v5767_v4, %v5795_v18  ;;  %v7283_v32 = vmax.f32 %v5803_v30, %v5831_v44  ;;  %v7284_v30 = vmax.f32 %v6258_v34, %v6260_v48 }
 0x1a4   :  { %1395 = vmatmul.bf16.gmra.mxu3 %v4155_v24  ;;  %v1283_v57 = vpop.f32.mrf.mxu2  ;;  %v908_v24 = vpack.c.b16 %v882_v6, %v882_v6  ;;  %v1033_v34 = vadd.f32 %v6510_v19, %v6508_v60  ;;  %v5203_v19 = vld [vmem:[%s7217_s3 + $0x238] sm:$0xff] }
 0x1a5   :  { %v1082_v45 = vmax.f32 %v7281_v1, %v1020_v7  ;;  %v1434_v44 = vadd.f32 %v6558_v3, %v7284_v30  ;;  %v5211_v60 = vld [vmem:[%s7217_s3 + $0x278] sm:$0xff] }
 0x1a6   :  { %v961_v11 = vpop.f32.mrf.mxu0 }
 0x1a7   :  { %1949 = vmatpush.bf16.msrb.mxu1 %v5172_v41  ;;  %v1356_v21 = vpop.f32.mrf.mxu3  ;;  %v1034_v38 = vpop.f32.mrf.mxu1  ;;  %v1025_v41 = vadd.f32 %v6366_v59, %v6364_v17  ;;  %v7282_v17 = vmax.f32 %v5797_v23, %v5801_v27  ;;  %v1406_v9 = vmax.f32 %v1082_v45, %v1344_v2  ;;  %v1459_v55 = vmax.f32 %v1434_v44, 0.0  ;;  %v5201_v44 = vld [vmem:[%s7217_s3 + $0x228] sm:$0xff] }
 0x1a8   :  { %v1354_v2 = vadd.f32 %v6506_v0, %v6504_v42  ;;  %v1357_v1 = vadd.f32 %v1356_v21, %v1283_v57  ;;  %v7286_v0 = vmax.f32 %v5839_v56, %v5867_v10  ;;  %v5219_v57 = vld [vmem:[%s7217_s3 + $0x2b8] sm:$0xff]  ;;  %v7287_v45 = vmax.f32 %v5869_v15, %v5873_v20  ;;  %v5210_v15 = vld [vmem:[%s7217_s3 + $0x270] sm:$0xff] }
 0x1a9   :  { %v1083_v59 = vmax.f32 %v7282_v17, %v1023_v12  ;;  %v1084_v8 = vmax.f32 %v7283_v32, %v1025_v41  ;;  %v5227_v21 = vld [vmem:[%s7217_s3 + $0x2f8] sm:$0xff]  ;;  %v7288_v56 = vmax.f32 %v5878_v26, %v5885_v40  ;;  %v5218_v26 = vld [vmem:[%s7217_s3 + $0x2b0] sm:$0xff] }
 0x1aa   :  { %v1087_v17 = vmax.f32 %v7287_v45, %v1033_v34  ;;  %v5226_v40 = vld [vmem:[%s7217_s3 + $0x2f0] sm:$0xff] }
 0x1ab   :  { %v1407_v4 = vmax.f32 %v1083_v59, %v1347_v50  ;;  %v1408_v18 = vmax.f32 %v1084_v8, %v1349_v5  ;;  %v1035_v50 = vadd.f32 %v1034_v38, %v961_v11 }
 0x1ac   :  { %v1285_v54 = vpop.f32.mrf.mxu2 }
 0x1ad   :  { %v1436_v29 = vadd.f32 %v6558_v3, %v1407_v4  ;;  %v1437_v6 = vadd.f32 %v6558_v3, %v1408_v18  ;;  %v1088_v10 = vmax.f32 %v7288_v56, %v1035_v50 }
 0x1ae   :  { %v6536_v62 = vpop.f32.mrf.mxu0 }
 0x1af   :  { %v1358_v47 = vpop.f32.mrf.mxu3  ;;  %v6538_v63 = vpop.f32.mrf.mxu1  ;;  %v1461_v7 = vmax.f32 %v1436_v29, 0.0  ;;  %v1462_v12 = vmax.f32 %v1437_v6, 0.0  ;;  %v5217_v6 = vld [vmem:[%s7217_s3 + $0x2a8] sm:$0xff] }
 0x1b0   :  { %v1359_v38 = vadd.f32 %v1358_v47, %v1285_v54  ;;  %v1411_v54 = vmax.f32 %v1087_v17, %v1357_v1  ;;  %v5202_v47 = vld [vmem:[%s7217_s3 + $0x230] sm:$0xff]  ;;  %v7290_v17 = vmax.f32 %v5893_v58, %v5921_v13 }
 0x1b1   :  { %1003 = vmatmul.bf16.gmra.mxu0 %v907_v16  ;;  %1327 = vmatmul.bf16.gmra.mxu2 %v1231_v14  ;;  %v1028_v16 = vadd.f32 %v6422_v51, %v6420_v39  ;;  %v1352_v14 = vadd.f32 %v6450_v35, %v6448_v37  ;;  %v1484_v51 = vpack.c.bf16 %v1459_v55, %v1459_v55  ;;  %v5225_v55 = vld [vmem:[%s7217_s3 + $0x2e8] sm:$0xff]  ;;  %v5214_v58 = vld [vmem:[%s7217_s3 + $0x290] sm:$0xff] }
 0x1b2   :  { %1076 = vmatmul.bf16.gmra.mxu1 %v908_v24  ;;  %v1030_v24 = vadd.f32 %v6454_v28, %v6452_v43  ;;  %v1640_v28 = vpack.c.bf16 %v1461_v7, %v1461_v7  ;;  %v1719_v37 = vpack.c.bf16 %v1462_v12, %v1462_v12  ;;  %v7285_v35 = vmax.f32 %v5833_v49, %v5837_v53  ;;  %v5222_v13 = vld [vmem:[%s7217_s3 + $0x2d0] sm:$0xff] }
 0x1b3   :  { %v1412_v20 = vmax.f32 %v1088_v10, %v1359_v38  ;;  %v1440_v30 = vadd.f32 %v6558_v3, %v1411_v54 }
 0x1b4   :  { %1400 = vmatmul.bf16.gmra.mxu3 %v1232_v36  ;;  %v6560_v31 = vpop.f32.mrf.mxu2  ;;  %v1435_v36 = vadd.f32 %v6558_v3, %v1406_v9  ;;  %v1085_v42 = vmax.f32 %v7285_v35, %v1028_v16  ;;  %v1086_v11 = vmax.f32 %v7286_v0, %v1030_v24  ;;  %v5200_v16 = vld [vmem:[%s7217_s3 + $0x220] sm:$0xff]  ;;  %v5207_v0 = vld [vmem:[%s7217_s3 + $0x258] sm:$0xff] }
 0x1b5   :  { %v1441_v29 = vadd.f32 %v6558_v3, %v1412_v20  ;;  %v1465_v12 = vmax.f32 %v1440_v30, 0.0  ;;  %v5208_v24 = vld [vmem:[%s7217_s3 + $0x260] sm:$0xff] }
 0x1b6   :  { %v6564_v27 = vpop.f32.mrf.mxu0  ;;  %v1460_v25 = vmax.f32 %v1435_v36, 0.0  ;;  %v1409_v49 = vmax.f32 %v1085_v42, %v1352_v14  ;;  %v1410_v53 = vmax.f32 %v1086_v11, %v1354_v2  ;;  %v5209_v36 = vld [vmem:[%s7217_s3 + $0x268] sm:$0xff]  ;;  %v5216_v14 = vld [vmem:[%s7217_s3 + $0x2a0] sm:$0xff]  ;;  %v5199_v42 = vld [vmem:[%s7217_s3 + $0x218] sm:$0xff] }
 0x1b7   :  { %v6562_v23 = vpop.f32.mrf.mxu3  ;;  %v6566_v61 = vpop.f32.mrf.mxu1  ;;  %v1466_v34 = vmax.f32 %v1441_v29, 0.0  ;;  %v5224_v2 = vld [vmem:[%s7217_s3 + $0x2e0] sm:$0xff] }
 0x1b8   :  { %v1501_v43 = vpack.c.bf16 %v1460_v25, %v1460_v25  ;;  %v1438_v8 = vadd.f32 %v6558_v3, %v1409_v49  ;;  %v1439_v9 = vadd.f32 %v6558_v3, %v1410_v53  ;;  %v1040_v35 = vadd.f32 %v6566_v61, %v6564_v27  ;;  %v5212_v29 = vld [vmem:[%s7217_s3 + $0x280] sm:$0xff] }
 0x1b9   :  { %v2035_v11 = vpack.c.bf16 %v1466_v34, %v1466_v34  ;;  %v1362_v27 = vadd.f32 %v6562_v23, %v6560_v31  ;;  %v5198_v31 = vld [vmem:[%s7217_s3 + $0x210] sm:$0xff] }
 0x1ba   :  { %v1463_v25 = vmax.f32 %v1438_v8, 0.0  ;;  %v1464_v7 = vmax.f32 %v1439_v9, 0.0  ;;  %v1090_v49 = vmax.f32 %v7290_v17, %v1040_v35  ;;  %v5206_v23 = vld [vmem:[%s7217_s3 + $0x250] sm:$0xff]  ;;  %v5221_v8 = vld [vmem:[%s7217_s3 + $0x2c8] sm:$0xff]  ;;  %v5240_v17 = vld [vmem:[%s7217_s3 + $0x360] sm:$0xff] }
 0x1bb   :  { %v5242_v35 = vld [vmem:[%s7217_s3 + $0x370] sm:$0xff] }
 0x1bc   :  { %v6581_v48 = vpop.f32.mrf.mxu2 }
 0x1be   :  { %v6589_v5 = vpop.f32.mrf.mxu0 }
 0x1bf   :  { %v6583_v41 = vpop.f32.mrf.mxu3  ;;  %v6591_v39 = vpop.f32.mrf.mxu1 }
 0x1c0   :  { %v1043_v38 = vadd.f32 %v6591_v39, %v6589_v5  ;;  %v1364_v61 = vadd.f32 %v6583_v41, %v6581_v48  ;;  %v7291_v48 = vmax.f32 %v5923_v22, %v5927_v33 }
 0x1c1   :  { %1574 = vmatmul.bf16.vlgmr.msra.gmra.mxu0 %v1501_v43  ;;  %1713 = vmatmul.bf16.vlgmr.msra.gmra.mxu2 %v1640_v28  ;;  %v1798_v43 = vpack.c.bf16 %v1463_v25, %v1463_v25  ;;  %v1877_v28 = vpack.c.bf16 %v1464_v7, %v1464_v7 }
 0x1c2   :  { %1635 = vmatmul.bf16.vlgmr.msra.gmra.mxu1 %v1484_v51  ;;  %2179 = vmatpush.bf16.msra.mxu0 %v5203_v19  ;;  %v1091_v41 = vmax.f32 %v7291_v48, %v1043_v38  ;;  %v1414_v54 = vmax.f32 %v1090_v49, %v1364_v61  ;;  %v5258_v38 = vld [vmem:[%s7217_s3 + $0x3f0] sm:$0xff]  ;;  %v5248_v49 = vld [vmem:[%s7217_s3 + $0x3a0] sm:$0xff] }
 0x1c3   :  { %2258 = vmatpush.bf16.msra.mxu1 %v5211_v60  ;;  %2337 = vmatpush.bf16.msra.mxu2 %v5219_v57  ;;  %v1956_v60 = vpack.c.bf16 %v1465_v12, %v1465_v12 }
 0x1c4   :  { %1792 = vmatmul.bf16.vlgmr.msra.gmra.mxu3 %v1719_v37  ;;  %v1293_v59 = vpop.f32.mrf.mxu2  ;;  %v1038_v37 = vadd.f32 %v6538_v63, %v6536_v62  ;;  %v5215_v63 = vld [vmem:[%s7217_s3 + $0x298] sm:$0xff] }
 0x1c5   :  { %2416 = vmatpush.bf16.msra.mxu3 %v5227_v21  ;;  %v5223_v62 = vld [vmem:[%s7217_s3 + $0x2d8] sm:$0xff]  ;;  %v7289_v21 = vmax.f32 %v5887_v46, %v5891_v52  ;;  %v7292_v46 = vld [vmem:[#allocation2_spill] sm:$0xff]  ;;  %v7293_v52 = vld [vmem:[#allocation3_spill] sm:$0xff] }
 0x1c6   :  { %v971_v4 = vpop.f32.mrf.mxu0  ;;  %2180 = vmatpush.bf16.msra.mxu0 %v5202_v47  ;;  %v7294_v53 = vmax.f32 %v7292_v46, %v7293_v52  ;;  %v5231_v52 = vld [vmem:[%s7217_s3 + $0x318] sm:$0xff] }
 0x1c7   :  { %v1366_v32 = vpop.f32.mrf.mxu3  ;;  %v1044_v18 = vpop.f32.mrf.mxu1  ;;  %2259 = vmatpush.bf16.msra.mxu1 %v5210_v15  ;;  %2338 = vmatpush.bf16.msra.mxu2 %v5218_v26  ;;  %v1089_v45 = vmax.f32 %v7289_v21, %v1038_v37  ;;  %v5234_v37 = vld [vmem:[%s7217_s3 + $0x330] sm:$0xff]  ;;  %v5257_v21 = vld [vmem:[%s7217_s3 + $0x3e8] sm:$0xff] }
 0x1c8   :  { %v1045_v57 = vadd.f32 %v1044_v18, %v971_v4  ;;  %v1367_v5 = vadd.f32 %v1366_v32, %v1293_v59  ;;  %v5205_v59 = vld [vmem:[%s7217_s3 + $0x248] sm:$0xff]  ;;  %v1443_v4 = vadd.f32 %v6558_v3, %v1414_v54 }
 0x1c9   :  { %2417 = vmatpush.bf16.msra.mxu3 %v5226_v40  ;;  %v1413_v10 = vmax.f32 %v1089_v45, %v1362_v27  ;;  %v5197_v40 = vld [vmem:[%s7217_s3 + $0x208] sm:$0xff]  ;;  %v5232_v45 = vld [vmem:[%s7217_s3 + $0x320] sm:$0xff] }
 0x1ca   :  { %2181 = vmatpush.bf16.msra.mxu0 %v5201_v44  ;;  %v1092_v56 = vmax.f32 %v7294_v53, %v1045_v57  ;;  %v1415_v33 = vmax.f32 %v1091_v41, %v1367_v5  ;;  %v5213_v32 = vld [vmem:[%s7217_s3 + $0x288] sm:$0xff]  ;;  %v5196_v44 = vld [vmem:[%s7217_s3 + $0x200] sm:$0xff]  ;;  %v1468_v25 = vmax.f32 %v1443_v4, 0.0  ;;  %v5239_v53 = vld [vmem:[%s7217_s3 + $0x358] sm:$0xff] }
 0x1cb   :  { %2260 = vmatpush.bf16.msra.mxu1 %v5209_v36  ;;  %2339 = vmatpush.bf16.msra.mxu2 %v5217_v6  ;;  %v1442_v9 = vadd.f32 %v6558_v3, %v1413_v10  ;;  %v5204_v36 = vld [vmem:[%s7217_s3 + $0x240] sm:$0xff]  ;;  %v5241_v27 = vld [vmem:[%s7217_s3 + $0x368] sm:$0xff]  ;;  %v5255_v10 = vld [vmem:[%s7217_s3 + $0x3d8] sm:$0xff] }
 0x1cc   :  { %v1295_v50 = vpop.f32.mrf.mxu2  ;;  %v1444_v18 = vadd.f32 %v6558_v3, %v1415_v33  ;;  %v5220_v6 = vld [vmem:[%s7217_s3 + $0x2c0] sm:$0xff] }
 0x1cd   :  { %2418 = vmatpush.bf16.msra.mxu3 %v5225_v55  ;;  %v1467_v55 = vmax.f32 %v1442_v9, 0.0  ;;  %v7299_v9 = vld [vmem:[#allocation7_spill] sm:$0xff] }
 0x1ce   :  { %v6657_v1 = vpop.f32.mrf.mxu0  ;;  %2182 = vmatpush.bf16.msra.mxu0 %v5200_v16  ;;  %v5235_v16 = vld [vmem:[%s7217_s3 + $0x338] sm:$0xff]  ;;  %v1469_v34 = vmax.f32 %v1444_v18, 0.0 }
 0x1cf   :  { %v1368_v51 = vpop.f32.mrf.mxu3  ;;  %v6659_v19 = vpop.f32.mrf.mxu1  ;;  %2261 = vmatpush.bf16.msra.mxu1 %v5208_v24  ;;  %2340 = vmatpush.bf16.msra.mxu2 %v5216_v14  ;;  %v5243_v24 = vld [vmem:[%s7217_s3 + $0x378] sm:$0xff] }
 0x1d0   :  { %v1369_v39 = vadd.f32 %v1368_v51, %v1295_v50  ;;  %v5251_v51 = vld [vmem:[%s7217_s3 + $0x3b8] sm:$0xff] }
 0x1d1   :  { %2419 = vmatpush.bf16.msra.mxu3 %v5224_v2  ;;  %1871 = vmatmul.bf16.vlgmr.msrb.gmra.mxu0 %v1798_v43  ;;  %v5259_v43 = vld [vmem:[%s7217_s3 + $0x3f8] sm:$0xff] }
 0x1d2   :  { %1950 = vmatmul.bf16.vlgmr.msrb.gmra.mxu1 %v1877_v28  ;;  %2029 = vmatmul.bf16.vlgmr.msrb.gmra.mxu2 %v1956_v60  ;;  %v1416_v15 = vmax.f32 %v1092_v56, %v1369_v39  ;;  %v2114_v28 = vpack.c.bf16 %v1467_v55, %v1467_v55  ;;  %v2193_v60 = vpack.c.bf16 %v1468_v25, %v1468_v25  ;;  %v5249_v39 = vld [vmem:[%s7217_s3 + $0x3a8] sm:$0xff] }
 0x1d3   :  { %2183 = vmatpush.bf16.msra.mxu0 %v5199_v42  ;;  %2262 = vmatpush.bf16.msra.mxu1 %v5207_v0  ;;  %v2272_v42 = vpack.c.bf16 %v1469_v34, %v1469_v34  ;;  %v7305_v55 = vld [vmem:[#allocation11_spill] sm:$0xff] }
 0x1d4   :  { %2108 = vmatmul.bf16.vlgmr.msrb.gmra.mxu3 %v2035_v11  ;;  %2341 = vmatpush.bf16.msra.mxu2 %v5215_v63  ;;  %v6707_v47 = vpop.f32.mrf.mxu2  ;;  %v1445_v30 = vadd.f32 %v6558_v3, %v1416_v15  ;;  %v5250_v11 = vld [vmem:[%s7217_s3 + $0x3b0] sm:$0xff] }
 0x1d5   :  { %2420 = vmatpush.bf16.msra.mxu3 %v5223_v62  ;;  %v5233_v62 = vld [vmem:[%s7217_s3 + $0x328] sm:$0xff] }
 0x1d6   :  { %v6711_v20 = vpop.f32.mrf.mxu0  ;;  %v1470_v14 = vmax.f32 %v1445_v30, 0.0  ;;  %v5230_v30 = vld [vmem:[%s7217_s3 + $0x310] sm:$0xff] }
 0x1d7   :  { %v6709_v22 = vpop.f32.mrf.mxu3  ;;  %v6713_v26 = vpop.f32.mrf.mxu1  ;;  %2184 = vmatpush.bf16.msra.mxu0 %v5198_v31  ;;  %2263 = vmatpush.bf16.msra.mxu1 %v5206_v23  ;;  %v5256_v31 = vld [vmem:[%s7217_s3 + $0x3e0] sm:$0xff]  ;;  %v1048_v23 = vadd.f32 %v6659_v19, %v6657_v1 }
 0x1d8   :  { %2342 = vmatpush.bf16.msra.mxu2 %v5214_v58  ;;  %v2351_v0 = vpack.c.bf16 %v1470_v14, %v1470_v14  ;;  %v1050_v48 = vadd.f32 %v6713_v26, %v6711_v20  ;;  %v1372_v54 = vadd.f32 %v6709_v22, %v6707_v47  ;;  %v7295_v26 = vld [vmem:[#allocation4_spill] sm:$0xff] }
 0x1d9   :  { %2421 = vmatpush.bf16.msra.mxu3 %v5222_v13  ;;  %v5247_v13 = vld [vmem:[%s7217_s3 + $0x398] sm:$0xff]  ;;  %v5238_v47 = vld [vmem:[%s7217_s3 + $0x350] sm:$0xff] }
 0x1da   :  { %v7301_v22 = vld [vmem:[#allocation8_spill] sm:$0xff] }
 0x1db   :  { %2185 = vmatpush.bf16.msra.mxu0 %v5197_v40  ;;  %2264 = vmatpush.bf16.msra.mxu1 %v5205_v59  ;;  %v7296_v40 = vld [vmem:[#allocation5_spill] sm:$0xff] }
 0x1dc   :  { %2343 = vmatpush.bf16.msra.mxu2 %v5213_v32  ;;  %v6743_v7 = vpop.f32.mrf.mxu2  ;;  %v7297_v59 = vmax.f32 %v7295_v26, %v7296_v40  ;;  %v5273_v26 = vld [vmem:[%s7217_s3 + $0x468] sm:$0xff] }
 0x1dd   :  { %2422 = vmatpush.bf16.msra.mxu3 %v5221_v8  ;;  %v7298_v8 = vld [vmem:[#allocation6_spill] sm:$0xff]  ;;  %v5281_v40 = vld [vmem:[%s7217_s3 + $0x4a8] sm:$0xff] }
 0x1de   :  { %v979_v2 = vpop.f32.mrf.mxu0  ;;  %v1093_v32 = vmax.f32 %v7297_v59, %v1048_v23  ;;  %v7300_v4 = vmax.f32 %v7298_v8, %v7299_v9  ;;  %v5291_v23 = vld [vmem:[%s7217_s3 + $0x4f8] sm:$0xff]  ;;  %v5289_v59 = vld [vmem:[%s7217_s3 + $0x4e8] sm:$0xff] }
 0x1df   :  { %v6745_v12 = vpop.f32.mrf.mxu3  ;;  %v1052_v50 = vpop.f32.mrf.mxu1  ;;  %2186 = vmatpush.bf16.msra.mxu0 %v5196_v44  ;;  %2265 = vmatpush.bf16.msra.mxu1 %v5204_v36  ;;  %v7302_v44 = vld [vmem:[#allocation9_spill] sm:$0xff] }
 0x1e0   :  { %2344 = vmatpush.bf16.msra.mxu2 %v5212_v29  ;;  %v1053_v56 = vadd.f32 %v1052_v50, %v979_v2  ;;  %v1374_v33 = vadd.f32 %v6745_v12, %v6743_v7  ;;  %v1094_v18 = vmax.f32 %v7300_v4, %v1050_v48  ;;  %v7303_v36 = vmax.f32 %v7301_v22, %v7302_v44  ;;  %v5246_v12 = vld [vmem:[%s7217_s3 + $0x390] sm:$0xff]  ;;  %v5288_v22 = vld [vmem:[%s7217_s3 + $0x4e0] sm:$0xff] }
 0x1e1   :  { %2423 = vmatpush.bf16.msra.mxu3 %v5220_v6  ;;  %v7304_v6 = vld [vmem:[#allocation10_spill] sm:$0xff] }
 0x1e2   :  { %2187 = vmatmul.bf16.vlgmr.msra.gmra.mxu0 %v2114_v28  ;;  %2266 = vmatmul.bf16.vlgmr.msra.gmra.mxu1 %v2193_v60  ;;  %v1095_v29 = vmax.f32 %v7303_v36, %v1053_v56  ;;  %v7306_v25 = vmax.f32 %v7304_v6, %v7305_v55  ;;  %v1418_v34 = vmax.f32 %v1094_v18, %v1374_v33  ;;  %v5237_v28 = vld [vmem:[%s7217_s3 + $0x348] sm:$0xff]  ;;  %v5282_v33 = vld [vmem:[%s7217_s3 + $0x4b0] sm:$0xff]  ;;  %v5264_v18 = vld [vmem:[%s7217_s3 + $0x420] sm:$0xff] }
 0x1e3   :  { %2495 = vmatpush.bf16.msrb.mxu0 %v5235_v16  ;;  %2574 = vmatpush.bf16.msrb.mxu1 %v5243_v24  ;;  %v5254_v16 = vld [vmem:[%s7217_s3 + $0x3d0] sm:$0xff]  ;;  %v1417_v24 = vmax.f32 %v1093_v32, %v1372_v54  ;;  %v5271_v6 = vld [vmem:[%s7217_s3 + $0x458] sm:$0xff] }
 0x1e4   :  { %2653 = vmatpush.bf16.msrb.mxu2 %v5251_v51  ;;  %2424 = vmatmul.bf16.vlgmr.msra.gmra.mxu3 %v2351_v0  ;;  %v1303_v57 = vpop.f32.mrf.mxu2 }
 0x1e5   :  { %2732 = vmatpush.bf16.msrb.mxu3 %v5259_v43  ;;  %2345 = vmatmul.bf16.vlgmr.msra.gmra.mxu2 %v2272_v42  ;;  %v5229_v43 = vld [vmem:[%s7217_s3 + $0x308] sm:$0xff]  ;;  %v1446_v0 = vadd.f32 %v6558_v3, %v1417_v24 }
 0x1e6   :  { %v981_v61 = vpop.f32.mrf.mxu0  ;;  %v5253_v42 = vld [vmem:[%s7217_s3 + $0x3c8] sm:$0xff] }
 0x1e7   :  { %2496 = vmatpush.bf16.msrb.mxu0 %v5234_v37  ;;  %2575 = vmatpush.bf16.msrb.mxu1 %v5242_v35  ;;  %v1376_v63 = vpop.f32.mrf.mxu3  ;;  %v1054_v5 = vpop.f32.mrf.mxu1  ;;  %v5245_v35 = vld [vmem:[%s7217_s3 + $0x388] sm:$0xff] }
 0x1e8   :  { %2654 = vmatpush.bf16.msrb.mxu2 %v5250_v11  ;;  %v1055_v58 = vadd.f32 %v1054_v5, %v981_v61  ;;  %v1377_v15 = vadd.f32 %v1376_v63, %v1303_v57  ;;  %v1447_v11 = vadd.f32 %v6558_v3, %v1418_v34  ;;  %v5228_v63 = vld [vmem:[%s7217_s3 + $0x300] sm:$0xff]  ;;  %v1471_v5 = vmax.f32 %v1446_v0, 0.0  ;;  %v7311_v0 = vld [vmem:[#allocation15_spill] sm:$0xff] }
 0x1e9   :  { %2733 = vmatpush.bf16.msrb.mxu3 %v5258_v38  ;;  %v5252_v61 = vld [vmem:[%s7217_s3 + $0x3c0] sm:$0xff] }
 0x1ea   :  { %v1096_v7 = vmax.f32 %v7306_v25, %v1055_v58  ;;  %v1419_v14 = vmax.f32 %v1095_v29, %v1377_v15  ;;  %v5266_v58 = vld [vmem:[%s7217_s3 + $0x430] sm:$0xff]  ;;  %v5263_v29 = vld [vmem:[%s7217_s3 + $0x418] sm:$0xff] }
 0x1eb   :  { %2497 = vmatpush.bf16.msrb.mxu0 %v5233_v62  ;;  %2576 = vmatpush.bf16.msrb.mxu1 %v5241_v27  ;;  %v5236_v62 = vld [vmem:[%s7217_s3 + $0x340] sm:$0xff]  ;;  %v5290_v15 = vld [vmem:[%s7217_s3 + $0x4f0] sm:$0xff] }
 0x1ec   :  { %2655 = vmatpush.bf16.msrb.mxu2 %v5249_v39  ;;  %v1305_v41 = vpop.f32.mrf.mxu2  ;;  %v1448_v38 = vadd.f32 %v6558_v3, %v1419_v14  ;;  %v5244_v27 = vld [vmem:[%s7217_s3 + $0x380] sm:$0xff]  ;;  %v1472_v39 = vmax.f32 %v1447_v11, 0.0 }
 0x1ed   :  { %2734 = vmatpush.bf16.msrb.mxu3 %v5257_v21  ;;  %v5267_v21 = vld [vmem:[%s7217_s3 + $0x438] sm:$0xff] }
 0x1ee   :  { %v6805_v1 = vpop.f32.mrf.mxu0  ;;  %v2509_v56 = vpack.c.bf16 %v1472_v39, %v1472_v39 }
 0x1ef   :  { %2498 = vmatpush.bf16.msrb.mxu0 %v5232_v45  ;;  %2577 = vmatpush.bf16.msrb.mxu1 %v5240_v17  ;;  %v1378_v46 = vpop.f32.mrf.mxu3  ;;  %v6807_v19 = vpop.f32.mrf.mxu1  ;;  %v5275_v45 = vld [vmem:[%s7217_s3 + $0x478] sm:$0xff]  ;;  %v1473_v17 = vmax.f32 %v1448_v38, 0.0 }
 0x1f0   :  { %2656 = vmatpush.bf16.msrb.mxu2 %v5248_v49  ;;  %v1379_v20 = vadd.f32 %v1378_v46, %v1305_v41  ;;  %v1058_v44 = vadd.f32 %v6807_v19, %v6805_v1  ;;  %v5279_v1 = vld [vmem:[%s7217_s3 + $0x498] sm:$0xff] }
 0x1f1   :  { %2735 = vmatpush.bf16.msrb.mxu3 %v5256_v31  ;;  %v5283_v31 = vld [vmem:[%s7217_s3 + $0x4b8] sm:$0xff] }
 0x1f2   :  { %v1420_v2 = vmax.f32 %v1096_v7, %v1379_v20  ;;  %v5265_v20 = vld [vmem:[%s7217_s3 + $0x428] sm:$0xff]  ;;  %v5287_v19 = vld [vmem:[%s7217_s3 + $0x4d8] sm:$0xff] }
 0x1f3   :  { %2499 = vmatpush.bf16.msrb.mxu0 %v5231_v52  ;;  %2578 = vmatpush.bf16.msrb.mxu1 %v5239_v53  ;;  %v2430_v53 = vpack.c.bf16 %v1471_v5, %v1471_v5  ;;  %v7317_v5 = vld [vmem:[#allocation19_spill] sm:$0xff] }
 0x1f4   :  { %2657 = vmatpush.bf16.msrb.mxu2 %v5247_v13  ;;  %v6843_v50 = vpop.f32.mrf.mxu2  ;;  %v1449_v57 = vadd.f32 %v6558_v3, %v1420_v2  ;;  %v5274_v13 = vld [vmem:[%s7217_s3 + $0x470] sm:$0xff] }
 0x1f5   :  { %2736 = vmatpush.bf16.msrb.mxu3 %v5255_v10  ;;  %v2588_v10 = vpack.c.bf16 %v1473_v17, %v1473_v17  ;;  %v5286_v17 = vld [vmem:[%s7217_s3 + $0x4d0] sm:$0xff] }
 0x1f6   :  { %v6853_v60 = vpop.f32.mrf.mxu0  ;;  %v1474_v49 = vmax.f32 %v1449_v57, 0.0  ;;  %v7313_v57 = vld [vmem:[#allocation16_spill] sm:$0xff] }
 0x1f7   :  { %2500 = vmatpush.bf16.msrb.mxu0 %v5230_v30  ;;  %2579 = vmatpush.bf16.msrb.mxu1 %v5238_v47  ;;  %v6845_v51 = vpop.f32.mrf.mxu3  ;;  %v6855_v37 = vpop.f32.mrf.mxu1  ;;  %v5272_v30 = vld [vmem:[%s7217_s3 + $0x460] sm:$0xff] }
 0x1f8   :  { %2658 = vmatpush.bf16.msrb.mxu2 %v5246_v12  ;;  %v2667_v54 = vpack.c.bf16 %v1474_v49, %v1474_v49  ;;  %v5280_v47 = vld [vmem:[%s7217_s3 + $0x4a0] sm:$0xff]  ;;  %v1060_v36 = vadd.f32 %v6855_v37, %v6853_v60  ;;  %v1382_v7 = vadd.f32 %v6845_v51, %v6843_v50  ;;  %v7308_v60 = vld [vmem:[#allocation13_spill] sm:$0xff]  ;;  %v5262_v50 = vld [vmem:[%s7217_s3 + $0x410] sm:$0xff] }
 0x1f9   :  { %2737 = vmatpush.bf16.msrb.mxu3 %v5254_v16  ;;  %v5270_v51 = vld [vmem:[%s7217_s3 + $0x450] sm:$0xff] }
 0x1fb   :  { %2501 = vmatpush.bf16.msrb.mxu0 %v5229_v43  ;;  %2580 = vmatpush.bf16.msrb.mxu1 %v5237_v28  ;;  %v7307_v28 = vld [vmem:[#allocation12_spill] sm:$0xff] }
 0x1fc   :  { %2659 = vmatpush.bf16.msrb.mxu2 %v5245_v35  ;;  %v1310_v48 = vpop.f32.mrf.mxu2  ;;  %v7309_v37 = vmax.f32 %v7307_v28, %v7308_v60  ;;  %v5305_v28 = vld [vmem:[%s7217_s3 + $0x568] sm:$0xff] }
 0x1fd   :  { %2738 = vmatpush.bf16.msrb.mxu3 %v5253_v42  ;;  %v7310_v42 = vld [vmem:[#allocation14_spill] sm:$0xff]  ;;  %v5313_v60 = vld [vmem:[%s7217_s3 + $0x5a8] sm:$0xff] }
 0x1fe   :  { %v989_v46 = vpop.f32.mrf.mxu0  ;;  %v1097_v35 = vmax.f32 %v7309_v37, %v1058_v44  ;;  %v7312_v11 = vmax.f32 %v7310_v42, %v7311_v0  ;;  %v5323_v44 = vld [vmem:[%s7217_s3 + $0x5f8] sm:$0xff]  ;;  %v5321_v37 = vld [vmem:[%s7217_s3 + $0x5e8] sm:$0xff]  ;;  %v5296_v0 = vld [vmem:[%s7217_s3 + $0x520] sm:$0xff] }
 0x1ff   :  { %2502 = vmatpush.bf16.msrb.mxu0 %v5228_v63  ;;  %2581 = vmatpush.bf16.msrb.mxu1 %v5236_v62  ;;  %v1383_v41 = vpop.f32.mrf.mxu3  ;;  %v1062_v52 = vpop.f32.mrf.mxu1  ;;  %v7314_v63 = vld [vmem:[#allocation17_spill] sm:$0xff] }
 0x200   :  { %2660 = vmatpush.bf16.msrb.mxu2 %v5244_v27  ;;  %v1063_v55 = vadd.f32 %v1062_v52, %v989_v46  ;;  %v1384_v12 = vadd.f32 %v1383_v41, %v1310_v48  ;;  %v1098_v38 = vmax.f32 %v7312_v11, %v1060_v36  ;;  %v7315_v62 = vmax.f32 %v7313_v57, %v7314_v63  ;;  %v5261_v41 = vld [vmem:[%s7217_s3 + $0x408] sm:$0xff]  ;;  %v5304_v11 = vld [vmem:[%s7217_s3 + $0x560] sm:$0xff] }
 0x201   :  { %2739 = vmatpush.bf16.msrb.mxu3 %v5252_v61  ;;  %v7316_v61 = vld [vmem:[#allocation18_spill] sm:$0xff]  ;;  %v1421_v49 = vmax.f32 %v1097_v35, %v1382_v7  ;;  %v5269_v46 = vld [vmem:[%s7217_s3 + $0x448] sm:$0xff] }
 0x202   :  { %2503 = vmatmul.bf16.vlgmr.msrb.gmra.mxu0 %v2430_v53  ;;  %2582 = vmatmul.bf16.vlgmr.msrb.gmra.mxu1 %v2509_v56  ;;  %v1099_v27 = vmax.f32 %v7315_v62, %v1063_v55  ;;  %v7318_v39 = vmax.f32 %v7316_v61, %v7317_v5  ;;  %v5277_v52 = vld [vmem:[%s7217_s3 + $0x488] sm:$0xff]  ;;  %v5295_v5 = vld [vmem:[%s7217_s3 + $0x518] sm:$0xff] }
 0x203   :  { %2811 = vmatpush.bf16.msra.mxu0 %v5267_v21  ;;  %2890 = vmatpush.bf16.msra.mxu1 %v5275_v45  ;;  %v5278_v45 = vld [vmem:[%s7217_s3 + $0x490] sm:$0xff]  ;;  %v5285_v53 = vld [vmem:[%s7217_s3 + $0x4c8] sm:$0xff]  ;;  %v1450_v56 = vadd.f32 %v6558_v3, %v1421_v49  ;;  %v7320_v49 = vld [vmem:[#allocation21_spill] sm:$0xff] }
 0x204   :  { %2969 = vmatpush.bf16.msra.mxu2 %v5283_v31  ;;  %2740 = vmatmul.bf16.vlgmr.msrb.gmra.mxu3 %v2667_v54  ;;  %v1313_v32 = vpop.f32.mrf.mxu2  ;;  %v1422_v31 = vmax.f32 %v1098_v38, %v1384_v12  ;;  %v5314_v12 = vld [vmem:[%s7217_s3 + $0x5b0] sm:$0xff]  ;;  %v5312_v38 = vld [vmem:[%s7217_s3 + $0x5a0] sm:$0xff] }
 0x205   :  { %3048 = vmatpush.bf16.msra.mxu3 %v5291_v23  ;;  %2661 = vmatmul.bf16.vlgmr.msrb.gmra.mxu2 %v2588_v10 }
 0x206   :  { %v991_v9 = vpop.f32.mrf.mxu0 }
 0x207   :  { %2812 = vmatpush.bf16.msra.mxu0 %v5266_v58  ;;  %2891 = vmatpush.bf16.msra.mxu1 %v5274_v13  ;;  %v1386_v8 = vpop.f32.mrf.mxu3  ;;  %v1064_v4 = vpop.f32.mrf.mxu1  ;;  %v1451_v58 = vadd.f32 %v6558_v3, %v1422_v31 }
 0x208   :  { %2970 = vmatpush.bf16.msra.mxu2 %v5282_v33  ;;  %v1065_v25 = vadd.f32 %v1064_v4, %v991_v9  ;;  %v1387_v34 = vadd.f32 %v1386_v8, %v1313_v32  ;;  %v5284_v32 = vld [vmem:[%s7217_s3 + $0x4c0] sm:$0xff]  ;;  %v1475_v8 = vmax.f32 %v1450_v56, 0.0  ;;  %v5299_v4 = vld [vmem:[%s7217_s3 + $0x538] sm:$0xff] }
 0x209   :  { %3049 = vmatpush.bf16.msra.mxu3 %v5290_v15  ;;  %v1476_v9 = vmax.f32 %v1451_v58, 0.0  ;;  %v7325_v58 = vld [vmem:[#allocation24_spill] sm:$0xff] }
 0x20a   :  { %v1100_v21 = vmax.f32 %v7318_v39, %v1065_v25  ;;  %v1423_v23 = vmax.f32 %v1099_v27, %v1387_v34  ;;  %v2746_v36 = vpack.c.bf16 %v1475_v8, %v1475_v8  ;;  %v5298_v25 = vld [vmem:[%s7217_s3 + $0x530] sm:$0xff]  ;;  %v5303_v39 = vld [vmem:[%s7217_s3 + $0x558] sm:$0xff] }
 0x20b   :  { %2813 = vmatpush.bf16.msra.mxu0 %v5265_v20  ;;  %2892 = vmatpush.bf16.msra.mxu1 %v5273_v26  ;;  %v5260_v26 = vld [vmem:[%s7217_s3 + $0x400] sm:$0xff] }
 0x20c   :  { %2971 = vmatpush.bf16.msra.mxu2 %v5281_v40  ;;  %v1315_v16 = vpop.f32.mrf.mxu2  ;;  %v1452_v54 = vadd.f32 %v6558_v3, %v1423_v23  ;;  %v5268_v40 = vld [vmem:[%s7217_s3 + $0x440] sm:$0xff] }
 0x20d   :  { %3050 = vmatpush.bf16.msra.mxu3 %v5289_v59  ;;  %v5276_v59 = vld [vmem:[%s7217_s3 + $0x480] sm:$0xff] }
 0x20e   :  { %v6945_v2 = vpop.f32.mrf.mxu0 }
 0x20f   :  { %2814 = vmatpush.bf16.msra.mxu0 %v5264_v18  ;;  %2893 = vmatpush.bf16.msra.mxu1 %v5272_v30  ;;  %v1388_v24 = vpop.f32.mrf.mxu3  ;;  %v6947_v43 = vpop.f32.mrf.mxu1  ;;  %v5307_v18 = vld [vmem:[%s7217_s3 + $0x578] sm:$0xff]  ;;  %v1477_v30 = vmax.f32 %v1452_v54, 0.0 }
 0x210   :  { %2972 = vmatpush.bf16.msra.mxu2 %v5280_v47  ;;  %v1389_v14 = vadd.f32 %v1388_v24, %v1315_v16  ;;  %v5322_v16 = vld [vmem:[%s7217_s3 + $0x5f0] sm:$0xff]  ;;  %v1068_v63 = vadd.f32 %v6947_v43, %v6945_v2  ;;  %v5311_v43 = vld [vmem:[%s7217_s3 + $0x598] sm:$0xff] }
 0x211   :  { %3051 = vmatpush.bf16.msra.mxu3 %v5288_v22  ;;  %v5315_v22 = vld [vmem:[%s7217_s3 + $0x5b8] sm:$0xff] }
 0x212   :  { %v1424_v48 = vmax.f32 %v1100_v21, %v1389_v14  ;;  %v5297_v14 = vld [vmem:[%s7217_s3 + $0x528] sm:$0xff] }
 0x213   :  { %2815 = vmatpush.bf16.msra.mxu0 %v5263_v29  ;;  %2894 = vmatpush.bf16.msra.mxu1 %v5271_v6  ;;  %v2825_v29 = vpack.c.bf16 %v1476_v9, %v1476_v9 }
 0x214   :  { %2973 = vmatpush.bf16.msra.mxu2 %v5279_v1  ;;  %v6987_v13 = vpop.f32.mrf.mxu2  ;;  %v1453_v33 = vadd.f32 %v6558_v3, %v1424_v48  ;;  %v5306_v1 = vld [vmem:[%s7217_s3 + $0x570] sm:$0xff] }
 0x215   :  { %3052 = vmatpush.bf16.msra.mxu3 %v5287_v19  ;;  %v2904_v19 = vpack.c.bf16 %v1477_v30, %v1477_v30  ;;  %v5318_v30 = vld [vmem:[%s7217_s3 + $0x5d0] sm:$0xff] }
 0x216   :  { %v6993_v15 = vpop.f32.mrf.mxu0  ;;  %v1478_v47 = vmax.f32 %v1453_v33, 0.0 }
 0x217   :  { %2816 = vmatpush.bf16.msra.mxu0 %v5262_v50  ;;  %2895 = vmatpush.bf16.msra.mxu1 %v5270_v51  ;;  %v6989_v10 = vpop.f32.mrf.mxu3  ;;  %v1069_v20 = vpop.f32.mrf.mxu1  ;;  %v5320_v50 = vld [vmem:[%s7217_s3 + $0x5e0] sm:$0xff] }
 0x218   :  { %2974 = vmatpush.bf16.msra.mxu2 %v5278_v45  ;;  %v2983_v7 = vpack.c.bf16 %v1478_v47, %v1478_v47  ;;  %v1070_v62 = vadd.f32 %v1069_v20, %v6993_v15  ;;  %v1392_v27 = vadd.f32 %v6989_v10, %v6987_v13  ;;  %v5319_v45 = vld [vmem:[%s7217_s3 + $0x5d8] sm:$0xff]  ;;  %v5294_v20 = vld [vmem:[%s7217_s3 + $0x510] sm:$0xff] }
 0x219   :  { %3053 = vmatpush.bf16.msra.mxu3 %v5286_v17  ;;  %v7319_v17 = vld [vmem:[#allocation20_spill] sm:$0xff]  ;;  %v7326_v13 = vld [vmem:[#allocation25_spill] sm:$0xff] }
 0x21a   :  { %v7321_v31 = vmax.f32 %v7319_v17, %v7320_v49  ;;  %v7327_v10 = vmax.f32 %v7325_v58, %v7326_v13 }
 0x21b   :  { %2817 = vmatpush.bf16.msra.mxu0 %v5261_v41  ;;  %2896 = vmatpush.bf16.msra.mxu1 %v5269_v46  ;;  %v7322_v41 = vld [vmem:[#allocation22_spill] sm:$0xff]  ;;  %v7323_v46 = vld [vmem:[#allocation23_spill] sm:$0xff] }
 0x21c   :  { %2975 = vmatpush.bf16.msra.mxu2 %v5277_v52  ;;  %v1320_v6 = vpop.f32.mrf.mxu2  ;;  %v1101_v23 = vmax.f32 %v7321_v31, %v1068_v63  ;;  %v7324_v52 = vmax.f32 %v7322_v41, %v7323_v46  ;;  %v5327_v41 = vld [vmem:[%s7217_s3 + $0x618] sm:$0xff] }
 0x21d   :  { %3054 = vmatpush.bf16.msra.mxu3 %v5285_v53 }
 0x21e   :  { %v999_v24 = vpop.f32.mrf.mxu0  ;;  %v1102_v53 = vmax.f32 %v7324_v52, %v1070_v62  ;;  %v1425_v56 = vmax.f32 %v1101_v23, %v1392_v27  ;;  %v5330_v62 = vld [vmem:[%s7217_s3 + $0x630] sm:$0xff] }
 0x21f   :  { %2818 = vmatpush.bf16.msra.mxu0 %v5260_v26  ;;  %2897 = vmatpush.bf16.msra.mxu1 %v5268_v40  ;;  %v1393_v55 = vpop.f32.mrf.mxu3  ;;  %v1072_v34 = vpop.f32.mrf.mxu1  ;;  %v5302_v26 = vld [vmem:[%s7217_s3 + $0x550] sm:$0xff] }
 0x220   :  { %2976 = vmatpush.bf16.msra.mxu2 %v5276_v59  ;;  %v1073_v61 = vadd.f32 %v1072_v34, %v999_v24  ;;  %v1394_v21 = vadd.f32 %v1393_v55, %v1320_v6  ;;  %v7328_v59 = vld [vmem:[#allocation26_spill] sm:$0xff]  ;;  %v5301_v6 = vld [vmem:[%s7217_s3 + $0x548] sm:$0xff]  ;;  %v1454_v55 = vadd.f32 %v6558_v3, %v1425_v56  ;;  %v7332_v56 = vld [vmem:[#allocation29_spill] sm:$0xff] }
 0x221   :  { %3055 = vmatpush.bf16.msra.mxu3 %v5284_v32  ;;  %v7329_v32 = vld [vmem:[#allocation27_spill] sm:$0xff] }
 0x222   :  { %2819 = vmatmul.bf16.vlgmr.msra.gmra.mxu0 %v2746_v36  ;;  %2898 = vmatmul.bf16.vlgmr.msra.gmra.mxu1 %v2825_v29  ;;  %v1103_v54 = vmax.f32 %v7327_v10, %v1073_v61  ;;  %v1426_v40 = vmax.f32 %v1102_v53, %v1394_v21  ;;  %v7330_v8 = vmax.f32 %v7328_v59, %v7329_v32  ;;  %v5293_v29 = vld [vmem:[%s7217_s3 + $0x508] sm:$0xff]  ;;  %v7331_v53 = vld [vmem:[#allocation28_spill] sm:$0xff]  ;;  %v5352_v32 = vld [vmem:[%s7216_s2] ss:$0 sm:$0xff] }
 0x223   :  { %3127 = vmatpush.bf16.msrb.mxu0 %v5299_v4  ;;  %3206 = vmatpush.bf16.msrb.mxu1 %v5307_v18  ;;  %v5310_v18 = vld [vmem:[%s7217_s3 + $0x590] sm:$0xff]  ;;  %v5329_v21 = vld [vmem:[%s7217_s3 + $0x628] sm:$0xff]  ;;  %v7333_v58 = vmax.f32 %v7331_v53, %v7332_v56 }
 0x224   :  { %3285 = vmatpush.bf16.msrb.mxu2 %v5315_v22  ;;  %3056 = vmatmul.bf16.vlgmr.msra.gmra.mxu3 %v2983_v7  ;;  %v1323_v35 = vpop.f32.mrf.mxu2  ;;  %v5317_v7 = vld [vmem:[%s7217_s3 + $0x5c8] sm:$0xff]  ;;  %v5326_v10 = vld [vmem:[%s7217_s3 + $0x610] sm:$0xff] }
 0x225   :  { %3364 = vmatpush.bf16.msrb.mxu3 %v5323_v44  ;;  %2977 = vmatmul.bf16.vlgmr.msra.gmra.mxu2 %v2904_v19  ;;  %v5309_v19 = vld [vmem:[%s7217_s3 + $0x588] sm:$0xff] }
 0x226   :  { %v1001_v51 = vpop.f32.mrf.mxu0  ;;  %v5333_v53 = vld [vmem:[%s7220_s5 + $0x8] sm:$0xff] }
 0x227   :  { %3128 = vmatpush.bf16.msrb.mxu0 %v5298_v25  ;;  %3207 = vmatpush.bf16.msrb.mxu1 %v5306_v1  ;;  %v1396_v42 = vpop.f32.mrf.mxu3  ;;  %v1074_v57 = vpop.f32.mrf.mxu1  ;;  %v1455_v25 = vadd.f32 %v6558_v3, %v1426_v40  ;;  %v5325_v40 = vld [vmem:[%s7217_s3 + $0x608] sm:$0xff] }
 0x228   :  { %3286 = vmatpush.bf16.msrb.mxu2 %v5314_v12  ;;  %v1075_v2 = vadd.f32 %v1074_v57, %v1001_v51  ;;  %v1397_v48 = vadd.f32 %v1396_v42, %v1323_v35  ;;  %v5316_v35 = vld [vmem:[%s7217_s3 + $0x5c0] sm:$0xff] }
 0x229   :  { %3365 = vmatpush.bf16.msrb.mxu3 %v5322_v16 }
 0x22a   :  { %v1104_v9 = vmax.f32 %v7330_v8, %v1075_v2  ;;  %v1427_v44 = vmax.f32 %v1103_v54, %v1397_v48 }
 0x22b   :  { %3129 = vmatpush.bf16.msrb.mxu0 %v5297_v14  ;;  %3208 = vmatpush.bf16.msrb.mxu1 %v5305_v28  ;;  %v5292_v14 = vld [vmem:[%s7217_s3 + $0x500] sm:$0xff] }
 0x22c   :  { %3287 = vmatpush.bf16.msrb.mxu2 %v5313_v60  ;;  %v1325_v33 = vpop.f32.mrf.mxu2  ;;  %v1456_v12 = vadd.f32 %v6558_v3, %v1427_v44  ;;  %v5300_v28 = vld [vmem:[%s7217_s3 + $0x540] sm:$0xff]  ;;  %v1479_v60 = vmax.f32 %v1454_v55, 0.0 }
 0x22d   :  { %3366 = vmatpush.bf16.msrb.mxu3 %v5321_v37  ;;  %v1480_v37 = vmax.f32 %v1455_v25, 0.0 }
 0x22e   :  { %v1004_v47 = vpop.f32.mrf.mxu0  ;;  %v3062_v51 = vpack.c.bf16 %v1479_v60, %v1479_v60 }
 0x22f   :  { %3130 = vmatpush.bf16.msrb.mxu0 %v5296_v0  ;;  %3209 = vmatpush.bf16.msrb.mxu1 %v5304_v11  ;;  %v1398_v15 = vpop.f32.mrf.mxu3  ;;  %v1077_v22 = vpop.f32.mrf.mxu1  ;;  %v1481_v11 = vmax.f32 %v1456_v12, 0.0  ;;  %v3141_v57 = vpack.c.bf16 %v1480_v37, %v1480_v37 }
 0x230   :  { %3288 = vmatpush.bf16.msrb.mxu2 %v5312_v38  ;;  %v1399_v4 = vadd.f32 %v1398_v15, %v1325_v33  ;;  %v5331_v38 = vld [vmem:[%s7217_s3 + $0x638] sm:$0xff]  ;;  %v1078_v49 = vadd.f32 %v1077_v22, %v1004_v47 }
 0x231   :  { %3367 = vmatpush.bf16.msrb.mxu3 %v5320_v50  ;;  %v3220_v63 = vpack.c.bf16 %v1481_v11, %v1481_v11 }
 0x232   :  { %v1428_v36 = vmax.f32 %v1104_v9, %v1399_v4  ;;  %v1105_v13 = vmax.f32 %v7333_v58, %v1078_v49  ;;  %v5324_v4 = vld [vmem:[%s7217_s3 + $0x600] sm:$0xff] }
 0x233   :  { %3131 = vmatpush.bf16.msrb.mxu0 %v5295_v5  ;;  %3210 = vmatpush.bf16.msrb.mxu1 %v5303_v39 }
 0x234   :  { %3289 = vmatpush.bf16.msrb.mxu2 %v5311_v43  ;;  %v1457_v1 = vadd.f32 %v6558_v3, %v1428_v36  ;;  %v1328_v24 = vpop.f32.mrf.mxu2  ;;  %v5308_v3 = vld [vmem:[%s7217_s3 + $0x580] sm:$0xff] }
 0x235   :  { %3368 = vmatpush.bf16.msrb.mxu3 %v5319_v45  ;;  %v5328_v43 = vld [vmem:[%s7217_s3 + $0x620] sm:$0xff] }
 0x236   :  { %v1482_v16 = vmax.f32 %v1457_v1, 0.0  ;;  %v1006_v42 = vpop.f32.mrf.mxu0 }
 0x237   :  { %3132 = vmatpush.bf16.msrb.mxu0 %v5294_v20  ;;  %3211 = vmatpush.bf16.msrb.mxu1 %v5302_v26  ;;  %v1401_v34 = vpop.f32.mrf.mxu3  ;;  %v1079_v0 = vpop.f32.mrf.mxu1 }
 0x238   :  { %3290 = vmatpush.bf16.msrb.mxu2 %v5310_v18  ;;  %v3299_v50 = vpack.c.bf16 %v1482_v16, %v1482_v16  ;;  %v1402_v46 = vadd.f32 %v1401_v34, %v1328_v24 }
 0x239   :  { %3369 = vmatpush.bf16.msrb.mxu3 %v5318_v30 }
 0x23a   :  { %v1429_v54 = vmax.f32 %v1105_v13, %v1402_v46  ;;  %v5335_v46 = vld [vmem:[%s7220_s5 + $0x18] sm:$0xff]  ;;  %v5332_v13 = vld [vmem:[%s7220_s5] sm:$0xff] }
 0x23b   :  { %3133 = vmatpush.bf16.msrb.mxu0 %v5293_v29  ;;  %3212 = vmatpush.bf16.msrb.mxu1 %v5301_v6 }
 0x23c   :  { %3291 = vmatpush.bf16.msrb.mxu2 %v5309_v19  ;;  %v1330_v27 = vpop.f32.mrf.mxu2  ;;  %v1458_v8 = vadd.f32 %v5352_v32, %v1429_v54 }
 0x23d   :  { %3370 = vmatpush.bf16.msrb.mxu3 %v5317_v7 }
 0x23e   :  { %v1575_v5 = vpop.f32.mrf.mxu0  ;;  %v1483_v18 = vmax.f32 %v1458_v8, 0.0  ;;  %v5345_v8 = vld [vmem:[%s7221_s7 + $0x28] sm:$0xff] }
 0x23f   :  { %3134 = vmatpush.bf16.msrb.mxu0 %v5292_v14  ;;  %3213 = vmatpush.bf16.msrb.mxu1 %v5300_v28  ;;  %v1403_v61 = vpop.f32.mrf.mxu3  ;;  %v1636_v39 = vpop.f32.mrf.mxu1 }
 0x240   :  { %3292 = vmatpush.bf16.msrb.mxu2 %v5308_v3  ;;  %v1637_v2 = vadd.f32 %v1636_v39, %v1575_v5  ;;  %v3378_v29 = vpack.c.bf16 %v1483_v18, %v1483_v18 }
 0x241   :  { %3371 = vmatpush.bf16.msrb.mxu3 %v5316_v35 }
 0x242   :  { %3135 = vmatmul.bf16.vlgmr.msrb.gmra.mxu0 %v3062_v51  ;;  %3214 = vmatmul.bf16.vlgmr.msrb.gmra.mxu1 %v3141_v57 }
 0x243   :  { %3443 = vmatpush.bf16.msra.mxu0 %v5331_v38  ;;  %3293 = vmatmul.bf16.vlgmr.msrb.gmra.mxu2 %v3220_v63 }
 0x244   :  { %3372 = vmatmul.bf16.vlgmr.msrb.gmra.mxu3 %v3299_v50  ;;  %v1714_v45 = vpop.f32.mrf.mxu2 }
 0x245   :  { %v1718_v31 = vadd.f32 %v1714_v45, %v1637_v2  ;;  %v5338_v45 = vld [vmem:[%s7220_s5 + $0x30] sm:$0xff] }
 0x246   :  { %v1577_v23 = vpop.f32.mrf.mxu0 }
 0x247   :  { %3444 = vmatpush.bf16.msra.mxu0 %v5330_v62  ;;  %v1793_v17 = vpop.f32.mrf.mxu3  ;;  %v1638_v48 = vpop.f32.mrf.mxu1  ;;  %v5336_v23 = vld [vmem:[%s7220_s5 + $0x20] sm:$0xff] }
 0x248   :  { %v1797_v52 = vadd.f32 %v1793_v17, %v1718_v31  ;;  %v5337_v31 = vld [vmem:[%s7220_s5 + $0x28] sm:$0xff] }
 0x24b   :  { %3445 = vmatpush.bf16.msra.mxu0 %v5329_v21  ;;  %v5339_v21 = vld [vmem:[%s7220_s5 + $0x38] sm:$0xff] }
 0x24c   :  { %v1716_v33 = vpop.f32.mrf.mxu2  ;;  %3532 = vmatpush.bf16.msra.mxu1 %v5339_v21 }
 0x24e   :  { %v1872_v20 = vpop.f32.mrf.mxu0 }
 0x24f   :  { %3446 = vmatpush.bf16.msra.mxu0 %v5328_v43  ;;  %v1795_v15 = vpop.f32.mrf.mxu3  ;;  %v1951_v26 = vpop.f32.mrf.mxu1  ;;  %v1876_v59 = vadd.f32 %v1872_v20, %v1797_v52  ;;  %v5334_v52 = vld [vmem:[%s7220_s5 + $0x10] sm:$0xff] }
 0x250   :  { %3533 = vmatpush.bf16.msra.mxu1 %v5338_v45  ;;  %v5347_v15 = vld [vmem:[%s7221_s7 + $0x38] sm:$0xff] }
 0x251   :  { %v1955_v9 = vadd.f32 %v1951_v26, %v1876_v59  ;;  %3615 = vmatpush.bf16.msra.mxu2 %v5347_v15 }
 0x253   :  { %3447 = vmatpush.bf16.msra.mxu0 %v5327_v41 }
 0x254   :  { %3534 = vmatpush.bf16.msra.mxu1 %v5337_v31 }
 0x255   :  { %v2030_v30 = vpop.f32.mrf.mxu2 }
 0x256   :  { %v2034_v22 = vadd.f32 %v2030_v30, %v1955_v9  ;;  %v1874_v44 = vpop.f32.mrf.mxu0  ;;  %v5344_v30 = vld [vmem:[%s7221_s7 + $0x20] sm:$0xff] }
 0x257   :  { %3448 = vmatpush.bf16.msra.mxu0 %v5326_v10  ;;  %v2109_v47 = vpop.f32.mrf.mxu3  ;;  %v1953_v36 = vpop.f32.mrf.mxu1 }
 0x258   :  { %v2113_v6 = vadd.f32 %v2109_v47, %v2034_v22  ;;  %3535 = vmatpush.bf16.msra.mxu1 %v5336_v23  ;;  %v5343_v22 = vld [vmem:[%s7221_s7 + $0x18] sm:$0xff] }
 0x25b   :  { %3449 = vmatpush.bf16.msra.mxu0 %v5325_v40  ;;  %v5346_v40 = vld [vmem:[%s7221_s7 + $0x30] sm:$0xff] }
 0x25c   :  { %3536 = vmatpush.bf16.msra.mxu1 %v5335_v46  ;;  %3616 = vmatpush.bf16.msra.mxu2 %v5346_v40 }
 0x25d   :  { %v2032_v55 = vpop.f32.mrf.mxu2 }
 0x25e   :  { %v5349_v55 = vld [vmem:[%s7218_s4] ss:$0 sm:$0xff] }
 0x25f   :  { %3450 = vmatpush.bf16.msra.mxu0 %v5324_v4  ;;  %v2111_v25 = vpop.f32.mrf.mxu3  ;;  %v2188_v1 = vpop.f32.mrf.mxu0 }
 0x260   :  { %v2267_v19 = vpop.f32.mrf.mxu1  ;;  %v2192_v7 = vadd.f32 %v2188_v1, %v2113_v6  ;;  %3537 = vmatpush.bf16.msra.mxu1 %v5334_v52  ;;  %3617 = vmatpush.bf16.msra.mxu2 %v5345_v8 }
 0x262   :  { %3451 = vmatmul.bf16.vlgmr.msra.gmra.mxu0 %v3378_v29  ;;  %v2271_v12 = vadd.f32 %v2267_v19, %v2192_v7  ;;  %v5342_v29 = vld [vmem:[%s7221_s7 + $0x10] sm:$0xff] }
 0x264   :  { %3538 = vmatpush.bf16.msra.mxu1 %v5333_v53  ;;  %3618 = vmatpush.bf16.msra.mxu2 %v5344_v30 }
 0x267   :  { %v2425_v24 = vpop.f32.mrf.mxu3  ;;  %v2190_v14 = vpop.f32.mrf.mxu0 }
 0x268   :  { %v2346_v16 = vpop.f32.mrf.mxu2  ;;  %v2269_v28 = vpop.f32.mrf.mxu1  ;;  %3539 = vmatpush.bf16.msra.mxu1 %v5332_v13  ;;  %3619 = vmatpush.bf16.msra.mxu2 %v5343_v22  ;;  %v5350_v14 = vld [vmem:[%s7219_s6] ss:$0 sm:$0xff] }
 0x269   :  { %v2350_v34 = vadd.f32 %v2346_v16, %v2271_v12 }
 0x26b   :  { %v2429_v60 = vadd.f32 %v2425_v24, %v2350_v34  ;;  %v5341_v24 = vld [vmem:[%s7221_s7 + $0x8] sm:$0xff]  ;;  %v5340_v34 = vld [vmem:[%s7221_s7] sm:$0xff] }
 0x26c   :  { %3620 = vmatpush.bf16.msra.mxu2 %v5342_v29 }
 0x26f   :  { %v2427_v3 = vpop.f32.mrf.mxu3 }
 0x270   :  { %v2348_v37 = vpop.f32.mrf.mxu2  ;;  %3621 = vmatpush.bf16.msra.mxu2 %v5341_v24 }
 0x274   :  { %3622 = vmatpush.bf16.msra.mxu2 %v5340_v34 }
 0x27f   :  { %v2504_v35 = vpop.f32.mrf.mxu0  ;;  %v2583_v42 = vpop.f32.mrf.mxu1 }
 0x280   :  { %v2508_v0 = vadd.f32 %v2504_v35, %v2429_v60 }
 0x282   :  { %v2587_v11 = vadd.f32 %v2583_v42, %v2508_v0  ;;  %v5351_v42 = vld [vmem:[%s7222_s8] ss:$0 sm:$0xff] }
 0x287   :  { %v2741_v50 = vpop.f32.mrf.mxu3  ;;  %v2506_v57 = vpop.f32.mrf.mxu0 }
 0x288   :  { %v2662_v38 = vpop.f32.mrf.mxu2  ;;  %v2585_v63 = vpop.f32.mrf.mxu1 }
 0x289   :  { %v2666_v51 = vadd.f32 %v2662_v38, %v2587_v11 }
 0x28b   :  { %v2745_v62 = vadd.f32 %v2741_v50, %v2666_v51 }
 0x28f   :  { %v2743_v61 = vpop.f32.mrf.mxu3 }
 0x290   :  { %v2664_v27 = vpop.f32.mrf.mxu2 }
 0x29f   :  { %v2820_v5 = vpop.f32.mrf.mxu0  ;;  %v2899_v39 = vpop.f32.mrf.mxu1 }
 0x2a0   :  { %v2824_v10 = vadd.f32 %v2820_v5, %v2745_v62 }
 0x2a2   :  { %v2903_v59 = vadd.f32 %v2899_v39, %v2824_v10 }
 0x2a7   :  { %v3057_v43 = vpop.f32.mrf.mxu3  ;;  %v2822_v17 = vpop.f32.mrf.mxu0 }
 0x2a8   :  { %v2978_v2 = vpop.f32.mrf.mxu2  ;;  %v2901_v49 = vpop.f32.mrf.mxu1 }
 0x2a9   :  { %v2982_v32 = vadd.f32 %v2978_v2, %v2903_v59 }
 0x2ab   :  { %v3061_v18 = vadd.f32 %v3057_v43, %v2982_v32 }
 0x2af   :  { %v3059_v41 = vpop.f32.mrf.mxu3 }
 0x2b0   :  { %v2980_v48 = vpop.f32.mrf.mxu2 }
 0x2bf   :  { %v3136_v56 = vpop.f32.mrf.mxu0  ;;  %v3215_v58 = vpop.f32.mrf.mxu1 }
 0x2c0   :  { %v3140_v47 = vadd.f32 %v3136_v56, %v3061_v18 }
 0x2c2   :  { %v3219_v44 = vadd.f32 %v3215_v58, %v3140_v47 }
 0x2c6   :  { %v3294_v54 = vpop.f32.mrf.mxu2 }
 0x2c7   :  { %v3373_v33 = vpop.f32.mrf.mxu3  ;;  %v3138_v20 = vpop.f32.mrf.mxu0  ;;  %v3298_v36 = vadd.f32 %v3294_v54, %v3219_v44 }
 0x2c8   :  { %v3217_v26 = vpop.f32.mrf.mxu1 }
 0x2c9   :  { %v3377_v6 = vadd.f32 %v3373_v33, %v3298_v36 }
 0x2ce   :  { %v3296_v9 = vpop.f32.mrf.mxu2 }
 0x2cf   :  { %v3375_v4 = vpop.f32.mrf.mxu3 }
 0x2df   :  { %v3452_v25 = vpop.f32.mrf.mxu0 }
 0x2e0   :  { %v3456_v1 = vadd.f32 %v3452_v25, %v3377_v6 }
 0x2e2   :  { %v3461_v19 = vadd.f32 %v5349_v55, %v3456_v1 }
 0x2e4   :  { %v3462_v7 = vmax.f32 %v3461_v19, 0.0 }
 0x2e6   :  { %v3463_v12 = vpack.c.bf16 %v3462_v7, %v3462_v7 }
 0x2e7   :  { %v3454_v16 = vpop.f32.mrf.mxu0 }
 0x2e8   :  { %3540 = vmatmul.bf16.vlgmr.msra.gmra.mxu1 %v3463_v12 }
 0x365   :  { %v3541_v28 = vpop.f32.mrf.mxu1 }
 0x366   :  { %v3542_v60 = vadd.f32 %v5350_v14, %v3541_v28 }
 0x368   :  { %v3545_v37 = vmax.f32 %v3542_v60, 0.0 }
 0x36a   :  { %v3546_v3 = vpack.c.bf16 %v3545_v37, %v3545_v37 }
 0x36c   :  { %3623 = vmatmul.bf16.vlgmr.msra.gmra.mxu2 %v3546_v3 }
 0x36d   :  { %v3543_v35 = vpop.f32.mrf.mxu1 }
 0x3ef   :  { %v3624_v0 = vpop.f32.mrf.mxu2 }
 0x3f0   :  { %v3625_v11 = vadd.f32 %v5351_v42, %v3624_v0 }
 0x3f2   :  { %3628 = vst [vmem:[%s7223_s9] sm:$0xff] %v3625_v11 }
 0x3f7   :  { %v3626_v38 = vpop.f32.mrf.mxu2 }

</bundles_post_ra>
